<compile_context>
chip_gen: v7x
topology: tpu7x:2x2x1
jax: 0.10.0
libtpu: 0.0.40
codegen_flags: <defaults>
</compile_context>

<pallas_src>
import functools

import numpy as np

import jax
import jax.numpy as jnp
from jax.experimental import pallas as pl
from jax.experimental.pallas import tpu as pltpu


_SYS_SEP = 1.0e4  # system-index separation folded into the 4th coordinate (>> cutoff)


def _pair_mask_band_kernel(row_tile_ref, col_tile_ref,     # scalar prefetch (SMEM)
                           pos_r_ref, pos_cT_ref,          # (TILE,4) / (4,TILE) f32
                           mask_ref,                       # (TILE,TILE) int8 out
                           *, cutoff2, tile):
    b = pl.program_id(0)

    pos_r = pos_r_ref[...]          # (TILE, 4)
    pos_cT = pos_cT_ref[...]        # (4, TILE)

    # Fused per-coordinate squared distance on the VPU.  The 4th coordinate is
    # sys_i * _SYS_SEP: cross-system pairs pick up a >= _SYS_SEP^2 term and fail
    # the cutoff test; same-system pairs add exactly 0 (integers are exact in f32).
    dx = pos_r[:, 0:1] - pos_cT[0:1, :]
    dy = pos_r[:, 1:2] - pos_cT[1:2, :]
    dz = pos_r[:, 2:3] - pos_cT[2:3, :]
    ds = pos_r[:, 3:4] - pos_cT[3:4, :]
    within = (dx * dx + dy * dy + dz * dz + ds * ds) < jnp.float32(cutoff2)

    is_diag = row_tile_ref[b] == col_tile_ref[b]

    @pl.when(is_diag)
    def _diag():
        # Self pairs only exist on diagonal tiles; local iota compare, no
        # global i*tile / j*tile adds.
        r = jax.lax.broadcasted_iota(jnp.int32, (tile, tile), 0)
        c = jax.lax.broadcasted_iota(jnp.int32, (tile, tile), 1)
        mask_ref[...] = (within & (r != c)).astype(jnp.int8)

    @pl.when(jnp.logical_not(is_diag))
    def _offdiag():
        mask_ref[...] = within.astype(jnp.int8)


def _pick_tile_and_vmem():
    """Generation-specific tile / VMEM limit: 1024 on 128-MiB parts, 512 on v7x."""
    try:
        kind = jax.devices()[0].device_kind.lower()
    except Exception:
        kind = ""
    if ("v5" in kind) or ("v6" in kind):
        return 1024, 96 * 1024 * 1024
    # v7x has only 64 MiB VMEM per TensorCore; also the safe default elsewhere.
    return 512, 48 * 1024 * 1024


def neighbor_pairs(positions, sys_i, cutoff, *, tile=None):
    """Return (idx_i, idx_j): ordered same-system pairs with distance < cutoff."""
    n = positions.shape[0]
    if n == 0:
        z = jnp.zeros((0,), jnp.int32)
        return z, z

    default_tile, vmem_bytes = _pick_tile_and_vmem()
    if tile is None:
        tile = default_tile

    n_pad = max(((n + tile - 1) // tile) * tile, tile)
    pad = n_pad - n
    nt = n_pad // tile

    sys_f = jnp.reshape(sys_i, (-1,)).astype(jnp.float32)
    pos4 = jnp.concatenate(
        [positions.astype(jnp.float32), sys_f[:, None] * jnp.float32(_SYS_SEP)],
        axis=1)                                                  # (n, 4)
    if pad:
        # Sentinel atoms: >= 1e6 apart from everything (incl. each other) and a
        # "system" coordinate no real atom has -> they never form pairs.
        sx = (1.0e6 * (jnp.arange(pad, dtype=jnp.float32) + 1.0))[:, None]
        sentinel = jnp.concatenate(
            [sx,
             jnp.zeros((pad, 2), jnp.float32),
             jnp.full((pad, 1), -_SYS_SEP, jnp.float32)], axis=1)
        pos4 = jnp.concatenate([pos4, sentinel], axis=0)

    pos_r = pos4                   # (n_pad, 4)  row-side positions
    pos_cT = pos4.T                # (4, n_pad)  col-side positions (lane-dense)

    # ---- host-side band construction (conservative, tight ranges) ----
    sys_np = np.asarray(sys_i).reshape(-1)
    smin = np.full((nt,), np.iinfo(np.int64).max, np.int64)
    smax = np.full((nt,), np.iinfo(np.int64).min, np.int64)
    for t in range(nt):
        lo, hi = t * tile, min((t + 1) * tile, n)
        if lo < hi:
            smin[t] = sys_np[lo:hi].min()
            smax[t] = sys_np[lo:hi].max()
    overlap = (smin[:, None] <= smax[None, :]) & (smin[None, :] <= smax[:, None])
    rows_np, cols_np = np.nonzero(overlap)          # fully padded tiles never appear
    n_band = int(rows_np.shape[0])
    row_ids = jnp.asarray(rows_np.astype(np.int32))
    col_ids = jnp.asarray(cols_np.astype(np.int32))

    kernel = functools.partial(_pair_mask_band_kernel,
                               cutoff2=float(cutoff) ** 2, tile=tile)

    grid_spec = pltpu.PrefetchScalarGridSpec(
        num_scalar_prefetch=2,
        grid=(n_band,),
        in_specs=[
            pl.BlockSpec((tile, 4), lambda b, rid, cid: (rid[b], 0)),
            pl.BlockSpec((4, tile), lambda b, rid, cid: (0, cid[b])),
        ],
        out_specs=pl.BlockSpec((None, tile, tile), lambda b, rid, cid: (b, 0, 0)),
    )

    mask_band = pl.pallas_call(
        kernel,
        out_shape=jax.ShapeDtypeStruct((n_band, tile, tile), jnp.int8),
        grid_spec=grid_spec,
        compiler_params=pltpu.CompilerParams(
            dimension_semantics=("parallel",),
            vmem_limit_bytes=vmem_bytes,
        ),
    )(row_ids, col_ids, pos_r, pos_cT)

    # Glue: extract pairs from the compacted band (dynamic count -> eager).
    bb, li, lj = jnp.nonzero(mask_band)
    idx_i = (row_ids[bb] * tile + li).astype(jnp.int32)
    idx_j = (col_ids[bb] * tile + lj).astype(jnp.int32)
    # Canonical row-major (by i, then j) ordering, like nonzero on a dense mask.
    order = jnp.lexsort((idx_j, idx_i))
    return idx_i[order], idx_j[order]


def neighbor_list_forward(coll_batch, cutoff):
    """JAX re-implementation of NeighborList.forward semantics."""
    atomic_numbers = coll_batch['atomic_numbers']
    positions = coll_batch['positions']
    cell = coll_batch['cell']
    pbc = coll_batch['pbc']

    if coll_batch.get('sys_i') is None:
        sys_i = jnp.zeros_like(atomic_numbers)
    else:
        sys_i = coll_batch['sys_i']

    atoms_number = coll_batch['atoms_number']
    if atoms_number.shape:
        atomic_numbers_cumsum = jnp.concatenate(
            [jnp.zeros((1,), dtype=sys_i.dtype),
             jnp.cumsum(atoms_number[:-1]).astype(sys_i.dtype)], axis=0)
    else:
        atomic_numbers_cumsum = jnp.zeros((1,), dtype=sys_i.dtype)
        sys_i = jnp.zeros_like(atomic_numbers)
        cell = cell[None, ...]
        pbc = pbc[None, ...]
    del atomic_numbers_cumsum  # bookkeeping only; pair indices are global here

    # ---- hot path: Pallas band kernel ----
    idx_i, idx_j = neighbor_pairs(positions, sys_i, cutoff)
    idx_seg = sys_i[idx_i]

    coll_batch['idx_i'] = idx_i
    coll_batch['idx_j'] = idx_j
    # TODO(synk): PBC image offsets (pbc_offset) not implemented — non-periodic
    # systems only, matching the base-class path where pbc_offset is None.
    coll_batch['sys_ij'] = idx_seg
    return coll_batch


if __name__ == "__main__":
    key = jax.random.PRNGKey(0)
    cutoff = 2.0

    # Two systems, 4 atoms each -> N = 8 atoms total.
    n_sys, atoms_per_sys = 2, 4
    n_atoms = n_sys * atoms_per_sys

    k1, k2 = jax.random.split(key)
    positions = jax.random.uniform(k1, (n_atoms, 3), jnp.float32, 0.0, 3.0)
    atomic_numbers = jax.random.randint(k2, (n_atoms,), 1, 10, dtype=jnp.int32)
    sys_i = jnp.repeat(jnp.arange(n_sys, dtype=jnp.int32), atoms_per_sys)
    atoms_number = jnp.full((n_sys,), atoms_per_sys, dtype=jnp.int32)
    cell = jnp.zeros((n_sys, 3, 3), jnp.float32)
    pbc = jnp.zeros((n_sys, 3), jnp.bool_)

    coll_batch = {
        'atomic_numbers': atomic_numbers,
        'positions': positions,
        'cell': cell,
        'pbc': pbc,
        'sys_i': sys_i,
        'atoms_number': atoms_number,
    }

    out = neighbor_list_forward(coll_batch, cutoff)
    jax.block_until_ready(out['idx_i'])
    jax.block_until_ready(out['idx_j'])
    jax.block_until_ready(out['sys_ij'])

    # Reference check in plain JAX semantics (row-major pair ordering).
    diff = positions[:, None, :] - positions[None, :, :]
    d2_ref = jnp.sum(diff * diff, axis=-1)
    same = sys_i[:, None] == sys_i[None, :]
    eye = jnp.eye(n_atoms, dtype=bool)
    mask_ref = (d2_ref < cutoff * cutoff) & same & (~eye)
    ii_ref, jj_ref = jnp.nonzero(mask_ref)
    assert jnp.array_equal(out['idx_i'], ii_ref.astype(jnp.int32))
    assert jnp.array_equal(out['idx_j'], jj_ref.astype(jnp.int32))
    assert jnp.array_equal(out['sys_ij'], sys_i[ii_ref])

    print("KERNEL_OK")
</pallas_src>

<mosaic_0001>
module attributes {stable_mosaic.version = 11 : i64} {
  func.func @_pair_mask_band_kernel(%arg0: i32, %arg1: memref<1xi32, #tpu.memory_space<smem>>, %arg2: memref<1xi32, #tpu.memory_space<smem>>, %arg3: memref<512x4xf32, #tpu.memory_space<vmem>>, %arg4: memref<4x512xf32, #tpu.memory_space<vmem>>, %arg5: memref<1x512x512xi8, #tpu.memory_space<vmem>>) attributes {dimension_semantics = [#tpu.dimension_semantics<parallel>], iteration_bounds = array<i64: 1>, scalar_prefetch = 2 : i64, scratch_operands = 0 : i64, tpu.core_type = #tpu.core_type<tc>, window_params = [{transform_indices = @transform_0, window_bounds = array<i64: 512, 4>}, {transform_indices = @transform_1, window_bounds = array<i64: 4, 512>}, {transform_indices = @transform_2, window_bounds = array<i64: 1, 512, 512>}]} {
    %c0 = arith.constant 0 : index
    %c0_0 = arith.constant 0 : index
    %0 = vector.load %arg3[%c0, %c0_0] : memref<512x4xf32, #tpu.memory_space<vmem>>, vector<512x4xf32>
    %c0_1 = arith.constant 0 : index
    %c0_2 = arith.constant 0 : index
    %1 = vector.load %arg4[%c0_1, %c0_2] : memref<4x512xf32, #tpu.memory_space<vmem>>, vector<4x512xf32>
    %2 = vector.extract_strided_slice %0 {offsets = [0, 0], sizes = [512, 1], strides = [1, 1]} : vector<512x4xf32> to vector<512x1xf32>
    %3 = vector.extract_strided_slice %1 {offsets = [0, 0], sizes = [1, 512], strides = [1, 1]} : vector<4x512xf32> to vector<1x512xf32>
    %4 = vector.broadcast %2 : vector<512x1xf32> to vector<512x512xf32>
    %5 = vector.broadcast %3 : vector<1x512xf32> to vector<512x512xf32>
    %6 = arith.subf %4, %5 : vector<512x512xf32>
    %7 = vector.extract_strided_slice %0 {offsets = [0, 1], sizes = [512, 1], strides = [1, 1]} : vector<512x4xf32> to vector<512x1xf32>
    %8 = vector.extract_strided_slice %1 {offsets = [1, 0], sizes = [1, 512], strides = [1, 1]} : vector<4x512xf32> to vector<1x512xf32>
    %9 = vector.broadcast %7 : vector<512x1xf32> to vector<512x512xf32>
    %10 = vector.broadcast %8 : vector<1x512xf32> to vector<512x512xf32>
    %11 = arith.subf %9, %10 : vector<512x512xf32>
    %12 = vector.extract_strided_slice %0 {offsets = [0, 2], sizes = [512, 1], strides = [1, 1]} : vector<512x4xf32> to vector<512x1xf32>
    %13 = vector.extract_strided_slice %1 {offsets = [2, 0], sizes = [1, 512], strides = [1, 1]} : vector<4x512xf32> to vector<1x512xf32>
    %14 = vector.broadcast %12 : vector<512x1xf32> to vector<512x512xf32>
    %15 = vector.broadcast %13 : vector<1x512xf32> to vector<512x512xf32>
    %16 = arith.subf %14, %15 : vector<512x512xf32>
    %17 = vector.extract_strided_slice %0 {offsets = [0, 3], sizes = [512, 1], strides = [1, 1]} : vector<512x4xf32> to vector<512x1xf32>
    %18 = vector.extract_strided_slice %1 {offsets = [3, 0], sizes = [1, 512], strides = [1, 1]} : vector<4x512xf32> to vector<1x512xf32>
    %19 = vector.broadcast %17 : vector<512x1xf32> to vector<512x512xf32>
    %20 = vector.broadcast %18 : vector<1x512xf32> to vector<512x512xf32>
    %21 = arith.subf %19, %20 : vector<512x512xf32>
    %22 = arith.mulf %6, %6 : vector<512x512xf32>
    %23 = arith.mulf %11, %11 : vector<512x512xf32>
    %24 = arith.addf %22, %23 : vector<512x512xf32>
    %25 = arith.mulf %16, %16 : vector<512x512xf32>
    %26 = arith.addf %24, %25 : vector<512x512xf32>
    %27 = arith.mulf %21, %21 : vector<512x512xf32>
    %28 = arith.addf %26, %27 : vector<512x512xf32>
    %cst = arith.constant 4.000000e+00 : f32
    %29 = vector.broadcast %cst : f32 to vector<512x512xf32>
    %30 = arith.cmpf olt, %28, %29 : vector<512x512xf32>
    %31 = arith.index_cast %arg0 : i32 to index
    %32 = memref.load %arg1[%31] : memref<1xi32, #tpu.memory_space<smem>>
    %33 = arith.index_cast %arg0 : i32 to index
    %34 = memref.load %arg2[%33] : memref<1xi32, #tpu.memory_space<smem>>
    %35 = arith.cmpi eq, %32, %34 : i32
    %36 = arith.extui %35 : i1 to i32
    %c0_i32 = arith.constant 0 : i32
    %37 = arith.cmpi ne, %36, %c0_i32 : i32
    scf.if %37 {
      %41 = tpu.iota {dimensions = array<i32: 0>} : vector<512x512xi32>
      %42 = tpu.iota {dimensions = array<i32: 1>} : vector<512x512xi32>
      %43 = arith.cmpi ne, %41, %42 : vector<512x512xi32>
      %44 = arith.andi %30, %43 : vector<512x512xi1>
      %45 = arith.extui %44 : vector<512x512xi1> to vector<512x512xi8>
      %c0_4 = arith.constant 0 : index
      %c0_5 = arith.constant 0 : index
      %c0_6 = arith.constant 0 : index
      %46 = vector.load %arg5[%c0_4, %c0_5, %c0_6] : memref<1x512x512xi8, #tpu.memory_space<vmem>>, vector<1x512x512xi8>
      %47 = vector.shape_cast %46 : vector<1x512x512xi8> to vector<512x512xi8>
      %48 = vector.shape_cast %45 : vector<512x512xi8> to vector<1x512x512xi8>
      tpu.vector_store %arg5[%c0_4, %c0_5, %c0_6], %48 {strides = array<i32>} : memref<1x512x512xi8, #tpu.memory_space<vmem>>, vector<1x512x512xi8>,
    } else {
    }
    %true = arith.constant true
    %38 = arith.xori %35, %true : i1
    %39 = arith.extui %38 : i1 to i32
    %c0_i32_3 = arith.constant 0 : i32
    %40 = arith.cmpi ne, %39, %c0_i32_3 : i32
    scf.if %40 {
      %41 = arith.extui %30 : vector<512x512xi1> to vector<512x512xi8>
      %c0_4 = arith.constant 0 : index
      %c0_5 = arith.constant 0 : index
      %c0_6 = arith.constant 0 : index
      %42 = vector.load %arg5[%c0_4, %c0_5, %c0_6] : memref<1x512x512xi8, #tpu.memory_space<vmem>>, vector<1x512x512xi8>
      %43 = vector.shape_cast %42 : vector<1x512x512xi8> to vector<512x512xi8>
      %44 = vector.shape_cast %41 : vector<512x512xi8> to vector<1x512x512xi8>
      tpu.vector_store %arg5[%c0_4, %c0_5, %c0_6], %44 {strides = array<i32>} : memref<1x512x512xi8, #tpu.memory_space<vmem>>, vector<1x512x512xi8>,
    } else {
    }
    return
  }
  func.func @transform_0(%arg0: i32, %arg1: memref<1xi32, #tpu.memory_space<smem>>, %arg2: memref<1xi32, #tpu.memory_space<smem>>) -> (i32, i32) {
    %0 = arith.index_cast %arg0 : i32 to index
    %1 = memref.load %arg1[%0] : memref<1xi32, #tpu.memory_space<smem>>
    %c0_i32 = arith.constant 0 : i32
    %c0_i32_0 = arith.constant 0 : i32
    return %1, %c0_i32 : i32, i32
  }
  func.func @transform_1(%arg0: i32, %arg1: memref<1xi32, #tpu.memory_space<smem>>, %arg2: memref<1xi32, #tpu.memory_space<smem>>) -> (i32, i32) {
    %0 = arith.index_cast %arg0 : i32 to index
    %1 = memref.load %arg2[%0] : memref<1xi32, #tpu.memory_space<smem>>
    %c0_i32 = arith.constant 0 : i32
    %c0_i32_0 = arith.constant 0 : i32
    return %c0_i32, %1 : i32, i32
  }
  func.func @transform_2(%arg0: i32, %arg1: memref<1xi32, #tpu.memory_space<smem>>, %arg2: memref<1xi32, #tpu.memory_space<smem>>) -> (i32, i32, i32) {
    %c0_i32 = arith.constant 0 : i32
    %c0_i32_0 = arith.constant 0 : i32
    %c0_i32_1 = arith.constant 0 : i32
    return %arg0, %c0_i32, %c0_i32_0 : i32, i32, i32
  }
}

</mosaic_0001>

<bundles_post_ra>
// kernel: tpu_custom_call.1
= control target key start
LH: loop header
LB: loop body
LE: loop exit
PB: predicated region body
PF: predicated region fallthrough
CT: control target
= control target key end

     0   :  { %s12304_s0 = inlined_call_operand.<no memory space> [shape: s32[1], index: 0, kind: input, shape index: {}]   ;;  %s12305_s1 = inlined_call_operand.<no memory space> [shape: s32[1], index: 1, kind: input, shape index: {}]   ;;  %s12306_s2 = inlined_call_operand.vmem [shape: f32[512,4], index: 2, kind: input, shape index: {}]   ;;  %s12307_s3 = inlined_call_operand.vmem [shape: f32[4,512], index: 3, kind: input, shape index: {}]   ;;  %s12308_s4 = inlined_call_operand.hbm [shape: s8[1,512,512], index: 4, kind: output, shape index: {}]  }
   0x1   :  { %s5694_s17 = sshll.u32 %s12304_s0, 6 }
   0x2   :  { %11 = vsyncpa [#allocation6], 0  ;;  %v5893_v0 = vmov 0   ;;  %p46_p0 = scmp.lt.s32.totalorder %s5694_s17, 63  ;;  %s5696_s23 = sshll.u32 %s12305_s1, 2  ;;  %v12309_v57 = vlaneseq }
   0x3   :  { %5710 = vset.pattern.permute.xlu1 %v5893_v0  ;;  %5709 = vset.pattern.permute.xlu0 %v5893_v0  ;;  %p54_p1 = scmp.lt.s32.totalorder %s5696_s23, 3  ;;  %p5698_p2 = scmp.ne.s32.totalorder %s12304_s0, %s12305_s1 }
   0x4   :  { %s15048_s17 = smov (!%p46_p0, %s5694_s17), 63  ;;  %v6129_v60 = vshrl.u32 %v12309_v57, 7 }
   0x5   :  { %s5695_s18 = sshll.u32 %s15048_s17, 3  ;;  %s15050_s23 = smov (!%p54_p1, %s5696_s23), 3 }
   0x6   :  { %s5933_s21 = scalar_lea.vmem %s12306_s2, %s5695_s18  ;;  %s5697_s24 = sshll.u32 %s15050_s23, 2  ;;  %12545 = vst [vmem:[#allocation10_spill] sm:$0xff] %v6129_v60  ;;  %v452_v63 = vsub.s32 0, %v6129_v60 }
   0x7   :  { %v5936_v1 = vld [vmem:[%s5933_s21 + $0x10] sm:$0xff]  ;;  %v5939_v2 = vld [vmem:[%s5933_s21] sm:$0xff]  ;;  %v5944_v3 = vld [vmem:[%s5933_s21 + $0x18] sm:$0xff]  ;;  %s6136_s27 = scalar_lea.vmem %s12307_s3, %s5697_s24 }
   0x8   :  { %140 = vperm.xlu1 %5710, %v5936_v1   ;;  %130 = vperm.xlu0 %5709, %v5939_v2   ;;  %v5947_v4 = vld [vmem:[%s5933_s21 + $0x8] sm:$0xff]  ;;  %v5955_v6 = vld [vmem:[%s5933_s21 + $0x20] sm:$0xff]  ;;  %v5960_v7 = vld [vmem:[%s5933_s21 + $0x38] sm:$0xff] }
   0x9   :  { %v5952_v5 = vld [vmem:[%s5933_s21 + $0x28] sm:$0xff]  ;;  %v5963_v8 = vld [vmem:[%s5933_s21 + $0x30] sm:$0xff]  ;;  %v5971_v10 = vld [vmem:[%s5933_s21 + $0x40] sm:$0xff] }
   0xa   :  { %v5968_v9 = vld [vmem:[%s5933_s21 + $0x48] sm:$0xff]  ;;  %v5976_v11 = vld [vmem:[%s5933_s21 + $0x58] sm:$0xff]  ;;  %v5979_v12 = vld [vmem:[%s5933_s21 + $0x50] sm:$0xff] }
   0xb   :  { %v5984_v13 = vld [vmem:[%s5933_s21 + $0x68] sm:$0xff]  ;;  %v5987_v14 = vld [vmem:[%s5933_s21 + $0x60] sm:$0xff]  ;;  %v5992_v15 = vld [vmem:[%s5933_s21 + $0x78] sm:$0xff] }
   0xc   :  { %145 = vperm.xlu1 %5710, %v5944_v3   ;;  %135 = vperm.xlu0 %5709, %v5947_v4   ;;  %v5995_v16 = vld [vmem:[%s5933_s21 + $0x70] sm:$0xff]  ;;  %v6000_v17 = vld [vmem:[%s5933_s21 + $0x88] sm:$0xff]  ;;  %v6003_v18 = vld [vmem:[%s5933_s21 + $0x80] sm:$0xff] }
   0xd   :  { %v6008_v19 = vld [vmem:[%s5933_s21 + $0x98] sm:$0xff]  ;;  %v6011_v20 = vld [vmem:[%s5933_s21 + $0x90] sm:$0xff]  ;;  %v6016_v21 = vld [vmem:[%s5933_s21 + $0xa8] sm:$0xff] }
   0xe   :  { %v6019_v22 = vld [vmem:[%s5933_s21 + $0xa0] sm:$0xff]  ;;  %v6024_v23 = vld [vmem:[%s5933_s21 + $0xb8] sm:$0xff]  ;;  %v6027_v24 = vld [vmem:[%s5933_s21 + $0xb0] sm:$0xff] }
   0xf   :  { %v6032_v25 = vld [vmem:[%s5933_s21 + $0xc8] sm:$0xff]  ;;  %v6035_v26 = vld [vmem:[%s5933_s21 + $0xc0] sm:$0xff]  ;;  %v6040_v27 = vld [vmem:[%s5933_s21 + $0xd8] sm:$0xff] }
  0x10   :  { %155 = vperm.xlu1 %5710, %v5952_v5   ;;  %150 = vperm.xlu0 %5709, %v5955_v6   ;;  %v6043_v28 = vld [vmem:[%s5933_s21 + $0xd0] sm:$0xff]  ;;  %v6048_v29 = vld [vmem:[%s5933_s21 + $0xe8] sm:$0xff]  ;;  %v6051_v30 = vld [vmem:[%s5933_s21 + $0xe0] sm:$0xff] }
  0x11   :  { %v6056_v31 = vld [vmem:[%s5933_s21 + $0xf8] sm:$0xff]  ;;  %v6059_v32 = vld [vmem:[%s5933_s21 + $0xf0] sm:$0xff]  ;;  %v6064_v33 = vld [vmem:[%s5933_s21 + $0x108] sm:$0xff] }
  0x12   :  { %v6067_v34 = vld [vmem:[%s5933_s21 + $0x100] sm:$0xff]  ;;  %v6072_v35 = vld [vmem:[%s5933_s21 + $0x118] sm:$0xff]  ;;  %v6075_v36 = vld [vmem:[%s5933_s21 + $0x110] sm:$0xff] }
  0x13   :  { %v6080_v37 = vld [vmem:[%s5933_s21 + $0x128] sm:$0xff]  ;;  %v6083_v38 = vld [vmem:[%s5933_s21 + $0x120] sm:$0xff]  ;;  %v6088_v39 = vld [vmem:[%s5933_s21 + $0x138] sm:$0xff] }
  0x14   :  { %165 = vperm.xlu1 %5710, %v5960_v7   ;;  %160 = vperm.xlu0 %5709, %v5963_v8   ;;  %v6091_v40 = vld [vmem:[%s5933_s21 + $0x130] sm:$0xff]  ;;  %v6096_v41 = vld [vmem:[%s5933_s21 + $0x148] sm:$0xff]  ;;  %v6099_v42 = vld [vmem:[%s5933_s21 + $0x140] sm:$0xff] }
  0x15   :  { %v6104_v43 = vld [vmem:[%s5933_s21 + $0x158] sm:$0xff]  ;;  %v6107_v44 = vld [vmem:[%s5933_s21 + $0x150] sm:$0xff]  ;;  %v107_v45 = vld [vmem:[%s5933_s21 + $0x168] sm:$0xff] }
  0x16   :  { %12543 = vst [vmem:[#allocation8_spill] sm:$0xff] %v6104_v43  ;;  %12544 = vst [vmem:[#allocation9_spill] sm:$0xff] %v6107_v44  ;;  %v106_v46 = vld [vmem:[%s5933_s21 + $0x160] sm:$0xff]  ;;  %v109_v47 = vld [vmem:[%s5933_s21 + $0x178] sm:$0xff] }
  0x17   :  { %v108_v48 = vld [vmem:[%s5933_s21 + $0x170] sm:$0xff]  ;;  %v111_v49 = vld [vmem:[%s5933_s21 + $0x188] sm:$0xff]  ;;  %v110_v50 = vld [vmem:[%s5933_s21 + $0x180] sm:$0xff] }
  0x18   :  { %175 = vperm.xlu1 %5710, %v5968_v9   ;;  %170 = vperm.xlu0 %5709, %v5971_v10   ;;  %v113_v51 = vld [vmem:[%s5933_s21 + $0x198] sm:$0xff]  ;;  %v112_v52 = vld [vmem:[%s5933_s21 + $0x190] sm:$0xff]  ;;  %v115_v53 = vld [vmem:[%s5933_s21 + $0x1a8] sm:$0xff] }
  0x19   :  { %v114_v54 = vld [vmem:[%s5933_s21 + $0x1a0] sm:$0xff]  ;;  %v117_v55 = vld [vmem:[%s5933_s21 + $0x1b8] sm:$0xff]  ;;  %v116_v56 = vld [vmem:[%s5933_s21 + $0x1b0] sm:$0xff] }
  0x1a   :  { %v119_v58 = vld [vmem:[%s5933_s21 + $0x1c8] sm:$0xff]  ;;  %v118_v59 = vld [vmem:[%s5933_s21 + $0x1c0] sm:$0xff]  ;;  %v121_v61 = vld [vmem:[%s5933_s21 + $0x1d8] sm:$0xff] }
  0x1b   :  { %v120_v62 = vld [vmem:[%s5933_s21 + $0x1d0] sm:$0xff]  ;;  %v6140_v0 = vld [vmem:[%s6136_s27] sm:$0xff] }
  0x1c   :  { %185 = vperm.xlu1 %5710, %v5976_v11   ;;  %180 = vperm.xlu0 %5709, %v5979_v12   ;;  %12546 = vst [vmem:[#allocation11_spill] sm:$0xff] %v6140_v0 }
  0x20   :  { %195 = vperm.xlu1 %5710, %v5984_v13   ;;  %190 = vperm.xlu0 %5709, %v5987_v14  }
  0x24   :  { %205 = vperm.xlu1 %5710, %v5992_v15   ;;  %200 = vperm.xlu0 %5709, %v5995_v16  }
  0x28   :  { %215 = vperm.xlu1 %5710, %v6000_v17   ;;  %210 = vperm.xlu0 %5709, %v6003_v18  }
  0x2c   :  { %225 = vperm.xlu1 %5710, %v6008_v19   ;;  %220 = vperm.xlu0 %5709, %v6011_v20  }
  0x30   :  { %235 = vperm.xlu1 %5710, %v6016_v21   ;;  %230 = vperm.xlu0 %5709, %v6019_v22  }
  0x34   :  { %245 = vperm.xlu1 %5710, %v6024_v23   ;;  %240 = vperm.xlu0 %5709, %v6027_v24  }
  0x38   :  { %255 = vperm.xlu1 %5710, %v6032_v25   ;;  %250 = vperm.xlu0 %5709, %v6035_v26  }
  0x3c   :  { %265 = vperm.xlu1 %5710, %v6040_v27   ;;  %260 = vperm.xlu0 %5709, %v6043_v28  }
  0x40   :  { %275 = vperm.xlu1 %5710, %v6048_v29   ;;  %270 = vperm.xlu0 %5709, %v6051_v30  }
  0x44   :  { %285 = vperm.xlu1 %5710, %v6056_v31   ;;  %280 = vperm.xlu0 %5709, %v6059_v32  }
  0x48   :  { %295 = vperm.xlu1 %5710, %v6064_v33   ;;  %290 = vperm.xlu0 %5709, %v6067_v34  }
  0x4c   :  { %305 = vperm.xlu1 %5710, %v6072_v35   ;;  %300 = vperm.xlu0 %5709, %v6075_v36  }
  0x50   :  { %315 = vperm.xlu1 %5710, %v6080_v37   ;;  %310 = vperm.xlu0 %5709, %v6083_v38  }
  0x54   :  { %325 = vperm.xlu1 %5710, %v6088_v39   ;;  %320 = vperm.xlu0 %5709, %v6091_v40  }
  0x58   :  { %335 = vperm.xlu1 %5710, %v6096_v41   ;;  %330 = vperm.xlu0 %5709, %v6099_v42  }
  0x5c   :  { %345 = vperm.xlu1 %5710, %v6104_v43   ;;  %340 = vperm.xlu0 %5709, %v6107_v44  }
  0x60   :  { %355 = vperm.xlu1 %5710, %v107_v45   ;;  %350 = vperm.xlu0 %5709, %v106_v46   ;;  %v456_v45 = vsub.s32 4, %v6129_v60  ;;  %v123_v46 = vld [vmem:[%s5933_s21 + $0x1e8] sm:$0xff] }
  0x64   :  { %365 = vperm.xlu1 %5710, %v109_v47   ;;  %360 = vperm.xlu0 %5709, %v108_v48   ;;  %v122_v47 = vld [vmem:[%s5933_s21 + $0x1e0] sm:$0xff]  ;;  %v6146_v48 = vld [vmem:[%s6136_s27 + $0x8] sm:$0xff] }
  0x65   :  { %12547 = vst [vmem:[#allocation12_spill] sm:$0xff] %v6146_v48 }
  0x68   :  { %375 = vperm.xlu1 %5710, %v111_v49   ;;  %370 = vperm.xlu0 %5709, %v110_v50   ;;  %v453_v49 = vrot.slane %v6140_v0, %v452_v63  ;;  %v457_v50 = vrot.slane %v6140_v0, %v456_v45 }
  0x6c   :  { %385 = vperm.xlu1 %5710, %v113_v51   ;;  %380 = vperm.xlu0 %5709, %v112_v52   ;;  %v461_v51 = vrot.slane %v6146_v48, %v452_v63  ;;  %v465_v52 = vrot.slane %v6146_v48, %v456_v45 }
  0x70   :  { %395 = vperm.xlu1 %5710, %v115_v53   ;;  %390 = vperm.xlu0 %5709, %v114_v54   ;;  %v125_v53 = vld [vmem:[%s5933_s21 + $0x1f8] sm:$0xff]  ;;  %v124_v54 = vld [vmem:[%s5933_s21 + $0x1f0] sm:$0xff] }
  0x74   :  { %405 = vperm.xlu1 %5710, %v117_v55   ;;  %400 = vperm.xlu0 %5709, %v116_v56   ;;  %v6154_v55 = vrot.slane %v453_v49, %v452_v63  ;;  %v6156_v56 = vrot.slane %v457_v50, %v452_v63 }
  0x78   :  { %415 = vperm.xlu1 %5710, %v119_v58   ;;  %410 = vperm.xlu0 %5709, %v118_v59   ;;  %v6158_v58 = vrot.slane %v461_v51, %v452_v63  ;;  %v6160_v59 = vrot.slane %v465_v52, %v452_v63  ;;  %v5894_v63 = vmov 1  }
  0x7c   :  { %425 = vperm.xlu1 %5710, %v121_v61   ;;  %420 = vperm.xlu0 %5709, %v120_v62   ;;  %v6163_v61 = vsub.s32 1, %v6129_v60  ;;  %v1004_v62 = vsub.s32 5, %v6129_v60 }
  0x7e   :  { %12548 = vst [vmem:[#allocation13_spill] sm:$0xff] %v6163_v61  ;;  %v6179_v45 = vrot.slane %v6146_v48, %v1004_v62 }
  0x80   :  { %435 = vperm.xlu1 %5710, %v123_v46   ;;  %430 = vperm.xlu0 %5709, %v122_v47   ;;  %12550 = vst [vmem:[#allocation15_spill] sm:$0xff] %v6179_v45 }
  0x84   :  { %445 = vperm.xlu1 %5710, %v125_v53   ;;  %440 = vperm.xlu0 %5709, %v124_v54   ;;  %v6174_v54 = vrot.slane %v6140_v0, %v1004_v62 }
  0x86   :  { %12549 = vst [vmem:[#allocation14_spill] sm:$0xff] %v6174_v54 }
  0x87   :  { %v141_v46 = vpop.permute.xlu1 %140  ;;  %v131_v47 = vpop.permute.xlu0 %130 }
  0x88   :  { %v494_v49 = vsub.f32 %v141_v46, %v6154_v55  ;;  %v495_v53 = vsub.f32 %v141_v46, %v6156_v56  ;;  %v496_v50 = vsub.f32 %v141_v46, %v6158_v58  ;;  %v497_v51 = vsub.f32 %v141_v46, %v6160_v59  ;;  %5712 = vset.pattern.permute.xlu1 %v5894_v63 }
  0x89   :  { %v486_v52 = vsub.f32 %v131_v47, %v6154_v55  ;;  %5711 = vset.pattern.permute.xlu0 %v5894_v63  ;;  %v487_v43 = vsub.f32 %v131_v47, %v6156_v56  ;;  %v488_v46 = vsub.f32 %v131_v47, %v6158_v58  ;;  %v489_v44 = vsub.f32 %v131_v47, %v6160_v59 }
  0x8a   :  { %v6181_v60 = vmul.f32 %v494_v49, %v494_v49  ;;  %747 = vperm.xlu1 %5712, %v5947_v4   ;;  %v6187_v63 = vmul.f32 %v495_v53, %v495_v53  ;;  %v6189_v0 = vmul.f32 %v496_v50, %v496_v50  ;;  %v6191_v54 = vmul.f32 %v497_v51, %v497_v51 }
  0x8b   :  { %v6193_v57 = vmul.f32 %v486_v52, %v486_v52  ;;  %743 = vperm.xlu0 %5711, %v5939_v2   ;;  %v146_v62 = vpop.permute.xlu1 %145  ;;  %v136_v49 = vpop.permute.xlu0 %135  ;;  %v6206_v2 = vmul.f32 %v488_v46, %v488_v46 }
  0x8c   :  { %12551 = vst [vmem:[#allocation16_spill] sm:$0xff] %v6181_v60  ;;  %12552 = vst [vmem:[#allocation17_spill] sm:$0xff] %v6187_v63  ;;  %v498_v60 = vsub.f32 %v146_v62, %v6154_v55  ;;  %v499_v45 = vsub.f32 %v146_v62, %v6156_v56  ;;  %v500_v47 = vsub.f32 %v146_v62, %v6158_v58 }
  0x8d   :  { %12553 = vst [vmem:[#allocation18_spill] sm:$0xff] %v6189_v0  ;;  %12554 = vst [vmem:[#allocation19_spill] sm:$0xff] %v6191_v54  ;;  %v501_v4 = vsub.f32 %v146_v62, %v6160_v59  ;;  %v490_v53 = vsub.f32 %v136_v49, %v6154_v55  ;;  %v491_v50 = vsub.f32 %v136_v49, %v6156_v56 }
  0x8e   :  { %12555 = vst [vmem:[#allocation20_spill] sm:$0xff] %v6193_v57  ;;  %v492_v51 = vsub.f32 %v136_v49, %v6158_v58  ;;  %v493_v52 = vsub.f32 %v136_v49, %v6160_v59  ;;  %v6204_v54 = vmul.f32 %v487_v43, %v487_v43  ;;  %12557 = vst [vmem:[#allocation22_spill] sm:$0xff] %v6206_v2  ;;  %751 = vperm.xlu1 %5712, %v5936_v1  }
  0x8f   :  { %v6208_v0 = vmul.f32 %v489_v44, %v489_v44  ;;  %v6210_v63 = vmul.f32 %v498_v60, %v498_v60  ;;  %v6213_v57 = vmul.f32 %v499_v45, %v499_v45  ;;  %v6215_v62 = vmul.f32 %v500_v47, %v500_v47  ;;  %755 = vperm.xlu0 %5711, %v5944_v3   ;;  %v156_v43 = vpop.permute.xlu1 %155  ;;  %v151_v49 = vpop.permute.xlu0 %150 }
  0x90   :  { %12556 = vst [vmem:[#allocation21_spill] sm:$0xff] %v6204_v54  ;;  %v6217_v48 = vmul.f32 %v501_v4, %v501_v4  ;;  %v6219_v61 = vmul.f32 %v490_v53, %v490_v53  ;;  %v506_v46 = vsub.f32 %v156_v43, %v6154_v55  ;;  %v507_v44 = vsub.f32 %v156_v43, %v6156_v56 }
  0x91   :  { %12558 = vst [vmem:[#allocation23_spill] sm:$0xff] %v6208_v0  ;;  %12559 = vst [vmem:[#allocation24_spill] sm:$0xff] %v6210_v63  ;;  %v508_v60 = vsub.f32 %v156_v43, %v6158_v58  ;;  %v509_v1 = vsub.f32 %v156_v43, %v6160_v59  ;;  %v6226_v45 = vmul.f32 %v491_v50, %v491_v50 }
  0x92   :  { %12560 = vst [vmem:[#allocation25_spill] sm:$0xff] %v6213_v57  ;;  %12561 = vst [vmem:[#allocation26_spill] sm:$0xff] %v6215_v62  ;;  %v6228_v47 = vmul.f32 %v492_v51, %v492_v51  ;;  %v6230_v4 = vmul.f32 %v493_v52, %v493_v52  ;;  %v502_v53 = vsub.f32 %v151_v49, %v6154_v55  ;;  %759 = vperm.xlu1 %5712, %v5955_v6  }
  0x93   :  { %12562 = vst [vmem:[#allocation27_spill] sm:$0xff] %v6217_v48  ;;  %v6233_v48 = vmul.f32 %v506_v46, %v506_v46  ;;  %v503_v3 = vsub.f32 %v151_v49, %v6156_v56  ;;  %v504_v62 = vsub.f32 %v151_v49, %v6158_v58  ;;  %v505_v57 = vsub.f32 %v151_v49, %v6160_v59  ;;  %v166_v43 = vpop.permute.xlu1 %165  ;;  %v161_v46 = vpop.permute.xlu0 %160 }
  0x94   :  { %v6239_v63 = vmul.f32 %v507_v44, %v507_v44  ;;  %v6241_v50 = vmul.f32 %v508_v60, %v508_v60  ;;  %v6243_v51 = vmul.f32 %v509_v1, %v509_v1  ;;  %v6245_v52 = vmul.f32 %v502_v53, %v502_v53  ;;  %763 = vperm.xlu0 %5711, %v5952_v5  }
  0x95   :  { %12563 = vst [vmem:[#allocation28_spill] sm:$0xff] %v6233_v48  ;;  %v514_v48 = vsub.f32 %v166_v43, %v6154_v55  ;;  %v515_v0 = vsub.f32 %v166_v43, %v6156_v56  ;;  %v516_v49 = vsub.f32 %v166_v43, %v6158_v58  ;;  %v517_v6 = vsub.f32 %v166_v43, %v6160_v59 }
  0x96   :  { %12564 = vst [vmem:[#allocation29_spill] sm:$0xff] %v6239_v63  ;;  %12565 = vst [vmem:[#allocation30_spill] sm:$0xff] %v6241_v50  ;;  %v510_v44 = vsub.f32 %v161_v46, %v6154_v55  ;;  %v511_v60 = vsub.f32 %v161_v46, %v6156_v56  ;;  %v512_v1 = vsub.f32 %v161_v46, %v6158_v58  ;;  %767 = vperm.xlu1 %5712, %v5963_v8  }
  0x97   :  { %12566 = vst [vmem:[#allocation31_spill] sm:$0xff] %v6243_v51  ;;  %12567 = vst [vmem:[#allocation32_spill] sm:$0xff] %v6245_v52  ;;  %v513_v53 = vsub.f32 %v161_v46, %v6160_v59  ;;  %v6256_v51 = vmul.f32 %v503_v3, %v503_v3  ;;  %v6258_v5 = vmul.f32 %v504_v62, %v504_v62  ;;  %v176_v3 = vpop.permute.xlu1 %175  ;;  %v171_v46 = vpop.permute.xlu0 %170 }
  0x98   :  { %v6260_v50 = vmul.f32 %v505_v57, %v505_v57  ;;  %v6262_v63 = vmul.f32 %v514_v48, %v514_v48  ;;  %v6265_v52 = vmul.f32 %v515_v0, %v515_v0  ;;  %v6267_v43 = vmul.f32 %v516_v49, %v516_v49  ;;  %771 = vperm.xlu0 %5711, %v5960_v7  }
  0x99   :  { %v6269_v2 = vmul.f32 %v517_v6, %v517_v6  ;;  %v6271_v54 = vmul.f32 %v510_v44, %v510_v44  ;;  %v522_v62 = vsub.f32 %v176_v3, %v6154_v55  ;;  %v523_v57 = vsub.f32 %v176_v3, %v6156_v56 }
  0x9a   :  { %12568 = vst [vmem:[#allocation33_spill] sm:$0xff] %v6262_v63  ;;  %12569 = vst [vmem:[#allocation34_spill] sm:$0xff] %v6265_v52  ;;  %v524_v48 = vsub.f32 %v176_v3, %v6158_v58  ;;  %v525_v8 = vsub.f32 %v176_v3, %v6160_v59  ;;  %v6278_v0 = vmul.f32 %v511_v60, %v511_v60  ;;  %775 = vperm.xlu1 %5712, %v5971_v10  }
  0x9b   :  { %12570 = vst [vmem:[#allocation35_spill] sm:$0xff] %v6267_v43  ;;  %12571 = vst [vmem:[#allocation36_spill] sm:$0xff] %v6269_v2  ;;  %v6280_v49 = vmul.f32 %v512_v1, %v512_v1  ;;  %v6282_v6 = vmul.f32 %v513_v53, %v513_v53  ;;  %v518_v44 = vsub.f32 %v171_v46, %v6154_v55  ;;  %v186_v3 = vpop.permute.xlu1 %185 }
  0x9c   :  { %12572 = vst [vmem:[#allocation37_spill] sm:$0xff] %v6278_v0  ;;  %v6285_v2 = vmul.f32 %v522_v62, %v522_v62  ;;  %v519_v7 = vsub.f32 %v171_v46, %v6156_v56  ;;  %v520_v43 = vsub.f32 %v171_v46, %v6158_v58  ;;  %v521_v52 = vsub.f32 %v171_v46, %v6160_v59  ;;  %v181_v62 = vpop.permute.xlu0 %180 }
  0x9d   :  { %12573 = vst [vmem:[#allocation38_spill] sm:$0xff] %v6280_v49  ;;  %12574 = vst [vmem:[#allocation39_spill] sm:$0xff] %v6282_v6  ;;  %v6291_v63 = vmul.f32 %v523_v57, %v523_v57  ;;  %v6293_v60 = vmul.f32 %v524_v48, %v524_v48  ;;  %v6295_v1 = vmul.f32 %v525_v8, %v525_v8  ;;  %779 = vperm.xlu0 %5711, %v5968_v9  }
  0x9e   :  { %12575 = vst [vmem:[#allocation40_spill] sm:$0xff] %v6285_v2  ;;  %v6297_v53 = vmul.f32 %v518_v44, %v518_v44  ;;  %v530_v2 = vsub.f32 %v186_v3, %v6154_v55  ;;  %v531_v6 = vsub.f32 %v186_v3, %v6156_v56  ;;  %v532_v46 = vsub.f32 %v186_v3, %v6158_v58 }
  0x9f   :  { %12576 = vst [vmem:[#allocation41_spill] sm:$0xff] %v6291_v63  ;;  %12577 = vst [vmem:[#allocation42_spill] sm:$0xff] %v6293_v60  ;;  %v533_v10 = vsub.f32 %v186_v3, %v6160_v59  ;;  %v526_v57 = vsub.f32 %v181_v62, %v6154_v55  ;;  %v527_v48 = vsub.f32 %v181_v62, %v6156_v56  ;;  %783 = vperm.xlu1 %5712, %v5979_v12  }
  0xa0   :  { %12578 = vst [vmem:[#allocation43_spill] sm:$0xff] %v6295_v1  ;;  %12579 = vst [vmem:[#allocation44_spill] sm:$0xff] %v6297_v53  ;;  %v528_v8 = vsub.f32 %v181_v62, %v6158_v58  ;;  %v529_v44 = vsub.f32 %v181_v62, %v6160_v59  ;;  %v6308_v1 = vmul.f32 %v519_v7, %v519_v7  ;;  %v196_v7 = vpop.permute.xlu1 %195  ;;  %v191_v62 = vpop.permute.xlu0 %190 }
  0xa1   :  { %v6310_v9 = vmul.f32 %v520_v43, %v520_v43  ;;  %v6312_v60 = vmul.f32 %v521_v52, %v521_v52  ;;  %v6314_v63 = vmul.f32 %v530_v2, %v530_v2  ;;  %v6317_v53 = vmul.f32 %v531_v6, %v531_v6  ;;  %787 = vperm.xlu0 %5711, %v5976_v11  }
  0xa2   :  { %v6319_v3 = vmul.f32 %v532_v46, %v532_v46  ;;  %v6321_v49 = vmul.f32 %v533_v10, %v533_v10  ;;  %v6323_v0 = vmul.f32 %v526_v57, %v526_v57  ;;  %v538_v43 = vsub.f32 %v196_v7, %v6154_v55 }
  0xa3   :  { %12580 = vst [vmem:[#allocation45_spill] sm:$0xff] %v6314_v63  ;;  %12581 = vst [vmem:[#allocation46_spill] sm:$0xff] %v6317_v53  ;;  %v539_v52 = vsub.f32 %v196_v7, %v6156_v56  ;;  %v540_v2 = vsub.f32 %v196_v7, %v6158_v58  ;;  %v541_v12 = vsub.f32 %v196_v7, %v6160_v59  ;;  %791 = vperm.xlu1 %5712, %v5987_v14  }
  0xa4   :  { %12582 = vst [vmem:[#allocation47_spill] sm:$0xff] %v6319_v3  ;;  %12583 = vst [vmem:[#allocation48_spill] sm:$0xff] %v6321_v49  ;;  %v6330_v6 = vmul.f32 %v527_v48, %v527_v48  ;;  %v6332_v46 = vmul.f32 %v528_v8, %v528_v8  ;;  %v6334_v10 = vmul.f32 %v529_v44, %v529_v44  ;;  %v206_v7 = vpop.permute.xlu1 %205 }
  0xa5   :  { %v534_v57 = vsub.f32 %v191_v62, %v6154_v55  ;;  %v6337_v49 = vmul.f32 %v538_v43, %v538_v43  ;;  %v535_v11 = vsub.f32 %v191_v62, %v6156_v56  ;;  %v536_v3 = vsub.f32 %v191_v62, %v6158_v58  ;;  %795 = vperm.xlu0 %5711, %v5984_v13   ;;  %v201_v43 = vpop.permute.xlu0 %200 }
  0xa6   :  { %12584 = vst [vmem:[#allocation49_spill] sm:$0xff] %v6330_v6  ;;  %12585 = vst [vmem:[#allocation50_spill] sm:$0xff] %v6332_v46  ;;  %v537_v53 = vsub.f32 %v191_v62, %v6160_v59  ;;  %v6343_v63 = vmul.f32 %v539_v52, %v539_v52  ;;  %v6345_v48 = vmul.f32 %v540_v2, %v540_v2 }
  0xa7   :  { %12586 = vst [vmem:[#allocation51_spill] sm:$0xff] %v6334_v10  ;;  %12587 = vst [vmem:[#allocation52_spill] sm:$0xff] %v6337_v49  ;;  %v6347_v8 = vmul.f32 %v541_v12, %v541_v12  ;;  %v6349_v44 = vmul.f32 %v534_v57, %v534_v57  ;;  %v546_v49 = vsub.f32 %v206_v7, %v6154_v55  ;;  %799 = vperm.xlu1 %5712, %v5995_v16  }
  0xa8   :  { %12588 = vst [vmem:[#allocation53_spill] sm:$0xff] %v6343_v63  ;;  %12589 = vst [vmem:[#allocation54_spill] sm:$0xff] %v6345_v48  ;;  %v547_v10 = vsub.f32 %v206_v7, %v6156_v56  ;;  %v548_v62 = vsub.f32 %v206_v7, %v6158_v58  ;;  %v549_v14 = vsub.f32 %v206_v7, %v6160_v59 }
  0xa9   :  { %12590 = vst [vmem:[#allocation55_spill] sm:$0xff] %v6347_v8  ;;  %12591 = vst [vmem:[#allocation56_spill] sm:$0xff] %v6349_v44  ;;  %v542_v52 = vsub.f32 %v201_v43, %v6154_v55  ;;  %v543_v2 = vsub.f32 %v201_v43, %v6156_v56  ;;  %v544_v12 = vsub.f32 %v201_v43, %v6158_v58  ;;  %803 = vperm.xlu0 %5711, %v5992_v15  }
  0xaa   :  { %v545_v57 = vsub.f32 %v201_v43, %v6160_v59  ;;  %v6360_v8 = vmul.f32 %v535_v11, %v535_v11  ;;  %v6362_v13 = vmul.f32 %v536_v3, %v536_v3  ;;  %v6364_v48 = vmul.f32 %v537_v53, %v537_v53  ;;  %v216_v11 = vpop.permute.xlu1 %215  ;;  %v211_v43 = vpop.permute.xlu0 %210 }
  0xab   :  { %v6366_v63 = vmul.f32 %v546_v49, %v546_v49  ;;  %v6369_v44 = vmul.f32 %v547_v10, %v547_v10  ;;  %v6371_v7 = vmul.f32 %v548_v62, %v548_v62  ;;  %v6373_v46 = vmul.f32 %v549_v14, %v549_v14  ;;  %807 = vperm.xlu1 %5712, %v6003_v18  }
  0xac   :  { %v6375_v6 = vmul.f32 %v542_v52, %v542_v52  ;;  %v554_v3 = vsub.f32 %v216_v11, %v6154_v55  ;;  %v555_v53 = vsub.f32 %v216_v11, %v6156_v56  ;;  %v556_v49 = vsub.f32 %v216_v11, %v6158_v58 }
  0xad   :  { %12592 = vst [vmem:[#allocation57_spill] sm:$0xff] %v6366_v63  ;;  %12593 = vst [vmem:[#allocation58_spill] sm:$0xff] %v6369_v44  ;;  %v557_v16 = vsub.f32 %v216_v11, %v6160_v59  ;;  %v6382_v10 = vmul.f32 %v543_v2, %v543_v2  ;;  %v6384_v62 = vmul.f32 %v544_v12, %v544_v12  ;;  %811 = vperm.xlu0 %5711, %v6000_v17  }
  0xae   :  { %12594 = vst [vmem:[#allocation59_spill] sm:$0xff] %v6371_v7  ;;  %12595 = vst [vmem:[#allocation60_spill] sm:$0xff] %v6373_v46  ;;  %v6386_v14 = vmul.f32 %v545_v57, %v545_v57  ;;  %v550_v52 = vsub.f32 %v211_v43, %v6154_v55  ;;  %v6389_v46 = vmul.f32 %v554_v3, %v554_v3  ;;  %v226_v11 = vpop.permute.xlu1 %225  ;;  %v221_v3 = vpop.permute.xlu0 %220 }
  0xaf   :  { %12596 = vst [vmem:[#allocation61_spill] sm:$0xff] %v6382_v10  ;;  %12597 = vst [vmem:[#allocation62_spill] sm:$0xff] %v6384_v62  ;;  %v551_v15 = vsub.f32 %v211_v43, %v6156_v56  ;;  %v552_v7 = vsub.f32 %v211_v43, %v6158_v58  ;;  %v553_v44 = vsub.f32 %v211_v43, %v6160_v59  ;;  %815 = vperm.xlu1 %5712, %v6011_v20  }
  0xb0   :  { %12598 = vst [vmem:[#allocation63_spill] sm:$0xff] %v6386_v14  ;;  %12599 = vst [vmem:[#allocation64_spill] sm:$0xff] %v6389_v46  ;;  %v6395_v63 = vmul.f32 %v555_v53, %v555_v53  ;;  %v6397_v2 = vmul.f32 %v556_v49, %v556_v49  ;;  %v6399_v12 = vmul.f32 %v557_v16, %v557_v16 }
  0xb1   :  { %v6401_v57 = vmul.f32 %v550_v52, %v550_v52  ;;  %v562_v46 = vsub.f32 %v226_v11, %v6154_v55  ;;  %v563_v14 = vsub.f32 %v226_v11, %v6156_v56  ;;  %v564_v43 = vsub.f32 %v226_v11, %v6158_v58  ;;  %819 = vperm.xlu0 %5711, %v6008_v19  }
  0xb2   :  { %12600 = vst [vmem:[#allocation65_spill] sm:$0xff] %v6395_v63  ;;  %12601 = vst [vmem:[#allocation66_spill] sm:$0xff] %v6397_v2  ;;  %v565_v18 = vsub.f32 %v226_v11, %v6160_v59  ;;  %v558_v53 = vsub.f32 %v221_v3, %v6154_v55  ;;  %v559_v49 = vsub.f32 %v221_v3, %v6156_v56 }
  0xb3   :  { %12602 = vst [vmem:[#allocation67_spill] sm:$0xff] %v6399_v12  ;;  %12603 = vst [vmem:[#allocation68_spill] sm:$0xff] %v6401_v57  ;;  %v560_v16 = vsub.f32 %v221_v3, %v6158_v58  ;;  %v561_v52 = vsub.f32 %v221_v3, %v6160_v59  ;;  %v6412_v12 = vmul.f32 %v551_v15, %v551_v15  ;;  %v236_v15 = vpop.permute.xlu1 %235  ;;  %v231_v3 = vpop.permute.xlu0 %230  ;;  %823 = vperm.xlu1 %5712, %v6019_v22  }
  0xb4   :  { %v6414_v17 = vmul.f32 %v552_v7, %v552_v7  ;;  %v6416_v2 = vmul.f32 %v553_v44, %v553_v44  ;;  %v6418_v63 = vmul.f32 %v562_v46, %v562_v46  ;;  %v6421_v57 = vmul.f32 %v563_v14, %v563_v14 }
  0xb5   :  { %v6423_v11 = vmul.f32 %v564_v43, %v564_v43  ;;  %v6425_v62 = vmul.f32 %v565_v18, %v565_v18  ;;  %v6427_v10 = vmul.f32 %v558_v53, %v558_v53  ;;  %v570_v7 = vsub.f32 %v236_v15, %v6154_v55  ;;  %827 = vperm.xlu0 %5711, %v6016_v21  }
  0xb6   :  { %12604 = vst [vmem:[#allocation69_spill] sm:$0xff] %v6418_v63  ;;  %12605 = vst [vmem:[#allocation70_spill] sm:$0xff] %v6421_v57  ;;  %v571_v44 = vsub.f32 %v236_v15, %v6156_v56  ;;  %v572_v46 = vsub.f32 %v236_v15, %v6158_v58  ;;  %v573_v20 = vsub.f32 %v236_v15, %v6160_v59 }
  0xb7   :  { %12606 = vst [vmem:[#allocation71_spill] sm:$0xff] %v6423_v11  ;;  %12607 = vst [vmem:[#allocation72_spill] sm:$0xff] %v6425_v62  ;;  %v6434_v14 = vmul.f32 %v559_v49, %v559_v49  ;;  %v6436_v43 = vmul.f32 %v560_v16, %v560_v16  ;;  %v6438_v18 = vmul.f32 %v561_v52, %v561_v52  ;;  %v246_v15 = vpop.permute.xlu1 %245  ;;  %831 = vperm.xlu1 %5712, %v6027_v24  }
  0xb8   :  { %v566_v53 = vsub.f32 %v231_v3, %v6154_v55  ;;  %v6441_v62 = vmul.f32 %v570_v7, %v570_v7  ;;  %v567_v19 = vsub.f32 %v231_v3, %v6156_v56  ;;  %v568_v11 = vsub.f32 %v231_v3, %v6158_v58  ;;  %v241_v7 = vpop.permute.xlu0 %240 }
  0xb9   :  { %12608 = vst [vmem:[#allocation73_spill] sm:$0xff] %v6434_v14  ;;  %12609 = vst [vmem:[#allocation74_spill] sm:$0xff] %v6436_v43  ;;  %v569_v57 = vsub.f32 %v231_v3, %v6160_v59  ;;  %v6447_v63 = vmul.f32 %v571_v44, %v571_v44  ;;  %v6449_v49 = vmul.f32 %v572_v46, %v572_v46  ;;  %835 = vperm.xlu0 %5711, %v6024_v23  }
  0xba   :  { %12610 = vst [vmem:[#allocation75_spill] sm:$0xff] %v6438_v18  ;;  %12611 = vst [vmem:[#allocation76_spill] sm:$0xff] %v6441_v62  ;;  %v6451_v16 = vmul.f32 %v573_v20, %v573_v20  ;;  %v6453_v52 = vmul.f32 %v566_v53, %v566_v53  ;;  %v578_v62 = vsub.f32 %v246_v15, %v6154_v55 }
  0xbb   :  { %12612 = vst [vmem:[#allocation77_spill] sm:$0xff] %v6447_v63  ;;  %12613 = vst [vmem:[#allocation78_spill] sm:$0xff] %v6449_v49  ;;  %v579_v18 = vsub.f32 %v246_v15, %v6156_v56  ;;  %v580_v3 = vsub.f32 %v246_v15, %v6158_v58  ;;  %v581_v22 = vsub.f32 %v246_v15, %v6160_v59  ;;  %839 = vperm.xlu1 %5712, %v6035_v26  }
  0xbc   :  { %12614 = vst [vmem:[#allocation79_spill] sm:$0xff] %v6451_v16  ;;  %12615 = vst [vmem:[#allocation80_spill] sm:$0xff] %v6453_v52  ;;  %v574_v44 = vsub.f32 %v241_v7, %v6154_v55  ;;  %v575_v46 = vsub.f32 %v241_v7, %v6156_v56  ;;  %v576_v20 = vsub.f32 %v241_v7, %v6158_v58 }
  0xbd   :  { %v577_v53 = vsub.f32 %v241_v7, %v6160_v59  ;;  %v6464_v16 = vmul.f32 %v567_v19, %v567_v19  ;;  %v6466_v21 = vmul.f32 %v568_v11, %v568_v11  ;;  %v6468_v49 = vmul.f32 %v569_v57, %v569_v57  ;;  %v256_v19 = vpop.permute.xlu1 %255  ;;  %v251_v7 = vpop.permute.xlu0 %250  ;;  %843 = vperm.xlu0 %5711, %v6032_v25  }
  0xbe   :  { %v6470_v63 = vmul.f32 %v578_v62, %v578_v62  ;;  %v6473_v52 = vmul.f32 %v579_v18, %v579_v18  ;;  %v6475_v15 = vmul.f32 %v580_v3, %v580_v3  ;;  %v6477_v43 = vmul.f32 %v581_v22, %v581_v22 }
  0xbf   :  { %v6479_v14 = vmul.f32 %v574_v44, %v574_v44  ;;  %v586_v11 = vsub.f32 %v256_v19, %v6154_v55  ;;  %v587_v57 = vsub.f32 %v256_v19, %v6156_v56  ;;  %v588_v62 = vsub.f32 %v256_v19, %v6158_v58  ;;  %847 = vperm.xlu1 %5712, %v6043_v28  }
  0xc0   :  { %12616 = vst [vmem:[#allocation81_spill] sm:$0xff] %v6470_v63  ;;  %12617 = vst [vmem:[#allocation82_spill] sm:$0xff] %v6473_v52  ;;  %v589_v24 = vsub.f32 %v256_v19, %v6160_v59  ;;  %v6486_v18 = vmul.f32 %v575_v46, %v575_v46  ;;  %v6488_v3 = vmul.f32 %v576_v20, %v576_v20 }
  0xc1   :  { %12618 = vst [vmem:[#allocation83_spill] sm:$0xff] %v6475_v15  ;;  %12619 = vst [vmem:[#allocation84_spill] sm:$0xff] %v6477_v43  ;;  %v6490_v22 = vmul.f32 %v577_v53, %v577_v53  ;;  %v582_v44 = vsub.f32 %v251_v7, %v6154_v55  ;;  %v6493_v43 = vmul.f32 %v586_v11, %v586_v11  ;;  %v266_v19 = vpop.permute.xlu1 %265  ;;  %v261_v11 = vpop.permute.xlu0 %260  ;;  %851 = vperm.xlu0 %5711, %v6040_v27  }
  0xc2   :  { %12620 = vst [vmem:[#allocation85_spill] sm:$0xff] %v6486_v18  ;;  %12621 = vst [vmem:[#allocation86_spill] sm:$0xff] %v6488_v3  ;;  %v583_v23 = vsub.f32 %v251_v7, %v6156_v56  ;;  %v584_v15 = vsub.f32 %v251_v7, %v6158_v58  ;;  %v585_v52 = vsub.f32 %v251_v7, %v6160_v59 }
  0xc3   :  { %12622 = vst [vmem:[#allocation87_spill] sm:$0xff] %v6490_v22  ;;  %12623 = vst [vmem:[#allocation88_spill] sm:$0xff] %v6493_v43  ;;  %v6499_v63 = vmul.f32 %v587_v57, %v587_v57  ;;  %v6501_v46 = vmul.f32 %v588_v62, %v588_v62  ;;  %v6503_v20 = vmul.f32 %v589_v24, %v589_v24  ;;  %855 = vperm.xlu1 %5712, %v6051_v30  }
  0xc4   :  { %v6505_v53 = vmul.f32 %v582_v44, %v582_v44  ;;  %v594_v43 = vsub.f32 %v266_v19, %v6154_v55  ;;  %v595_v22 = vsub.f32 %v266_v19, %v6156_v56  ;;  %v596_v7 = vsub.f32 %v266_v19, %v6158_v58 }
  0xc5   :  { %12624 = vst [vmem:[#allocation89_spill] sm:$0xff] %v6499_v63  ;;  %12625 = vst [vmem:[#allocation90_spill] sm:$0xff] %v6501_v46  ;;  %v597_v26 = vsub.f32 %v266_v19, %v6160_v59  ;;  %v590_v57 = vsub.f32 %v261_v11, %v6154_v55  ;;  %v591_v62 = vsub.f32 %v261_v11, %v6156_v56  ;;  %859 = vperm.xlu0 %5711, %v6048_v29  }
  0xc6   :  { %12626 = vst [vmem:[#allocation91_spill] sm:$0xff] %v6503_v20  ;;  %12627 = vst [vmem:[#allocation92_spill] sm:$0xff] %v6505_v53  ;;  %v592_v24 = vsub.f32 %v261_v11, %v6158_v58  ;;  %v593_v44 = vsub.f32 %v261_v11, %v6160_v59  ;;  %v6516_v20 = vmul.f32 %v583_v23, %v583_v23  ;;  %v276_v23 = vpop.permute.xlu1 %275  ;;  %v271_v11 = vpop.permute.xlu0 %270 }
  0xc7   :  { %v6518_v25 = vmul.f32 %v584_v15, %v584_v15  ;;  %v6520_v46 = vmul.f32 %v585_v52, %v585_v52  ;;  %v6522_v63 = vmul.f32 %v594_v43, %v594_v43  ;;  %v6525_v53 = vmul.f32 %v595_v22, %v595_v22  ;;  %863 = vperm.xlu1 %5712, %v6059_v32  }
  0xc8   :  { %v6527_v19 = vmul.f32 %v596_v7, %v596_v7  ;;  %v6529_v3 = vmul.f32 %v597_v26, %v597_v26  ;;  %v6531_v18 = vmul.f32 %v590_v57, %v590_v57  ;;  %v602_v15 = vsub.f32 %v276_v23, %v6154_v55 }
  0xc9   :  { %12628 = vst [vmem:[#allocation93_spill] sm:$0xff] %v6522_v63  ;;  %12629 = vst [vmem:[#allocation94_spill] sm:$0xff] %v6525_v53  ;;  %v603_v52 = vsub.f32 %v276_v23, %v6156_v56  ;;  %v604_v43 = vsub.f32 %v276_v23, %v6158_v58  ;;  %v605_v28 = vsub.f32 %v276_v23, %v6160_v59  ;;  %867 = vperm.xlu0 %5711, %v6056_v31  }
  0xca   :  { %12630 = vst [vmem:[#allocation95_spill] sm:$0xff] %v6527_v19  ;;  %12631 = vst [vmem:[#allocation96_spill] sm:$0xff] %v6529_v3  ;;  %v6538_v22 = vmul.f32 %v591_v62, %v591_v62  ;;  %v6540_v7 = vmul.f32 %v592_v24, %v592_v24  ;;  %v6542_v26 = vmul.f32 %v593_v44, %v593_v44  ;;  %v286_v23 = vpop.permute.xlu1 %285 }
  0xcb   :  { %v598_v57 = vsub.f32 %v271_v11, %v6154_v55  ;;  %v6545_v3 = vmul.f32 %v602_v15, %v602_v15  ;;  %v599_v27 = vsub.f32 %v271_v11, %v6156_v56  ;;  %v600_v19 = vsub.f32 %v271_v11, %v6158_v58  ;;  %v281_v15 = vpop.permute.xlu0 %280  ;;  %871 = vperm.xlu1 %5712, %v6067_v34  }
  0xcc   :  { %12632 = vst [vmem:[#allocation97_spill] sm:$0xff] %v6538_v22  ;;  %12633 = vst [vmem:[#allocation98_spill] sm:$0xff] %v6540_v7  ;;  %v601_v53 = vsub.f32 %v271_v11, %v6160_v59  ;;  %v6551_v63 = vmul.f32 %v603_v52, %v603_v52  ;;  %v6553_v62 = vmul.f32 %v604_v43, %v604_v43 }
  0xcd   :  { %12634 = vst [vmem:[#allocation99_spill] sm:$0xff] %v6542_v26  ;;  %12635 = vst [vmem:[#allocation100_spill] sm:$0xff] %v6545_v3  ;;  %v6555_v24 = vmul.f32 %v605_v28, %v605_v28  ;;  %v6557_v44 = vmul.f32 %v598_v57, %v598_v57  ;;  %v610_v3 = vsub.f32 %v286_v23, %v6154_v55  ;;  %875 = vperm.xlu0 %5711, %v6064_v33  }
  0xce   :  { %12636 = vst [vmem:[#allocation101_spill] sm:$0xff] %v6551_v63  ;;  %12637 = vst [vmem:[#allocation102_spill] sm:$0xff] %v6553_v62  ;;  %v611_v26 = vsub.f32 %v286_v23, %v6156_v56  ;;  %v612_v11 = vsub.f32 %v286_v23, %v6158_v58  ;;  %v613_v30 = vsub.f32 %v286_v23, %v6160_v59 }
  0xcf   :  { %12638 = vst [vmem:[#allocation103_spill] sm:$0xff] %v6555_v24  ;;  %12639 = vst [vmem:[#allocation104_spill] sm:$0xff] %v6557_v44  ;;  %v606_v52 = vsub.f32 %v281_v15, %v6154_v55  ;;  %v607_v43 = vsub.f32 %v281_v15, %v6156_v56  ;;  %v608_v28 = vsub.f32 %v281_v15, %v6158_v58  ;;  %879 = vperm.xlu1 %5712, %v6075_v36  }
  0xd0   :  { %v609_v57 = vsub.f32 %v281_v15, %v6160_v59  ;;  %v6568_v24 = vmul.f32 %v599_v27, %v599_v27  ;;  %v6570_v29 = vmul.f32 %v600_v19, %v600_v19  ;;  %v6572_v62 = vmul.f32 %v601_v53, %v601_v53  ;;  %v296_v27 = vpop.permute.xlu1 %295  ;;  %v291_v15 = vpop.permute.xlu0 %290 }
  0xd1   :  { %v6574_v63 = vmul.f32 %v610_v3, %v610_v3  ;;  %v6577_v44 = vmul.f32 %v611_v26, %v611_v26  ;;  %v6579_v23 = vmul.f32 %v612_v11, %v612_v11  ;;  %v6581_v7 = vmul.f32 %v613_v30, %v613_v30  ;;  %883 = vperm.xlu0 %5711, %v6072_v35  }
  0xd2   :  { %v6583_v22 = vmul.f32 %v606_v52, %v606_v52  ;;  %v618_v19 = vsub.f32 %v296_v27, %v6154_v55  ;;  %v619_v53 = vsub.f32 %v296_v27, %v6156_v56  ;;  %v620_v3 = vsub.f32 %v296_v27, %v6158_v58 }
  0xd3   :  { %12640 = vst [vmem:[#allocation105_spill] sm:$0xff] %v6574_v63  ;;  %12641 = vst [vmem:[#allocation106_spill] sm:$0xff] %v6577_v44  ;;  %v621_v32 = vsub.f32 %v296_v27, %v6160_v59  ;;  %v6590_v26 = vmul.f32 %v607_v43, %v607_v43  ;;  %v6592_v11 = vmul.f32 %v608_v28, %v608_v28  ;;  %887 = vperm.xlu1 %5712, %v6083_v38  }
  0xd4   :  { %12642 = vst [vmem:[#allocation107_spill] sm:$0xff] %v6579_v23  ;;  %12643 = vst [vmem:[#allocation108_spill] sm:$0xff] %v6581_v7  ;;  %v6594_v30 = vmul.f32 %v609_v57, %v609_v57  ;;  %v614_v52 = vsub.f32 %v291_v15, %v6154_v55  ;;  %v6597_v7 = vmul.f32 %v618_v19, %v618_v19  ;;  %v306_v27 = vpop.permute.xlu1 %305  ;;  %v301_v19 = vpop.permute.xlu0 %300 }
  0xd5   :  { %12644 = vst [vmem:[#allocation109_spill] sm:$0xff] %v6590_v26  ;;  %12645 = vst [vmem:[#allocation110_spill] sm:$0xff] %v6592_v11  ;;  %v615_v31 = vsub.f32 %v291_v15, %v6156_v56  ;;  %v616_v23 = vsub.f32 %v291_v15, %v6158_v58  ;;  %v617_v44 = vsub.f32 %v291_v15, %v6160_v59  ;;  %891 = vperm.xlu0 %5711, %v6080_v37  }
  0xd6   :  { %12646 = vst [vmem:[#allocation111_spill] sm:$0xff] %v6594_v30  ;;  %12647 = vst [vmem:[#allocation112_spill] sm:$0xff] %v6597_v7  ;;  %v6603_v63 = vmul.f32 %v619_v53, %v619_v53  ;;  %v6605_v43 = vmul.f32 %v620_v3, %v620_v3  ;;  %v6607_v28 = vmul.f32 %v621_v32, %v621_v32 }
  0xd7   :  { %v6609_v57 = vmul.f32 %v614_v52, %v614_v52  ;;  %v626_v7 = vsub.f32 %v306_v27, %v6154_v55  ;;  %v627_v30 = vsub.f32 %v306_v27, %v6156_v56  ;;  %v628_v15 = vsub.f32 %v306_v27, %v6158_v58  ;;  %895 = vperm.xlu1 %5712, %v6091_v40  }
  0xd8   :  { %12648 = vst [vmem:[#allocation113_spill] sm:$0xff] %v6603_v63  ;;  %12649 = vst [vmem:[#allocation114_spill] sm:$0xff] %v6605_v43  ;;  %v629_v34 = vsub.f32 %v306_v27, %v6160_v59  ;;  %v622_v53 = vsub.f32 %v301_v19, %v6154_v55  ;;  %v623_v3 = vsub.f32 %v301_v19, %v6156_v56 }
  0xd9   :  { %12650 = vst [vmem:[#allocation115_spill] sm:$0xff] %v6607_v28  ;;  %12651 = vst [vmem:[#allocation116_spill] sm:$0xff] %v6609_v57  ;;  %v624_v32 = vsub.f32 %v301_v19, %v6158_v58  ;;  %v625_v52 = vsub.f32 %v301_v19, %v6160_v59  ;;  %v6620_v28 = vmul.f32 %v615_v31, %v615_v31  ;;  %v316_v31 = vpop.permute.xlu1 %315  ;;  %v311_v19 = vpop.permute.xlu0 %310  ;;  %899 = vperm.xlu0 %5711, %v6088_v39  }
  0xda   :  { %v6622_v33 = vmul.f32 %v616_v23, %v616_v23  ;;  %v6624_v43 = vmul.f32 %v617_v44, %v617_v44  ;;  %v6626_v63 = vmul.f32 %v626_v7, %v626_v7  ;;  %v6629_v57 = vmul.f32 %v627_v30, %v627_v30 }
  0xdb   :  { %v6631_v27 = vmul.f32 %v628_v15, %v628_v15  ;;  %v6633_v11 = vmul.f32 %v629_v34, %v629_v34  ;;  %v6635_v26 = vmul.f32 %v622_v53, %v622_v53  ;;  %v634_v23 = vsub.f32 %v316_v31, %v6154_v55  ;;  %903 = vperm.xlu1 %5712, %v6099_v42  }
  0xdc   :  { %12652 = vst [vmem:[#allocation117_spill] sm:$0xff] %v6626_v63  ;;  %12653 = vst [vmem:[#allocation118_spill] sm:$0xff] %v6629_v57  ;;  %v635_v44 = vsub.f32 %v316_v31, %v6156_v56  ;;  %v636_v7 = vsub.f32 %v316_v31, %v6158_v58  ;;  %v637_v36 = vsub.f32 %v316_v31, %v6160_v59 }
  0xdd   :  { %12654 = vst [vmem:[#allocation119_spill] sm:$0xff] %v6631_v27  ;;  %12655 = vst [vmem:[#allocation120_spill] sm:$0xff] %v6633_v11  ;;  %v6642_v30 = vmul.f32 %v623_v3, %v623_v3  ;;  %v6644_v15 = vmul.f32 %v624_v32, %v624_v32  ;;  %v6646_v34 = vmul.f32 %v625_v52, %v625_v52  ;;  %v326_v31 = vpop.permute.xlu1 %325  ;;  %907 = vperm.xlu0 %5711, %v6096_v41  }
  0xde   :  { %v630_v53 = vsub.f32 %v311_v19, %v6154_v55  ;;  %v6649_v11 = vmul.f32 %v634_v23, %v634_v23  ;;  %v631_v35 = vsub.f32 %v311_v19, %v6156_v56  ;;  %v632_v27 = vsub.f32 %v311_v19, %v6158_v58  ;;  %v321_v23 = vpop.permute.xlu0 %320 }
  0xdf   :  { %12656 = vst [vmem:[#allocation121_spill] sm:$0xff] %v6642_v30  ;;  %12657 = vst [vmem:[#allocation122_spill] sm:$0xff] %v6644_v15  ;;  %v633_v57 = vsub.f32 %v311_v19, %v6160_v59  ;;  %v6655_v63 = vmul.f32 %v635_v44, %v635_v44  ;;  %v6657_v3 = vmul.f32 %v636_v7, %v636_v7 }
  0xe0   :  { %12658 = vst [vmem:[#allocation123_spill] sm:$0xff] %v6646_v34  ;;  %12659 = vst [vmem:[#allocation124_spill] sm:$0xff] %v6649_v11  ;;  %v6659_v32 = vmul.f32 %v637_v36, %v637_v36  ;;  %v6661_v52 = vmul.f32 %v630_v53, %v630_v53  ;;  %v642_v11 = vsub.f32 %v326_v31, %v6154_v55 }
  0xe1   :  { %12660 = vst [vmem:[#allocation125_spill] sm:$0xff] %v6655_v63  ;;  %12661 = vst [vmem:[#allocation126_spill] sm:$0xff] %v6657_v3  ;;  %v643_v34 = vsub.f32 %v326_v31, %v6156_v56  ;;  %v644_v19 = vsub.f32 %v326_v31, %v6158_v58  ;;  %v645_v38 = vsub.f32 %v326_v31, %v6160_v59 }
  0xe2   :  { %12662 = vst [vmem:[#allocation127_spill] sm:$0xff] %v6659_v32  ;;  %12663 = vst [vmem:[#allocation128_spill] sm:$0xff] %v6661_v52  ;;  %v638_v44 = vsub.f32 %v321_v23, %v6154_v55  ;;  %v639_v7 = vsub.f32 %v321_v23, %v6156_v56  ;;  %v640_v36 = vsub.f32 %v321_v23, %v6158_v58 }
  0xe3   :  { %v641_v53 = vsub.f32 %v321_v23, %v6160_v59  ;;  %v6672_v32 = vmul.f32 %v631_v35, %v631_v35  ;;  %v6674_v37 = vmul.f32 %v632_v27, %v632_v27  ;;  %v6676_v3 = vmul.f32 %v633_v57, %v633_v57  ;;  %v336_v35 = vpop.permute.xlu1 %335  ;;  %v331_v23 = vpop.permute.xlu0 %330 }
  0xe4   :  { %v6678_v63 = vmul.f32 %v642_v11, %v642_v11  ;;  %v6681_v52 = vmul.f32 %v643_v34, %v643_v34  ;;  %v6683_v31 = vmul.f32 %v644_v19, %v644_v19  ;;  %v6685_v15 = vmul.f32 %v645_v38, %v645_v38 }
  0xe5   :  { %12664 = vst [vmem:[#allocation129_spill] sm:$0xff] %v6674_v37  ;;  %12665 = vst [vmem:[#allocation130_spill] sm:$0xff] %v6676_v3  ;;  %v6687_v30 = vmul.f32 %v638_v44, %v638_v44  ;;  %v650_v27 = vsub.f32 %v336_v35, %v6154_v55  ;;  %v651_v57 = vsub.f32 %v336_v35, %v6156_v56  ;;  %v12688_v3 = vld [vmem:[#allocation8_spill] sm:$0xff] }
  0xe6   :  { %12666 = vst [vmem:[#allocation131_spill] sm:$0xff] %v6678_v63  ;;  %12667 = vst [vmem:[#allocation132_spill] sm:$0xff] %v6681_v52  ;;  %v652_v11 = vsub.f32 %v336_v35, %v6158_v58  ;;  %v653_v40 = vsub.f32 %v336_v35, %v6160_v59  ;;  %v6694_v34 = vmul.f32 %v639_v7, %v639_v7  ;;  %915 = vperm.xlu0 %5711, %v12688_v3  }
  0xe7   :  { %12668 = vst [vmem:[#allocation133_spill] sm:$0xff] %v6683_v31  ;;  %12669 = vst [vmem:[#allocation134_spill] sm:$0xff] %v6685_v15  ;;  %v6696_v19 = vmul.f32 %v640_v36, %v640_v36  ;;  %v6698_v38 = vmul.f32 %v641_v53, %v641_v53  ;;  %v646_v44 = vsub.f32 %v331_v23, %v6154_v55  ;;  %v346_v35 = vpop.permute.xlu1 %345 }
  0xe8   :  { %12670 = vst [vmem:[#allocation135_spill] sm:$0xff] %v6687_v30  ;;  %12671 = vst [vmem:[#allocation136_spill] sm:$0xff] %v6694_v34  ;;  %v6701_v15 = vmul.f32 %v650_v27, %v650_v27  ;;  %v647_v39 = vsub.f32 %v331_v23, %v6156_v56  ;;  %v648_v31 = vsub.f32 %v331_v23, %v6158_v58  ;;  %v341_v27 = vpop.permute.xlu0 %340 }
  0xe9   :  { %12672 = vst [vmem:[#allocation137_spill] sm:$0xff] %v6696_v19  ;;  %12673 = vst [vmem:[#allocation138_spill] sm:$0xff] %v6698_v38  ;;  %v649_v52 = vsub.f32 %v331_v23, %v6160_v59  ;;  %v6707_v63 = vmul.f32 %v651_v57, %v651_v57  ;;  %v6709_v7 = vmul.f32 %v652_v11, %v652_v11 }
  0xea   :  { %12674 = vst [vmem:[#allocation139_spill] sm:$0xff] %v6701_v15  ;;  %v6711_v36 = vmul.f32 %v653_v40, %v653_v40  ;;  %v6713_v53 = vmul.f32 %v646_v44, %v646_v44  ;;  %v658_v15 = vsub.f32 %v346_v35, %v6154_v55  ;;  %v659_v38 = vsub.f32 %v346_v35, %v6156_v56 }
  0xeb   :  { %12675 = vst [vmem:[#allocation140_spill] sm:$0xff] %v6707_v63  ;;  %12676 = vst [vmem:[#allocation141_spill] sm:$0xff] %v6709_v7  ;;  %v660_v23 = vsub.f32 %v346_v35, %v6158_v58  ;;  %v661_v42 = vsub.f32 %v346_v35, %v6160_v59  ;;  %v654_v57 = vsub.f32 %v341_v27, %v6154_v55 }
  0xec   :  { %12677 = vst [vmem:[#allocation142_spill] sm:$0xff] %v6711_v36  ;;  %12678 = vst [vmem:[#allocation143_spill] sm:$0xff] %v6713_v53  ;;  %v655_v11 = vsub.f32 %v341_v27, %v6156_v56  ;;  %v656_v40 = vsub.f32 %v341_v27, %v6158_v58  ;;  %v657_v44 = vsub.f32 %v341_v27, %v6160_v59  ;;  %v12683_v53 = vld [vmem:[#allocation9_spill] sm:$0xff] }
  0xed   :  { %v6724_v36 = vmul.f32 %v647_v39, %v647_v39  ;;  %v6726_v41 = vmul.f32 %v648_v31, %v648_v31  ;;  %v6728_v7 = vmul.f32 %v649_v52, %v649_v52  ;;  %v6730_v63 = vmul.f32 %v658_v15, %v658_v15  ;;  %911 = vperm.xlu1 %5712, %v12683_v53   ;;  %v356_v39 = vpop.permute.xlu1 %355  ;;  %v351_v31 = vpop.permute.xlu0 %350 }
  0xee   :  { %v6733_v19 = vmul.f32 %v659_v38, %v659_v38  ;;  %v6735_v35 = vmul.f32 %v660_v23, %v660_v23  ;;  %v6737_v34 = vmul.f32 %v661_v42, %v661_v42  ;;  %v6739_v30 = vmul.f32 %v654_v57, %v654_v57 }
  0xef   :  { %12679 = vst [vmem:[#allocation144_spill] sm:$0xff] %v6724_v36  ;;  %12680 = vst [vmem:[#allocation145_spill] sm:$0xff] %v6726_v41  ;;  %v666_v52 = vsub.f32 %v356_v39, %v6154_v55  ;;  %v667_v15 = vsub.f32 %v356_v39, %v6156_v56  ;;  %v668_v27 = vsub.f32 %v356_v39, %v6158_v58  ;;  %v5720_v36 = vld [vmem:[%s5933_s21 + $0x178] sm:$0xff] }
  0xf0   :  { %12681 = vst [vmem:[#allocation146_spill] sm:$0xff] %v6728_v7  ;;  %12682 = vst [vmem:[#allocation147_spill] sm:$0xff] %v6730_v63  ;;  %v669_v38 = vsub.f32 %v356_v39, %v6160_v59  ;;  %v6746_v53 = vmul.f32 %v655_v11, %v655_v11  ;;  %v6748_v23 = vmul.f32 %v656_v40, %v656_v40  ;;  %v5717_v63 = vld [vmem:[%s5933_s21 + $0x160] sm:$0xff]  ;;  %v5718_v39 = vld [vmem:[%s5933_s21 + $0x168] sm:$0xff] }
  0xf1   :  { %12684 = vst [vmem:[#allocation9_spill] sm:$0xff] %v6733_v19  ;;  %12685 = vst [vmem:[#allocation148_spill] sm:$0xff] %v6735_v35  ;;  %v6750_v42 = vmul.f32 %v657_v44, %v657_v44  ;;  %v662_v57 = vsub.f32 %v351_v31, %v6154_v55  ;;  %v6753_v3 = vmul.f32 %v666_v52, %v666_v52  ;;  %919 = vperm.xlu1 %5712, %v5717_v63   ;;  %v366_v52 = vpop.permute.xlu1 %365 }
  0xf2   :  { %12686 = vst [vmem:[#allocation149_spill] sm:$0xff] %v6737_v34  ;;  %12687 = vst [vmem:[#allocation150_spill] sm:$0xff] %v6739_v30  ;;  %v663_v34 = vsub.f32 %v351_v31, %v6156_v56  ;;  %v664_v35 = vsub.f32 %v351_v31, %v6158_v58  ;;  %v665_v19 = vsub.f32 %v351_v31, %v6160_v59  ;;  %923 = vperm.xlu0 %5711, %v5718_v39  }
  0xf3   :  { %12689 = vst [vmem:[#allocation8_spill] sm:$0xff] %v6746_v53  ;;  %12690 = vst [vmem:[#allocation151_spill] sm:$0xff] %v6748_v23  ;;  %v6759_v30 = vmul.f32 %v667_v15, %v667_v15  ;;  %v6761_v11 = vmul.f32 %v668_v27, %v668_v27  ;;  %v6763_v40 = vmul.f32 %v669_v38, %v669_v38 }
  0xf4   :  { %12691 = vst [vmem:[#allocation152_spill] sm:$0xff] %v6750_v42  ;;  %12692 = vst [vmem:[#allocation153_spill] sm:$0xff] %v6753_v3  ;;  %v6765_v44 = vmul.f32 %v662_v57, %v662_v57  ;;  %v361_v3 = vpop.permute.xlu0 %360  ;;  %v674_v42 = vsub.f32 %v366_v52, %v6154_v55  ;;  %v675_v23 = vsub.f32 %v366_v52, %v6156_v56 }
  0xf5   :  { %12693 = vst [vmem:[#allocation154_spill] sm:$0xff] %v6759_v30  ;;  %12694 = vst [vmem:[#allocation155_spill] sm:$0xff] %v6761_v11  ;;  %v676_v31 = vsub.f32 %v366_v52, %v6158_v58  ;;  %v677_v63 = vsub.f32 %v366_v52, %v6160_v59  ;;  %v670_v15 = vsub.f32 %v361_v3, %v6154_v55 }
  0xf6   :  { %12695 = vst [vmem:[#allocation156_spill] sm:$0xff] %v6763_v40  ;;  %12696 = vst [vmem:[#allocation157_spill] sm:$0xff] %v6765_v44  ;;  %v671_v27 = vsub.f32 %v361_v3, %v6156_v56  ;;  %v672_v38 = vsub.f32 %v361_v3, %v6158_v58  ;;  %v673_v57 = vsub.f32 %v361_v3, %v6160_v59  ;;  %v5719_v44 = vld [vmem:[%s5933_s21 + $0x170] sm:$0xff]  ;;  %931 = vperm.xlu0 %5711, %v5720_v36  }
  0xf7   :  { %v6776_v39 = vmul.f32 %v663_v34, %v663_v34  ;;  %v6778_v40 = vmul.f32 %v664_v35, %v664_v35  ;;  %v6780_v11 = vmul.f32 %v665_v19, %v665_v19  ;;  %v6782_v30 = vmul.f32 %v674_v42, %v674_v42  ;;  %927 = vperm.xlu1 %5712, %v5719_v44   ;;  %v376_v34 = vpop.permute.xlu1 %375 }
  0xf8   :  { %v6785_v53 = vmul.f32 %v675_v23, %v675_v23  ;;  %v6787_v52 = vmul.f32 %v676_v31, %v676_v31  ;;  %v6789_v7 = vmul.f32 %v677_v63, %v677_v63  ;;  %v6791_v41 = vmul.f32 %v670_v15, %v670_v15  ;;  %v371_v35 = vpop.permute.xlu0 %370 }
  0xf9   :  { %12697 = vst [vmem:[#allocation158_spill] sm:$0xff] %v6776_v39  ;;  %12698 = vst [vmem:[#allocation159_spill] sm:$0xff] %v6778_v40  ;;  %v682_v19 = vsub.f32 %v376_v34, %v6154_v55  ;;  %v683_v42 = vsub.f32 %v376_v34, %v6156_v56  ;;  %v684_v3 = vsub.f32 %v376_v34, %v6158_v58  ;;  %v5724_v39 = vld [vmem:[%s5933_s21 + $0x198] sm:$0xff] }
  0xfa   :  { %12699 = vst [vmem:[#allocation160_spill] sm:$0xff] %v6780_v11  ;;  %12700 = vst [vmem:[#allocation161_spill] sm:$0xff] %v6782_v30  ;;  %v685_v23 = vsub.f32 %v376_v34, %v6160_v59  ;;  %v6798_v44 = vmul.f32 %v671_v27, %v671_v27  ;;  %v6800_v31 = vmul.f32 %v672_v38, %v672_v38  ;;  %v5721_v30 = vld [vmem:[%s5933_s21 + $0x180] sm:$0xff]  ;;  %v5722_v34 = vld [vmem:[%s5933_s21 + $0x188] sm:$0xff] }
  0xfb   :  { %12701 = vst [vmem:[#allocation162_spill] sm:$0xff] %v6785_v53  ;;  %12702 = vst [vmem:[#allocation163_spill] sm:$0xff] %v6787_v52  ;;  %v6802_v63 = vmul.f32 %v673_v57, %v673_v57  ;;  %v678_v15 = vsub.f32 %v371_v35, %v6154_v55  ;;  %v6805_v36 = vmul.f32 %v682_v19, %v682_v19  ;;  %935 = vperm.xlu1 %5712, %v5721_v30   ;;  %v386_v19 = vpop.permute.xlu1 %385 }
  0xfc   :  { %12703 = vst [vmem:[#allocation164_spill] sm:$0xff] %v6789_v7  ;;  %12704 = vst [vmem:[#allocation165_spill] sm:$0xff] %v6791_v41  ;;  %v679_v7 = vsub.f32 %v371_v35, %v6156_v56  ;;  %v680_v52 = vsub.f32 %v371_v35, %v6158_v58  ;;  %v681_v53 = vsub.f32 %v371_v35, %v6160_v59  ;;  %939 = vperm.xlu0 %5711, %v5722_v34  }
  0xfd   :  { %12705 = vst [vmem:[#allocation166_spill] sm:$0xff] %v6798_v44  ;;  %12706 = vst [vmem:[#allocation167_spill] sm:$0xff] %v6800_v31  ;;  %v6811_v41 = vmul.f32 %v683_v42, %v683_v42  ;;  %v6813_v27 = vmul.f32 %v684_v3, %v684_v3  ;;  %v6815_v38 = vmul.f32 %v685_v23, %v685_v23 }
  0xfe   :  { %12707 = vst [vmem:[#allocation168_spill] sm:$0xff] %v6802_v63  ;;  %12708 = vst [vmem:[#allocation169_spill] sm:$0xff] %v6805_v36  ;;  %v6817_v57 = vmul.f32 %v678_v15, %v678_v15  ;;  %v381_v36 = vpop.permute.xlu0 %380  ;;  %v690_v63 = vsub.f32 %v386_v19, %v6154_v55  ;;  %v691_v31 = vsub.f32 %v386_v19, %v6156_v56 }
  0xff   :  { %12709 = vst [vmem:[#allocation170_spill] sm:$0xff] %v6811_v41  ;;  %12710 = vst [vmem:[#allocation171_spill] sm:$0xff] %v6813_v27  ;;  %v692_v35 = vsub.f32 %v386_v19, %v6158_v58  ;;  %v693_v30 = vsub.f32 %v386_v19, %v6160_v59  ;;  %v686_v42 = vsub.f32 %v381_v36, %v6154_v55 }
 0x100   :  { %12711 = vst [vmem:[#allocation172_spill] sm:$0xff] %v6815_v38  ;;  %12712 = vst [vmem:[#allocation173_spill] sm:$0xff] %v6817_v57  ;;  %v687_v3 = vsub.f32 %v381_v36, %v6156_v56  ;;  %v688_v23 = vsub.f32 %v381_v36, %v6158_v58  ;;  %v689_v15 = vsub.f32 %v381_v36, %v6160_v59  ;;  %v5723_v57 = vld [vmem:[%s5933_s21 + $0x190] sm:$0xff]  ;;  %947 = vperm.xlu0 %5711, %v5724_v39  }
 0x101   :  { %v6828_v34 = vmul.f32 %v679_v7, %v679_v7  ;;  %v6830_v38 = vmul.f32 %v680_v52, %v680_v52  ;;  %v6832_v27 = vmul.f32 %v681_v53, %v681_v53  ;;  %v6834_v41 = vmul.f32 %v690_v63, %v690_v63  ;;  %943 = vperm.xlu1 %5712, %v5723_v57   ;;  %v396_v7 = vpop.permute.xlu1 %395 }
 0x102   :  { %v6837_v44 = vmul.f32 %v691_v31, %v691_v31  ;;  %v6839_v19 = vmul.f32 %v692_v35, %v692_v35  ;;  %v6841_v11 = vmul.f32 %v693_v30, %v693_v30  ;;  %v6843_v40 = vmul.f32 %v686_v42, %v686_v42  ;;  %v391_v52 = vpop.permute.xlu0 %390 }
 0x103   :  { %12713 = vst [vmem:[#allocation174_spill] sm:$0xff] %v6828_v34  ;;  %12714 = vst [vmem:[#allocation175_spill] sm:$0xff] %v6830_v38  ;;  %v698_v53 = vsub.f32 %v396_v7, %v6154_v55  ;;  %v699_v63 = vsub.f32 %v396_v7, %v6156_v56  ;;  %v700_v36 = vsub.f32 %v396_v7, %v6158_v58  ;;  %v5728_v34 = vld [vmem:[%s5933_s21 + $0x1b8] sm:$0xff] }
 0x104   :  { %12715 = vst [vmem:[#allocation176_spill] sm:$0xff] %v6832_v27  ;;  %12716 = vst [vmem:[#allocation177_spill] sm:$0xff] %v6834_v41  ;;  %v701_v31 = vsub.f32 %v396_v7, %v6160_v59  ;;  %v6850_v57 = vmul.f32 %v687_v3, %v687_v3  ;;  %v6852_v35 = vmul.f32 %v688_v23, %v688_v23  ;;  %v5725_v41 = vld [vmem:[%s5933_s21 + $0x1a0] sm:$0xff]  ;;  %v5726_v7 = vld [vmem:[%s5933_s21 + $0x1a8] sm:$0xff] }
 0x105   :  { %12717 = vst [vmem:[#allocation178_spill] sm:$0xff] %v6837_v44  ;;  %12718 = vst [vmem:[#allocation179_spill] sm:$0xff] %v6839_v19  ;;  %v6854_v30 = vmul.f32 %v689_v15, %v689_v15  ;;  %v694_v42 = vsub.f32 %v391_v52, %v6154_v55  ;;  %v6857_v39 = vmul.f32 %v698_v53, %v698_v53  ;;  %951 = vperm.xlu1 %5712, %v5725_v41   ;;  %v406_v53 = vpop.permute.xlu1 %405 }
 0x106   :  { %12719 = vst [vmem:[#allocation180_spill] sm:$0xff] %v6841_v11  ;;  %12720 = vst [vmem:[#allocation181_spill] sm:$0xff] %v6843_v40  ;;  %v695_v11 = vsub.f32 %v391_v52, %v6156_v56  ;;  %v696_v19 = vsub.f32 %v391_v52, %v6158_v58  ;;  %v697_v44 = vsub.f32 %v391_v52, %v6160_v59  ;;  %955 = vperm.xlu0 %5711, %v5726_v7  }
 0x107   :  { %12721 = vst [vmem:[#allocation182_spill] sm:$0xff] %v6850_v57  ;;  %12722 = vst [vmem:[#allocation183_spill] sm:$0xff] %v6852_v35  ;;  %v6863_v40 = vmul.f32 %v699_v63, %v699_v63  ;;  %v6865_v3 = vmul.f32 %v700_v36, %v700_v36  ;;  %v6867_v23 = vmul.f32 %v701_v31, %v701_v31 }
 0x108   :  { %12723 = vst [vmem:[#allocation184_spill] sm:$0xff] %v6854_v30  ;;  %12724 = vst [vmem:[#allocation185_spill] sm:$0xff] %v6857_v39  ;;  %v6869_v15 = vmul.f32 %v694_v42, %v694_v42  ;;  %v401_v39 = vpop.permute.xlu0 %400  ;;  %v706_v30 = vsub.f32 %v406_v53, %v6154_v55  ;;  %v707_v35 = vsub.f32 %v406_v53, %v6156_v56 }
 0x109   :  { %12725 = vst [vmem:[#allocation186_spill] sm:$0xff] %v6863_v40  ;;  %12726 = vst [vmem:[#allocation187_spill] sm:$0xff] %v6865_v3  ;;  %v708_v52 = vsub.f32 %v406_v53, %v6158_v58  ;;  %v709_v41 = vsub.f32 %v406_v53, %v6160_v59  ;;  %v702_v63 = vsub.f32 %v401_v39, %v6154_v55 }
 0x10a   :  { %12727 = vst [vmem:[#allocation188_spill] sm:$0xff] %v6867_v23  ;;  %12728 = vst [vmem:[#allocation189_spill] sm:$0xff] %v6869_v15  ;;  %v703_v36 = vsub.f32 %v401_v39, %v6156_v56  ;;  %v704_v31 = vsub.f32 %v401_v39, %v6158_v58  ;;  %v705_v42 = vsub.f32 %v401_v39, %v6160_v59  ;;  %v5727_v15 = vld [vmem:[%s5933_s21 + $0x1b0] sm:$0xff]  ;;  %963 = vperm.xlu0 %5711, %v5728_v34  }
 0x10b   :  { %v6880_v7 = vmul.f32 %v695_v11, %v695_v11  ;;  %v6882_v23 = vmul.f32 %v696_v19, %v696_v19  ;;  %v6884_v3 = vmul.f32 %v697_v44, %v697_v44  ;;  %v6886_v40 = vmul.f32 %v706_v30, %v706_v30  ;;  %959 = vperm.xlu1 %5712, %v5727_v15   ;;  %v416_v11 = vpop.permute.xlu1 %415 }
 0x10c   :  { %v6889_v57 = vmul.f32 %v707_v35, %v707_v35  ;;  %v6891_v53 = vmul.f32 %v708_v52, %v708_v52  ;;  %v6893_v27 = vmul.f32 %v709_v41, %v709_v41  ;;  %v6895_v38 = vmul.f32 %v702_v63, %v702_v63  ;;  %v411_v19 = vpop.permute.xlu0 %410 }
 0x10d   :  { %12729 = vst [vmem:[#allocation190_spill] sm:$0xff] %v6880_v7  ;;  %12730 = vst [vmem:[#allocation191_spill] sm:$0xff] %v6882_v23  ;;  %v714_v44 = vsub.f32 %v416_v11, %v6154_v55  ;;  %v715_v30 = vsub.f32 %v416_v11, %v6156_v56  ;;  %v716_v39 = vsub.f32 %v416_v11, %v6158_v58  ;;  %v5732_v7 = vld [vmem:[%s5933_s21 + $0x1d8] sm:$0xff] }
 0x10e   :  { %12731 = vst [vmem:[#allocation192_spill] sm:$0xff] %v6884_v3  ;;  %12732 = vst [vmem:[#allocation193_spill] sm:$0xff] %v6886_v40  ;;  %v717_v35 = vsub.f32 %v416_v11, %v6160_v59  ;;  %v6902_v15 = vmul.f32 %v703_v36, %v703_v36  ;;  %v6904_v52 = vmul.f32 %v704_v31, %v704_v31  ;;  %v5729_v40 = vld [vmem:[%s5933_s21 + $0x1c0] sm:$0xff]  ;;  %v5730_v11 = vld [vmem:[%s5933_s21 + $0x1c8] sm:$0xff] }
 0x10f   :  { %12733 = vst [vmem:[#allocation194_spill] sm:$0xff] %v6889_v57  ;;  %12734 = vst [vmem:[#allocation195_spill] sm:$0xff] %v6891_v53  ;;  %v6906_v41 = vmul.f32 %v705_v42, %v705_v42  ;;  %v710_v63 = vsub.f32 %v411_v19, %v6154_v55  ;;  %v6909_v34 = vmul.f32 %v714_v44, %v714_v44  ;;  %967 = vperm.xlu1 %5712, %v5729_v40   ;;  %v426_v44 = vpop.permute.xlu1 %425 }
 0x110   :  { %12735 = vst [vmem:[#allocation196_spill] sm:$0xff] %v6893_v27  ;;  %12736 = vst [vmem:[#allocation197_spill] sm:$0xff] %v6895_v38  ;;  %v711_v27 = vsub.f32 %v411_v19, %v6156_v56  ;;  %v712_v53 = vsub.f32 %v411_v19, %v6158_v58  ;;  %v713_v57 = vsub.f32 %v411_v19, %v6160_v59  ;;  %971 = vperm.xlu0 %5711, %v5730_v11  }
 0x111   :  { %12737 = vst [vmem:[#allocation198_spill] sm:$0xff] %v6902_v15  ;;  %12738 = vst [vmem:[#allocation199_spill] sm:$0xff] %v6904_v52  ;;  %v6915_v38 = vmul.f32 %v715_v30, %v715_v30  ;;  %v6917_v36 = vmul.f32 %v716_v39, %v716_v39  ;;  %v6919_v31 = vmul.f32 %v717_v35, %v717_v35 }
 0x112   :  { %12739 = vst [vmem:[#allocation200_spill] sm:$0xff] %v6906_v41  ;;  %12740 = vst [vmem:[#allocation201_spill] sm:$0xff] %v6909_v34  ;;  %v6921_v42 = vmul.f32 %v710_v63, %v710_v63  ;;  %v421_v34 = vpop.permute.xlu0 %420  ;;  %v722_v41 = vsub.f32 %v426_v44, %v6154_v55  ;;  %v723_v52 = vsub.f32 %v426_v44, %v6156_v56 }
 0x113   :  { %12741 = vst [vmem:[#allocation202_spill] sm:$0xff] %v6915_v38  ;;  %12742 = vst [vmem:[#allocation203_spill] sm:$0xff] %v6917_v36  ;;  %v724_v19 = vsub.f32 %v426_v44, %v6158_v58  ;;  %v725_v40 = vsub.f32 %v426_v44, %v6160_v59  ;;  %v718_v30 = vsub.f32 %v421_v34, %v6154_v55 }
 0x114   :  { %12743 = vst [vmem:[#allocation204_spill] sm:$0xff] %v6919_v31  ;;  %12744 = vst [vmem:[#allocation205_spill] sm:$0xff] %v6921_v42  ;;  %v719_v39 = vsub.f32 %v421_v34, %v6156_v56  ;;  %v720_v35 = vsub.f32 %v421_v34, %v6158_v58  ;;  %v721_v63 = vsub.f32 %v421_v34, %v6160_v59  ;;  %v5731_v42 = vld [vmem:[%s5933_s21 + $0x1d0] sm:$0xff]  ;;  %979 = vperm.xlu0 %5711, %v5732_v7  }
 0x115   :  { %v6932_v11 = vmul.f32 %v711_v27, %v711_v27  ;;  %v6934_v31 = vmul.f32 %v712_v53, %v712_v53  ;;  %v6936_v36 = vmul.f32 %v713_v57, %v713_v57  ;;  %v6938_v38 = vmul.f32 %v722_v41, %v722_v41  ;;  %975 = vperm.xlu1 %5712, %v5731_v42   ;;  %v436_v27 = vpop.permute.xlu1 %435 }
 0x116   :  { %v6941_v15 = vmul.f32 %v723_v52, %v723_v52  ;;  %v6943_v44 = vmul.f32 %v724_v19, %v724_v19  ;;  %v6945_v3 = vmul.f32 %v725_v40, %v725_v40  ;;  %v6947_v23 = vmul.f32 %v718_v30, %v718_v30  ;;  %v431_v53 = vpop.permute.xlu0 %430 }
 0x117   :  { %12745 = vst [vmem:[#allocation206_spill] sm:$0xff] %v6932_v11  ;;  %12746 = vst [vmem:[#allocation207_spill] sm:$0xff] %v6934_v31  ;;  %v730_v57 = vsub.f32 %v436_v27, %v6154_v55  ;;  %v731_v41 = vsub.f32 %v436_v27, %v6156_v56  ;;  %v732_v34 = vsub.f32 %v436_v27, %v6158_v58 }
 0x118   :  { %12747 = vst [vmem:[#allocation208_spill] sm:$0xff] %v6936_v36  ;;  %12748 = vst [vmem:[#allocation209_spill] sm:$0xff] %v6938_v38  ;;  %v733_v52 = vsub.f32 %v436_v27, %v6160_v59  ;;  %v6954_v42 = vmul.f32 %v719_v39, %v719_v39  ;;  %v6956_v19 = vmul.f32 %v720_v35, %v720_v35  ;;  %v5733_v38 = vld [vmem:[%s5933_s21 + $0x1e0] sm:$0xff]  ;;  %v5734_v27 = vld [vmem:[%s5933_s21 + $0x1e8] sm:$0xff] }
 0x119   :  { %12749 = vst [vmem:[#allocation210_spill] sm:$0xff] %v6941_v15  ;;  %12750 = vst [vmem:[#allocation211_spill] sm:$0xff] %v6943_v44  ;;  %v6958_v40 = vmul.f32 %v721_v63, %v721_v63  ;;  %v726_v30 = vsub.f32 %v431_v53, %v6154_v55  ;;  %v6961_v7 = vmul.f32 %v730_v57, %v730_v57  ;;  %983 = vperm.xlu1 %5712, %v5733_v38   ;;  %v446_v57 = vpop.permute.xlu1 %445  ;;  %v5738_v36 = vld [vmem:[%s5933_s21 + $0x8] sm:$0xff] }
 0x11a   :  { %12751 = vst [vmem:[#allocation212_spill] sm:$0xff] %v6945_v3  ;;  %12752 = vst [vmem:[#allocation213_spill] sm:$0xff] %v6947_v23  ;;  %v727_v3 = vsub.f32 %v431_v53, %v6156_v56  ;;  %v728_v44 = vsub.f32 %v431_v53, %v6158_v58  ;;  %v729_v15 = vsub.f32 %v431_v53, %v6160_v59  ;;  %987 = vperm.xlu0 %5711, %v5734_v27  }
 0x11b   :  { %12753 = vst [vmem:[#allocation214_spill] sm:$0xff] %v6954_v42  ;;  %12754 = vst [vmem:[#allocation215_spill] sm:$0xff] %v6956_v19  ;;  %v6967_v23 = vmul.f32 %v731_v41, %v731_v41  ;;  %v6969_v39 = vmul.f32 %v732_v34, %v732_v34  ;;  %v6971_v35 = vmul.f32 %v733_v52, %v733_v52 }
 0x11c   :  { %12755 = vst [vmem:[#allocation216_spill] sm:$0xff] %v6958_v40  ;;  %12756 = vst [vmem:[#allocation217_spill] sm:$0xff] %v6961_v7  ;;  %v6973_v63 = vmul.f32 %v726_v30, %v726_v30  ;;  %v441_v7 = vpop.permute.xlu0 %440  ;;  %v738_v40 = vsub.f32 %v446_v57, %v6154_v55  ;;  %v739_v19 = vsub.f32 %v446_v57, %v6156_v56 }
 0x11d   :  { %12757 = vst [vmem:[#allocation218_spill] sm:$0xff] %v6967_v23  ;;  %12758 = vst [vmem:[#allocation219_spill] sm:$0xff] %v6969_v39  ;;  %v740_v53 = vsub.f32 %v446_v57, %v6158_v58  ;;  %v741_v38 = vsub.f32 %v446_v57, %v6160_v59  ;;  %v734_v41 = vsub.f32 %v441_v7, %v6154_v55 }
 0x11e   :  { %12759 = vst [vmem:[#allocation220_spill] sm:$0xff] %v6971_v35  ;;  %12760 = vst [vmem:[#allocation221_spill] sm:$0xff] %v6973_v63  ;;  %v735_v34 = vsub.f32 %v441_v7, %v6156_v56  ;;  %v736_v52 = vsub.f32 %v441_v7, %v6158_v58  ;;  %v737_v30 = vsub.f32 %v441_v7, %v6160_v59  ;;  %v5735_v63 = vld [vmem:[%s5933_s21 + $0x1f0] sm:$0xff]  ;;  %v5736_v58 = vld [vmem:[%s5933_s21 + $0x1f8] sm:$0xff] }
 0x11f   :  { %v6984_v27 = vmul.f32 %v727_v3, %v727_v3  ;;  %v6986_v35 = vmul.f32 %v728_v44, %v728_v44  ;;  %v6988_v39 = vmul.f32 %v729_v15, %v729_v15  ;;  %v6990_v23 = vmul.f32 %v738_v40, %v738_v40  ;;  %991 = vperm.xlu1 %5712, %v5735_v63   ;;  %v12769_v59 = vld [vmem:[#allocation13_spill] sm:$0xff]  ;;  %v12770_v3 = vld [vmem:[#allocation11_spill] sm:$0xff]  ;;  %v12772_v40 = vld [vmem:[#allocation14_spill] sm:$0xff] }
 0x120   :  { %v6993_v42 = vmul.f32 %v739_v19, %v739_v19  ;;  %v6995_v57 = vmul.f32 %v740_v53, %v740_v53  ;;  %v6997_v55 = vmul.f32 %v741_v38, %v741_v38  ;;  %v6999_v56 = vmul.f32 %v734_v41, %v734_v41  ;;  %995 = vperm.xlu0 %5711, %v5736_v58   ;;  %v12773_v19 = vld [vmem:[#allocation12_spill] sm:$0xff]  ;;  %v12775_v38 = vld [vmem:[#allocation15_spill] sm:$0xff] }
 0x121   :  { %12761 = vst [vmem:[#allocation222_spill] sm:$0xff] %v6984_v27  ;;  %12762 = vst [vmem:[#allocation223_spill] sm:$0xff] %v6986_v35  ;;  %v12771_v44 = vrot.slane %v12770_v3, %v12769_v59  ;;  %v7010_v7 = vrot.slane %v12772_v40, %v12769_v59  ;;  %v12774_v63 = vrot.slane %v12773_v19, %v12769_v59 }
 0x122   :  { %12763 = vst [vmem:[#allocation224_spill] sm:$0xff] %v6988_v39  ;;  %12764 = vst [vmem:[#allocation225_spill] sm:$0xff] %v6990_v23  ;;  %v7020_v41 = vrot.slane %v12775_v38, %v12769_v59  ;;  %v7022_v58 = vmul.f32 %v735_v34, %v735_v34  ;;  %v7026_v3 = vmul.f32 %v737_v30, %v737_v30  ;;  %v5737_v23 = vld [vmem:[%s5933_s21] sm:$0xff] }
 0x123   :  { %12765 = vst [vmem:[#allocation226_spill] sm:$0xff] %v6993_v42  ;;  %12766 = vst [vmem:[#allocation227_spill] sm:$0xff] %v6995_v57  ;;  %v7006_v15 = vrot.slane %v12771_v44, %v12769_v59  ;;  %v7016_v53 = vrot.slane %v12774_v63, %v12769_v59  ;;  %v748_v44 = vpop.permute.xlu1 %747  ;;  %v744_v57 = vpop.permute.xlu0 %743  ;;  %v5895_v42 = vmov 2  }
 0x124   :  { %12767 = vst [vmem:[#allocation228_spill] sm:$0xff] %v6997_v55  ;;  %12768 = vst [vmem:[#allocation229_spill] sm:$0xff] %v6999_v56  ;;  %v7024_v56 = vmul.f32 %v736_v52, %v736_v52  ;;  %v1039_v55 = vsub.f32 %v748_v44, %v7010_v7  ;;  %v1041_v63 = vsub.f32 %v748_v44, %v7020_v41  ;;  %5713 = vset.pattern.permute.xlu1 %v5895_v42 }
 0x125   :  { %12776 = vst [vmem:[#allocation13_spill] sm:$0xff] %v7022_v58  ;;  %12778 = vst [vmem:[#allocation14_spill] sm:$0xff] %v7026_v3  ;;  %v1038_v40 = vsub.f32 %v748_v44, %v7006_v15  ;;  %v1040_v19 = vsub.f32 %v748_v44, %v7016_v53  ;;  %v1034_v34 = vsub.f32 %v744_v57, %v7006_v15  ;;  %5714 = vset.pattern.permute.xlu0 %v5895_v42 }
 0x126   :  { %12777 = vst [vmem:[#allocation11_spill] sm:$0xff] %v7024_v56  ;;  %v1035_v52 = vsub.f32 %v744_v57, %v7010_v7  ;;  %v1036_v30 = vsub.f32 %v744_v57, %v7016_v53  ;;  %v1037_v59 = vsub.f32 %v744_v57, %v7020_v41  ;;  %v2647_v3 = vmul.f32 %v1039_v55, %v1039_v55 }
 0x127   :  { %v2646_v38 = vmul.f32 %v1038_v40, %v1038_v40  ;;  %v2648_v56 = vmul.f32 %v1040_v19, %v1040_v19  ;;  %v2649_v58 = vmul.f32 %v1041_v63, %v1041_v63  ;;  %1291 = vperm.xlu1 %5713, %v5737_v23   ;;  %v2642_v44 = vmul.f32 %v1034_v34, %v1034_v34  ;;  %v752_v31 = vpop.permute.xlu1 %751  ;;  %v756_v23 = vpop.permute.xlu0 %755  ;;  %v12783_v40 = vld [vmem:[#allocation20_spill] sm:$0xff]  ;;  %v12785_v63 = vld [vmem:[#allocation21_spill] sm:$0xff]  ;;  %v12787_v34 = vld [vmem:[#allocation22_spill] sm:$0xff] }
 0x128   :  { %v2643_v39 = vmul.f32 %v1035_v52, %v1035_v52  ;;  %v2644_v35 = vmul.f32 %v1036_v30, %v1036_v30  ;;  %v2645_v27 = vmul.f32 %v1037_v59, %v1037_v59  ;;  %1295 = vperm.xlu0 %5714, %v5738_v36   ;;  %v7042_v57 = vadd.f32 %v2647_v3, %v6226_v45  ;;  %v12789_v52 = vld [vmem:[#allocation23_spill] sm:$0xff]  ;;  %v5739_v3 = vld [vmem:[%s5933_s21 + $0x10] sm:$0xff] }
 0x129   :  { %v7039_v11 = vadd.f32 %v2646_v38, %v6219_v61  ;;  %v7045_v42 = vadd.f32 %v2648_v56, %v6228_v47  ;;  %v7048_v55 = vadd.f32 %v2649_v58, %v6230_v4  ;;  %v7051_v19 = vadd.f32 %v2642_v44, %v12783_v40 }
 0x12a   :  { %12780 = vst [vmem:[#allocation15_spill] sm:$0xff] %v7042_v57  ;;  %v7054_v36 = vadd.f32 %v2643_v39, %v12785_v63  ;;  %v7057_v61 = vadd.f32 %v2644_v35, %v12787_v34  ;;  %v7060_v45 = vadd.f32 %v2645_v27, %v12789_v52  ;;  %v1042_v47 = vsub.f32 %v752_v31, %v7006_v15  ;;  %v5740_v27 = vld [vmem:[%s5933_s21 + $0x20] sm:$0xff] }
 0x12b   :  { %12779 = vst [vmem:[#allocation12_spill] sm:$0xff] %v7039_v11  ;;  %12781 = vst [vmem:[#allocation230_spill] sm:$0xff] %v7045_v42  ;;  %v1043_v56 = vsub.f32 %v752_v31, %v7010_v7  ;;  %v1044_v4 = vsub.f32 %v752_v31, %v7016_v53  ;;  %v1045_v58 = vsub.f32 %v752_v31, %v7020_v41  ;;  %1299 = vperm.xlu1 %5713, %v5739_v3   ;;  %v760_v38 = vpop.permute.xlu1 %759  ;;  %v764_v31 = vpop.permute.xlu0 %763  ;;  %v12791_v57 = vld [vmem:[#allocation16_spill] sm:$0xff] }
 0x12c   :  { %12782 = vst [vmem:[#allocation231_spill] sm:$0xff] %v7048_v55  ;;  %12784 = vst [vmem:[#allocation20_spill] sm:$0xff] %v7051_v19  ;;  %v1046_v30 = vsub.f32 %v756_v23, %v7006_v15  ;;  %v1047_v39 = vsub.f32 %v756_v23, %v7010_v7  ;;  %v1048_v35 = vsub.f32 %v756_v23, %v7016_v53  ;;  %1307 = vperm.xlu0 %5714, %v5740_v27   ;;  %v12797_v27 = vld [vmem:[#allocation19_spill] sm:$0xff] }
 0x12d   :  { %12786 = vst [vmem:[#allocation21_spill] sm:$0xff] %v7054_v36  ;;  %12788 = vst [vmem:[#allocation22_spill] sm:$0xff] %v7057_v61  ;;  %v1049_v59 = vsub.f32 %v756_v23, %v7020_v41  ;;  %v2650_v44 = vmul.f32 %v1042_v47, %v1042_v47  ;;  %v2651_v40 = vmul.f32 %v1043_v56, %v1043_v56  ;;  %v12795_v23 = vld [vmem:[#allocation18_spill] sm:$0xff]  ;;  %v5741_v56 = vld [vmem:[%s5933_s21 + $0x18] sm:$0xff] }
 0x12e   :  { %12790 = vst [vmem:[#allocation23_spill] sm:$0xff] %v7060_v45  ;;  %v2652_v63 = vmul.f32 %v1044_v4, %v1044_v4  ;;  %v2653_v34 = vmul.f32 %v1045_v58, %v1045_v58  ;;  %v2654_v52 = vmul.f32 %v1046_v30, %v1046_v30  ;;  %v2655_v3 = vmul.f32 %v1047_v39, %v1047_v39  ;;  %v12793_v45 = vld [vmem:[#allocation17_spill] sm:$0xff]  ;;  %v12799_v4 = vld [vmem:[#allocation24_spill] sm:$0xff] }
 0x12f   :  { %v2656_v55 = vmul.f32 %v1048_v35, %v1048_v35  ;;  %v2657_v42 = vmul.f32 %v1049_v59, %v1049_v59  ;;  %v7073_v11 = vadd.f32 %v2650_v44, %v12791_v57  ;;  %v7076_v61 = vadd.f32 %v2651_v40, %v12793_v45  ;;  %1303 = vperm.xlu1 %5713, %v5741_v56   ;;  %v12801_v30 = vld [vmem:[#allocation25_spill] sm:$0xff]  ;;  %v12803_v35 = vld [vmem:[#allocation26_spill] sm:$0xff]  ;;  %v12805_v59 = vld [vmem:[#allocation27_spill] sm:$0xff]  ;;  %v768_v40 = vpop.permute.xlu1 %767 }
 0x130   :  { %v7079_v36 = vadd.f32 %v2652_v63, %v12795_v23  ;;  %v7082_v47 = vadd.f32 %v2653_v34, %v12797_v27  ;;  %v7086_v58 = vadd.f32 %v2654_v52, %v12799_v4  ;;  %v7089_v39 = vadd.f32 %v2655_v3, %v12801_v30  ;;  %v5742_v44 = vld [vmem:[%s5933_s21 + $0x30] sm:$0xff]  ;;  %v772_v3 = vpop.permute.xlu0 %771 }
 0x131   :  { %12792 = vst [vmem:[#allocation16_spill] sm:$0xff] %v7073_v11  ;;  %12794 = vst [vmem:[#allocation17_spill] sm:$0xff] %v7076_v61  ;;  %v7092_v57 = vadd.f32 %v2656_v55, %v12803_v35  ;;  %v7095_v45 = vadd.f32 %v2657_v42, %v12805_v59  ;;  %1315 = vperm.xlu0 %5714, %v5742_v44   ;;  %v1050_v63 = vsub.f32 %v760_v38, %v7006_v15  ;;  %v5743_v44 = vld [vmem:[%s5933_s21 + $0x28] sm:$0xff]  ;;  %v5744_v11 = vld [vmem:[%s5933_s21 + $0x40] sm:$0xff] }
 0x132   :  { %12796 = vst [vmem:[#allocation18_spill] sm:$0xff] %v7079_v36  ;;  %12798 = vst [vmem:[#allocation19_spill] sm:$0xff] %v7082_v47  ;;  %v1051_v34 = vsub.f32 %v760_v38, %v7010_v7  ;;  %v1052_v52 = vsub.f32 %v760_v38, %v7016_v53  ;;  %v1053_v23 = vsub.f32 %v760_v38, %v7020_v41 }
 0x133   :  { %12800 = vst [vmem:[#allocation24_spill] sm:$0xff] %v7086_v58  ;;  %12802 = vst [vmem:[#allocation25_spill] sm:$0xff] %v7089_v39  ;;  %v1054_v55 = vsub.f32 %v764_v31, %v7006_v15  ;;  %v1055_v27 = vsub.f32 %v764_v31, %v7010_v7  ;;  %v1056_v42 = vsub.f32 %v764_v31, %v7016_v53  ;;  %1311 = vperm.xlu1 %5713, %v5743_v44  }
 0x134   :  { %12804 = vst [vmem:[#allocation26_spill] sm:$0xff] %v7092_v57  ;;  %12806 = vst [vmem:[#allocation27_spill] sm:$0xff] %v7095_v45  ;;  %v1057_v56 = vsub.f32 %v764_v31, %v7020_v41  ;;  %v2658_v4 = vmul.f32 %v1050_v63, %v1050_v63  ;;  %v2659_v30 = vmul.f32 %v1051_v34, %v1051_v34  ;;  %v776_v45 = vpop.permute.xlu1 %775  ;;  %v12807_v57 = vld [vmem:[#allocation32_spill] sm:$0xff]  ;;  %v780_v34 = vpop.permute.xlu0 %779 }
 0x135   :  { %v2660_v35 = vmul.f32 %v1052_v52, %v1052_v52  ;;  %v2661_v59 = vmul.f32 %v1053_v23, %v1053_v23  ;;  %v2662_v47 = vmul.f32 %v1054_v55, %v1054_v55  ;;  %v2663_v36 = vmul.f32 %v1055_v27, %v1055_v27  ;;  %1323 = vperm.xlu0 %5714, %v5744_v11   ;;  %v12812_v52 = vld [vmem:[#allocation28_spill] sm:$0xff]  ;;  %v12814_v55 = vld [vmem:[#allocation29_spill] sm:$0xff]  ;;  %v12816_v27 = vld [vmem:[#allocation30_spill] sm:$0xff] }
 0x136   :  { %v2664_v61 = vmul.f32 %v1056_v42, %v1056_v42  ;;  %v2665_v38 = vmul.f32 %v1057_v56, %v1057_v56  ;;  %v7109_v39 = vadd.f32 %v2658_v4, %v12807_v57  ;;  %v7112_v58 = vadd.f32 %v2659_v30, %v6256_v51  ;;  %v12818_v42 = vld [vmem:[#allocation31_spill] sm:$0xff] }
 0x137   :  { %v7115_v31 = vadd.f32 %v2660_v35, %v6258_v5  ;;  %v7118_v63 = vadd.f32 %v2661_v59, %v6260_v50  ;;  %v7121_v23 = vadd.f32 %v2662_v47, %v12812_v52  ;;  %v7124_v11 = vadd.f32 %v2663_v36, %v12814_v55  ;;  %v5745_v30 = vld [vmem:[%s5933_s21 + $0x38] sm:$0xff]  ;;  %v5746_v59 = vld [vmem:[%s5933_s21 + $0x50] sm:$0xff] }
 0x138   :  { %12808 = vst [vmem:[#allocation32_spill] sm:$0xff] %v7109_v39  ;;  %12809 = vst [vmem:[#allocation232_spill] sm:$0xff] %v7112_v58  ;;  %v7127_v57 = vadd.f32 %v2664_v61, %v12816_v27  ;;  %v7130_v51 = vadd.f32 %v2665_v38, %v12818_v42  ;;  %v1058_v5 = vsub.f32 %v768_v40, %v7006_v15  ;;  %1319 = vperm.xlu1 %5713, %v5745_v30   ;;  %v784_v44 = vpop.permute.xlu1 %783  ;;  %v12821_v39 = vld [vmem:[#allocation37_spill] sm:$0xff] }
 0x139   :  { %12810 = vst [vmem:[#allocation233_spill] sm:$0xff] %v7115_v31  ;;  %12811 = vst [vmem:[#allocation234_spill] sm:$0xff] %v7118_v63  ;;  %v1059_v56 = vsub.f32 %v768_v40, %v7010_v7  ;;  %v1060_v50 = vsub.f32 %v768_v40, %v7016_v53  ;;  %v1061_v4 = vsub.f32 %v768_v40, %v7020_v41  ;;  %1331 = vperm.xlu0 %5714, %v5746_v59   ;;  %v788_v40 = vpop.permute.xlu0 %787  ;;  %v12825_v59 = vld [vmem:[#allocation39_spill] sm:$0xff] }
 0x13a   :  { %12813 = vst [vmem:[#allocation28_spill] sm:$0xff] %v7121_v23  ;;  %12815 = vst [vmem:[#allocation29_spill] sm:$0xff] %v7124_v11  ;;  %v1062_v47 = vsub.f32 %v772_v3, %v7006_v15  ;;  %v1063_v36 = vsub.f32 %v772_v3, %v7010_v7  ;;  %v1064_v61 = vsub.f32 %v772_v3, %v7016_v53 }
 0x13b   :  { %12817 = vst [vmem:[#allocation30_spill] sm:$0xff] %v7127_v57  ;;  %12819 = vst [vmem:[#allocation31_spill] sm:$0xff] %v7130_v51  ;;  %v1065_v35 = vsub.f32 %v772_v3, %v7020_v41  ;;  %v2666_v38 = vmul.f32 %v1058_v5, %v1058_v5  ;;  %v2667_v52 = vmul.f32 %v1059_v56, %v1059_v56  ;;  %v12823_v3 = vld [vmem:[#allocation38_spill] sm:$0xff]  ;;  %v5747_v56 = vld [vmem:[%s5933_s21 + $0x48] sm:$0xff] }
 0x13c   :  { %v2668_v55 = vmul.f32 %v1060_v50, %v1060_v50  ;;  %v2669_v27 = vmul.f32 %v1061_v4, %v1061_v4  ;;  %v2670_v42 = vmul.f32 %v1062_v47, %v1062_v47  ;;  %v2671_v30 = vmul.f32 %v1063_v36, %v1063_v36  ;;  %1327 = vperm.xlu1 %5713, %v5747_v56   ;;  %v12827_v50 = vld [vmem:[#allocation33_spill] sm:$0xff]  ;;  %v12829_v47 = vld [vmem:[#allocation34_spill] sm:$0xff] }
 0x13d   :  { %v2672_v63 = vmul.f32 %v1064_v61, %v1064_v61  ;;  %v2673_v31 = vmul.f32 %v1065_v35, %v1065_v35  ;;  %v7143_v58 = vadd.f32 %v2666_v38, %v6271_v54  ;;  %v7146_v51 = vadd.f32 %v2667_v52, %v12821_v39  ;;  %v12831_v61 = vld [vmem:[#allocation35_spill] sm:$0xff]  ;;  %v12833_v35 = vld [vmem:[#allocation36_spill] sm:$0xff]  ;;  %v7168_v52 = vpop.permute.xlu1 %791 }
 0x13e   :  { %v7149_v57 = vadd.f32 %v2668_v55, %v12823_v3  ;;  %v7152_v5 = vadd.f32 %v2669_v27, %v12825_v59  ;;  %v7156_v4 = vadd.f32 %v2670_v42, %v12827_v50  ;;  %v7159_v36 = vadd.f32 %v2671_v30, %v12829_v47  ;;  %v5748_v38 = vld [vmem:[%s5933_s21 + $0x60] sm:$0xff]  ;;  %v7174_v3 = vpop.permute.xlu0 %795 }
 0x13f   :  { %12820 = vst [vmem:[#allocation235_spill] sm:$0xff] %v7143_v58  ;;  %12822 = vst [vmem:[#allocation37_spill] sm:$0xff] %v7146_v51  ;;  %v7162_v54 = vadd.f32 %v2672_v63, %v12831_v61  ;;  %v7165_v39 = vadd.f32 %v2673_v31, %v12833_v35  ;;  %1339 = vperm.xlu0 %5714, %v5748_v38   ;;  %v1066_v55 = vsub.f32 %v776_v45, %v7006_v15  ;;  %v5749_v38 = vld [vmem:[%s5933_s21 + $0x58] sm:$0xff]  ;;  %v5750_v58 = vld [vmem:[%s5933_s21 + $0x70] sm:$0xff] }
 0x140   :  { %12824 = vst [vmem:[#allocation38_spill] sm:$0xff] %v7149_v57  ;;  %12826 = vst [vmem:[#allocation39_spill] sm:$0xff] %v7152_v5  ;;  %v1067_v27 = vsub.f32 %v776_v45, %v7010_v7  ;;  %v1068_v42 = vsub.f32 %v776_v45, %v7016_v53  ;;  %v1069_v30 = vsub.f32 %v776_v45, %v7020_v41  ;;  %1335 = vperm.xlu1 %5713, %v5749_v38  }
 0x141   :  { %12828 = vst [vmem:[#allocation33_spill] sm:$0xff] %v7156_v4  ;;  %12830 = vst [vmem:[#allocation34_spill] sm:$0xff] %v7159_v36  ;;  %v1070_v63 = vsub.f32 %v780_v34, %v7006_v15  ;;  %v1071_v31 = vsub.f32 %v780_v34, %v7010_v7  ;;  %v1072_v59 = vsub.f32 %v780_v34, %v7016_v53  ;;  %v5788_v4 = vld [vmem:[%s5933_s21 + $0x1a0] sm:$0xff] }
 0x142   :  { %12832 = vst [vmem:[#allocation35_spill] sm:$0xff] %v7162_v54  ;;  %12834 = vst [vmem:[#allocation36_spill] sm:$0xff] %v7165_v39  ;;  %v1073_v56 = vsub.f32 %v780_v34, %v7020_v41  ;;  %v2674_v50 = vmul.f32 %v1066_v55, %v1066_v55  ;;  %v2675_v47 = vmul.f32 %v1067_v27, %v1067_v27  ;;  %v7182_v39 = vpop.permute.xlu1 %799  ;;  %v12835_v54 = vld [vmem:[#allocation44_spill] sm:$0xff] }
 0x143   :  { %v2676_v61 = vmul.f32 %v1068_v42, %v1068_v42  ;;  %v2677_v35 = vmul.f32 %v1069_v30, %v1069_v30  ;;  %v2678_v5 = vmul.f32 %v1070_v63, %v1070_v63  ;;  %v2679_v57 = vmul.f32 %v1071_v31, %v1071_v31  ;;  %1347 = vperm.xlu0 %5714, %v5750_v58   ;;  %v7196_v42 = vpop.permute.xlu0 %803  ;;  %v12840_v30 = vld [vmem:[#allocation40_spill] sm:$0xff]  ;;  %v12842_v58 = vld [vmem:[#allocation41_spill] sm:$0xff] }
 0x144   :  { %v2680_v45 = vmul.f32 %v1072_v59, %v1072_v59  ;;  %v2681_v51 = vmul.f32 %v1073_v56, %v1073_v56  ;;  %v7185_v36 = vadd.f32 %v2674_v50, %v12835_v54  ;;  %v7188_v34 = vadd.f32 %v2675_v47, %v6308_v1  ;;  %v12844_v54 = vld [vmem:[#allocation42_spill] sm:$0xff]  ;;  %v12846_v1 = vld [vmem:[#allocation43_spill] sm:$0xff] }
 0x145   :  { %v7191_v55 = vadd.f32 %v2676_v61, %v6310_v9  ;;  %v7194_v27 = vadd.f32 %v2677_v35, %v6312_v60  ;;  %v7199_v63 = vadd.f32 %v2678_v5, %v12840_v30  ;;  %v7202_v31 = vadd.f32 %v2679_v57, %v12842_v58  ;;  %v5751_v61 = vld [vmem:[%s5933_s21 + $0x68] sm:$0xff] }
 0x146   :  { %12836 = vst [vmem:[#allocation44_spill] sm:$0xff] %v7185_v36  ;;  %12837 = vst [vmem:[#allocation236_spill] sm:$0xff] %v7188_v34  ;;  %v7205_v59 = vadd.f32 %v2680_v45, %v12844_v54  ;;  %v7208_v56 = vadd.f32 %v2681_v51, %v12846_v1  ;;  %v1074_v9 = vsub.f32 %v784_v44, %v7006_v15  ;;  %1343 = vperm.xlu1 %5713, %v5751_v61   ;;  %v5752_v51 = vld [vmem:[%s5933_s21 + $0x80] sm:$0xff]  ;;  %v7220_v45 = vpop.permute.xlu1 %807 }
 0x147   :  { %12838 = vst [vmem:[#allocation237_spill] sm:$0xff] %v7191_v55  ;;  %12839 = vst [vmem:[#allocation238_spill] sm:$0xff] %v7194_v27  ;;  %v1075_v60 = vsub.f32 %v784_v44, %v7010_v7  ;;  %v1076_v50 = vsub.f32 %v784_v44, %v7016_v53  ;;  %v1077_v47 = vsub.f32 %v784_v44, %v7020_v41  ;;  %1355 = vperm.xlu0 %5714, %v5752_v51   ;;  %v7222_v44 = vpop.permute.xlu0 %811  ;;  %v12851_v51 = vld [vmem:[#allocation50_spill] sm:$0xff] }
 0x148   :  { %12841 = vst [vmem:[#allocation40_spill] sm:$0xff] %v7199_v63  ;;  %12843 = vst [vmem:[#allocation41_spill] sm:$0xff] %v7202_v31  ;;  %v1078_v5 = vsub.f32 %v788_v40, %v7006_v15  ;;  %v1079_v57 = vsub.f32 %v788_v40, %v7010_v7  ;;  %v1080_v35 = vsub.f32 %v788_v40, %v7016_v53 }
 0x149   :  { %12845 = vst [vmem:[#allocation42_spill] sm:$0xff] %v7205_v59  ;;  %12847 = vst [vmem:[#allocation43_spill] sm:$0xff] %v7208_v56  ;;  %v1081_v38 = vsub.f32 %v788_v40, %v7020_v41  ;;  %v2682_v30 = vmul.f32 %v1074_v9, %v1074_v9  ;;  %v2683_v58 = vmul.f32 %v1075_v60, %v1075_v60  ;;  %v12849_v40 = vld [vmem:[#allocation49_spill] sm:$0xff]  ;;  %v12853_v9 = vld [vmem:[#allocation51_spill] sm:$0xff] }
 0x14a   :  { %v2684_v54 = vmul.f32 %v1076_v50, %v1076_v50  ;;  %v2685_v1 = vmul.f32 %v1077_v47, %v1077_v47  ;;  %v2686_v61 = vmul.f32 %v1078_v5, %v1078_v5  ;;  %v2687_v27 = vmul.f32 %v1079_v57, %v1079_v57  ;;  %v5753_v50 = vld [vmem:[%s5933_s21 + $0x78] sm:$0xff]  ;;  %v12855_v47 = vld [vmem:[#allocation45_spill] sm:$0xff]  ;;  %v12857_v5 = vld [vmem:[#allocation46_spill] sm:$0xff] }
 0x14b   :  { %v2688_v55 = vmul.f32 %v1080_v35, %v1080_v35  ;;  %v2689_v34 = vmul.f32 %v1081_v38, %v1081_v38  ;;  %v7225_v36 = vadd.f32 %v2682_v30, %v6323_v0  ;;  %v7228_v56 = vadd.f32 %v2683_v58, %v12849_v40  ;;  %1351 = vperm.xlu1 %5713, %v5753_v50   ;;  %v12859_v35 = vld [vmem:[#allocation47_spill] sm:$0xff]  ;;  %v12861_v38 = vld [vmem:[#allocation48_spill] sm:$0xff]  ;;  %v5754_v58 = vld [vmem:[%s5933_s21 + $0x90] sm:$0xff] }
 0x14c   :  { %v7231_v59 = vadd.f32 %v2684_v54, %v12851_v51  ;;  %v7234_v60 = vadd.f32 %v2685_v1, %v12853_v9  ;;  %v7238_v31 = vadd.f32 %v2686_v61, %v12855_v47  ;;  %v7241_v57 = vadd.f32 %v2687_v27, %v12857_v5  ;;  %1363 = vperm.xlu0 %5714, %v5754_v58   ;;  %v7250_v54 = vpop.permute.xlu1 %815 }
 0x14d   :  { %12848 = vst [vmem:[#allocation239_spill] sm:$0xff] %v7225_v36  ;;  %12850 = vst [vmem:[#allocation49_spill] sm:$0xff] %v7228_v56  ;;  %v7244_v0 = vadd.f32 %v2688_v55, %v12859_v35  ;;  %v7247_v30 = vadd.f32 %v2689_v34, %v12861_v38  ;;  %v1082_v1 = vsub.f32 %v7168_v52, %v7006_v15  ;;  %v7260_v34 = vpop.permute.xlu0 %819  ;;  %v5756_v36 = vld [vmem:[%s5933_s21 + $0xa0] sm:$0xff] }
 0x14e   :  { %12852 = vst [vmem:[#allocation50_spill] sm:$0xff] %v7231_v59  ;;  %12854 = vst [vmem:[#allocation51_spill] sm:$0xff] %v7234_v60  ;;  %v1083_v61 = vsub.f32 %v7168_v52, %v7010_v7  ;;  %v1084_v27 = vsub.f32 %v7168_v52, %v7016_v53  ;;  %v1085_v55 = vsub.f32 %v7168_v52, %v7020_v41  ;;  %v5755_v52 = vld [vmem:[%s5933_s21 + $0x88] sm:$0xff] }
 0x14f   :  { %12856 = vst [vmem:[#allocation45_spill] sm:$0xff] %v7238_v31  ;;  %12858 = vst [vmem:[#allocation46_spill] sm:$0xff] %v7241_v57  ;;  %v1086_v40 = vsub.f32 %v7174_v3, %v7006_v15  ;;  %v1087_v51 = vsub.f32 %v7174_v3, %v7010_v7  ;;  %v1088_v9 = vsub.f32 %v7174_v3, %v7016_v53  ;;  %1359 = vperm.xlu1 %5713, %v5755_v52   ;;  %v5758_v52 = vld [vmem:[%s5933_s21 + $0xb0] sm:$0xff] }
 0x150   :  { %12860 = vst [vmem:[#allocation47_spill] sm:$0xff] %v7244_v0  ;;  %12862 = vst [vmem:[#allocation48_spill] sm:$0xff] %v7247_v30  ;;  %v1089_v50 = vsub.f32 %v7174_v3, %v7020_v41  ;;  %v2690_v47 = vmul.f32 %v1082_v1, %v1082_v1  ;;  %v2691_v5 = vmul.f32 %v1083_v61, %v1083_v61  ;;  %1371 = vperm.xlu0 %5714, %v5756_v36   ;;  %v7272_v30 = vpop.permute.xlu1 %823  ;;  %v12863_v0 = vld [vmem:[#allocation56_spill] sm:$0xff]  ;;  %v12870_v36 = vld [vmem:[#allocation53_spill] sm:$0xff] }
 0x151   :  { %v2692_v35 = vmul.f32 %v1084_v27, %v1084_v27  ;;  %v2693_v38 = vmul.f32 %v1085_v55, %v1085_v55  ;;  %v2694_v58 = vmul.f32 %v1086_v40, %v1086_v40  ;;  %v2695_v60 = vmul.f32 %v1087_v51, %v1087_v51  ;;  %v7286_v27 = vpop.permute.xlu0 %827  ;;  %v12868_v55 = vld [vmem:[#allocation52_spill] sm:$0xff] }
 0x152   :  { %v2696_v59 = vmul.f32 %v1088_v9, %v1088_v9  ;;  %v2697_v56 = vmul.f32 %v1089_v50, %v1089_v50  ;;  %v7275_v57 = vadd.f32 %v2690_v47, %v12863_v0  ;;  %v7278_v3 = vadd.f32 %v2691_v5, %v6360_v8  ;;  %v12872_v0 = vld [vmem:[#allocation54_spill] sm:$0xff]  ;;  %v12874_v8 = vld [vmem:[#allocation55_spill] sm:$0xff] }
 0x153   :  { %v7281_v1 = vadd.f32 %v2692_v35, %v6362_v13  ;;  %v7284_v61 = vadd.f32 %v2693_v38, %v6364_v48  ;;  %v7289_v40 = vadd.f32 %v2694_v58, %v12868_v55  ;;  %v7292_v51 = vadd.f32 %v2695_v60, %v12870_v36  ;;  %v5757_v60 = vld [vmem:[%s5933_s21 + $0x98] sm:$0xff] }
 0x154   :  { %12864 = vst [vmem:[#allocation56_spill] sm:$0xff] %v7275_v57  ;;  %12865 = vst [vmem:[#allocation240_spill] sm:$0xff] %v7278_v3  ;;  %v7295_v9 = vadd.f32 %v2696_v59, %v12872_v0  ;;  %v7298_v50 = vadd.f32 %v2697_v56, %v12874_v8  ;;  %v1090_v13 = vsub.f32 %v7182_v39, %v7006_v15  ;;  %1367 = vperm.xlu1 %5713, %v5757_v60   ;;  %v7318_v58 = vpop.permute.xlu1 %831 }
 0x155   :  { %12866 = vst [vmem:[#allocation241_spill] sm:$0xff] %v7281_v1  ;;  %12867 = vst [vmem:[#allocation242_spill] sm:$0xff] %v7284_v61  ;;  %v1091_v48 = vsub.f32 %v7182_v39, %v7010_v7  ;;  %v1092_v47 = vsub.f32 %v7182_v39, %v7016_v53  ;;  %v1093_v5 = vsub.f32 %v7182_v39, %v7020_v41  ;;  %1379 = vperm.xlu0 %5714, %v5758_v52   ;;  %v7320_v8 = vpop.permute.xlu0 %835  ;;  %v12879_v52 = vld [vmem:[#allocation62_spill] sm:$0xff] }
 0x156   :  { %12869 = vst [vmem:[#allocation52_spill] sm:$0xff] %v7289_v40  ;;  %12871 = vst [vmem:[#allocation53_spill] sm:$0xff] %v7292_v51  ;;  %v1094_v59 = vsub.f32 %v7196_v42, %v7006_v15  ;;  %v1095_v56 = vsub.f32 %v7196_v42, %v7010_v7  ;;  %v1096_v35 = vsub.f32 %v7196_v42, %v7016_v53 }
 0x157   :  { %12873 = vst [vmem:[#allocation54_spill] sm:$0xff] %v7295_v9  ;;  %12875 = vst [vmem:[#allocation55_spill] sm:$0xff] %v7298_v50  ;;  %v1097_v38 = vsub.f32 %v7196_v42, %v7020_v41  ;;  %v2698_v39 = vmul.f32 %v1090_v13, %v1090_v13  ;;  %v2699_v55 = vmul.f32 %v1091_v48, %v1091_v48  ;;  %v12877_v42 = vld [vmem:[#allocation61_spill] sm:$0xff]  ;;  %v12881_v13 = vld [vmem:[#allocation63_spill] sm:$0xff] }
 0x158   :  { %v2700_v36 = vmul.f32 %v1092_v47, %v1092_v47  ;;  %v2701_v0 = vmul.f32 %v1093_v5, %v1093_v5  ;;  %v2702_v60 = vmul.f32 %v1094_v59, %v1094_v59  ;;  %v2703_v61 = vmul.f32 %v1095_v56, %v1095_v56  ;;  %v5759_v47 = vld [vmem:[%s5933_s21 + $0xa8] sm:$0xff]  ;;  %v12885_v59 = vld [vmem:[#allocation58_spill] sm:$0xff] }
 0x159   :  { %v2704_v1 = vmul.f32 %v1096_v35, %v1096_v35  ;;  %v2705_v3 = vmul.f32 %v1097_v38, %v1097_v38  ;;  %v7323_v57 = vadd.f32 %v2698_v39, %v6375_v6  ;;  %v7326_v50 = vadd.f32 %v2699_v55, %v12877_v42  ;;  %1375 = vperm.xlu1 %5713, %v5759_v47   ;;  %v12883_v5 = vld [vmem:[#allocation57_spill] sm:$0xff]  ;;  %v12887_v35 = vld [vmem:[#allocation59_spill] sm:$0xff]  ;;  %v12889_v38 = vld [vmem:[#allocation60_spill] sm:$0xff] }
 0x15a   :  { %v7329_v9 = vadd.f32 %v2700_v36, %v12879_v52  ;;  %v7332_v48 = vadd.f32 %v2701_v0, %v12881_v13  ;;  %v7336_v51 = vadd.f32 %v2702_v60, %v12883_v5  ;;  %v7339_v56 = vadd.f32 %v2703_v61, %v12885_v59  ;;  %v5760_v55 = vld [vmem:[%s5933_s21 + $0xc0] sm:$0xff]  ;;  %v7348_v36 = vpop.permute.xlu1 %839 }
 0x15b   :  { %12876 = vst [vmem:[#allocation243_spill] sm:$0xff] %v7323_v57  ;;  %12878 = vst [vmem:[#allocation61_spill] sm:$0xff] %v7326_v50  ;;  %v7342_v6 = vadd.f32 %v2704_v1, %v12887_v35  ;;  %v7345_v39 = vadd.f32 %v2705_v3, %v12889_v38  ;;  %1387 = vperm.xlu0 %5714, %v5760_v55   ;;  %v1098_v0 = vsub.f32 %v7220_v45, %v7006_v15  ;;  %v7358_v3 = vpop.permute.xlu0 %843  ;;  %v5762_v57 = vld [vmem:[%s5933_s21 + $0xd0] sm:$0xff] }
 0x15c   :  { %12880 = vst [vmem:[#allocation62_spill] sm:$0xff] %v7329_v9  ;;  %12882 = vst [vmem:[#allocation63_spill] sm:$0xff] %v7332_v48  ;;  %v1099_v60 = vsub.f32 %v7220_v45, %v7010_v7  ;;  %v1100_v61 = vsub.f32 %v7220_v45, %v7016_v53  ;;  %v1101_v1 = vsub.f32 %v7220_v45, %v7020_v41  ;;  %v5761_v45 = vld [vmem:[%s5933_s21 + $0xb8] sm:$0xff] }
 0x15d   :  { %12884 = vst [vmem:[#allocation57_spill] sm:$0xff] %v7336_v51  ;;  %12886 = vst [vmem:[#allocation58_spill] sm:$0xff] %v7339_v56  ;;  %v1102_v42 = vsub.f32 %v7222_v44, %v7006_v15  ;;  %v1103_v52 = vsub.f32 %v7222_v44, %v7010_v7  ;;  %v1104_v13 = vsub.f32 %v7222_v44, %v7016_v53  ;;  %1383 = vperm.xlu1 %5713, %v5761_v45   ;;  %v5764_v45 = vld [vmem:[%s5933_s21 + $0xe0] sm:$0xff] }
 0x15e   :  { %12888 = vst [vmem:[#allocation59_spill] sm:$0xff] %v7342_v6  ;;  %12890 = vst [vmem:[#allocation60_spill] sm:$0xff] %v7345_v39  ;;  %v1105_v47 = vsub.f32 %v7222_v44, %v7020_v41  ;;  %v2706_v5 = vmul.f32 %v1098_v0, %v1098_v0  ;;  %v2707_v59 = vmul.f32 %v1099_v60, %v1099_v60  ;;  %v7370_v39 = vpop.permute.xlu1 %847  ;;  %v12891_v6 = vld [vmem:[#allocation68_spill] sm:$0xff] }
 0x15f   :  { %v2708_v35 = vmul.f32 %v1100_v61, %v1100_v61  ;;  %v2709_v38 = vmul.f32 %v1101_v1, %v1101_v1  ;;  %v2710_v55 = vmul.f32 %v1102_v42, %v1102_v42  ;;  %v2711_v48 = vmul.f32 %v1103_v52, %v1103_v52  ;;  %1395 = vperm.xlu0 %5714, %v5762_v57   ;;  %v7384_v61 = vpop.permute.xlu0 %851  ;;  %v12896_v1 = vld [vmem:[#allocation64_spill] sm:$0xff]  ;;  %v12898_v57 = vld [vmem:[#allocation65_spill] sm:$0xff] }
 0x160   :  { %v2712_v9 = vmul.f32 %v1104_v13, %v1104_v13  ;;  %v2713_v50 = vmul.f32 %v1105_v47, %v1105_v47  ;;  %v7373_v56 = vadd.f32 %v2706_v5, %v12891_v6  ;;  %v7376_v44 = vadd.f32 %v2707_v59, %v6412_v12  ;;  %v12900_v6 = vld [vmem:[#allocation66_spill] sm:$0xff]  ;;  %v12902_v12 = vld [vmem:[#allocation67_spill] sm:$0xff] }
 0x161   :  { %v7379_v0 = vadd.f32 %v2708_v35, %v6414_v17  ;;  %v7382_v60 = vadd.f32 %v2709_v38, %v6416_v2  ;;  %v7387_v42 = vadd.f32 %v2710_v55, %v12896_v1  ;;  %v7390_v52 = vadd.f32 %v2711_v48, %v12898_v57  ;;  %v5763_v48 = vld [vmem:[%s5933_s21 + $0xc8] sm:$0xff] }
 0x162   :  { %12892 = vst [vmem:[#allocation68_spill] sm:$0xff] %v7373_v56  ;;  %12893 = vst [vmem:[#allocation244_spill] sm:$0xff] %v7376_v44  ;;  %v7393_v13 = vadd.f32 %v2712_v9, %v12900_v6  ;;  %v7396_v47 = vadd.f32 %v2713_v50, %v12902_v12  ;;  %v1106_v17 = vsub.f32 %v7250_v54, %v7006_v15  ;;  %1391 = vperm.xlu1 %5713, %v5763_v48   ;;  %v7416_v55 = vpop.permute.xlu1 %855 }
 0x163   :  { %12894 = vst [vmem:[#allocation245_spill] sm:$0xff] %v7379_v0  ;;  %12895 = vst [vmem:[#allocation246_spill] sm:$0xff] %v7382_v60  ;;  %v1107_v2 = vsub.f32 %v7250_v54, %v7010_v7  ;;  %v1108_v5 = vsub.f32 %v7250_v54, %v7016_v53  ;;  %v1109_v59 = vsub.f32 %v7250_v54, %v7020_v41  ;;  %1403 = vperm.xlu0 %5714, %v5764_v45   ;;  %v7418_v12 = vpop.permute.xlu0 %859  ;;  %v12907_v45 = vld [vmem:[#allocation74_spill] sm:$0xff] }
 0x164   :  { %12897 = vst [vmem:[#allocation64_spill] sm:$0xff] %v7387_v42  ;;  %12899 = vst [vmem:[#allocation65_spill] sm:$0xff] %v7390_v52  ;;  %v1110_v9 = vsub.f32 %v7260_v34, %v7006_v15  ;;  %v1111_v50 = vsub.f32 %v7260_v34, %v7010_v7  ;;  %v1112_v35 = vsub.f32 %v7260_v34, %v7016_v53 }
 0x165   :  { %12901 = vst [vmem:[#allocation66_spill] sm:$0xff] %v7393_v13  ;;  %12903 = vst [vmem:[#allocation67_spill] sm:$0xff] %v7396_v47  ;;  %v1113_v38 = vsub.f32 %v7260_v34, %v7020_v41  ;;  %v2714_v54 = vmul.f32 %v1106_v17, %v1106_v17  ;;  %v2715_v1 = vmul.f32 %v1107_v2, %v1107_v2  ;;  %v12905_v34 = vld [vmem:[#allocation73_spill] sm:$0xff]  ;;  %v12909_v17 = vld [vmem:[#allocation75_spill] sm:$0xff] }
 0x166   :  { %v2716_v57 = vmul.f32 %v1108_v5, %v1108_v5  ;;  %v2717_v6 = vmul.f32 %v1109_v59, %v1109_v59  ;;  %v2718_v48 = vmul.f32 %v1110_v9, %v1110_v9  ;;  %v2719_v60 = vmul.f32 %v1111_v50, %v1111_v50  ;;  %v5765_v5 = vld [vmem:[%s5933_s21 + $0xd8] sm:$0xff]  ;;  %v12911_v59 = vld [vmem:[#allocation69_spill] sm:$0xff]  ;;  %v12913_v9 = vld [vmem:[#allocation70_spill] sm:$0xff] }
 0x167   :  { %v2720_v0 = vmul.f32 %v1112_v35, %v1112_v35  ;;  %v2721_v44 = vmul.f32 %v1113_v38, %v1113_v38  ;;  %v7421_v56 = vadd.f32 %v2714_v54, %v6427_v10  ;;  %v7424_v47 = vadd.f32 %v2715_v1, %v12905_v34  ;;  %1399 = vperm.xlu1 %5713, %v5765_v5   ;;  %v12915_v35 = vld [vmem:[#allocation71_spill] sm:$0xff]  ;;  %v12917_v38 = vld [vmem:[#allocation72_spill] sm:$0xff]  ;;  %v5766_v1 = vld [vmem:[%s5933_s21 + $0xf0] sm:$0xff] }
 0x168   :  { %v7427_v13 = vadd.f32 %v2716_v57, %v12907_v45  ;;  %v7430_v2 = vadd.f32 %v2717_v6, %v12909_v17  ;;  %v7434_v52 = vadd.f32 %v2718_v48, %v12911_v59  ;;  %v7437_v50 = vadd.f32 %v2719_v60, %v12913_v9  ;;  %1411 = vperm.xlu0 %5714, %v5766_v1   ;;  %v7446_v57 = vpop.permute.xlu1 %863 }
 0x169   :  { %12904 = vst [vmem:[#allocation247_spill] sm:$0xff] %v7421_v56  ;;  %12906 = vst [vmem:[#allocation73_spill] sm:$0xff] %v7424_v47  ;;  %v7440_v10 = vadd.f32 %v2720_v0, %v12915_v35  ;;  %v7443_v54 = vadd.f32 %v2721_v44, %v12917_v38  ;;  %v1114_v6 = vsub.f32 %v7272_v30, %v7006_v15  ;;  %v7456_v44 = vpop.permute.xlu0 %867  ;;  %v5768_v56 = vld [vmem:[%s5933_s21 + $0x100] sm:$0xff] }
 0x16a   :  { %12908 = vst [vmem:[#allocation74_spill] sm:$0xff] %v7427_v13  ;;  %12910 = vst [vmem:[#allocation75_spill] sm:$0xff] %v7430_v2  ;;  %v1115_v48 = vsub.f32 %v7272_v30, %v7010_v7  ;;  %v1116_v60 = vsub.f32 %v7272_v30, %v7016_v53  ;;  %v1117_v0 = vsub.f32 %v7272_v30, %v7020_v41  ;;  %v5767_v30 = vld [vmem:[%s5933_s21 + $0xe8] sm:$0xff] }
 0x16b   :  { %12912 = vst [vmem:[#allocation69_spill] sm:$0xff] %v7434_v52  ;;  %12914 = vst [vmem:[#allocation70_spill] sm:$0xff] %v7437_v50  ;;  %v1118_v34 = vsub.f32 %v7286_v27, %v7006_v15  ;;  %v1119_v45 = vsub.f32 %v7286_v27, %v7010_v7  ;;  %v1120_v17 = vsub.f32 %v7286_v27, %v7016_v53  ;;  %1407 = vperm.xlu1 %5713, %v5767_v30   ;;  %v5770_v30 = vld [vmem:[%s5933_s21 + $0x110] sm:$0xff] }
 0x16c   :  { %12916 = vst [vmem:[#allocation71_spill] sm:$0xff] %v7440_v10  ;;  %12918 = vst [vmem:[#allocation72_spill] sm:$0xff] %v7443_v54  ;;  %v1121_v5 = vsub.f32 %v7286_v27, %v7020_v41  ;;  %v2722_v59 = vmul.f32 %v1114_v6, %v1114_v6  ;;  %v2723_v9 = vmul.f32 %v1115_v48, %v1115_v48  ;;  %1419 = vperm.xlu0 %5714, %v5768_v56   ;;  %v7468_v54 = vpop.permute.xlu1 %871  ;;  %v12919_v10 = vld [vmem:[#allocation80_spill] sm:$0xff]  ;;  %v12926_v56 = vld [vmem:[#allocation77_spill] sm:$0xff] }
 0x16d   :  { %v2724_v35 = vmul.f32 %v1116_v60, %v1116_v60  ;;  %v2725_v38 = vmul.f32 %v1117_v0, %v1117_v0  ;;  %v2726_v1 = vmul.f32 %v1118_v34, %v1118_v34  ;;  %v2727_v2 = vmul.f32 %v1119_v45, %v1119_v45  ;;  %v7482_v60 = vpop.permute.xlu0 %875  ;;  %v12924_v0 = vld [vmem:[#allocation76_spill] sm:$0xff] }
 0x16e   :  { %v2728_v13 = vmul.f32 %v1120_v17, %v1120_v17  ;;  %v2729_v47 = vmul.f32 %v1121_v5, %v1121_v5  ;;  %v7471_v50 = vadd.f32 %v2722_v59, %v12919_v10  ;;  %v7474_v27 = vadd.f32 %v2723_v9, %v6464_v16  ;;  %v12928_v10 = vld [vmem:[#allocation78_spill] sm:$0xff]  ;;  %v12930_v16 = vld [vmem:[#allocation79_spill] sm:$0xff] }
 0x16f   :  { %v7477_v6 = vadd.f32 %v2724_v35, %v6466_v21  ;;  %v7480_v48 = vadd.f32 %v2725_v38, %v6468_v49  ;;  %v7485_v34 = vadd.f32 %v2726_v1, %v12924_v0  ;;  %v7488_v45 = vadd.f32 %v2727_v2, %v12926_v56  ;;  %v5769_v2 = vld [vmem:[%s5933_s21 + $0xf8] sm:$0xff] }
 0x170   :  { %12920 = vst [vmem:[#allocation80_spill] sm:$0xff] %v7471_v50  ;;  %12921 = vst [vmem:[#allocation248_spill] sm:$0xff] %v7474_v27  ;;  %v7491_v17 = vadd.f32 %v2728_v13, %v12928_v10  ;;  %v7494_v5 = vadd.f32 %v2729_v47, %v12930_v16  ;;  %v1122_v21 = vsub.f32 %v7318_v58, %v7006_v15  ;;  %1415 = vperm.xlu1 %5713, %v5769_v2   ;;  %v7514_v1 = vpop.permute.xlu1 %879 }
 0x171   :  { %12922 = vst [vmem:[#allocation249_spill] sm:$0xff] %v7477_v6  ;;  %12923 = vst [vmem:[#allocation250_spill] sm:$0xff] %v7480_v48  ;;  %v1123_v49 = vsub.f32 %v7318_v58, %v7010_v7  ;;  %v1124_v59 = vsub.f32 %v7318_v58, %v7016_v53  ;;  %v1125_v9 = vsub.f32 %v7318_v58, %v7020_v41  ;;  %1427 = vperm.xlu0 %5714, %v5770_v30   ;;  %v7516_v16 = vpop.permute.xlu0 %883  ;;  %v12935_v30 = vld [vmem:[#allocation86_spill] sm:$0xff] }
 0x172   :  { %12925 = vst [vmem:[#allocation76_spill] sm:$0xff] %v7485_v34  ;;  %12927 = vst [vmem:[#allocation77_spill] sm:$0xff] %v7488_v45  ;;  %v1126_v13 = vsub.f32 %v7320_v8, %v7006_v15  ;;  %v1127_v47 = vsub.f32 %v7320_v8, %v7010_v7  ;;  %v1128_v35 = vsub.f32 %v7320_v8, %v7016_v53 }
 0x173   :  { %12929 = vst [vmem:[#allocation78_spill] sm:$0xff] %v7491_v17  ;;  %12931 = vst [vmem:[#allocation79_spill] sm:$0xff] %v7494_v5  ;;  %v1129_v38 = vsub.f32 %v7320_v8, %v7020_v41  ;;  %v2730_v58 = vmul.f32 %v1122_v21, %v1122_v21  ;;  %v2731_v0 = vmul.f32 %v1123_v49, %v1123_v49  ;;  %v12933_v8 = vld [vmem:[#allocation85_spill] sm:$0xff]  ;;  %v12937_v21 = vld [vmem:[#allocation87_spill] sm:$0xff] }
 0x174   :  { %v2732_v56 = vmul.f32 %v1124_v59, %v1124_v59  ;;  %v2733_v10 = vmul.f32 %v1125_v9, %v1125_v9  ;;  %v2734_v2 = vmul.f32 %v1126_v13, %v1126_v13  ;;  %v2735_v48 = vmul.f32 %v1127_v47, %v1127_v47  ;;  %v5771_v59 = vld [vmem:[%s5933_s21 + $0x108] sm:$0xff]  ;;  %v12941_v13 = vld [vmem:[#allocation82_spill] sm:$0xff] }
 0x175   :  { %v2736_v6 = vmul.f32 %v1128_v35, %v1128_v35  ;;  %v2737_v27 = vmul.f32 %v1129_v38, %v1129_v38  ;;  %v7519_v50 = vadd.f32 %v2730_v58, %v6479_v14  ;;  %v7522_v5 = vadd.f32 %v2731_v0, %v12933_v8  ;;  %1423 = vperm.xlu1 %5713, %v5771_v59   ;;  %v12939_v9 = vld [vmem:[#allocation81_spill] sm:$0xff]  ;;  %v12943_v35 = vld [vmem:[#allocation83_spill] sm:$0xff]  ;;  %v12945_v38 = vld [vmem:[#allocation84_spill] sm:$0xff] }
 0x176   :  { %v7525_v17 = vadd.f32 %v2732_v56, %v12935_v30  ;;  %v7528_v49 = vadd.f32 %v2733_v10, %v12937_v21  ;;  %v7532_v45 = vadd.f32 %v2734_v2, %v12939_v9  ;;  %v7535_v47 = vadd.f32 %v2735_v48, %v12941_v13  ;;  %v5772_v0 = vld [vmem:[%s5933_s21 + $0x120] sm:$0xff]  ;;  %v7544_v56 = vpop.permute.xlu1 %887 }
 0x177   :  { %12932 = vst [vmem:[#allocation251_spill] sm:$0xff] %v7519_v50  ;;  %12934 = vst [vmem:[#allocation85_spill] sm:$0xff] %v7522_v5  ;;  %v7538_v14 = vadd.f32 %v2736_v6, %v12943_v35  ;;  %v7541_v58 = vadd.f32 %v2737_v27, %v12945_v38  ;;  %1435 = vperm.xlu0 %5714, %v5772_v0   ;;  %v1130_v10 = vsub.f32 %v7348_v36, %v7006_v15  ;;  %v7554_v27 = vpop.permute.xlu0 %891  ;;  %v5774_v50 = vld [vmem:[%s5933_s21 + $0x130] sm:$0xff] }
 0x178   :  { %12936 = vst [vmem:[#allocation86_spill] sm:$0xff] %v7525_v17  ;;  %12938 = vst [vmem:[#allocation87_spill] sm:$0xff] %v7528_v49  ;;  %v1131_v2 = vsub.f32 %v7348_v36, %v7010_v7  ;;  %v1132_v48 = vsub.f32 %v7348_v36, %v7016_v53  ;;  %v1133_v6 = vsub.f32 %v7348_v36, %v7020_v41  ;;  %v5773_v36 = vld [vmem:[%s5933_s21 + $0x118] sm:$0xff] }
 0x179   :  { %12940 = vst [vmem:[#allocation81_spill] sm:$0xff] %v7532_v45  ;;  %12942 = vst [vmem:[#allocation82_spill] sm:$0xff] %v7535_v47  ;;  %v1134_v8 = vsub.f32 %v7358_v3, %v7006_v15  ;;  %v1135_v30 = vsub.f32 %v7358_v3, %v7010_v7  ;;  %v1136_v21 = vsub.f32 %v7358_v3, %v7016_v53  ;;  %1431 = vperm.xlu1 %5713, %v5773_v36   ;;  %v5776_v36 = vld [vmem:[%s5933_s21 + $0x140] sm:$0xff]  ;;  %v5786_v45 = vld [vmem:[%s5933_s21 + $0x190] sm:$0xff] }
 0x17a   :  { %12944 = vst [vmem:[#allocation83_spill] sm:$0xff] %v7538_v14  ;;  %12946 = vst [vmem:[#allocation84_spill] sm:$0xff] %v7541_v58  ;;  %v1137_v59 = vsub.f32 %v7358_v3, %v7020_v41  ;;  %v2738_v9 = vmul.f32 %v1130_v10, %v1130_v10  ;;  %v2739_v13 = vmul.f32 %v1131_v2, %v1131_v2  ;;  %v7566_v58 = vpop.permute.xlu1 %895  ;;  %v12947_v14 = vld [vmem:[#allocation92_spill] sm:$0xff] }
 0x17b   :  { %v2740_v35 = vmul.f32 %v1132_v48, %v1132_v48  ;;  %v2741_v38 = vmul.f32 %v1133_v6, %v1133_v6  ;;  %v2742_v0 = vmul.f32 %v1134_v8, %v1134_v8  ;;  %v2743_v49 = vmul.f32 %v1135_v30, %v1135_v30  ;;  %1443 = vperm.xlu0 %5714, %v5774_v50   ;;  %v7580_v48 = vpop.permute.xlu0 %899  ;;  %v12952_v6 = vld [vmem:[#allocation88_spill] sm:$0xff]  ;;  %v12954_v50 = vld [vmem:[#allocation89_spill] sm:$0xff] }
 0x17c   :  { %v2744_v17 = vmul.f32 %v1136_v21, %v1136_v21  ;;  %v2745_v5 = vmul.f32 %v1137_v59, %v1137_v59  ;;  %v7569_v47 = vadd.f32 %v2738_v9, %v12947_v14  ;;  %v7572_v3 = vadd.f32 %v2739_v13, %v6516_v20  ;;  %v12956_v14 = vld [vmem:[#allocation90_spill] sm:$0xff]  ;;  %v12958_v20 = vld [vmem:[#allocation91_spill] sm:$0xff] }
 0x17d   :  { %v7575_v10 = vadd.f32 %v2740_v35, %v6518_v25  ;;  %v7578_v2 = vadd.f32 %v2741_v38, %v6520_v46  ;;  %v7583_v8 = vadd.f32 %v2742_v0, %v12952_v6  ;;  %v7586_v30 = vadd.f32 %v2743_v49, %v12954_v50  ;;  %v5775_v49 = vld [vmem:[%s5933_s21 + $0x128] sm:$0xff] }
 0x17e   :  { %12948 = vst [vmem:[#allocation92_spill] sm:$0xff] %v7569_v47  ;;  %12949 = vst [vmem:[#allocation252_spill] sm:$0xff] %v7572_v3  ;;  %v7589_v21 = vadd.f32 %v2744_v17, %v12956_v14  ;;  %v7592_v59 = vadd.f32 %v2745_v5, %v12958_v20  ;;  %v1138_v25 = vsub.f32 %v7370_v39, %v7006_v15  ;;  %1439 = vperm.xlu1 %5713, %v5775_v49   ;;  %v7612_v0 = vpop.permute.xlu1 %903 }
 0x17f   :  { %12950 = vst [vmem:[#allocation253_spill] sm:$0xff] %v7575_v10  ;;  %12951 = vst [vmem:[#allocation254_spill] sm:$0xff] %v7578_v2  ;;  %v1139_v46 = vsub.f32 %v7370_v39, %v7010_v7  ;;  %v1140_v9 = vsub.f32 %v7370_v39, %v7016_v53  ;;  %v1141_v13 = vsub.f32 %v7370_v39, %v7020_v41  ;;  %1451 = vperm.xlu0 %5714, %v5776_v36   ;;  %v7614_v20 = vpop.permute.xlu0 %907  ;;  %v12963_v36 = vld [vmem:[#allocation98_spill] sm:$0xff] }
 0x180   :  { %12953 = vst [vmem:[#allocation88_spill] sm:$0xff] %v7583_v8  ;;  %12955 = vst [vmem:[#allocation89_spill] sm:$0xff] %v7586_v30  ;;  %v1142_v17 = vsub.f32 %v7384_v61, %v7006_v15  ;;  %v1143_v5 = vsub.f32 %v7384_v61, %v7010_v7  ;;  %v1144_v35 = vsub.f32 %v7384_v61, %v7016_v53 }
 0x181   :  { %12957 = vst [vmem:[#allocation90_spill] sm:$0xff] %v7589_v21  ;;  %12959 = vst [vmem:[#allocation91_spill] sm:$0xff] %v7592_v59  ;;  %v1145_v38 = vsub.f32 %v7384_v61, %v7020_v41  ;;  %v2746_v39 = vmul.f32 %v1138_v25, %v1138_v25  ;;  %v2747_v6 = vmul.f32 %v1139_v46, %v1139_v46  ;;  %v12961_v61 = vld [vmem:[#allocation97_spill] sm:$0xff]  ;;  %v12965_v25 = vld [vmem:[#allocation99_spill] sm:$0xff] }
 0x182   :  { %v2748_v50 = vmul.f32 %v1140_v9, %v1140_v9  ;;  %v2749_v14 = vmul.f32 %v1141_v13, %v1141_v13  ;;  %v2750_v49 = vmul.f32 %v1142_v17, %v1142_v17  ;;  %v2751_v2 = vmul.f32 %v1143_v5, %v1143_v5  ;;  %v5777_v9 = vld [vmem:[%s5933_s21 + $0x138] sm:$0xff]  ;;  %v12967_v13 = vld [vmem:[#allocation93_spill] sm:$0xff]  ;;  %v12969_v17 = vld [vmem:[#allocation94_spill] sm:$0xff] }
 0x183   :  { %v2752_v10 = vmul.f32 %v1144_v35, %v1144_v35  ;;  %v2753_v3 = vmul.f32 %v1145_v38, %v1145_v38  ;;  %v7617_v47 = vadd.f32 %v2746_v39, %v6531_v18  ;;  %v7620_v59 = vadd.f32 %v2747_v6, %v12961_v61  ;;  %1447 = vperm.xlu1 %5713, %v5777_v9   ;;  %v12971_v35 = vld [vmem:[#allocation95_spill] sm:$0xff]  ;;  %v12973_v38 = vld [vmem:[#allocation96_spill] sm:$0xff]  ;;  %v5778_v6 = vld [vmem:[%s5933_s21 + $0x150] sm:$0xff] }
 0x184   :  { %v7623_v21 = vadd.f32 %v2748_v50, %v12963_v36  ;;  %v7626_v46 = vadd.f32 %v2749_v14, %v12965_v25  ;;  %v7630_v30 = vadd.f32 %v2750_v49, %v12967_v13  ;;  %v7633_v5 = vadd.f32 %v2751_v2, %v12969_v17  ;;  %1459 = vperm.xlu0 %5714, %v5778_v6   ;;  %v7642_v50 = vpop.permute.xlu1 %911 }
 0x185   :  { %12960 = vst [vmem:[#allocation255_spill] sm:$0xff] %v7617_v47  ;;  %12962 = vst [vmem:[#allocation97_spill] sm:$0xff] %v7620_v59  ;;  %v7636_v18 = vadd.f32 %v2752_v10, %v12971_v35  ;;  %v7639_v39 = vadd.f32 %v2753_v3, %v12973_v38  ;;  %v1146_v14 = vsub.f32 %v7416_v55, %v7006_v15  ;;  %v7652_v3 = vpop.permute.xlu0 %915  ;;  %v5780_v47 = vld [vmem:[%s5933_s21 + $0x160] sm:$0xff] }
 0x186   :  { %12964 = vst [vmem:[#allocation98_spill] sm:$0xff] %v7623_v21  ;;  %12966 = vst [vmem:[#allocation99_spill] sm:$0xff] %v7626_v46  ;;  %v1147_v49 = vsub.f32 %v7416_v55, %v7010_v7  ;;  %v1148_v2 = vsub.f32 %v7416_v55, %v7016_v53  ;;  %v1149_v10 = vsub.f32 %v7416_v55, %v7020_v41  ;;  %v5779_v55 = vld [vmem:[%s5933_s21 + $0x148] sm:$0xff] }
 0x187   :  { %12968 = vst [vmem:[#allocation93_spill] sm:$0xff] %v7630_v30  ;;  %12970 = vst [vmem:[#allocation94_spill] sm:$0xff] %v7633_v5  ;;  %v1150_v61 = vsub.f32 %v7418_v12, %v7006_v15  ;;  %v1151_v36 = vsub.f32 %v7418_v12, %v7010_v7  ;;  %v1152_v25 = vsub.f32 %v7418_v12, %v7016_v53  ;;  %1455 = vperm.xlu1 %5713, %v5779_v55   ;;  %v5782_v55 = vld [vmem:[%s5933_s21 + $0x170] sm:$0xff] }
 0x188   :  { %12972 = vst [vmem:[#allocation95_spill] sm:$0xff] %v7636_v18  ;;  %12974 = vst [vmem:[#allocation96_spill] sm:$0xff] %v7639_v39  ;;  %v1153_v9 = vsub.f32 %v7418_v12, %v7020_v41  ;;  %v2754_v13 = vmul.f32 %v1146_v14, %v1146_v14  ;;  %v2755_v17 = vmul.f32 %v1147_v49, %v1147_v49  ;;  %1467 = vperm.xlu0 %5714, %v5780_v47   ;;  %v7664_v39 = vpop.permute.xlu1 %919  ;;  %v12975_v18 = vld [vmem:[#allocation104_spill] sm:$0xff]  ;;  %v12982_v47 = vld [vmem:[#allocation101_spill] sm:$0xff] }
 0x189   :  { %v2756_v35 = vmul.f32 %v1148_v2, %v1148_v2  ;;  %v2757_v38 = vmul.f32 %v1149_v10, %v1149_v10  ;;  %v2758_v6 = vmul.f32 %v1150_v61, %v1150_v61  ;;  %v2759_v46 = vmul.f32 %v1151_v36, %v1151_v36  ;;  %v7678_v2 = vpop.permute.xlu0 %923  ;;  %v12980_v10 = vld [vmem:[#allocation100_spill] sm:$0xff] }
 0x18a   :  { %v2760_v21 = vmul.f32 %v1152_v25, %v1152_v25  ;;  %v2761_v59 = vmul.f32 %v1153_v9, %v1153_v9  ;;  %v7667_v5 = vadd.f32 %v2754_v13, %v12975_v18  ;;  %v7670_v12 = vadd.f32 %v2755_v17, %v6568_v24  ;;  %v12984_v18 = vld [vmem:[#allocation102_spill] sm:$0xff]  ;;  %v12986_v24 = vld [vmem:[#allocation103_spill] sm:$0xff] }
 0x18b   :  { %v7673_v14 = vadd.f32 %v2756_v35, %v6570_v29  ;;  %v7676_v49 = vadd.f32 %v2757_v38, %v6572_v62  ;;  %v7681_v61 = vadd.f32 %v2758_v6, %v12980_v10  ;;  %v7684_v36 = vadd.f32 %v2759_v46, %v12982_v47  ;;  %v5781_v46 = vld [vmem:[%s5933_s21 + $0x158] sm:$0xff] }
 0x18c   :  { %12976 = vst [vmem:[#allocation104_spill] sm:$0xff] %v7667_v5  ;;  %12977 = vst [vmem:[#allocation256_spill] sm:$0xff] %v7670_v12  ;;  %v7687_v25 = vadd.f32 %v2760_v21, %v12984_v18  ;;  %v7690_v9 = vadd.f32 %v2761_v59, %v12986_v24  ;;  %v1154_v29 = vsub.f32 %v7446_v57, %v7006_v15  ;;  %1463 = vperm.xlu1 %5713, %v5781_v46   ;;  %v7710_v6 = vpop.permute.xlu1 %927  ;;  %v5784_v12 = vld [vmem:[%s5933_s21 + $0x180] sm:$0xff] }
 0x18d   :  { %12978 = vst [vmem:[#allocation257_spill] sm:$0xff] %v7673_v14  ;;  %12979 = vst [vmem:[#allocation258_spill] sm:$0xff] %v7676_v49  ;;  %v1155_v62 = vsub.f32 %v7446_v57, %v7010_v7  ;;  %v1156_v13 = vsub.f32 %v7446_v57, %v7016_v53  ;;  %v1157_v17 = vsub.f32 %v7446_v57, %v7020_v41  ;;  %1475 = vperm.xlu0 %5714, %v5782_v55   ;;  %v7720_v24 = vpop.permute.xlu0 %931 }
 0x18e   :  { %12981 = vst [vmem:[#allocation100_spill] sm:$0xff] %v7681_v61  ;;  %12983 = vst [vmem:[#allocation101_spill] sm:$0xff] %v7684_v36  ;;  %v1158_v21 = vsub.f32 %v7456_v44, %v7006_v15  ;;  %v1159_v59 = vsub.f32 %v7456_v44, %v7010_v7  ;;  %v1160_v35 = vsub.f32 %v7456_v44, %v7016_v53 }
 0x18f   :  { %12985 = vst [vmem:[#allocation102_spill] sm:$0xff] %v7687_v25  ;;  %12987 = vst [vmem:[#allocation103_spill] sm:$0xff] %v7690_v9  ;;  %v1161_v38 = vsub.f32 %v7456_v44, %v7020_v41  ;;  %v7712_v57 = vmul.f32 %v1154_v29, %v1154_v29  ;;  %v7714_v10 = vmul.f32 %v1155_v62, %v1155_v62 }
 0x190   :  { %v7716_v47 = vmul.f32 %v1156_v13, %v1156_v13  ;;  %v7718_v18 = vmul.f32 %v1157_v17, %v1157_v17  ;;  %v7722_v46 = vmul.f32 %v1158_v21, %v1158_v21  ;;  %v7724_v49 = vmul.f32 %v1159_v59, %v1159_v59  ;;  %v5783_v21 = vld [vmem:[%s5933_s21 + $0x168] sm:$0xff]  ;;  %v7748_v5 = vpop.permute.xlu1 %935 }
 0x191   :  { %v7726_v44 = vmul.f32 %v1160_v35, %v1160_v35  ;;  %v7728_v55 = vmul.f32 %v1161_v38, %v1161_v38  ;;  %v1162_v29 = vsub.f32 %v7468_v54, %v7006_v15  ;;  %v1163_v62 = vsub.f32 %v7468_v54, %v7010_v7  ;;  %1471 = vperm.xlu1 %5713, %v5783_v21   ;;  %v7758_v36 = vpop.permute.xlu0 %939 }
 0x192   :  { %v1164_v13 = vsub.f32 %v7468_v54, %v7016_v53  ;;  %v1165_v17 = vsub.f32 %v7468_v54, %v7020_v41  ;;  %v1166_v59 = vsub.f32 %v7482_v60, %v7006_v15  ;;  %v1167_v35 = vsub.f32 %v7482_v60, %v7010_v7  ;;  %1483 = vperm.xlu0 %5714, %v5784_v12  }
 0x193   :  { %v1168_v38 = vsub.f32 %v7482_v60, %v7016_v53  ;;  %v1169_v14 = vsub.f32 %v7482_v60, %v7020_v41  ;;  %v7750_v54 = vmul.f32 %v1162_v29, %v1162_v29  ;;  %v7752_v21 = vmul.f32 %v1163_v62, %v1163_v62 }
 0x194   :  { %v7754_v9 = vmul.f32 %v1164_v13, %v1164_v13  ;;  %v7756_v25 = vmul.f32 %v1165_v17, %v1165_v17  ;;  %v7760_v61 = vmul.f32 %v1166_v59, %v1166_v59  ;;  %v7762_v30 = vmul.f32 %v1167_v35, %v1167_v35  ;;  %v5785_v59 = vld [vmem:[%s5933_s21 + $0x178] sm:$0xff]  ;;  %v7786_v34 = vpop.permute.xlu1 %943 }
 0x195   :  { %v7764_v60 = vmul.f32 %v1168_v38, %v1168_v38  ;;  %v7766_v12 = vmul.f32 %v1169_v14, %v1169_v14  ;;  %v1170_v29 = vsub.f32 %v7514_v1, %v7006_v15  ;;  %v1171_v62 = vsub.f32 %v7514_v1, %v7010_v7  ;;  %1479 = vperm.xlu1 %5713, %v5785_v59   ;;  %v7796_v51 = vpop.permute.xlu0 %947 }
 0x196   :  { %v1172_v13 = vsub.f32 %v7514_v1, %v7016_v53  ;;  %v1173_v17 = vsub.f32 %v7514_v1, %v7020_v41  ;;  %v1174_v35 = vsub.f32 %v7516_v16, %v7006_v15  ;;  %v1175_v14 = vsub.f32 %v7516_v16, %v7010_v7  ;;  %1491 = vperm.xlu0 %5714, %v5786_v45  }
 0x197   :  { %v1176_v38 = vsub.f32 %v7516_v16, %v7016_v53  ;;  %v1177_v8 = vsub.f32 %v7516_v16, %v7020_v41  ;;  %v7788_v1 = vmul.f32 %v1170_v29, %v1170_v29  ;;  %v7790_v59 = vmul.f32 %v1171_v62, %v1171_v62 }
 0x198   :  { %v7792_v52 = vmul.f32 %v1172_v13, %v1172_v13  ;;  %v7794_v42 = vmul.f32 %v1173_v17, %v1173_v17  ;;  %v7798_v40 = vmul.f32 %v1174_v35, %v1174_v35  ;;  %v7800_v31 = vmul.f32 %v1175_v14, %v1175_v14  ;;  %v5787_v35 = vld [vmem:[%s5933_s21 + $0x188] sm:$0xff]  ;;  %v7824_v11 = vpop.permute.xlu1 %951 }
 0x199   :  { %v7802_v16 = vmul.f32 %v1176_v38, %v1176_v38  ;;  %v7804_v45 = vmul.f32 %v1177_v8, %v1177_v8  ;;  %v1178_v29 = vsub.f32 %v7544_v56, %v7006_v15  ;;  %v1179_v62 = vsub.f32 %v7544_v56, %v7010_v7  ;;  %1487 = vperm.xlu1 %5713, %v5787_v35  }
 0x19a   :  { %12988 = vst [vmem:[#allocation259_spill] sm:$0xff] %v7798_v40  ;;  %12989 = vst [vmem:[#allocation260_spill] sm:$0xff] %v7800_v31  ;;  %v1180_v13 = vsub.f32 %v7544_v56, %v7016_v53  ;;  %v1181_v17 = vsub.f32 %v7544_v56, %v7020_v41  ;;  %v1182_v14 = vsub.f32 %v7554_v27, %v7006_v15  ;;  %1499 = vperm.xlu0 %5714, %v5788_v4  }
 0x19b   :  { %12990 = vst [vmem:[#allocation261_spill] sm:$0xff] %v7802_v16  ;;  %12991 = vst [vmem:[#allocation262_spill] sm:$0xff] %v7804_v45  ;;  %v1183_v8 = vsub.f32 %v7554_v27, %v7010_v7  ;;  %v1184_v38 = vsub.f32 %v7554_v27, %v7016_v53  ;;  %v1185_v63 = vsub.f32 %v7554_v27, %v7020_v41  ;;  %v7834_v45 = vpop.permute.xlu0 %955 }
 0x19c   :  { %v7826_v56 = vmul.f32 %v1178_v29, %v1178_v29  ;;  %v7828_v35 = vmul.f32 %v1179_v62, %v1179_v62  ;;  %v7830_v23 = vmul.f32 %v1180_v13, %v1180_v13  ;;  %v7832_v19 = vmul.f32 %v1181_v17, %v1181_v17 }
 0x19d   :  { %v7836_v16 = vmul.f32 %v1182_v14, %v1182_v14  ;;  %v7838_v31 = vmul.f32 %v1183_v8, %v1183_v8  ;;  %v7840_v27 = vmul.f32 %v1184_v38, %v1184_v38  ;;  %v7842_v4 = vmul.f32 %v1185_v63, %v1185_v63  ;;  %v5789_v14 = vld [vmem:[%s5933_s21 + $0x198] sm:$0xff] }
 0x19e   :  { %12992 = vst [vmem:[#allocation263_spill] sm:$0xff] %v7830_v23  ;;  %12993 = vst [vmem:[#allocation264_spill] sm:$0xff] %v7832_v19  ;;  %v1186_v29 = vsub.f32 %v7566_v58, %v7006_v15  ;;  %v1187_v62 = vsub.f32 %v7566_v58, %v7010_v7  ;;  %v1188_v13 = vsub.f32 %v7566_v58, %v7016_v53  ;;  %1495 = vperm.xlu1 %5713, %v5789_v14  }
 0x19f   :  { %12994 = vst [vmem:[#allocation265_spill] sm:$0xff] %v7836_v16  ;;  %12995 = vst [vmem:[#allocation266_spill] sm:$0xff] %v7838_v31  ;;  %v1189_v17 = vsub.f32 %v7566_v58, %v7020_v41  ;;  %v1190_v8 = vsub.f32 %v7580_v48, %v7006_v15  ;;  %v1191_v63 = vsub.f32 %v7580_v48, %v7010_v7  ;;  %v7862_v31 = vpop.permute.xlu1 %959  ;;  %v7872_v19 = vpop.permute.xlu0 %963 }
 0x1a0   :  { %12996 = vst [vmem:[#allocation267_spill] sm:$0xff] %v7840_v27  ;;  %12997 = vst [vmem:[#allocation268_spill] sm:$0xff] %v7842_v4  ;;  %v1192_v38 = vsub.f32 %v7580_v48, %v7016_v53  ;;  %v1193_v4 = vsub.f32 %v7580_v48, %v7020_v41  ;;  %v5790_v27 = vld [vmem:[%s5933_s21 + $0x1b0] sm:$0xff]  ;;  %v7864_v58 = vmul.f32 %v1186_v29, %v1186_v29 }
 0x1a1   :  { %1507 = vperm.xlu0 %5714, %v5790_v27   ;;  %v7866_v14 = vmul.f32 %v1187_v62, %v1187_v62  ;;  %v7868_v16 = vmul.f32 %v1188_v13, %v1188_v13  ;;  %v7870_v40 = vmul.f32 %v1189_v17, %v1189_v17  ;;  %v7874_v23 = vmul.f32 %v1190_v8, %v1190_v8  ;;  %v5791_v8 = vld [vmem:[%s5933_s21 + $0x1a8] sm:$0xff] }
 0x1a2   :  { %12998 = vst [vmem:[#allocation269_spill] sm:$0xff] %v7864_v58  ;;  %v7876_v37 = vmul.f32 %v1191_v63, %v1191_v63  ;;  %v7878_v48 = vmul.f32 %v1192_v38, %v1192_v38  ;;  %v7880_v27 = vmul.f32 %v1193_v4, %v1193_v4  ;;  %v1194_v29 = vsub.f32 %v7612_v0, %v7006_v15 }
 0x1a3   :  { %12999 = vst [vmem:[#allocation270_spill] sm:$0xff] %v7866_v14  ;;  %13000 = vst [vmem:[#allocation271_spill] sm:$0xff] %v7868_v16  ;;  %v1195_v62 = vsub.f32 %v7612_v0, %v7010_v7  ;;  %v1196_v13 = vsub.f32 %v7612_v0, %v7016_v53  ;;  %v1197_v17 = vsub.f32 %v7612_v0, %v7020_v41  ;;  %1503 = vperm.xlu1 %5713, %v5791_v8   ;;  %v7910_v16 = vpop.permute.xlu0 %971 }
 0x1a4   :  { %13001 = vst [vmem:[#allocation272_spill] sm:$0xff] %v7870_v40  ;;  %13002 = vst [vmem:[#allocation273_spill] sm:$0xff] %v7874_v23  ;;  %v1198_v63 = vsub.f32 %v7614_v20, %v7006_v15  ;;  %v1199_v4 = vsub.f32 %v7614_v20, %v7010_v7  ;;  %v1200_v38 = vsub.f32 %v7614_v20, %v7016_v53 }
 0x1a5   :  { %13003 = vst [vmem:[#allocation274_spill] sm:$0xff] %v7876_v37  ;;  %13004 = vst [vmem:[#allocation275_spill] sm:$0xff] %v7878_v48  ;;  %v5792_v48 = vld [vmem:[%s5933_s21 + $0x1c0] sm:$0xff]  ;;  %v7900_v37 = vpop.permute.xlu1 %967  ;;  %v7902_v0 = vmul.f32 %v1194_v29, %v1194_v29  ;;  %v7904_v8 = vmul.f32 %v1195_v62, %v1195_v62  ;;  %v7906_v23 = vmul.f32 %v1196_v13, %v1196_v13 }
 0x1a6   :  { %13005 = vst [vmem:[#allocation276_spill] sm:$0xff] %v7880_v27  ;;  %v1201_v27 = vsub.f32 %v7614_v20, %v7020_v41  ;;  %1515 = vperm.xlu0 %5714, %v5792_v48   ;;  %v7908_v40 = vmul.f32 %v1197_v17, %v1197_v17  ;;  %v7912_v14 = vmul.f32 %v1198_v63, %v1198_v63  ;;  %v5793_v63 = vld [vmem:[%s5933_s21 + $0x1b8] sm:$0xff] }
 0x1a7   :  { %13006 = vst [vmem:[#allocation277_spill] sm:$0xff] %v7902_v0  ;;  %13007 = vst [vmem:[#allocation278_spill] sm:$0xff] %v7904_v8  ;;  %v7914_v58 = vmul.f32 %v1199_v4, %v1199_v4  ;;  %v7916_v20 = vmul.f32 %v1200_v38, %v1200_v38  ;;  %v1202_v29 = vsub.f32 %v7642_v50, %v7006_v15  ;;  %1511 = vperm.xlu1 %5713, %v5793_v63  }
 0x1a8   :  { %13008 = vst [vmem:[#allocation279_spill] sm:$0xff] %v7906_v23  ;;  %13009 = vst [vmem:[#allocation280_spill] sm:$0xff] %v7908_v40  ;;  %v7918_v48 = vmul.f32 %v1201_v27, %v1201_v27  ;;  %v1203_v62 = vsub.f32 %v7642_v50, %v7010_v7  ;;  %v1204_v13 = vsub.f32 %v7642_v50, %v7016_v53  ;;  %v7948_v23 = vpop.permute.xlu0 %979 }
 0x1a9   :  { %13010 = vst [vmem:[#allocation281_spill] sm:$0xff] %v7912_v14  ;;  %13011 = vst [vmem:[#allocation282_spill] sm:$0xff] %v7914_v58  ;;  %v1205_v17 = vsub.f32 %v7642_v50, %v7020_v41  ;;  %v1206_v4 = vsub.f32 %v7652_v3, %v7006_v15  ;;  %v1207_v27 = vsub.f32 %v7652_v3, %v7010_v7  ;;  %v7938_v58 = vpop.permute.xlu1 %975 }
 0x1aa   :  { %13012 = vst [vmem:[#allocation283_spill] sm:$0xff] %v7916_v20  ;;  %13013 = vst [vmem:[#allocation284_spill] sm:$0xff] %v7918_v48  ;;  %v1208_v38 = vsub.f32 %v7652_v3, %v7016_v53  ;;  %v1209_v48 = vsub.f32 %v7652_v3, %v7020_v41  ;;  %v5794_v20 = vld [vmem:[%s5933_s21 + $0x1d0] sm:$0xff]  ;;  %v7940_v50 = vmul.f32 %v1202_v29, %v1202_v29 }
 0x1ab   :  { %1523 = vperm.xlu0 %5714, %v5794_v20   ;;  %v7942_v63 = vmul.f32 %v1203_v62, %v1203_v62  ;;  %v7944_v14 = vmul.f32 %v1204_v13, %v1204_v13  ;;  %v7946_v40 = vmul.f32 %v1205_v17, %v1205_v17  ;;  %v7950_v8 = vmul.f32 %v1206_v4, %v1206_v4  ;;  %v5795_v4 = vld [vmem:[%s5933_s21 + $0x1c8] sm:$0xff] }
 0x1ac   :  { %13014 = vst [vmem:[#allocation285_spill] sm:$0xff] %v7940_v50  ;;  %v7952_v0 = vmul.f32 %v1207_v27, %v1207_v27  ;;  %v7954_v3 = vmul.f32 %v1208_v38, %v1208_v38  ;;  %v7956_v20 = vmul.f32 %v1209_v48, %v1209_v48  ;;  %v1210_v29 = vsub.f32 %v7664_v39, %v7006_v15 }
 0x1ad   :  { %13015 = vst [vmem:[#allocation286_spill] sm:$0xff] %v7942_v63  ;;  %13016 = vst [vmem:[#allocation287_spill] sm:$0xff] %v7944_v14  ;;  %v1211_v62 = vsub.f32 %v7664_v39, %v7010_v7  ;;  %v1212_v13 = vsub.f32 %v7664_v39, %v7016_v53  ;;  %v1213_v17 = vsub.f32 %v7664_v39, %v7020_v41  ;;  %1519 = vperm.xlu1 %5713, %v5795_v4  }
 0x1ae   :  { %13017 = vst [vmem:[#allocation288_spill] sm:$0xff] %v7946_v40  ;;  %13018 = vst [vmem:[#allocation289_spill] sm:$0xff] %v7950_v8  ;;  %v1214_v27 = vsub.f32 %v7678_v2, %v7006_v15  ;;  %v1215_v48 = vsub.f32 %v7678_v2, %v7010_v7  ;;  %v1216_v38 = vsub.f32 %v7678_v2, %v7016_v53 }
 0x1af   :  { %13019 = vst [vmem:[#allocation290_spill] sm:$0xff] %v7952_v0  ;;  %13020 = vst [vmem:[#allocation291_spill] sm:$0xff] %v7954_v3  ;;  %v5796_v3 = vld [vmem:[%s5933_s21 + $0x1e0] sm:$0xff]  ;;  %v7976_v0 = vpop.permute.xlu1 %983  ;;  %v7978_v39 = vmul.f32 %v1210_v29, %v1210_v29  ;;  %v7980_v4 = vmul.f32 %v1211_v62, %v1211_v62  ;;  %v7982_v8 = vmul.f32 %v1212_v13, %v1212_v13 }
 0x1b0   :  { %13021 = vst [vmem:[#allocation292_spill] sm:$0xff] %v7956_v20  ;;  %v1217_v20 = vsub.f32 %v7678_v2, %v7020_v41  ;;  %1531 = vperm.xlu0 %5714, %v5796_v3   ;;  %v7984_v40 = vmul.f32 %v1213_v17, %v1213_v17  ;;  %v7986_v14 = vmul.f32 %v1214_v27, %v1214_v27  ;;  %v8002_v17 = vpop.permute.xlu0 %987  ;;  %v5797_v27 = vld [vmem:[%s5933_s21 + $0x1d8] sm:$0xff] }
 0x1b1   :  { %13022 = vst [vmem:[#allocation293_spill] sm:$0xff] %v7978_v39  ;;  %13023 = vst [vmem:[#allocation294_spill] sm:$0xff] %v7980_v4  ;;  %v7988_v63 = vmul.f32 %v1215_v48, %v1215_v48  ;;  %v7990_v50 = vmul.f32 %v1216_v38, %v1216_v38  ;;  %v1218_v3 = vsub.f32 %v7710_v6, %v7006_v15  ;;  %1527 = vperm.xlu1 %5713, %v5797_v27  }
 0x1b2   :  { %13024 = vst [vmem:[#allocation295_spill] sm:$0xff] %v7982_v8  ;;  %13025 = vst [vmem:[#allocation296_spill] sm:$0xff] %v7984_v40  ;;  %v7992_v2 = vmul.f32 %v1217_v20, %v1217_v20  ;;  %v1219_v29 = vsub.f32 %v7710_v6, %v7010_v7  ;;  %v1220_v62 = vsub.f32 %v7710_v6, %v7016_v53 }
 0x1b3   :  { %13026 = vst [vmem:[#allocation297_spill] sm:$0xff] %v7986_v14  ;;  %13027 = vst [vmem:[#allocation298_spill] sm:$0xff] %v7988_v63  ;;  %v1221_v13 = vsub.f32 %v7710_v6, %v7020_v41  ;;  %v1222_v20 = vsub.f32 %v7720_v24, %v7006_v15  ;;  %v1223_v48 = vsub.f32 %v7720_v24, %v7010_v7  ;;  %v8014_v6 = vpop.permute.xlu1 %991 }
 0x1b4   :  { %13028 = vst [vmem:[#allocation299_spill] sm:$0xff] %v7990_v50  ;;  %13029 = vst [vmem:[#allocation300_spill] sm:$0xff] %v7992_v2  ;;  %v1224_v38 = vsub.f32 %v7720_v24, %v7016_v53  ;;  %v1225_v2 = vsub.f32 %v7720_v24, %v7020_v41  ;;  %v5798_v50 = vld [vmem:[%s5933_s21 + $0x1f0] sm:$0xff]  ;;  %v8016_v63 = vmul.f32 %v1218_v3, %v1218_v3 }
 0x1b5   :  { %1539 = vperm.xlu0 %5714, %v5798_v50   ;;  %v8018_v27 = vmul.f32 %v1219_v29, %v1219_v29  ;;  %v8020_v14 = vmul.f32 %v1220_v62, %v1220_v62  ;;  %v8022_v40 = vmul.f32 %v1221_v13, %v1221_v13  ;;  %v8024_v8 = vmul.f32 %v1222_v20, %v1222_v20  ;;  %v5799_v13 = vld [vmem:[%s5933_s21 + $0x1e8] sm:$0xff] }
 0x1b6   :  { %13030 = vst [vmem:[#allocation301_spill] sm:$0xff] %v8016_v63  ;;  %v8026_v4 = vmul.f32 %v1223_v48, %v1223_v48  ;;  %v8028_v39 = vmul.f32 %v1224_v38, %v1224_v38  ;;  %v8030_v24 = vmul.f32 %v1225_v2, %v1225_v2  ;;  %v1226_v50 = vsub.f32 %v7748_v5, %v7006_v15 }
 0x1b7   :  { %13031 = vst [vmem:[#allocation302_spill] sm:$0xff] %v8018_v27  ;;  %13032 = vst [vmem:[#allocation303_spill] sm:$0xff] %v8020_v14  ;;  %v1227_v3 = vsub.f32 %v7748_v5, %v7010_v7  ;;  %v1228_v29 = vsub.f32 %v7748_v5, %v7016_v53  ;;  %v1229_v62 = vsub.f32 %v7748_v5, %v7020_v41  ;;  %1535 = vperm.xlu1 %5713, %v5799_v13   ;;  %v8067_v63 = vpop.permute.xlu1 %1291 }
 0x1b8   :  { %13033 = vst [vmem:[#allocation304_spill] sm:$0xff] %v8022_v40  ;;  %13034 = vst [vmem:[#allocation305_spill] sm:$0xff] %v8024_v8  ;;  %v1230_v20 = vsub.f32 %v7758_v36, %v7006_v15  ;;  %v1231_v2 = vsub.f32 %v7758_v36, %v7010_v7  ;;  %v1232_v48 = vsub.f32 %v7758_v36, %v7016_v53 }
 0x1b9   :  { %13035 = vst [vmem:[#allocation306_spill] sm:$0xff] %v8026_v4  ;;  %13036 = vst [vmem:[#allocation307_spill] sm:$0xff] %v8028_v39  ;;  %v1233_v38 = vsub.f32 %v7758_v36, %v7020_v41  ;;  %v8051_v39 = vmul.f32 %v1227_v3, %v1227_v3  ;;  %v8053_v5 = vmul.f32 %v1228_v29, %v1228_v29  ;;  %v8057_v4 = vpop.permute.xlu0 %995 }
 0x1ba   :  { %13037 = vst [vmem:[#allocation308_spill] sm:$0xff] %v8030_v24  ;;  %v8049_v24 = vmul.f32 %v1226_v50, %v1226_v50  ;;  %v8055_v13 = vmul.f32 %v1229_v62, %v1229_v62  ;;  %v8059_v8 = vmul.f32 %v1230_v20, %v1230_v20  ;;  %v8061_v40 = vmul.f32 %v1231_v2, %v1231_v2  ;;  %v5800_v62 = vld [vmem:[%s5933_s21 + $0x1f8] sm:$0xff] }
 0x1bb   :  { %13038 = vst [vmem:[#allocation309_spill] sm:$0xff] %v8051_v39  ;;  %13039 = vst [vmem:[#allocation310_spill] sm:$0xff] %v8053_v5  ;;  %v8063_v14 = vmul.f32 %v1232_v48, %v1232_v48  ;;  %v8065_v27 = vmul.f32 %v1233_v38, %v1233_v38  ;;  %v1234_v36 = vsub.f32 %v7786_v34, %v7006_v15  ;;  %1543 = vperm.xlu1 %5713, %v5800_v62  }
 0x1bc   :  { %13040 = vst [vmem:[#allocation311_spill] sm:$0xff] %v8055_v13  ;;  %13041 = vst [vmem:[#allocation312_spill] sm:$0xff] %v8059_v8  ;;  %v1235_v50 = vsub.f32 %v7786_v34, %v7010_v7  ;;  %v1236_v3 = vsub.f32 %v7786_v34, %v7016_v53  ;;  %v1237_v29 = vsub.f32 %v7786_v34, %v7020_v41 }
 0x1bd   :  { %13042 = vst [vmem:[#allocation313_spill] sm:$0xff] %v8061_v40  ;;  %13043 = vst [vmem:[#allocation314_spill] sm:$0xff] %v8063_v14  ;;  %v1238_v20 = vsub.f32 %v7796_v51, %v7006_v15  ;;  %v1239_v2 = vsub.f32 %v7796_v51, %v7010_v7  ;;  %v1240_v48 = vsub.f32 %v7796_v51, %v7016_v53 }
 0x1be   :  { %13044 = vst [vmem:[#allocation315_spill] sm:$0xff] %v8065_v27  ;;  %v1241_v38 = vsub.f32 %v7796_v51, %v7020_v41  ;;  %v8086_v27 = vmul.f32 %v1234_v36, %v1234_v36  ;;  %v8088_v14 = vmul.f32 %v1235_v50, %v1235_v50  ;;  %v8090_v40 = vmul.f32 %v1236_v3, %v1236_v3  ;;  %v8110_v3 = vpop.permute.xlu0 %1295 }
 0x1bf   :  { %v8092_v34 = vmul.f32 %v1237_v29, %v1237_v29  ;;  %v8094_v62 = vmul.f32 %v1238_v20, %v1238_v20  ;;  %v8096_v8 = vmul.f32 %v1239_v2, %v1239_v2  ;;  %v8098_v13 = vmul.f32 %v1240_v48, %v1240_v48 }
 0x1c0   :  { %13045 = vst [vmem:[#allocation316_spill] sm:$0xff] %v8088_v14  ;;  %13046 = vst [vmem:[#allocation317_spill] sm:$0xff] %v8090_v40  ;;  %v8100_v5 = vmul.f32 %v1241_v38, %v1241_v38  ;;  %v1242_v39 = vsub.f32 %v7824_v11, %v7006_v15  ;;  %v1243_v51 = vsub.f32 %v7824_v11, %v7010_v7  ;;  %v8120_v38 = vpop.permute.xlu1 %1299 }
 0x1c1   :  { %13047 = vst [vmem:[#allocation318_spill] sm:$0xff] %v8092_v34  ;;  %13048 = vst [vmem:[#allocation319_spill] sm:$0xff] %v8094_v62  ;;  %v1244_v36 = vsub.f32 %v7824_v11, %v7016_v53  ;;  %v1245_v50 = vsub.f32 %v7824_v11, %v7020_v41  ;;  %v1246_v29 = vsub.f32 %v7834_v45, %v7006_v15 }
 0x1c2   :  { %13049 = vst [vmem:[#allocation320_spill] sm:$0xff] %v8096_v8  ;;  %13050 = vst [vmem:[#allocation321_spill] sm:$0xff] %v8098_v13  ;;  %v1247_v20 = vsub.f32 %v7834_v45, %v7010_v7  ;;  %v1248_v2 = vsub.f32 %v7834_v45, %v7016_v53  ;;  %v1249_v48 = vsub.f32 %v7834_v45, %v7020_v41 }
 0x1c3   :  { %13051 = vst [vmem:[#allocation322_spill] sm:$0xff] %v8100_v5  ;;  %v8122_v5 = vmul.f32 %v1242_v39, %v1242_v39  ;;  %v8124_v13 = vmul.f32 %v1243_v51, %v1243_v51  ;;  %v8126_v11 = vmul.f32 %v1244_v36, %v1244_v36  ;;  %v8128_v8 = vmul.f32 %v1245_v50, %v1245_v50 }
 0x1c4   :  { %v8130_v62 = vmul.f32 %v1246_v29, %v1246_v29  ;;  %v8132_v34 = vmul.f32 %v1247_v20, %v1247_v20  ;;  %v8134_v40 = vmul.f32 %v1248_v2, %v1248_v2  ;;  %v8136_v14 = vmul.f32 %v1249_v48, %v1249_v48 }
 0x1c5   :  { %13052 = vst [vmem:[#allocation323_spill] sm:$0xff] %v8122_v5  ;;  %13053 = vst [vmem:[#allocation324_spill] sm:$0xff] %v8124_v13  ;;  %v1250_v45 = vsub.f32 %v7862_v31, %v7006_v15  ;;  %v1251_v39 = vsub.f32 %v7862_v31, %v7010_v7  ;;  %v1252_v51 = vsub.f32 %v7862_v31, %v7016_v53  ;;  %v8172_v5 = vpop.permute.xlu1 %1303 }
 0x1c6   :  { %13054 = vst [vmem:[#allocation325_spill] sm:$0xff] %v8126_v11  ;;  %13055 = vst [vmem:[#allocation326_spill] sm:$0xff] %v8128_v8  ;;  %v1253_v36 = vsub.f32 %v7862_v31, %v7020_v41  ;;  %v1254_v50 = vsub.f32 %v7872_v19, %v7006_v15  ;;  %v1255_v29 = vsub.f32 %v7872_v19, %v7010_v7  ;;  %v8162_v31 = vpop.permute.xlu0 %1307 }
 0x1c7   :  { %13056 = vst [vmem:[#allocation327_spill] sm:$0xff] %v8130_v62  ;;  %13057 = vst [vmem:[#allocation328_spill] sm:$0xff] %v8132_v34  ;;  %v1256_v20 = vsub.f32 %v7872_v19, %v7016_v53  ;;  %v1257_v2 = vsub.f32 %v7872_v19, %v7020_v41  ;;  %v8154_v48 = vmul.f32 %v1250_v45, %v1250_v45 }
 0x1c8   :  { %13058 = vst [vmem:[#allocation329_spill] sm:$0xff] %v8134_v40  ;;  %13059 = vst [vmem:[#allocation330_spill] sm:$0xff] %v8136_v14  ;;  %v8156_v14 = vmul.f32 %v1251_v39, %v1251_v39  ;;  %v8158_v40 = vmul.f32 %v1252_v51, %v1252_v51  ;;  %v8160_v34 = vmul.f32 %v1253_v36, %v1253_v36 }
 0x1c9   :  { %v8164_v62 = vmul.f32 %v1254_v50, %v1254_v50  ;;  %v8166_v8 = vmul.f32 %v1255_v29, %v1255_v29  ;;  %v8168_v11 = vmul.f32 %v1256_v20, %v1256_v20  ;;  %v8170_v13 = vmul.f32 %v1257_v2, %v1257_v2 }
 0x1ca   :  { %13060 = vst [vmem:[#allocation331_spill] sm:$0xff] %v8156_v14  ;;  %13061 = vst [vmem:[#allocation332_spill] sm:$0xff] %v8158_v40  ;;  %v1258_v19 = vsub.f32 %v7900_v37, %v7006_v15  ;;  %v1259_v45 = vsub.f32 %v7900_v37, %v7010_v7  ;;  %v1260_v39 = vsub.f32 %v7900_v37, %v7016_v53 }
 0x1cb   :  { %13062 = vst [vmem:[#allocation333_spill] sm:$0xff] %v8160_v34  ;;  %13063 = vst [vmem:[#allocation334_spill] sm:$0xff] %v8164_v62  ;;  %v1261_v51 = vsub.f32 %v7900_v37, %v7020_v41  ;;  %v1262_v36 = vsub.f32 %v7910_v16, %v7006_v15  ;;  %v1263_v50 = vsub.f32 %v7910_v16, %v7010_v7 }
 0x1cc   :  { %13064 = vst [vmem:[#allocation335_spill] sm:$0xff] %v8166_v8  ;;  %13065 = vst [vmem:[#allocation336_spill] sm:$0xff] %v8168_v11  ;;  %v1264_v29 = vsub.f32 %v7910_v16, %v7016_v53  ;;  %v1265_v20 = vsub.f32 %v7910_v16, %v7020_v41  ;;  %v8190_v2 = vmul.f32 %v1258_v19, %v1258_v19 }
 0x1cd   :  { %13066 = vst [vmem:[#allocation337_spill] sm:$0xff] %v8170_v13  ;;  %v8192_v13 = vmul.f32 %v1259_v45, %v1259_v45  ;;  %v8194_v11 = vmul.f32 %v1260_v39, %v1260_v39  ;;  %v8196_v8 = vmul.f32 %v1261_v51, %v1261_v51  ;;  %v8198_v37 = vmul.f32 %v1262_v36, %v1262_v36  ;;  %v8214_v39 = vpop.permute.xlu0 %1315 }
 0x1ce   :  { %v8200_v62 = vmul.f32 %v1263_v50, %v1263_v50  ;;  %v8202_v34 = vmul.f32 %v1264_v29, %v1264_v29  ;;  %v8204_v40 = vmul.f32 %v1265_v20, %v1265_v20  ;;  %v1266_v14 = vsub.f32 %v7938_v58, %v7006_v15  ;;  %v8224_v20 = vpop.permute.xlu1 %1311 }
 0x1cf   :  { %13067 = vst [vmem:[#allocation338_spill] sm:$0xff] %v8192_v13  ;;  %13068 = vst [vmem:[#allocation339_spill] sm:$0xff] %v8194_v11  ;;  %v1267_v16 = vsub.f32 %v7938_v58, %v7010_v7  ;;  %v1268_v19 = vsub.f32 %v7938_v58, %v7016_v53  ;;  %v1269_v45 = vsub.f32 %v7938_v58, %v7020_v41 }
 0x1d0   :  { %13069 = vst [vmem:[#allocation340_spill] sm:$0xff] %v8196_v8  ;;  %13070 = vst [vmem:[#allocation341_spill] sm:$0xff] %v8198_v37  ;;  %v1270_v51 = vsub.f32 %v7948_v23, %v7006_v15  ;;  %v1271_v36 = vsub.f32 %v7948_v23, %v7010_v7  ;;  %v1272_v50 = vsub.f32 %v7948_v23, %v7016_v53 }
 0x1d1   :  { %13071 = vst [vmem:[#allocation342_spill] sm:$0xff] %v8200_v62  ;;  %13072 = vst [vmem:[#allocation343_spill] sm:$0xff] %v8202_v34  ;;  %v1273_v29 = vsub.f32 %v7948_v23, %v7020_v41  ;;  %v8228_v34 = vmul.f32 %v1267_v16, %v1267_v16  ;;  %v8230_v58 = vmul.f32 %v1268_v19, %v1268_v19 }
 0x1d2   :  { %13073 = vst [vmem:[#allocation344_spill] sm:$0xff] %v8204_v40  ;;  %v8226_v40 = vmul.f32 %v1266_v14, %v1266_v14  ;;  %v8232_v62 = vmul.f32 %v1269_v45, %v1269_v45  ;;  %v8234_v37 = vmul.f32 %v1270_v51, %v1270_v51  ;;  %v8236_v8 = vmul.f32 %v1271_v36, %v1271_v36 }
 0x1d3   :  { %13075 = vst [vmem:[#allocation346_spill] sm:$0xff] %v8228_v34  ;;  %13076 = vst [vmem:[#allocation347_spill] sm:$0xff] %v8230_v58  ;;  %v8238_v11 = vmul.f32 %v1272_v50, %v1272_v50  ;;  %v8240_v13 = vmul.f32 %v1273_v29, %v1273_v29  ;;  %v1274_v23 = vsub.f32 %v7976_v0, %v7006_v15 }
 0x1d4   :  { %13074 = vst [vmem:[#allocation345_spill] sm:$0xff] %v8226_v40  ;;  %13077 = vst [vmem:[#allocation348_spill] sm:$0xff] %v8232_v62  ;;  %v1275_v14 = vsub.f32 %v7976_v0, %v7010_v7  ;;  %v1276_v16 = vsub.f32 %v7976_v0, %v7016_v53  ;;  %v1277_v19 = vsub.f32 %v7976_v0, %v7020_v41  ;;  %v8266_v0 = vpop.permute.xlu0 %1323  ;;  %v8276_v40 = vpop.permute.xlu1 %1319 }
 0x1d5   :  { %13078 = vst [vmem:[#allocation349_spill] sm:$0xff] %v8234_v37  ;;  %13079 = vst [vmem:[#allocation350_spill] sm:$0xff] %v8236_v8  ;;  %v1278_v45 = vsub.f32 %v8002_v17, %v7006_v15  ;;  %v1279_v51 = vsub.f32 %v8002_v17, %v7010_v7  ;;  %v1280_v36 = vsub.f32 %v8002_v17, %v7016_v53 }
 0x1d6   :  { %13080 = vst [vmem:[#allocation351_spill] sm:$0xff] %v8238_v11  ;;  %13081 = vst [vmem:[#allocation352_spill] sm:$0xff] %v8240_v13  ;;  %v1281_v50 = vsub.f32 %v8002_v17, %v7020_v41  ;;  %v8258_v29 = vmul.f32 %v1274_v23, %v1274_v23  ;;  %v8260_v13 = vmul.f32 %v1275_v14, %v1275_v14 }
 0x1d7   :  { %v8262_v11 = vmul.f32 %v1276_v16, %v1276_v16  ;;  %v8264_v8 = vmul.f32 %v1277_v19, %v1277_v19  ;;  %v8268_v37 = vmul.f32 %v1278_v45, %v1278_v45  ;;  %v8270_v62 = vmul.f32 %v1279_v51, %v1279_v51 }
 0x1d8   :  { %v8272_v58 = vmul.f32 %v1280_v36, %v1280_v36  ;;  %v8274_v34 = vmul.f32 %v1281_v50, %v1281_v50  ;;  %v1282_v17 = vsub.f32 %v8014_v6, %v7006_v15  ;;  %v1283_v23 = vsub.f32 %v8014_v6, %v7010_v7 }
 0x1d9   :  { %13082 = vst [vmem:[#allocation353_spill] sm:$0xff] %v8268_v37  ;;  %13083 = vst [vmem:[#allocation354_spill] sm:$0xff] %v8270_v62  ;;  %v1284_v14 = vsub.f32 %v8014_v6, %v7016_v53  ;;  %v1285_v16 = vsub.f32 %v8014_v6, %v7020_v41  ;;  %v1286_v19 = vsub.f32 %v8057_v4, %v7006_v15  ;;  %v13094_v37 = vld [vmem:[#allocation10_spill] sm:$0xff] }
 0x1da   :  { %13084 = vst [vmem:[#allocation355_spill] sm:$0xff] %v8272_v58  ;;  %13085 = vst [vmem:[#allocation356_spill] sm:$0xff] %v8274_v34  ;;  %v1287_v45 = vsub.f32 %v8057_v4, %v7010_v7  ;;  %v1288_v51 = vsub.f32 %v8057_v4, %v7016_v53  ;;  %v1289_v36 = vsub.f32 %v8057_v4, %v7020_v41  ;;  %v1548_v41 = vsub.s32 2, %v13094_v37 }
 0x1db   :  { %v8294_v50 = vmul.f32 %v1282_v17, %v1282_v17  ;;  %v8296_v34 = vmul.f32 %v1283_v23, %v1283_v23  ;;  %v8298_v58 = vmul.f32 %v1284_v14, %v1284_v14  ;;  %v8300_v62 = vmul.f32 %v1285_v16, %v1285_v16  ;;  %v8312_v17 = vpop.permute.xlu0 %1331  ;;  %v8318_v16 = vpop.permute.xlu1 %1327 }
 0x1dc   :  { %v8302_v6 = vmul.f32 %v1286_v19, %v1286_v19  ;;  %v8304_v15 = vmul.f32 %v1287_v45, %v1287_v45  ;;  %v8306_v7 = vmul.f32 %v1288_v51, %v1288_v51  ;;  %v8308_v53 = vmul.f32 %v1289_v36, %v1289_v36  ;;  %v13095_v19 = vld [vmem:[#allocation109_spill] sm:$0xff]  ;;  %v13096_v51 = vld [vmem:[#allocation110_spill] sm:$0xff] }
 0x1dd   :  { %13086 = vst [vmem:[#allocation357_spill] sm:$0xff] %v8294_v50  ;;  %13087 = vst [vmem:[#allocation358_spill] sm:$0xff] %v8296_v34  ;;  %v1552_v4 = vsub.s32 6, %v13094_v37  ;;  %v8316_v23 = vadd.f32 %v7712_v57, %v6583_v22  ;;  %v5896_v14 = vmov 3   ;;  %v8322_v45 = vadd.f32 %v7714_v10, %v13095_v19  ;;  %v5801_v22 = vld [vmem:[%s5933_s21] sm:$0xff] }
 0x1de   :  { %13088 = vst [vmem:[#allocation359_spill] sm:$0xff] %v8298_v58  ;;  %13089 = vst [vmem:[#allocation360_spill] sm:$0xff] %v8300_v62  ;;  %5715 = vset.pattern.permute.xlu0 %v5896_v14  ;;  %5716 = vset.pattern.permute.xlu1 %v5896_v14  ;;  %v8326_v36 = vadd.f32 %v7716_v47, %v13096_v51  ;;  %v13097_v62 = vld [vmem:[#allocation111_spill] sm:$0xff]  ;;  %v5802_v57 = vld [vmem:[%s6136_s27] sm:$0xff]  ;;  %v8342_v47 = vadd.f32 %v7752_v21, %v6620_v28 }
 0x1df   :  { %13090 = vst [vmem:[#allocation361_spill] sm:$0xff] %v8302_v6  ;;  %13091 = vst [vmem:[#allocation362_spill] sm:$0xff] %v8304_v15  ;;  %v8330_v58 = vadd.f32 %v7718_v18, %v13097_v62  ;;  %1839 = vperm.xlu0 %5715, %v5801_v22   ;;  %v1549_v34 = vrot.slane %v5802_v57, %v1548_v41  ;;  %v1553_v50 = vrot.slane %v5802_v57, %v1552_v4  ;;  %v5803_v14 = vld [vmem:[%s6136_s27 + $0x8] sm:$0xff]  ;;  %v13098_v10 = vld [vmem:[#allocation116_spill] sm:$0xff] }
 0x1e0   :  { %13092 = vst [vmem:[#allocation363_spill] sm:$0xff] %v8306_v7  ;;  %13093 = vst [vmem:[#allocation364_spill] sm:$0xff] %v8308_v53  ;;  %v1557_v53 = vrot.slane %v5803_v14, %v1548_v41  ;;  %v1561_v7 = vrot.slane %v5803_v14, %v1552_v4  ;;  %v5804_v15 = vld [vmem:[%s5933_s21 + $0x8] sm:$0xff]  ;;  %v8338_v19 = vadd.f32 %v7750_v54, %v13098_v10  ;;  %v13100_v21 = vld [vmem:[#allocation106_spill] sm:$0xff] }
 0x1e1   :  { %1843 = vperm.xlu1 %5716, %v5804_v15   ;;  %v8346_v18 = vadd.f32 %v7754_v9, %v6622_v33  ;;  %v8350_v62 = vadd.f32 %v7756_v25, %v6624_v43  ;;  %v8352_v4 = vrot.slane %v1549_v34, %v1548_v41  ;;  %v8354_v15 = vrot.slane %v1553_v50, %v1548_v41  ;;  %v13099_v22 = vld [vmem:[#allocation105_spill] sm:$0xff]  ;;  %v13101_v9 = vld [vmem:[#allocation107_spill] sm:$0xff]  ;;  %v13102_v25 = vld [vmem:[#allocation108_spill] sm:$0xff] }
 0x1e2   :  { %v8356_v51 = vrot.slane %v1557_v53, %v1548_v41  ;;  %v8358_v54 = vrot.slane %v1561_v7, %v1548_v41  ;;  %v8362_v28 = vadd.f32 %v7722_v46, %v13099_v22  ;;  %v8366_v33 = vadd.f32 %v7724_v49, %v13100_v21  ;;  %v5805_v53 = vld [vmem:[%s5933_s21 + $0x18] sm:$0xff]  ;;  %v5806_v10 = vld [vmem:[%s5933_s21 + $0x10] sm:$0xff] }
 0x1e3   :  { %v8370_v43 = vadd.f32 %v7726_v44, %v13101_v9  ;;  %v8374_v34 = vadd.f32 %v7728_v55, %v13102_v25  ;;  %v1582_v50 = vsub.f32 %v8067_v63, %v8352_v4  ;;  %v1583_v7 = vsub.f32 %v8067_v63, %v8354_v15  ;;  %1851 = vperm.xlu0 %5715, %v5805_v53   ;;  %v8385_v44 = vpop.permute.xlu0 %1339 }
 0x1e4   :  { %v1584_v46 = vsub.f32 %v8067_v63, %v8356_v51  ;;  %v1585_v49 = vsub.f32 %v8067_v63, %v8358_v54  ;;  %v1586_v55 = vsub.f32 %v8110_v3, %v8352_v4  ;;  %v1587_v41 = vsub.f32 %v8110_v3, %v8354_v15  ;;  %v8396_v63 = vpop.permute.xlu1 %1335 }
 0x1e5   :  { %v1588_v57 = vsub.f32 %v8110_v3, %v8356_v51  ;;  %v1589_v14 = vsub.f32 %v8110_v3, %v8358_v54  ;;  %1847 = vperm.xlu1 %5716, %v5806_v10   ;;  %v8398_v22 = vmul.f32 %v1582_v50, %v1582_v50  ;;  %v8400_v21 = vmul.f32 %v1583_v7, %v1583_v7 }
 0x1e6   :  { %v8402_v9 = vmul.f32 %v1584_v46, %v1584_v46  ;;  %v8404_v25 = vmul.f32 %v1585_v49, %v1585_v49  ;;  %v8406_v53 = vmul.f32 %v1586_v55, %v1586_v55  ;;  %v8408_v6 = vmul.f32 %v1587_v41, %v1587_v41  ;;  %v5807_v49 = vld [vmem:[%s5933_s21 + $0x28] sm:$0xff] }
 0x1e7   :  { %13103 = vst [vmem:[#allocation109_spill] sm:$0xff] %v8400_v21  ;;  %v8410_v37 = vmul.f32 %v1588_v57, %v1588_v57  ;;  %v8412_v3 = vmul.f32 %v1589_v14, %v1589_v14  ;;  %v1590_v10 = vsub.f32 %v8120_v38, %v8352_v4  ;;  %v1591_v50 = vsub.f32 %v8120_v38, %v8354_v15 }
 0x1e8   :  { %13104 = vst [vmem:[#allocation110_spill] sm:$0xff] %v8402_v9  ;;  %13105 = vst [vmem:[#allocation111_spill] sm:$0xff] %v8404_v25  ;;  %v1592_v7 = vsub.f32 %v8120_v38, %v8356_v51  ;;  %v1593_v46 = vsub.f32 %v8120_v38, %v8358_v54  ;;  %1859 = vperm.xlu0 %5715, %v5807_v49   ;;  %v1598_v55 = vsub.f32 %v8162_v31, %v8352_v4 }
 0x1e9   :  { %13106 = vst [vmem:[#allocation116_spill] sm:$0xff] %v8406_v53  ;;  %13107 = vst [vmem:[#allocation105_spill] sm:$0xff] %v8408_v6  ;;  %v1599_v41 = vsub.f32 %v8162_v31, %v8354_v15  ;;  %v1600_v57 = vsub.f32 %v8162_v31, %v8356_v51  ;;  %v1601_v14 = vsub.f32 %v8162_v31, %v8358_v54  ;;  %v8440_v53 = vpop.permute.xlu0 %1347 }
 0x1ea   :  { %13108 = vst [vmem:[#allocation106_spill] sm:$0xff] %v8410_v37  ;;  %13109 = vst [vmem:[#allocation107_spill] sm:$0xff] %v8412_v3  ;;  %v5808_v3 = vld [vmem:[%s5933_s21 + $0x20] sm:$0xff]  ;;  %v8432_v37 = vmul.f32 %v1590_v10, %v1590_v10  ;;  %v8434_v38 = vmul.f32 %v1591_v50, %v1591_v50  ;;  %v8436_v49 = vmul.f32 %v1592_v7, %v1592_v7 }
 0x1eb   :  { %1855 = vperm.xlu1 %5716, %v5808_v3   ;;  %v8438_v6 = vmul.f32 %v1593_v46, %v1593_v46  ;;  %v8442_v25 = vmul.f32 %v1598_v55, %v1598_v55  ;;  %v8444_v9 = vmul.f32 %v1599_v41, %v1599_v41  ;;  %v8446_v21 = vmul.f32 %v1600_v57, %v1600_v57  ;;  %v8450_v3 = vpop.permute.xlu1 %1343  ;;  %v5809_v55 = vld [vmem:[%s5933_s21 + $0x38] sm:$0xff] }
 0x1ec   :  { %13110 = vst [vmem:[#allocation108_spill] sm:$0xff] %v8432_v37  ;;  %13111 = vst [vmem:[#allocation365_spill] sm:$0xff] %v8434_v38  ;;  %v8448_v31 = vmul.f32 %v1601_v14, %v1601_v14  ;;  %v1594_v10 = vsub.f32 %v8172_v5, %v8352_v4  ;;  %v1595_v50 = vsub.f32 %v8172_v5, %v8354_v15  ;;  %1867 = vperm.xlu0 %5715, %v5809_v55  }
 0x1ed   :  { %13112 = vst [vmem:[#allocation366_spill] sm:$0xff] %v8436_v49  ;;  %13113 = vst [vmem:[#allocation367_spill] sm:$0xff] %v8438_v6  ;;  %v1596_v7 = vsub.f32 %v8172_v5, %v8356_v51  ;;  %v1597_v46 = vsub.f32 %v8172_v5, %v8358_v54  ;;  %v1606_v41 = vsub.f32 %v8214_v39, %v8352_v4 }
 0x1ee   :  { %13114 = vst [vmem:[#allocation368_spill] sm:$0xff] %v8442_v25  ;;  %13115 = vst [vmem:[#allocation369_spill] sm:$0xff] %v8444_v9  ;;  %v1607_v57 = vsub.f32 %v8214_v39, %v8354_v15  ;;  %v1608_v14 = vsub.f32 %v8214_v39, %v8356_v51  ;;  %v8470_v9 = vmul.f32 %v1594_v10, %v1594_v10 }
 0x1ef   :  { %13116 = vst [vmem:[#allocation370_spill] sm:$0xff] %v8446_v21  ;;  %13117 = vst [vmem:[#allocation371_spill] sm:$0xff] %v8448_v31  ;;  %v1609_v31 = vsub.f32 %v8214_v39, %v8358_v54  ;;  %v5810_v21 = vld [vmem:[%s5933_s21 + $0x30] sm:$0xff]  ;;  %v8472_v5 = vmul.f32 %v1595_v50, %v1595_v50  ;;  %v8474_v55 = vmul.f32 %v1596_v7, %v1596_v7  ;;  %v5811_v7 = vld [vmem:[%s5933_s21 + $0x48] sm:$0xff] }
 0x1f0   :  { %1863 = vperm.xlu1 %5716, %v5810_v21   ;;  %v8476_v25 = vmul.f32 %v1597_v46, %v1597_v46  ;;  %v8478_v6 = vmul.f32 %v1606_v41, %v1606_v41  ;;  %v8480_v49 = vmul.f32 %v1607_v57, %v1607_v57  ;;  %v8482_v38 = vmul.f32 %v1608_v14, %v1608_v14  ;;  %v8495_v46 = vpop.permute.xlu0 %1355 }
 0x1f1   :  { %13118 = vst [vmem:[#allocation372_spill] sm:$0xff] %v8472_v5  ;;  %13119 = vst [vmem:[#allocation373_spill] sm:$0xff] %v8474_v55  ;;  %v8484_v37 = vmul.f32 %v1609_v31, %v1609_v31  ;;  %v1602_v39 = vsub.f32 %v8224_v20, %v8352_v4  ;;  %v1603_v21 = vsub.f32 %v8224_v20, %v8354_v15  ;;  %1875 = vperm.xlu0 %5715, %v5811_v7  }
 0x1f2   :  { %13120 = vst [vmem:[#allocation374_spill] sm:$0xff] %v8476_v25  ;;  %13121 = vst [vmem:[#allocation375_spill] sm:$0xff] %v8478_v6  ;;  %v1604_v10 = vsub.f32 %v8224_v20, %v8356_v51  ;;  %v1605_v50 = vsub.f32 %v8224_v20, %v8358_v54  ;;  %v1614_v31 = vsub.f32 %v8266_v0, %v8352_v4  ;;  %v8506_v20 = vpop.permute.xlu1 %1351 }
 0x1f3   :  { %13122 = vst [vmem:[#allocation376_spill] sm:$0xff] %v8480_v49  ;;  %13123 = vst [vmem:[#allocation377_spill] sm:$0xff] %v8482_v38  ;;  %v1615_v41 = vsub.f32 %v8266_v0, %v8354_v15  ;;  %v1616_v57 = vsub.f32 %v8266_v0, %v8356_v51  ;;  %v1617_v14 = vsub.f32 %v8266_v0, %v8358_v54 }
 0x1f4   :  { %13124 = vst [vmem:[#allocation378_spill] sm:$0xff] %v8484_v37  ;;  %v5812_v37 = vld [vmem:[%s5933_s21 + $0x40] sm:$0xff]  ;;  %v8508_v7 = vmul.f32 %v1602_v39, %v1602_v39  ;;  %v8510_v38 = vmul.f32 %v1603_v21, %v1603_v21  ;;  %v8512_v49 = vmul.f32 %v1604_v10, %v1604_v10  ;;  %v8514_v6 = vmul.f32 %v1605_v50, %v1605_v50  ;;  %v5813_v50 = vld [vmem:[%s5933_s21 + $0x58] sm:$0xff] }
 0x1f5   :  { %1871 = vperm.xlu1 %5716, %v5812_v37   ;;  %v8516_v25 = vmul.f32 %v1614_v31, %v1614_v31  ;;  %v8518_v55 = vmul.f32 %v1615_v41, %v1615_v41  ;;  %v8520_v5 = vmul.f32 %v1616_v57, %v1616_v57  ;;  %v8522_v0 = vmul.f32 %v1617_v14, %v1617_v14 }
 0x1f6   :  { %13125 = vst [vmem:[#allocation379_spill] sm:$0xff] %v8510_v38  ;;  %13126 = vst [vmem:[#allocation380_spill] sm:$0xff] %v8512_v49  ;;  %v1610_v37 = vsub.f32 %v8276_v40, %v8352_v4  ;;  %v1611_v39 = vsub.f32 %v8276_v40, %v8354_v15  ;;  %v1612_v21 = vsub.f32 %v8276_v40, %v8356_v51  ;;  %1883 = vperm.xlu0 %5715, %v5813_v50  }
 0x1f7   :  { %13127 = vst [vmem:[#allocation381_spill] sm:$0xff] %v8514_v6  ;;  %13128 = vst [vmem:[#allocation382_spill] sm:$0xff] %v8516_v25  ;;  %v1613_v10 = vsub.f32 %v8276_v40, %v8358_v54  ;;  %v1622_v31 = vsub.f32 %v8312_v17, %v8352_v4  ;;  %v1623_v41 = vsub.f32 %v8312_v17, %v8354_v15  ;;  %v8550_v25 = vpop.permute.xlu0 %1363 }
 0x1f8   :  { %13129 = vst [vmem:[#allocation383_spill] sm:$0xff] %v8518_v55  ;;  %13130 = vst [vmem:[#allocation384_spill] sm:$0xff] %v8520_v5  ;;  %v1624_v57 = vsub.f32 %v8312_v17, %v8356_v51  ;;  %v1625_v14 = vsub.f32 %v8312_v17, %v8358_v54  ;;  %v8542_v5 = vmul.f32 %v1610_v37, %v1610_v37 }
 0x1f9   :  { %13131 = vst [vmem:[#allocation385_spill] sm:$0xff] %v8522_v0  ;;  %v5814_v0 = vld [vmem:[%s5933_s21 + $0x50] sm:$0xff]  ;;  %v8544_v40 = vmul.f32 %v1611_v39, %v1611_v39  ;;  %v8546_v50 = vmul.f32 %v1612_v21, %v1612_v21  ;;  %v8548_v55 = vmul.f32 %v1613_v10, %v1613_v10  ;;  %v8552_v6 = vmul.f32 %v1622_v31, %v1622_v31  ;;  %v5815_v31 = vld [vmem:[%s5933_s21 + $0x68] sm:$0xff] }
 0x1fa   :  { %1879 = vperm.xlu1 %5716, %v5814_v0   ;;  %13132 = vst [vmem:[#allocation386_spill] sm:$0xff] %v8542_v5  ;;  %v8554_v49 = vmul.f32 %v1623_v41, %v1623_v41  ;;  %v8556_v38 = vmul.f32 %v1624_v57, %v1624_v57  ;;  %v8558_v17 = vmul.f32 %v1625_v14, %v1625_v14  ;;  %v8560_v0 = vpop.permute.xlu1 %1359 }
 0x1fb   :  { %13133 = vst [vmem:[#allocation387_spill] sm:$0xff] %v8544_v40  ;;  %13134 = vst [vmem:[#allocation388_spill] sm:$0xff] %v8546_v50  ;;  %v1618_v37 = vsub.f32 %v8318_v16, %v8352_v4  ;;  %v1619_v39 = vsub.f32 %v8318_v16, %v8354_v15  ;;  %v1620_v21 = vsub.f32 %v8318_v16, %v8356_v51  ;;  %1891 = vperm.xlu0 %5715, %v5815_v31  }
 0x1fc   :  { %13135 = vst [vmem:[#allocation389_spill] sm:$0xff] %v8548_v55  ;;  %13136 = vst [vmem:[#allocation390_spill] sm:$0xff] %v8552_v6  ;;  %v1621_v10 = vsub.f32 %v8318_v16, %v8358_v54  ;;  %v1630_v41 = vsub.f32 %v8385_v44, %v8352_v4  ;;  %v1631_v57 = vsub.f32 %v8385_v44, %v8354_v15 }
 0x1fd   :  { %13137 = vst [vmem:[#allocation391_spill] sm:$0xff] %v8554_v49  ;;  %13138 = vst [vmem:[#allocation392_spill] sm:$0xff] %v8556_v38  ;;  %v1632_v14 = vsub.f32 %v8385_v44, %v8356_v51  ;;  %v5816_v38 = vld [vmem:[%s5933_s21 + $0x60] sm:$0xff]  ;;  %v8580_v49 = vmul.f32 %v1618_v37, %v1618_v37  ;;  %v8582_v16 = vmul.f32 %v1619_v39, %v1619_v39 }
 0x1fe   :  { %13139 = vst [vmem:[#allocation393_spill] sm:$0xff] %v8558_v17  ;;  %v1633_v17 = vsub.f32 %v8385_v44, %v8358_v54  ;;  %1887 = vperm.xlu1 %5716, %v5816_v38   ;;  %v8584_v31 = vmul.f32 %v1620_v21, %v1620_v21  ;;  %v8586_v6 = vmul.f32 %v1621_v10, %v1621_v10  ;;  %v5817_v21 = vld [vmem:[%s5933_s21 + $0x78] sm:$0xff]  ;;  %v8605_v10 = vpop.permute.xlu0 %1371 }
 0x1ff   :  { %13140 = vst [vmem:[#allocation394_spill] sm:$0xff] %v8582_v16  ;;  %v8588_v55 = vmul.f32 %v1630_v41, %v1630_v41  ;;  %v8590_v50 = vmul.f32 %v1631_v57, %v1631_v57  ;;  %v8592_v40 = vmul.f32 %v1632_v14, %v1632_v14  ;;  %v1626_v44 = vsub.f32 %v8396_v63, %v8352_v4 }
 0x200   :  { %13141 = vst [vmem:[#allocation395_spill] sm:$0xff] %v8584_v31  ;;  %13142 = vst [vmem:[#allocation396_spill] sm:$0xff] %v8586_v6  ;;  %v8594_v5 = vmul.f32 %v1633_v17, %v1633_v17  ;;  %v1627_v38 = vsub.f32 %v8396_v63, %v8354_v15  ;;  %v1628_v37 = vsub.f32 %v8396_v63, %v8356_v51  ;;  %1899 = vperm.xlu0 %5715, %v5817_v21  }
 0x201   :  { %13143 = vst [vmem:[#allocation397_spill] sm:$0xff] %v8588_v55  ;;  %13144 = vst [vmem:[#allocation398_spill] sm:$0xff] %v8590_v50  ;;  %v1629_v39 = vsub.f32 %v8396_v63, %v8358_v54  ;;  %v1638_v17 = vsub.f32 %v8440_v53, %v8352_v4  ;;  %v1639_v41 = vsub.f32 %v8440_v53, %v8354_v15  ;;  %v8616_v63 = vpop.permute.xlu1 %1367 }
 0x202   :  { %13145 = vst [vmem:[#allocation399_spill] sm:$0xff] %v8592_v40  ;;  %13146 = vst [vmem:[#allocation400_spill] sm:$0xff] %v8594_v5  ;;  %v1640_v57 = vsub.f32 %v8440_v53, %v8356_v51  ;;  %v1641_v14 = vsub.f32 %v8440_v53, %v8358_v54  ;;  %v5818_v5 = vld [vmem:[%s5933_s21 + $0x70] sm:$0xff]  ;;  %v8618_v21 = vmul.f32 %v1626_v44, %v1626_v44 }
 0x203   :  { %1895 = vperm.xlu1 %5716, %v5818_v5   ;;  %v8620_v40 = vmul.f32 %v1627_v38, %v1627_v38  ;;  %v8622_v50 = vmul.f32 %v1628_v37, %v1628_v37  ;;  %v8624_v55 = vmul.f32 %v1629_v39, %v1629_v39  ;;  %v8626_v6 = vmul.f32 %v1638_v17, %v1638_v17  ;;  %v5819_v39 = vld [vmem:[%s5933_s21 + $0x88] sm:$0xff] }
 0x204   :  { %13147 = vst [vmem:[#allocation401_spill] sm:$0xff] %v8618_v21  ;;  %v8628_v31 = vmul.f32 %v1639_v41, %v1639_v41  ;;  %v8630_v16 = vmul.f32 %v1640_v57, %v1640_v57  ;;  %v8632_v53 = vmul.f32 %v1641_v14, %v1641_v14  ;;  %v1634_v5 = vsub.f32 %v8450_v3, %v8352_v4 }
 0x205   :  { %13148 = vst [vmem:[#allocation402_spill] sm:$0xff] %v8620_v40  ;;  %13149 = vst [vmem:[#allocation403_spill] sm:$0xff] %v8622_v50  ;;  %v1635_v44 = vsub.f32 %v8450_v3, %v8354_v15  ;;  %v1636_v38 = vsub.f32 %v8450_v3, %v8356_v51  ;;  %v1637_v37 = vsub.f32 %v8450_v3, %v8358_v54  ;;  %1907 = vperm.xlu0 %5715, %v5819_v39   ;;  %v8668_v21 = vpop.permute.xlu1 %1375 }
 0x206   :  { %13150 = vst [vmem:[#allocation404_spill] sm:$0xff] %v8624_v55  ;;  %13151 = vst [vmem:[#allocation405_spill] sm:$0xff] %v8626_v6  ;;  %v1646_v17 = vsub.f32 %v8495_v46, %v8352_v4  ;;  %v1647_v41 = vsub.f32 %v8495_v46, %v8354_v15  ;;  %v1648_v57 = vsub.f32 %v8495_v46, %v8356_v51  ;;  %v1380_v6 = vpop.permute.xlu0 %1379 }
 0x207   :  { %13152 = vst [vmem:[#allocation406_spill] sm:$0xff] %v8628_v31  ;;  %13153 = vst [vmem:[#allocation407_spill] sm:$0xff] %v8630_v16  ;;  %v1649_v14 = vsub.f32 %v8495_v46, %v8358_v54  ;;  %v8652_v16 = vmul.f32 %v1634_v5, %v1634_v5  ;;  %v8654_v3 = vmul.f32 %v1635_v44, %v1635_v44 }
 0x208   :  { %13154 = vst [vmem:[#allocation408_spill] sm:$0xff] %v8632_v53  ;;  %v5820_v53 = vld [vmem:[%s5933_s21 + $0x80] sm:$0xff]  ;;  %v8656_v39 = vmul.f32 %v1636_v38, %v1636_v38  ;;  %v8658_v31 = vmul.f32 %v1637_v37, %v1637_v37  ;;  %v8660_v55 = vmul.f32 %v1646_v17, %v1646_v17  ;;  %v8662_v50 = vmul.f32 %v1647_v41, %v1647_v41  ;;  %v5821_v37 = vld [vmem:[%s5933_s21 + $0x98] sm:$0xff] }
 0x209   :  { %1903 = vperm.xlu1 %5716, %v5820_v53   ;;  %13155 = vst [vmem:[#allocation409_spill] sm:$0xff] %v8654_v3  ;;  %v8664_v40 = vmul.f32 %v1648_v57, %v1648_v57  ;;  %v8666_v46 = vmul.f32 %v1649_v14, %v1649_v14  ;;  %v1642_v53 = vsub.f32 %v8506_v20, %v8352_v4 }
 0x20a   :  { %13156 = vst [vmem:[#allocation410_spill] sm:$0xff] %v8656_v39  ;;  %13157 = vst [vmem:[#allocation411_spill] sm:$0xff] %v8658_v31  ;;  %v1643_v5 = vsub.f32 %v8506_v20, %v8354_v15  ;;  %v1644_v44 = vsub.f32 %v8506_v20, %v8356_v51  ;;  %v1645_v38 = vsub.f32 %v8506_v20, %v8358_v54  ;;  %1915 = vperm.xlu0 %5715, %v5821_v37  }
 0x20b   :  { %13158 = vst [vmem:[#allocation412_spill] sm:$0xff] %v8660_v55  ;;  %13159 = vst [vmem:[#allocation413_spill] sm:$0xff] %v8662_v50  ;;  %v1654_v17 = vsub.f32 %v8550_v25, %v8352_v4  ;;  %v1655_v41 = vsub.f32 %v8550_v25, %v8354_v15  ;;  %v1656_v57 = vsub.f32 %v8550_v25, %v8356_v51 }
 0x20c   :  { %13160 = vst [vmem:[#allocation414_spill] sm:$0xff] %v8664_v40  ;;  %13161 = vst [vmem:[#allocation415_spill] sm:$0xff] %v8666_v46  ;;  %v1657_v14 = vsub.f32 %v8550_v25, %v8358_v54  ;;  %v5822_v46 = vld [vmem:[%s5933_s21 + $0x90] sm:$0xff]  ;;  %v8688_v40 = vmul.f32 %v1642_v53, %v1642_v53  ;;  %v8690_v20 = vmul.f32 %v1643_v5, %v1643_v5 }
 0x20d   :  { %1911 = vperm.xlu1 %5716, %v5822_v46   ;;  %v8692_v37 = vmul.f32 %v1644_v44, %v1644_v44  ;;  %v8694_v50 = vmul.f32 %v1645_v38, %v1645_v38  ;;  %v8696_v55 = vmul.f32 %v1654_v17, %v1654_v17  ;;  %v8698_v31 = vmul.f32 %v1655_v41, %v1655_v41  ;;  %v5823_v44 = vld [vmem:[%s5933_s21 + $0xa8] sm:$0xff]  ;;  %v1388_v38 = vpop.permute.xlu0 %1387 }
 0x20e   :  { %13162 = vst [vmem:[#allocation416_spill] sm:$0xff] %v8690_v20  ;;  %v8700_v39 = vmul.f32 %v1656_v57, %v1656_v57  ;;  %v8702_v3 = vmul.f32 %v1657_v14, %v1657_v14  ;;  %v1650_v25 = vsub.f32 %v8560_v0, %v8352_v4  ;;  %v1651_v46 = vsub.f32 %v8560_v0, %v8354_v15 }
 0x20f   :  { %13163 = vst [vmem:[#allocation417_spill] sm:$0xff] %v8692_v37  ;;  %13164 = vst [vmem:[#allocation418_spill] sm:$0xff] %v8694_v50  ;;  %v1652_v53 = vsub.f32 %v8560_v0, %v8356_v51  ;;  %v1653_v5 = vsub.f32 %v8560_v0, %v8358_v54  ;;  %1923 = vperm.xlu0 %5715, %v5823_v44   ;;  %v1662_v17 = vsub.f32 %v8605_v10, %v8352_v4 }
 0x210   :  { %13165 = vst [vmem:[#allocation419_spill] sm:$0xff] %v8696_v55  ;;  %13166 = vst [vmem:[#allocation420_spill] sm:$0xff] %v8698_v31  ;;  %v1663_v41 = vsub.f32 %v8605_v10, %v8354_v15  ;;  %v1664_v57 = vsub.f32 %v8605_v10, %v8356_v51  ;;  %v1665_v14 = vsub.f32 %v8605_v10, %v8358_v54 }
 0x211   :  { %13167 = vst [vmem:[#allocation421_spill] sm:$0xff] %v8700_v39  ;;  %13168 = vst [vmem:[#allocation422_spill] sm:$0xff] %v8702_v3  ;;  %v5824_v3 = vld [vmem:[%s5933_s21 + $0xa0] sm:$0xff]  ;;  %v1384_v39 = vpop.permute.xlu1 %1383  ;;  %v8722_v0 = vmul.f32 %v1650_v25, %v1650_v25  ;;  %v8724_v44 = vmul.f32 %v1651_v46, %v1651_v46  ;;  %v8726_v31 = vmul.f32 %v1652_v53, %v1652_v53 }
 0x212   :  { %1919 = vperm.xlu1 %5716, %v5824_v3   ;;  %v8728_v55 = vmul.f32 %v1653_v5, %v1653_v5  ;;  %v8730_v50 = vmul.f32 %v1662_v17, %v1662_v17  ;;  %v8732_v37 = vmul.f32 %v1663_v41, %v1663_v41  ;;  %v8734_v20 = vmul.f32 %v1664_v57, %v1664_v57  ;;  %v5825_v5 = vld [vmem:[%s5933_s21 + $0xb8] sm:$0xff] }
 0x213   :  { %13169 = vst [vmem:[#allocation423_spill] sm:$0xff] %v8722_v0  ;;  %13170 = vst [vmem:[#allocation424_spill] sm:$0xff] %v8724_v44  ;;  %v8736_v10 = vmul.f32 %v1665_v14, %v1665_v14  ;;  %v1658_v3 = vsub.f32 %v8616_v63, %v8352_v4  ;;  %v1659_v25 = vsub.f32 %v8616_v63, %v8354_v15  ;;  %1931 = vperm.xlu0 %5715, %v5825_v5   ;;  %v1396_v5 = vpop.permute.xlu0 %1395 }
 0x214   :  { %13171 = vst [vmem:[#allocation425_spill] sm:$0xff] %v8726_v31  ;;  %13172 = vst [vmem:[#allocation426_spill] sm:$0xff] %v8728_v55  ;;  %v1660_v46 = vsub.f32 %v8616_v63, %v8356_v51  ;;  %v1661_v53 = vsub.f32 %v8616_v63, %v8358_v54  ;;  %v1670_v17 = vsub.f32 %v1380_v6, %v8352_v4 }
 0x215   :  { %13173 = vst [vmem:[#allocation427_spill] sm:$0xff] %v8730_v50  ;;  %13174 = vst [vmem:[#allocation428_spill] sm:$0xff] %v8732_v37  ;;  %v1671_v41 = vsub.f32 %v1380_v6, %v8354_v15  ;;  %v1672_v57 = vsub.f32 %v1380_v6, %v8356_v51  ;;  %v1673_v14 = vsub.f32 %v1380_v6, %v8358_v54  ;;  %v1392_v0 = vpop.permute.xlu1 %1391 }
 0x216   :  { %13175 = vst [vmem:[#allocation429_spill] sm:$0xff] %v8734_v20  ;;  %13176 = vst [vmem:[#allocation430_spill] sm:$0xff] %v8736_v10  ;;  %v5826_v10 = vld [vmem:[%s5933_s21 + $0xb0] sm:$0xff]  ;;  %v8752_v20 = vmul.f32 %v1658_v3, %v1658_v3  ;;  %v8754_v37 = vmul.f32 %v1659_v25, %v1659_v25  ;;  %v8756_v50 = vmul.f32 %v1660_v46, %v1660_v46 }
 0x217   :  { %1927 = vperm.xlu1 %5716, %v5826_v10   ;;  %v8758_v63 = vmul.f32 %v1661_v53, %v1661_v53  ;;  %v8760_v55 = vmul.f32 %v1670_v17, %v1670_v17  ;;  %v8762_v31 = vmul.f32 %v1671_v41, %v1671_v41  ;;  %v8764_v44 = vmul.f32 %v1672_v57, %v1672_v57  ;;  %v5827_v53 = vld [vmem:[%s5933_s21 + $0xc8] sm:$0xff] }
 0x218   :  { %13177 = vst [vmem:[#allocation431_spill] sm:$0xff] %v8754_v37  ;;  %13178 = vst [vmem:[#allocation432_spill] sm:$0xff] %v8756_v50  ;;  %v8766_v6 = vmul.f32 %v1673_v14, %v1673_v14  ;;  %v1666_v10 = vsub.f32 %v8668_v21, %v8352_v4  ;;  %v1667_v3 = vsub.f32 %v8668_v21, %v8354_v15  ;;  %1939 = vperm.xlu0 %5715, %v5827_v53  }
 0x219   :  { %13179 = vst [vmem:[#allocation433_spill] sm:$0xff] %v8758_v63  ;;  %13180 = vst [vmem:[#allocation434_spill] sm:$0xff] %v8760_v55  ;;  %v1668_v25 = vsub.f32 %v8668_v21, %v8356_v51  ;;  %v1669_v46 = vsub.f32 %v8668_v21, %v8358_v54  ;;  %v1678_v17 = vsub.f32 %v1388_v38, %v8352_v4 }
 0x21a   :  { %13181 = vst [vmem:[#allocation435_spill] sm:$0xff] %v8762_v31  ;;  %13182 = vst [vmem:[#allocation436_spill] sm:$0xff] %v8764_v44  ;;  %v1679_v41 = vsub.f32 %v1388_v38, %v8354_v15  ;;  %v1680_v57 = vsub.f32 %v1388_v38, %v8356_v51  ;;  %v1681_v14 = vsub.f32 %v1388_v38, %v8358_v54 }
 0x21b   :  { %13183 = vst [vmem:[#allocation437_spill] sm:$0xff] %v8766_v6  ;;  %v5828_v6 = vld [vmem:[%s5933_s21 + $0xc0] sm:$0xff]  ;;  %v8782_v44 = vmul.f32 %v1666_v10, %v1666_v10  ;;  %v8784_v31 = vmul.f32 %v1667_v3, %v1667_v3  ;;  %v8786_v55 = vmul.f32 %v1668_v25, %v1668_v25  ;;  %v8788_v21 = vmul.f32 %v1669_v46, %v1669_v46  ;;  %v5829_v25 = vld [vmem:[%s5933_s21 + $0xd8] sm:$0xff]  ;;  %v1404_v46 = vpop.permute.xlu0 %1403 }
 0x21c   :  { %1935 = vperm.xlu1 %5716, %v5828_v6   ;;  %v8790_v53 = vmul.f32 %v1678_v17, %v1678_v17  ;;  %v8792_v63 = vmul.f32 %v1679_v41, %v1679_v41  ;;  %v8794_v50 = vmul.f32 %v1680_v57, %v1680_v57  ;;  %v8796_v37 = vmul.f32 %v1681_v14, %v1681_v14 }
 0x21d   :  { %13184 = vst [vmem:[#allocation438_spill] sm:$0xff] %v8782_v44  ;;  %13185 = vst [vmem:[#allocation439_spill] sm:$0xff] %v8784_v31  ;;  %v1674_v38 = vsub.f32 %v1384_v39, %v8352_v4  ;;  %v1675_v6 = vsub.f32 %v1384_v39, %v8354_v15  ;;  %v1676_v10 = vsub.f32 %v1384_v39, %v8356_v51  ;;  %1947 = vperm.xlu0 %5715, %v5829_v25  }
 0x21e   :  { %13186 = vst [vmem:[#allocation440_spill] sm:$0xff] %v8786_v55  ;;  %13187 = vst [vmem:[#allocation441_spill] sm:$0xff] %v8788_v21  ;;  %v1677_v3 = vsub.f32 %v1384_v39, %v8358_v54  ;;  %v1686_v17 = vsub.f32 %v1396_v5, %v8352_v4  ;;  %v1687_v41 = vsub.f32 %v1396_v5, %v8354_v15 }
 0x21f   :  { %13188 = vst [vmem:[#allocation442_spill] sm:$0xff] %v8790_v53  ;;  %13189 = vst [vmem:[#allocation443_spill] sm:$0xff] %v8792_v63  ;;  %v1688_v57 = vsub.f32 %v1396_v5, %v8356_v51  ;;  %v1689_v14 = vsub.f32 %v1396_v5, %v8358_v54  ;;  %v8808_v63 = vmul.f32 %v1674_v38, %v1674_v38 }
 0x220   :  { %13190 = vst [vmem:[#allocation444_spill] sm:$0xff] %v8794_v50  ;;  %13191 = vst [vmem:[#allocation445_spill] sm:$0xff] %v8796_v37  ;;  %v1400_v37 = vpop.permute.xlu1 %1399  ;;  %v5830_v50 = vld [vmem:[%s5933_s21 + $0xd0] sm:$0xff]  ;;  %v8810_v53 = vmul.f32 %v1675_v6, %v1675_v6  ;;  %v8812_v39 = vmul.f32 %v1676_v10, %v1676_v10  ;;  %v8814_v25 = vmul.f32 %v1677_v3, %v1677_v3  ;;  %v5831_v10 = vld [vmem:[%s5933_s21 + $0xe8] sm:$0xff] }
 0x221   :  { %1943 = vperm.xlu1 %5716, %v5830_v50   ;;  %13192 = vst [vmem:[#allocation446_spill] sm:$0xff] %v8808_v63  ;;  %v8816_v21 = vmul.f32 %v1686_v17, %v1686_v17  ;;  %v8818_v55 = vmul.f32 %v1687_v41, %v1687_v41  ;;  %v8820_v31 = vmul.f32 %v1688_v57, %v1688_v57 }
 0x222   :  { %13193 = vst [vmem:[#allocation447_spill] sm:$0xff] %v8810_v53  ;;  %13194 = vst [vmem:[#allocation448_spill] sm:$0xff] %v8812_v39  ;;  %v8822_v5 = vmul.f32 %v1689_v14, %v1689_v14  ;;  %v1682_v44 = vsub.f32 %v1392_v0, %v8352_v4  ;;  %v1683_v50 = vsub.f32 %v1392_v0, %v8354_v15  ;;  %1955 = vperm.xlu0 %5715, %v5831_v10   ;;  %v5832_v14 = vld [vmem:[%s5933_s21 + $0xe0] sm:$0xff]  ;;  %v1412_v10 = vpop.permute.xlu0 %1411 }
 0x223   :  { %13195 = vst [vmem:[#allocation449_spill] sm:$0xff] %v8814_v25  ;;  %13196 = vst [vmem:[#allocation450_spill] sm:$0xff] %v8816_v21  ;;  %v1684_v38 = vsub.f32 %v1392_v0, %v8356_v51  ;;  %v1685_v6 = vsub.f32 %v1392_v0, %v8358_v54  ;;  %v1694_v3 = vsub.f32 %v1404_v46, %v8352_v4 }
 0x224   :  { %13197 = vst [vmem:[#allocation451_spill] sm:$0xff] %v8818_v55  ;;  %13198 = vst [vmem:[#allocation452_spill] sm:$0xff] %v8820_v31  ;;  %v1695_v17 = vsub.f32 %v1404_v46, %v8354_v15  ;;  %v1696_v41 = vsub.f32 %v1404_v46, %v8356_v51  ;;  %v1697_v57 = vsub.f32 %v1404_v46, %v8358_v54  ;;  %v1408_v53 = vpop.permute.xlu1 %1407 }
 0x225   :  { %13199 = vst [vmem:[#allocation453_spill] sm:$0xff] %v8822_v5  ;;  %1951 = vperm.xlu1 %5716, %v5832_v14   ;;  %v8834_v5 = vmul.f32 %v1682_v44, %v1682_v44  ;;  %v8836_v31 = vmul.f32 %v1683_v50, %v1683_v50  ;;  %v8838_v55 = vmul.f32 %v1684_v38, %v1684_v38  ;;  %v5833_v14 = vld [vmem:[%s5933_s21 + $0xf8] sm:$0xff] }
 0x226   :  { %v8840_v0 = vmul.f32 %v1685_v6, %v1685_v6  ;;  %v8842_v21 = vmul.f32 %v1694_v3, %v1694_v3  ;;  %v8844_v25 = vmul.f32 %v1695_v17, %v1695_v17  ;;  %v8846_v39 = vmul.f32 %v1696_v41, %v1696_v41  ;;  %1963 = vperm.xlu0 %5715, %v5833_v14  }
 0x227   :  { %13200 = vst [vmem:[#allocation454_spill] sm:$0xff] %v8834_v5  ;;  %13201 = vst [vmem:[#allocation455_spill] sm:$0xff] %v8836_v31  ;;  %v8848_v46 = vmul.f32 %v1697_v57, %v1697_v57  ;;  %v1690_v44 = vsub.f32 %v1400_v37, %v8352_v4  ;;  %v1691_v50 = vsub.f32 %v1400_v37, %v8354_v15 }
 0x228   :  { %13202 = vst [vmem:[#allocation456_spill] sm:$0xff] %v8838_v55  ;;  %13203 = vst [vmem:[#allocation457_spill] sm:$0xff] %v8840_v0  ;;  %v1692_v38 = vsub.f32 %v1400_v37, %v8356_v51  ;;  %v1693_v6 = vsub.f32 %v1400_v37, %v8358_v54  ;;  %v1702_v3 = vsub.f32 %v1412_v10, %v8352_v4 }
 0x229   :  { %13204 = vst [vmem:[#allocation458_spill] sm:$0xff] %v8842_v21  ;;  %13205 = vst [vmem:[#allocation459_spill] sm:$0xff] %v8844_v25  ;;  %v1703_v17 = vsub.f32 %v1412_v10, %v8354_v15  ;;  %v1704_v41 = vsub.f32 %v1412_v10, %v8356_v51  ;;  %v1705_v57 = vsub.f32 %v1412_v10, %v8358_v54 }
 0x22a   :  { %13206 = vst [vmem:[#allocation460_spill] sm:$0xff] %v8846_v39  ;;  %13207 = vst [vmem:[#allocation461_spill] sm:$0xff] %v8848_v46  ;;  %v5834_v46 = vld [vmem:[%s5933_s21 + $0xf0] sm:$0xff]  ;;  %v8860_v39 = vmul.f32 %v1690_v44, %v1690_v44  ;;  %v8862_v25 = vmul.f32 %v1691_v50, %v1691_v50  ;;  %v8864_v21 = vmul.f32 %v1692_v38, %v1692_v38  ;;  %v1420_v44 = vpop.permute.xlu0 %1419  ;;  %v5835_v50 = vld [vmem:[%s5933_s21 + $0x108] sm:$0xff] }
 0x22b   :  { %1959 = vperm.xlu1 %5716, %v5834_v46   ;;  %v8866_v37 = vmul.f32 %v1693_v6, %v1693_v6  ;;  %v3274_v14 = vmul.f32 %v1702_v3, %v1702_v3  ;;  %v3275_v0 = vmul.f32 %v1703_v17, %v1703_v17  ;;  %v3276_v55 = vmul.f32 %v1704_v41, %v1704_v41  ;;  %v1416_v41 = vpop.permute.xlu1 %1415 }
 0x22c   :  { %v3277_v31 = vmul.f32 %v1705_v57, %v1705_v57  ;;  %v1698_v5 = vsub.f32 %v1408_v53, %v8352_v4  ;;  %v1699_v10 = vsub.f32 %v1408_v53, %v8354_v15  ;;  %v1700_v63 = vsub.f32 %v1408_v53, %v8356_v51  ;;  %1971 = vperm.xlu0 %5715, %v5835_v50   ;;  %v5836_v57 = vld [vmem:[%s5933_s21 + $0x100] sm:$0xff] }
 0x22d   :  { %13208 = vst [vmem:[#allocation462_spill] sm:$0xff] %v8866_v37  ;;  %v1701_v46 = vsub.f32 %v1408_v53, %v8358_v54  ;;  %v8874_v38 = vadd.f32 %v3274_v14, %v8316_v23  ;;  %v8877_v6 = vadd.f32 %v3275_v0, %v8322_v45  ;;  %v8880_v3 = vadd.f32 %v3276_v55, %v8326_v36  ;;  %v5837_v14 = vld [vmem:[%s5933_s21 + $0x118] sm:$0xff] }
 0x22e   :  { %v8883_v17 = vadd.f32 %v3277_v31, %v8330_v58  ;;  %v8886_v53 = vmul.f32 %v1698_v5, %v1698_v5  ;;  %v8888_v37 = vmul.f32 %v1699_v10, %v1699_v10  ;;  %v8890_v50 = vmul.f32 %v1700_v63, %v1700_v63 }
 0x22f   :  { %13209 = vst [vmem:[#allocation463_spill] sm:$0xff] %v8874_v38  ;;  %13210 = vst [vmem:[#allocation464_spill] sm:$0xff] %v8877_v6  ;;  %1967 = vperm.xlu1 %5716, %v5836_v57   ;;  %v8892_v23 = vmul.f32 %v1701_v46, %v1701_v46  ;;  %v1710_v45 = vsub.f32 %v1420_v44, %v8352_v4  ;;  %v1711_v36 = vsub.f32 %v1420_v44, %v8354_v15 }
 0x230   :  { %13211 = vst [vmem:[#allocation465_spill] sm:$0xff] %v8880_v3  ;;  %13212 = vst [vmem:[#allocation466_spill] sm:$0xff] %v8883_v17  ;;  %v1712_v58 = vsub.f32 %v1420_v44, %v8356_v51  ;;  %v1713_v55 = vsub.f32 %v1420_v44, %v8358_v54  ;;  %v1706_v31 = vsub.f32 %v1416_v41, %v8352_v4  ;;  %1979 = vperm.xlu0 %5715, %v5837_v14   ;;  %v5838_v3 = vld [vmem:[%s5933_s21 + $0x110] sm:$0xff] }
 0x231   :  { %13213 = vst [vmem:[#allocation467_spill] sm:$0xff] %v8888_v37  ;;  %13214 = vst [vmem:[#allocation468_spill] sm:$0xff] %v8890_v50  ;;  %v1707_v5 = vsub.f32 %v1416_v41, %v8354_v15  ;;  %v1708_v0 = vsub.f32 %v1416_v41, %v8356_v51  ;;  %v1709_v63 = vsub.f32 %v1416_v41, %v8358_v54 }
 0x232   :  { %13215 = vst [vmem:[#allocation469_spill] sm:$0xff] %v8892_v23  ;;  %v3282_v10 = vmul.f32 %v1710_v45, %v1710_v45  ;;  %v3283_v46 = vmul.f32 %v1711_v36, %v1711_v36  ;;  %v3284_v57 = vmul.f32 %v1712_v58, %v1712_v58  ;;  %v3285_v17 = vmul.f32 %v1713_v55, %v1713_v55  ;;  %v1428_v36 = vpop.permute.xlu0 %1427 }
 0x233   :  { %1975 = vperm.xlu1 %5716, %v5838_v3   ;;  %v3278_v6 = vmul.f32 %v1706_v31, %v1706_v31  ;;  %v3279_v38 = vmul.f32 %v1707_v5, %v1707_v5  ;;  %v3280_v44 = vmul.f32 %v1708_v0, %v1708_v0  ;;  %v3281_v23 = vmul.f32 %v1709_v63, %v1709_v63  ;;  %v5839_v31 = vld [vmem:[%s5933_s21 + $0x128] sm:$0xff] }
 0x234   :  { %v8905_v50 = vadd.f32 %v3282_v10, %v8338_v19  ;;  %v8908_v37 = vadd.f32 %v3283_v46, %v8342_v47  ;;  %v8911_v41 = vadd.f32 %v3284_v57, %v8346_v18  ;;  %v8914_v45 = vadd.f32 %v3285_v17, %v8350_v62  ;;  %v1424_v47 = vpop.permute.xlu1 %1423  ;;  %1987 = vperm.xlu0 %5715, %v5839_v31   ;;  %v13220_v62 = vld [vmem:[#allocation121_spill] sm:$0xff]  ;;  %v5841_v46 = vld [vmem:[%s5933_s21 + $0x138] sm:$0xff]  ;;  %v13223_v57 = vld [vmem:[#allocation112_spill] sm:$0xff] }
 0x235   :  { %v8917_v3 = vadd.f32 %v3278_v6, %v8362_v28  ;;  %v8920_v58 = vadd.f32 %v3279_v38, %v8366_v33  ;;  %v8923_v19 = vadd.f32 %v3280_v44, %v8370_v43  ;;  %v8926_v55 = vadd.f32 %v3281_v23, %v8374_v34  ;;  %v13221_v28 = vld [vmem:[#allocation122_spill] sm:$0xff]  ;;  %v13222_v33 = vld [vmem:[#allocation123_spill] sm:$0xff]  ;;  %v5840_v38 = vld [vmem:[%s5933_s21 + $0x120] sm:$0xff] }
 0x236   :  { %13216 = vst [vmem:[#allocation470_spill] sm:$0xff] %v8905_v50  ;;  %13217 = vst [vmem:[#allocation471_spill] sm:$0xff] %v8908_v37  ;;  %v3034_v18 = vadd.f32 %v7788_v1, %v6635_v26  ;;  %v3035_v17 = vadd.f32 %v7790_v59, %v13220_v62  ;;  %v3036_v6 = vadd.f32 %v7792_v52, %v13221_v28  ;;  %v13224_v31 = vld [vmem:[#allocation113_spill] sm:$0xff]  ;;  %v13225_v62 = vld [vmem:[#allocation114_spill] sm:$0xff] }
 0x237   :  { %13218 = vst [vmem:[#allocation472_spill] sm:$0xff] %v8911_v41  ;;  %13219 = vst [vmem:[#allocation473_spill] sm:$0xff] %v8914_v45  ;;  %v3037_v43 = vadd.f32 %v7794_v42, %v13222_v33  ;;  %1983 = vperm.xlu1 %5716, %v5840_v38   ;;  %v1718_v34 = vsub.f32 %v1428_v36, %v8352_v4  ;;  %v1719_v23 = vsub.f32 %v1428_v36, %v8354_v15  ;;  %v13226_v33 = vld [vmem:[#allocation115_spill] sm:$0xff]  ;;  %v5842_v45 = vld [vmem:[%s5933_s21 + $0x130] sm:$0xff] }
 0x238   :  { %v1720_v5 = vsub.f32 %v1428_v36, %v8356_v51  ;;  %v1721_v26 = vsub.f32 %v1428_v36, %v8358_v54  ;;  %v1714_v1 = vsub.f32 %v1424_v47, %v8352_v4  ;;  %v1715_v59 = vsub.f32 %v1424_v47, %v8354_v15  ;;  %1995 = vperm.xlu0 %5715, %v5841_v46   ;;  %v5846_v41 = vld [vmem:[%s5933_s21 + $0x150] sm:$0xff]  ;;  %v13264_v37 = vld [vmem:[#allocation127_spill] sm:$0xff]  ;;  %v13265_v50 = vld [vmem:[#allocation268_spill] sm:$0xff] }
 0x239   :  { %v1716_v52 = vsub.f32 %v1424_v47, %v8356_v51  ;;  %v1717_v0 = vsub.f32 %v1424_v47, %v8358_v54  ;;  %v3290_v42 = vmul.f32 %v1718_v34, %v1718_v34  ;;  %v3291_v63 = vmul.f32 %v1719_v23, %v1719_v23 }
 0x23a   :  { %v3292_v14 = vmul.f32 %v1720_v5, %v1720_v5  ;;  %v3293_v10 = vmul.f32 %v1721_v26, %v1721_v26  ;;  %v3030_v44 = vadd.f32 %v7760_v61, %v13223_v57  ;;  %v3031_v36 = vadd.f32 %v7762_v30, %v13224_v31  ;;  %v13231_v57 = vld [vmem:[#allocation128_spill] sm:$0xff] }
 0x23b   :  { %v3032_v28 = vadd.f32 %v7764_v60, %v13225_v62  ;;  %v3033_v38 = vadd.f32 %v7766_v12, %v13226_v33  ;;  %1991 = vperm.xlu1 %5716, %v5842_v45   ;;  %v8956_v47 = vadd.f32 %v3290_v42, %v3034_v18  ;;  %v8958_v34 = vadd.f32 %v3291_v63, %v3035_v17  ;;  %v1436_v60 = vpop.permute.xlu0 %1435  ;;  %v13232_v18 = vld [vmem:[#allocation129_spill] sm:$0xff]  ;;  %v13233_v42 = vld [vmem:[#allocation263_spill] sm:$0xff]  ;;  %v13234_v63 = vld [vmem:[#allocation130_spill] sm:$0xff] }
 0x23c   :  { %v8960_v23 = vadd.f32 %v3292_v14, %v3036_v6  ;;  %v8962_v5 = vadd.f32 %v3293_v10, %v3037_v43  ;;  %v3286_v61 = vmul.f32 %v1714_v1, %v1714_v1  ;;  %v3287_v30 = vmul.f32 %v1715_v59, %v1715_v59  ;;  %v13235_v6 = vld [vmem:[#allocation264_spill] sm:$0xff]  ;;  %v1432_v43 = vpop.permute.xlu1 %1431  ;;  %v5843_v10 = vld [vmem:[%s5933_s21 + $0x148] sm:$0xff] }
 0x23d   :  { %13227 = vst [vmem:[#allocation121_spill] sm:$0xff] %v8956_v47  ;;  %13228 = vst [vmem:[#allocation122_spill] sm:$0xff] %v8958_v34  ;;  %v3288_v26 = vmul.f32 %v1716_v52, %v1716_v52  ;;  %v3289_v46 = vmul.f32 %v1717_v0, %v1717_v0  ;;  %v3042_v12 = vadd.f32 %v7826_v56, %v13231_v57  ;;  %2003 = vperm.xlu0 %5715, %v5843_v10   ;;  %v5844_v0 = vld [vmem:[%s5933_s21 + $0x140] sm:$0xff]  ;;  %v13236_v57 = vld [vmem:[#allocation117_spill] sm:$0xff] }
 0x23e   :  { %13229 = vst [vmem:[#allocation123_spill] sm:$0xff] %v8960_v23  ;;  %13230 = vst [vmem:[#allocation112_spill] sm:$0xff] %v8962_v5  ;;  %v3043_v45 = vadd.f32 %v7828_v35, %v6672_v32  ;;  %v3044_v17 = vadd.f32 %v13233_v42, %v13232_v18  ;;  %v3045_v14 = vadd.f32 %v13235_v6, %v13234_v63  ;;  %v13237_v18 = vld [vmem:[#allocation259_spill] sm:$0xff]  ;;  %v13238_v63 = vld [vmem:[#allocation118_spill] sm:$0xff] }
 0x23f   :  { %v8973_v1 = vadd.f32 %v3286_v61, %v3030_v44  ;;  %v8975_v59 = vadd.f32 %v3287_v30, %v3031_v36  ;;  %v8977_v52 = vadd.f32 %v3288_v26, %v3032_v28  ;;  %v8979_v56 = vadd.f32 %v3289_v46, %v3033_v38  ;;  %1999 = vperm.xlu1 %5716, %v5844_v0   ;;  %v5845_v46 = vld [vmem:[%s5933_s21 + $0x158] sm:$0xff]  ;;  %v13239_v6 = vld [vmem:[#allocation260_spill] sm:$0xff]  ;;  %v13241_v0 = vld [vmem:[#allocation261_spill] sm:$0xff] }
 0x240   :  { %v1726_v32 = vsub.f32 %v1436_v60, %v8352_v4  ;;  %v1727_v35 = vsub.f32 %v1436_v60, %v8354_v15  ;;  %v1728_v31 = vsub.f32 %v1436_v60, %v8356_v51  ;;  %v1729_v62 = vsub.f32 %v1436_v60, %v8358_v54  ;;  %v13240_v10 = vld [vmem:[#allocation119_spill] sm:$0xff]  ;;  %v13242_v23 = vld [vmem:[#allocation120_spill] sm:$0xff]  ;;  %v13243_v34 = vld [vmem:[#allocation262_spill] sm:$0xff] }
 0x241   :  { %v1722_v44 = vsub.f32 %v1432_v43, %v8352_v4  ;;  %v1723_v36 = vsub.f32 %v1432_v43, %v8354_v15  ;;  %v1724_v28 = vsub.f32 %v1432_v43, %v8356_v51  ;;  %v1725_v33 = vsub.f32 %v1432_v43, %v8358_v54  ;;  %2011 = vperm.xlu0 %5715, %v5845_v46  }
 0x242   :  { %v3298_v38 = vmul.f32 %v1726_v32, %v1726_v32  ;;  %v3299_v61 = vmul.f32 %v1727_v35, %v1727_v35  ;;  %v3300_v30 = vmul.f32 %v1728_v31, %v1728_v31  ;;  %v3301_v26 = vmul.f32 %v1729_v62, %v1729_v62 }
 0x243   :  { %v3038_v42 = vadd.f32 %v13237_v18, %v13236_v57  ;;  %v3039_v60 = vadd.f32 %v13239_v6, %v13238_v63  ;;  %v3040_v5 = vadd.f32 %v13241_v0, %v13240_v10  ;;  %v3041_v47 = vadd.f32 %v13243_v34, %v13242_v23  ;;  %2007 = vperm.xlu1 %5716, %v5846_v41   ;;  %v1444_v63 = vpop.permute.xlu0 %1443  ;;  %v13248_v6 = vld [vmem:[#allocation135_spill] sm:$0xff]  ;;  %v13249_v10 = vld [vmem:[#allocation269_spill] sm:$0xff]  ;;  %v13250_v23 = vld [vmem:[#allocation136_spill] sm:$0xff] }
 0x244   :  { %v9000_v43 = vadd.f32 %v3298_v38, %v3042_v12  ;;  %v9002_v32 = vadd.f32 %v3299_v61, %v3043_v45  ;;  %v9004_v35 = vadd.f32 %v3300_v30, %v3044_v17  ;;  %v9006_v31 = vadd.f32 %v3301_v26, %v3045_v14  ;;  %v13251_v0 = vld [vmem:[#allocation270_spill] sm:$0xff]  ;;  %v13252_v12 = vld [vmem:[#allocation137_spill] sm:$0xff]  ;;  %v13253_v38 = vld [vmem:[#allocation271_spill] sm:$0xff]  ;;  %v1440_v14 = vpop.permute.xlu1 %1439 }
 0x245   :  { %v3294_v62 = vmul.f32 %v1722_v44, %v1722_v44  ;;  %v3295_v46 = vmul.f32 %v1723_v36, %v1723_v36  ;;  %v3296_v57 = vmul.f32 %v1724_v28, %v1724_v28  ;;  %v3297_v18 = vmul.f32 %v1725_v33, %v1725_v33  ;;  %v13254_v61 = vld [vmem:[#allocation138_spill] sm:$0xff]  ;;  %v13255_v17 = vld [vmem:[#allocation272_spill] sm:$0xff]  ;;  %v5847_v26 = vld [vmem:[%s5933_s21 + $0x168] sm:$0xff] }
 0x246   :  { %13244 = vst [vmem:[#allocation113_spill] sm:$0xff] %v9000_v43  ;;  %13245 = vst [vmem:[#allocation114_spill] sm:$0xff] %v9002_v32  ;;  %v3050_v34 = vadd.f32 %v13249_v10, %v13248_v6  ;;  %v3051_v41 = vadd.f32 %v13251_v0, %v13250_v23  ;;  %v3052_v45 = vadd.f32 %v13253_v38, %v13252_v12  ;;  %2019 = vperm.xlu0 %5715, %v5847_v26   ;;  %v5848_v6 = vld [vmem:[%s5933_s21 + $0x160] sm:$0xff]  ;;  %v5849_v38 = vld [vmem:[%s5933_s21 + $0x178] sm:$0xff] }
 0x247   :  { %13246 = vst [vmem:[#allocation115_spill] sm:$0xff] %v9004_v35  ;;  %13247 = vst [vmem:[#allocation128_spill] sm:$0xff] %v9006_v31  ;;  %v3053_v30 = vadd.f32 %v13255_v17, %v13254_v61  ;;  %v9017_v44 = vadd.f32 %v3294_v62, %v3038_v42  ;;  %v9019_v36 = vadd.f32 %v3295_v46, %v3039_v60  ;;  %2015 = vperm.xlu1 %5716, %v5848_v6   ;;  %v13258_v61 = vld [vmem:[#allocation124_spill] sm:$0xff]  ;;  %v13259_v17 = vld [vmem:[#allocation265_spill] sm:$0xff] }
 0x248   :  { %v9021_v28 = vadd.f32 %v3296_v57, %v3040_v5  ;;  %v9023_v33 = vadd.f32 %v3297_v18, %v3041_v47  ;;  %v1734_v10 = vsub.f32 %v1444_v63, %v8352_v4  ;;  %v1735_v23 = vsub.f32 %v1444_v63, %v8354_v15  ;;  %v13260_v6 = vld [vmem:[#allocation125_spill] sm:$0xff]  ;;  %v13261_v31 = vld [vmem:[#allocation266_spill] sm:$0xff]  ;;  %v13263_v32 = vld [vmem:[#allocation267_spill] sm:$0xff] }
 0x249   :  { %v1736_v0 = vsub.f32 %v1444_v63, %v8356_v51  ;;  %v1737_v12 = vsub.f32 %v1444_v63, %v8358_v54  ;;  %v1730_v42 = vsub.f32 %v1440_v14, %v8352_v4  ;;  %v1731_v60 = vsub.f32 %v1440_v14, %v8354_v15  ;;  %v13262_v35 = vld [vmem:[#allocation126_spill] sm:$0xff] }
 0x24a   :  { %13256 = vst [vmem:[#allocation129_spill] sm:$0xff] %v9021_v28  ;;  %13257 = vst [vmem:[#allocation263_spill] sm:$0xff] %v9023_v33  ;;  %v1732_v5 = vsub.f32 %v1440_v14, %v8356_v51  ;;  %v1733_v47 = vsub.f32 %v1440_v14, %v8358_v54  ;;  %v3306_v62 = vmul.f32 %v1734_v10, %v1734_v10  ;;  %2027 = vperm.xlu0 %5715, %v5849_v38   ;;  %v5850_v28 = vld [vmem:[%s5933_s21 + $0x170] sm:$0xff] }
 0x24b   :  { %v3307_v46 = vmul.f32 %v1735_v23, %v1735_v23  ;;  %v3308_v57 = vmul.f32 %v1736_v0, %v1736_v0  ;;  %v3309_v18 = vmul.f32 %v1737_v12, %v1737_v12  ;;  %v3046_v26 = vadd.f32 %v13259_v17, %v13258_v61  ;;  %2023 = vperm.xlu1 %5716, %v5850_v28   ;;  %v13271_v17 = vld [vmem:[#allocation277_spill] sm:$0xff] }
 0x24c   :  { %v3047_v63 = vadd.f32 %v13261_v31, %v13260_v6  ;;  %v3048_v43 = vadd.f32 %v13263_v32, %v13262_v35  ;;  %v3049_v33 = vadd.f32 %v13265_v50, %v13264_v37  ;;  %v9044_v14 = vadd.f32 %v3306_v62, %v3050_v34  ;;  %v1452_v32 = vpop.permute.xlu0 %1451  ;;  %v13270_v35 = vld [vmem:[#allocation143_spill] sm:$0xff]  ;;  %v13272_v50 = vld [vmem:[#allocation144_spill] sm:$0xff]  ;;  %v13273_v6 = vld [vmem:[#allocation278_spill] sm:$0xff] }
 0x24d   :  { %v9046_v10 = vadd.f32 %v3307_v46, %v3051_v41  ;;  %v9048_v23 = vadd.f32 %v3308_v57, %v3052_v45  ;;  %v9050_v0 = vadd.f32 %v3309_v18, %v3053_v30  ;;  %v3302_v12 = vmul.f32 %v1730_v42, %v1730_v42  ;;  %v13274_v34 = vld [vmem:[#allocation145_spill] sm:$0xff]  ;;  %v13275_v62 = vld [vmem:[#allocation279_spill] sm:$0xff]  ;;  %v13276_v46 = vld [vmem:[#allocation146_spill] sm:$0xff]  ;;  %v1448_v30 = vpop.permute.xlu1 %1447 }
 0x24e   :  { %13266 = vst [vmem:[#allocation130_spill] sm:$0xff] %v9044_v14  ;;  %v3303_v31 = vmul.f32 %v1731_v60, %v1731_v60  ;;  %v3304_v38 = vmul.f32 %v1732_v5, %v1732_v5  ;;  %v3305_v61 = vmul.f32 %v1733_v47, %v1733_v47  ;;  %v3058_v37 = vadd.f32 %v13271_v17, %v13270_v35  ;;  %v13277_v45 = vld [vmem:[#allocation280_spill] sm:$0xff]  ;;  %v5851_v18 = vld [vmem:[%s5933_s21 + $0x188] sm:$0xff] }
 0x24f   :  { %13267 = vst [vmem:[#allocation264_spill] sm:$0xff] %v9046_v10  ;;  %13268 = vst [vmem:[#allocation117_spill] sm:$0xff] %v9048_v23  ;;  %v3059_v28 = vadd.f32 %v13273_v6, %v13272_v50  ;;  %v3060_v41 = vadd.f32 %v13275_v62, %v13274_v34  ;;  %v3061_v57 = vadd.f32 %v13277_v45, %v13276_v46  ;;  %2035 = vperm.xlu0 %5715, %v5851_v18   ;;  %v5852_v35 = vld [vmem:[%s5933_s21 + $0x180] sm:$0xff]  ;;  %v5853_v62 = vld [vmem:[%s5933_s21 + $0x198] sm:$0xff] }
 0x250   :  { %13269 = vst [vmem:[#allocation259_spill] sm:$0xff] %v9050_v0  ;;  %v9061_v42 = vadd.f32 %v3302_v12, %v3046_v26  ;;  %v9063_v60 = vadd.f32 %v3303_v31, %v3047_v63  ;;  %v9065_v5 = vadd.f32 %v3304_v38, %v3048_v43  ;;  %v9067_v47 = vadd.f32 %v3305_v61, %v3049_v33  ;;  %v13282_v46 = vld [vmem:[#allocation131_spill] sm:$0xff]  ;;  %v13283_v45 = vld [vmem:[#allocation273_spill] sm:$0xff]  ;;  %v13285_v0 = vld [vmem:[#allocation274_spill] sm:$0xff] }
 0x251   :  { %2031 = vperm.xlu1 %5716, %v5852_v35   ;;  %v1742_v17 = vsub.f32 %v1452_v32, %v8352_v4  ;;  %v1743_v50 = vsub.f32 %v1452_v32, %v8354_v15  ;;  %v1744_v6 = vsub.f32 %v1452_v32, %v8356_v51  ;;  %v1745_v34 = vsub.f32 %v1452_v32, %v8358_v54  ;;  %v13284_v35 = vld [vmem:[#allocation132_spill] sm:$0xff]  ;;  %v13286_v23 = vld [vmem:[#allocation133_spill] sm:$0xff]  ;;  %v13287_v10 = vld [vmem:[#allocation275_spill] sm:$0xff] }
 0x252   :  { %13278 = vst [vmem:[#allocation118_spill] sm:$0xff] %v9061_v42  ;;  %13279 = vst [vmem:[#allocation260_spill] sm:$0xff] %v9063_v60  ;;  %v1738_v26 = vsub.f32 %v1448_v30, %v8352_v4  ;;  %v1739_v63 = vsub.f32 %v1448_v30, %v8354_v15  ;;  %v1740_v43 = vsub.f32 %v1448_v30, %v8356_v51  ;;  %v5854_v42 = vld [vmem:[%s5933_s21 + $0x190] sm:$0xff] }
 0x253   :  { %13280 = vst [vmem:[#allocation119_spill] sm:$0xff] %v9065_v5  ;;  %13281 = vst [vmem:[#allocation261_spill] sm:$0xff] %v9067_v47  ;;  %v1741_v33 = vsub.f32 %v1448_v30, %v8358_v54  ;;  %v3314_v12 = vmul.f32 %v1742_v17, %v1742_v17  ;;  %v3315_v31 = vmul.f32 %v1743_v50, %v1743_v50  ;;  %2043 = vperm.xlu0 %5715, %v5853_v62   ;;  %v13288_v47 = vld [vmem:[#allocation134_spill] sm:$0xff]  ;;  %v13289_v5 = vld [vmem:[#allocation276_spill] sm:$0xff] }
 0x254   :  { %v3316_v38 = vmul.f32 %v1744_v6, %v1744_v6  ;;  %v3317_v61 = vmul.f32 %v1745_v34, %v1745_v34  ;;  %v3054_v18 = vadd.f32 %v13283_v45, %v13282_v46  ;;  %v3055_v32 = vadd.f32 %v13285_v0, %v13284_v35  ;;  %v13295_v45 = vld [vmem:[#allocation285_spill] sm:$0xff]  ;;  %v13297_v35 = vld [vmem:[#allocation286_spill] sm:$0xff] }
 0x255   :  { %v3056_v14 = vadd.f32 %v13287_v10, %v13286_v23  ;;  %v3057_v60 = vadd.f32 %v13289_v5, %v13288_v47  ;;  %2039 = vperm.xlu1 %5716, %v5854_v42   ;;  %v9088_v30 = vadd.f32 %v3314_v12, %v3058_v37  ;;  %v9090_v17 = vadd.f32 %v3315_v31, %v3059_v28  ;;  %v1460_v10 = vpop.permute.xlu0 %1459  ;;  %v13294_v23 = vld [vmem:[#allocation150_spill] sm:$0xff]  ;;  %v13296_v47 = vld [vmem:[#allocation8_spill] sm:$0xff]  ;;  %v13298_v37 = vld [vmem:[#allocation151_spill] sm:$0xff] }
 0x256   :  { %v9092_v50 = vadd.f32 %v3316_v38, %v3060_v41  ;;  %v9094_v6 = vadd.f32 %v3317_v61, %v3061_v57  ;;  %v3310_v34 = vmul.f32 %v1738_v26, %v1738_v26  ;;  %v3311_v0 = vmul.f32 %v1739_v63, %v1739_v63  ;;  %v13299_v12 = vld [vmem:[#allocation287_spill] sm:$0xff]  ;;  %v13300_v31 = vld [vmem:[#allocation152_spill] sm:$0xff]  ;;  %v1456_v57 = vpop.permute.xlu1 %1455  ;;  %v5855_v61 = vld [vmem:[%s5933_s21 + $0x1a8] sm:$0xff] }
 0x257   :  { %13290 = vst [vmem:[#allocation120_spill] sm:$0xff] %v9088_v30  ;;  %13291 = vst [vmem:[#allocation262_spill] sm:$0xff] %v9090_v17  ;;  %v3312_v62 = vmul.f32 %v1740_v43, %v1740_v43  ;;  %v3313_v46 = vmul.f32 %v1741_v33, %v1741_v33  ;;  %v3066_v5 = vadd.f32 %v13295_v45, %v13294_v23  ;;  %v13301_v41 = vld [vmem:[#allocation288_spill] sm:$0xff]  ;;  %2051 = vperm.xlu0 %5715, %v5855_v61   ;;  %v13311_v17 = vld [vmem:[#allocation283_spill] sm:$0xff] }
 0x258   :  { %13292 = vst [vmem:[#allocation135_spill] sm:$0xff] %v9092_v50  ;;  %13293 = vst [vmem:[#allocation269_spill] sm:$0xff] %v9094_v6  ;;  %v3067_v42 = vadd.f32 %v13297_v35, %v13296_v47  ;;  %v3068_v28 = vadd.f32 %v13299_v12, %v13298_v37  ;;  %v3069_v38 = vadd.f32 %v13301_v41, %v13300_v31  ;;  %v5856_v23 = vld [vmem:[%s5933_s21 + $0x1a0] sm:$0xff]  ;;  %v5857_v12 = vld [vmem:[%s5933_s21 + $0x1b8] sm:$0xff] }
 0x259   :  { %v9105_v26 = vadd.f32 %v3310_v34, %v3054_v18  ;;  %v9107_v63 = vadd.f32 %v3311_v0, %v3055_v32  ;;  %v9109_v43 = vadd.f32 %v3312_v62, %v3056_v14  ;;  %v9111_v33 = vadd.f32 %v3313_v46, %v3057_v60  ;;  %2047 = vperm.xlu1 %5716, %v5856_v23   ;;  %v13306_v31 = vld [vmem:[#allocation139_spill] sm:$0xff]  ;;  %v13307_v41 = vld [vmem:[#allocation281_spill] sm:$0xff]  ;;  %v13308_v23 = vld [vmem:[#allocation140_spill] sm:$0xff] }
 0x25a   :  { %v1750_v45 = vsub.f32 %v1460_v10, %v8352_v4  ;;  %v1751_v47 = vsub.f32 %v1460_v10, %v8354_v15  ;;  %v1752_v35 = vsub.f32 %v1460_v10, %v8356_v51  ;;  %v1753_v37 = vsub.f32 %v1460_v10, %v8358_v54  ;;  %v13309_v6 = vld [vmem:[#allocation282_spill] sm:$0xff]  ;;  %v13310_v50 = vld [vmem:[#allocation141_spill] sm:$0xff] }
 0x25b   :  { %13302 = vst [vmem:[#allocation136_spill] sm:$0xff] %v9105_v26  ;;  %13303 = vst [vmem:[#allocation270_spill] sm:$0xff] %v9107_v63  ;;  %v1746_v18 = vsub.f32 %v1456_v57, %v8352_v4  ;;  %v1747_v32 = vsub.f32 %v1456_v57, %v8354_v15  ;;  %v1748_v14 = vsub.f32 %v1456_v57, %v8356_v51  ;;  %2059 = vperm.xlu0 %5715, %v5857_v12   ;;  %v5858_v26 = vld [vmem:[%s5933_s21 + $0x1b0] sm:$0xff] }
 0x25c   :  { %13304 = vst [vmem:[#allocation137_spill] sm:$0xff] %v9109_v43  ;;  %13305 = vst [vmem:[#allocation271_spill] sm:$0xff] %v9111_v33  ;;  %v1749_v60 = vsub.f32 %v1456_v57, %v8358_v54  ;;  %v3322_v34 = vmul.f32 %v1750_v45, %v1750_v45  ;;  %v3323_v0 = vmul.f32 %v1751_v47, %v1751_v47  ;;  %v13312_v33 = vld [vmem:[#allocation142_spill] sm:$0xff]  ;;  %v13313_v43 = vld [vmem:[#allocation284_spill] sm:$0xff] }
 0x25d   :  { %v3324_v62 = vmul.f32 %v1752_v35, %v1752_v35  ;;  %v3325_v46 = vmul.f32 %v1753_v37, %v1753_v37  ;;  %v3062_v61 = vadd.f32 %v13307_v41, %v13306_v31  ;;  %v3063_v10 = vadd.f32 %v13309_v6, %v13308_v23  ;;  %2055 = vperm.xlu1 %5716, %v5858_v26   ;;  %v13319_v41 = vld [vmem:[#allocation293_spill] sm:$0xff]  ;;  %v13321_v23 = vld [vmem:[#allocation294_spill] sm:$0xff] }
 0x25e   :  { %v3064_v30 = vadd.f32 %v13311_v17, %v13310_v50  ;;  %v3065_v63 = vadd.f32 %v13313_v43, %v13312_v33  ;;  %v9132_v57 = vadd.f32 %v3322_v34, %v3066_v5  ;;  %v9134_v45 = vadd.f32 %v3323_v0, %v3067_v42  ;;  %v1468_v17 = vpop.permute.xlu0 %1467  ;;  %v13318_v50 = vld [vmem:[#allocation157_spill] sm:$0xff]  ;;  %v13320_v33 = vld [vmem:[#allocation158_spill] sm:$0xff]  ;;  %v13322_v5 = vld [vmem:[#allocation159_spill] sm:$0xff] }
 0x25f   :  { %v9136_v47 = vadd.f32 %v3324_v62, %v3068_v28  ;;  %v9138_v35 = vadd.f32 %v3325_v46, %v3069_v38  ;;  %v3318_v37 = vmul.f32 %v1746_v18, %v1746_v18  ;;  %v3319_v6 = vmul.f32 %v1747_v32, %v1747_v32  ;;  %v13323_v34 = vld [vmem:[#allocation295_spill] sm:$0xff]  ;;  %v13324_v0 = vld [vmem:[#allocation160_spill] sm:$0xff]  ;;  %v1464_v38 = vpop.permute.xlu1 %1463  ;;  %v5859_v46 = vld [vmem:[%s5933_s21 + $0x1c8] sm:$0xff] }
 0x260   :  { %13314 = vst [vmem:[#allocation138_spill] sm:$0xff] %v9132_v57  ;;  %13315 = vst [vmem:[#allocation272_spill] sm:$0xff] %v9134_v45  ;;  %v3320_v12 = vmul.f32 %v1748_v14, %v1748_v14  ;;  %v3321_v31 = vmul.f32 %v1749_v60, %v1749_v60  ;;  %v3074_v43 = vadd.f32 %v13319_v41, %v13318_v50  ;;  %v13325_v28 = vld [vmem:[#allocation296_spill] sm:$0xff]  ;;  %2067 = vperm.xlu0 %5715, %v5859_v46   ;;  %v13335_v45 = vld [vmem:[#allocation291_spill] sm:$0xff] }
 0x261   :  { %13316 = vst [vmem:[#allocation124_spill] sm:$0xff] %v9136_v47  ;;  %13317 = vst [vmem:[#allocation265_spill] sm:$0xff] %v9138_v35  ;;  %v3075_v26 = vadd.f32 %v13321_v23, %v13320_v33  ;;  %v3076_v42 = vadd.f32 %v13323_v34, %v13322_v5  ;;  %v3077_v62 = vadd.f32 %v13325_v28, %v13324_v0  ;;  %v5860_v50 = vld [vmem:[%s5933_s21 + $0x1c0] sm:$0xff]  ;;  %v5861_v34 = vld [vmem:[%s5933_s21 + $0x1d8] sm:$0xff] }
 0x262   :  { %v9149_v18 = vadd.f32 %v3318_v37, %v3062_v61  ;;  %v9151_v32 = vadd.f32 %v3319_v6, %v3063_v10  ;;  %v9153_v14 = vadd.f32 %v3320_v12, %v3064_v30  ;;  %v9155_v60 = vadd.f32 %v3321_v31, %v3065_v63  ;;  %2063 = vperm.xlu1 %5716, %v5860_v50   ;;  %v13330_v0 = vld [vmem:[#allocation147_spill] sm:$0xff]  ;;  %v13331_v28 = vld [vmem:[#allocation289_spill] sm:$0xff]  ;;  %v13333_v35 = vld [vmem:[#allocation290_spill] sm:$0xff] }
 0x263   :  { %v1758_v41 = vsub.f32 %v1468_v17, %v8352_v4  ;;  %v1759_v33 = vsub.f32 %v1468_v17, %v8354_v15  ;;  %v1760_v23 = vsub.f32 %v1468_v17, %v8356_v51  ;;  %v1761_v5 = vsub.f32 %v1468_v17, %v8358_v54  ;;  %v13332_v50 = vld [vmem:[#allocation9_spill] sm:$0xff]  ;;  %v13334_v47 = vld [vmem:[#allocation148_spill] sm:$0xff] }
 0x264   :  { %13326 = vst [vmem:[#allocation125_spill] sm:$0xff] %v9149_v18  ;;  %13327 = vst [vmem:[#allocation266_spill] sm:$0xff] %v9151_v32  ;;  %v1754_v61 = vsub.f32 %v1464_v38, %v8352_v4  ;;  %v1755_v10 = vsub.f32 %v1464_v38, %v8354_v15  ;;  %v1756_v30 = vsub.f32 %v1464_v38, %v8356_v51  ;;  %2075 = vperm.xlu0 %5715, %v5861_v34   ;;  %v5862_v18 = vld [vmem:[%s5933_s21 + $0x1d0] sm:$0xff] }
 0x265   :  { %13328 = vst [vmem:[#allocation126_spill] sm:$0xff] %v9153_v14  ;;  %13329 = vst [vmem:[#allocation267_spill] sm:$0xff] %v9155_v60  ;;  %v1757_v63 = vsub.f32 %v1464_v38, %v8358_v54  ;;  %v3330_v37 = vmul.f32 %v1758_v41, %v1758_v41  ;;  %v3331_v6 = vmul.f32 %v1759_v33, %v1759_v33  ;;  %v13336_v60 = vld [vmem:[#allocation149_spill] sm:$0xff]  ;;  %v13337_v14 = vld [vmem:[#allocation292_spill] sm:$0xff] }
 0x266   :  { %v3332_v12 = vmul.f32 %v1760_v23, %v1760_v23  ;;  %v3333_v31 = vmul.f32 %v1761_v5, %v1761_v5  ;;  %v3070_v46 = vadd.f32 %v13331_v28, %v13330_v0  ;;  %v3071_v17 = vadd.f32 %v13333_v35, %v13332_v50  ;;  %2071 = vperm.xlu1 %5716, %v5862_v18   ;;  %v13343_v28 = vld [vmem:[#allocation301_spill] sm:$0xff]  ;;  %v13345_v50 = vld [vmem:[#allocation302_spill] sm:$0xff] }
 0x267   :  { %v3072_v57 = vadd.f32 %v13335_v45, %v13334_v47  ;;  %v3073_v32 = vadd.f32 %v13337_v14, %v13336_v60  ;;  %v9176_v38 = vadd.f32 %v3330_v37, %v3074_v43  ;;  %v9178_v41 = vadd.f32 %v3331_v6, %v3075_v26  ;;  %v1476_v45 = vpop.permute.xlu0 %1475  ;;  %v13342_v47 = vld [vmem:[#allocation165_spill] sm:$0xff]  ;;  %v13344_v60 = vld [vmem:[#allocation166_spill] sm:$0xff]  ;;  %v13346_v43 = vld [vmem:[#allocation167_spill] sm:$0xff] }
 0x268   :  { %v9180_v33 = vadd.f32 %v3332_v12, %v3076_v42  ;;  %v9182_v23 = vadd.f32 %v3333_v31, %v3077_v62  ;;  %v3326_v5 = vmul.f32 %v1754_v61, %v1754_v61  ;;  %v3327_v35 = vmul.f32 %v1755_v10, %v1755_v10  ;;  %v13347_v37 = vld [vmem:[#allocation303_spill] sm:$0xff]  ;;  %v13348_v6 = vld [vmem:[#allocation168_spill] sm:$0xff]  ;;  %v1472_v62 = vpop.permute.xlu1 %1471  ;;  %v5863_v31 = vld [vmem:[%s5933_s21 + $0x1e8] sm:$0xff] }
 0x269   :  { %13338 = vst [vmem:[#allocation127_spill] sm:$0xff] %v9176_v38  ;;  %13339 = vst [vmem:[#allocation268_spill] sm:$0xff] %v9178_v41  ;;  %v3328_v34 = vmul.f32 %v1756_v30, %v1756_v30  ;;  %v3329_v0 = vmul.f32 %v1757_v63, %v1757_v63  ;;  %v3082_v14 = vadd.f32 %v13343_v28, %v13342_v47  ;;  %v13349_v42 = vld [vmem:[#allocation304_spill] sm:$0xff]  ;;  %2083 = vperm.xlu0 %5715, %v5863_v31   ;;  %v13359_v41 = vld [vmem:[#allocation299_spill] sm:$0xff] }
 0x26a   :  { %13340 = vst [vmem:[#allocation143_spill] sm:$0xff] %v9180_v33  ;;  %13341 = vst [vmem:[#allocation277_spill] sm:$0xff] %v9182_v23  ;;  %v3083_v18 = vadd.f32 %v13345_v50, %v13344_v60  ;;  %v3084_v26 = vadd.f32 %v13347_v37, %v13346_v43  ;;  %v3085_v12 = vadd.f32 %v13349_v42, %v13348_v6  ;;  %v5864_v47 = vld [vmem:[%s5933_s21 + $0x1e0] sm:$0xff]  ;;  %v5865_v37 = vld [vmem:[%s5933_s21 + $0x1f8] sm:$0xff] }
 0x26b   :  { %v9193_v61 = vadd.f32 %v3326_v5, %v3070_v46  ;;  %v9195_v10 = vadd.f32 %v3327_v35, %v3071_v17  ;;  %v9197_v30 = vadd.f32 %v3328_v34, %v3072_v57  ;;  %v9199_v63 = vadd.f32 %v3329_v0, %v3073_v32  ;;  %2079 = vperm.xlu1 %5716, %v5864_v47   ;;  %v13354_v6 = vld [vmem:[#allocation153_spill] sm:$0xff]  ;;  %v13356_v47 = vld [vmem:[#allocation154_spill] sm:$0xff]  ;;  %v13358_v33 = vld [vmem:[#allocation155_spill] sm:$0xff] }
 0x26c   :  { %v1766_v28 = vsub.f32 %v1476_v45, %v8352_v4  ;;  %v1767_v60 = vsub.f32 %v1476_v45, %v8354_v15  ;;  %v1768_v50 = vsub.f32 %v1476_v45, %v8356_v51  ;;  %v1769_v43 = vsub.f32 %v1476_v45, %v8358_v54  ;;  %v13355_v42 = vld [vmem:[#allocation297_spill] sm:$0xff]  ;;  %v13357_v23 = vld [vmem:[#allocation298_spill] sm:$0xff] }
 0x26d   :  { %13350 = vst [vmem:[#allocation144_spill] sm:$0xff] %v9193_v61  ;;  %13351 = vst [vmem:[#allocation278_spill] sm:$0xff] %v9195_v10  ;;  %v1762_v46 = vsub.f32 %v1472_v62, %v8352_v4  ;;  %v1763_v17 = vsub.f32 %v1472_v62, %v8354_v15  ;;  %v1764_v57 = vsub.f32 %v1472_v62, %v8356_v51  ;;  %2091 = vperm.xlu0 %5715, %v5865_v37   ;;  %v5866_v61 = vld [vmem:[%s5933_s21 + $0x1f0] sm:$0xff] }
 0x26e   :  { %13352 = vst [vmem:[#allocation145_spill] sm:$0xff] %v9197_v30  ;;  %13353 = vst [vmem:[#allocation279_spill] sm:$0xff] %v9199_v63  ;;  %v1765_v32 = vsub.f32 %v1472_v62, %v8358_v54  ;;  %v3338_v5 = vmul.f32 %v1766_v28, %v1766_v28  ;;  %v3339_v35 = vmul.f32 %v1767_v60, %v1767_v60  ;;  %v13360_v63 = vld [vmem:[#allocation156_spill] sm:$0xff] }
 0x26f   :  { %v3340_v34 = vmul.f32 %v1768_v50, %v1768_v50  ;;  %v3341_v0 = vmul.f32 %v1769_v43, %v1769_v43  ;;  %v3078_v31 = vadd.f32 %v13355_v42, %v13354_v6  ;;  %v3079_v45 = vadd.f32 %v13357_v23, %v13356_v47  ;;  %v13361_v30 = vld [vmem:[#allocation300_spill] sm:$0xff]  ;;  %2087 = vperm.xlu1 %5716, %v5866_v61   ;;  %v1484_v42 = vpop.permute.xlu0 %1483  ;;  %v13366_v47 = vld [vmem:[#allocation173_spill] sm:$0xff]  ;;  %v13369_v61 = vld [vmem:[#allocation175_spill] sm:$0xff] }
 0x270   :  { %v3080_v38 = vadd.f32 %v13359_v41, %v13358_v33  ;;  %v3081_v10 = vadd.f32 %v13361_v30, %v13360_v63  ;;  %v9220_v62 = vadd.f32 %v3338_v5, %v3082_v14  ;;  %v9222_v28 = vadd.f32 %v3339_v35, %v3083_v18  ;;  %v13367_v33 = vld [vmem:[#allocation174_spill] sm:$0xff]  ;;  %v13368_v30 = vld [vmem:[#allocation309_spill] sm:$0xff]  ;;  %v13371_v18 = vld [vmem:[#allocation176_spill] sm:$0xff] }
 0x271   :  { %v9224_v60 = vadd.f32 %v3340_v34, %v3084_v26  ;;  %v9226_v50 = vadd.f32 %v3341_v0, %v3085_v12  ;;  %v3334_v43 = vmul.f32 %v1762_v46, %v1762_v46  ;;  %v3335_v37 = vmul.f32 %v1763_v17, %v1763_v17  ;;  %v13370_v14 = vld [vmem:[#allocation310_spill] sm:$0xff]  ;;  %v13372_v35 = vld [vmem:[#allocation311_spill] sm:$0xff]  ;;  %v1480_v34 = vpop.permute.xlu1 %1479 }
 0x272   :  { %13362 = vst [vmem:[#allocation146_spill] sm:$0xff] %v9220_v62  ;;  %13363 = vst [vmem:[#allocation280_spill] sm:$0xff] %v9222_v28  ;;  %v3336_v6 = vmul.f32 %v1764_v57, %v1764_v57  ;;  %v3337_v23 = vmul.f32 %v1765_v32, %v1765_v32  ;;  %v3090_v41 = vadd.f32 %v8049_v24, %v13366_v47  ;;  %v13383_v28 = vld [vmem:[#allocation164_spill] sm:$0xff] }
 0x273   :  { %13364 = vst [vmem:[#allocation131_spill] sm:$0xff] %v9224_v60  ;;  %13365 = vst [vmem:[#allocation273_spill] sm:$0xff] %v9226_v50  ;;  %v3091_v63 = vadd.f32 %v13368_v30, %v13367_v33  ;;  %v3092_v5 = vadd.f32 %v13370_v14, %v13369_v61  ;;  %v3093_v26 = vadd.f32 %v13372_v35, %v13371_v18  ;;  %v13379_v14 = vld [vmem:[#allocation162_spill] sm:$0xff]  ;;  %v13381_v50 = vld [vmem:[#allocation163_spill] sm:$0xff] }
 0x274   :  { %v9236_v12 = vadd.f32 %v3334_v43, %v3078_v31  ;;  %v9238_v46 = vadd.f32 %v3335_v37, %v3079_v45  ;;  %v9240_v17 = vadd.f32 %v3336_v6, %v3080_v38  ;;  %v9242_v57 = vadd.f32 %v3337_v23, %v3081_v10  ;;  %v13377_v6 = vld [vmem:[#allocation161_spill] sm:$0xff]  ;;  %v13380_v18 = vld [vmem:[#allocation306_spill] sm:$0xff]  ;;  %v13384_v62 = vld [vmem:[#allocation308_spill] sm:$0xff] }
 0x275   :  { %v1774_v24 = vsub.f32 %v1484_v42, %v8352_v4  ;;  %v1775_v32 = vsub.f32 %v1484_v42, %v8354_v15  ;;  %v1776_v0 = vsub.f32 %v1484_v42, %v8356_v51  ;;  %v1777_v47 = vsub.f32 %v1484_v42, %v8358_v54  ;;  %v13378_v23 = vld [vmem:[#allocation305_spill] sm:$0xff]  ;;  %v13382_v42 = vld [vmem:[#allocation307_spill] sm:$0xff] }
 0x276   :  { %13373 = vst [vmem:[#allocation132_spill] sm:$0xff] %v9236_v12  ;;  %13374 = vst [vmem:[#allocation274_spill] sm:$0xff] %v9238_v46  ;;  %v1770_v33 = vsub.f32 %v1480_v34, %v8352_v4  ;;  %v1771_v30 = vsub.f32 %v1480_v34, %v8354_v15  ;;  %v1772_v31 = vsub.f32 %v1480_v34, %v8356_v51 }
 0x277   :  { %13375 = vst [vmem:[#allocation133_spill] sm:$0xff] %v9240_v17  ;;  %13376 = vst [vmem:[#allocation275_spill] sm:$0xff] %v9242_v57  ;;  %v1773_v45 = vsub.f32 %v1480_v34, %v8358_v54  ;;  %v3346_v38 = vmul.f32 %v1774_v24, %v1774_v24  ;;  %v3347_v43 = vmul.f32 %v1775_v32, %v1775_v32 }
 0x278   :  { %v3348_v10 = vmul.f32 %v1776_v0, %v1776_v0  ;;  %v3349_v37 = vmul.f32 %v1777_v47, %v1777_v47  ;;  %v3086_v61 = vadd.f32 %v13378_v23, %v13377_v6  ;;  %v3087_v35 = vadd.f32 %v13380_v18, %v13379_v14  ;;  %v1492_v23 = vpop.permute.xlu0 %1491  ;;  %v13389_v14 = vld [vmem:[#allocation181_spill] sm:$0xff] }
 0x279   :  { %v3088_v60 = vadd.f32 %v13382_v42, %v13381_v50  ;;  %v3089_v57 = vadd.f32 %v13384_v62, %v13383_v28  ;;  %v9260_v17 = vadd.f32 %v3346_v38, %v3090_v41  ;;  %v9262_v46 = vadd.f32 %v3347_v43, %v3091_v63  ;;  %v13390_v50 = vld [vmem:[#allocation182_spill] sm:$0xff]  ;;  %v13391_v42 = vld [vmem:[#allocation316_spill] sm:$0xff]  ;;  %v13392_v62 = vld [vmem:[#allocation183_spill] sm:$0xff]  ;;  %v1488_v43 = vpop.permute.xlu1 %1487 }
 0x27a   :  { %v9264_v34 = vadd.f32 %v3348_v10, %v3092_v5  ;;  %v9266_v24 = vadd.f32 %v3349_v37, %v3093_v26  ;;  %v3342_v32 = vmul.f32 %v1770_v33, %v1770_v33  ;;  %v3343_v0 = vmul.f32 %v1771_v30, %v1771_v30  ;;  %v13393_v28 = vld [vmem:[#allocation317_spill] sm:$0xff]  ;;  %v13394_v63 = vld [vmem:[#allocation184_spill] sm:$0xff]  ;;  %v13395_v38 = vld [vmem:[#allocation318_spill] sm:$0xff] }
 0x27b   :  { %13385 = vst [vmem:[#allocation134_spill] sm:$0xff] %v9260_v17  ;;  %13386 = vst [vmem:[#allocation276_spill] sm:$0xff] %v9262_v46  ;;  %v3344_v47 = vmul.f32 %v1772_v31, %v1772_v31  ;;  %v3345_v6 = vmul.f32 %v1773_v45, %v1773_v45  ;;  %v3098_v18 = vadd.f32 %v8086_v27, %v13389_v14  ;;  %v13407_v46 = vld [vmem:[#allocation315_spill] sm:$0xff] }
 0x27c   :  { %13387 = vst [vmem:[#allocation150_spill] sm:$0xff] %v9264_v34  ;;  %13388 = vst [vmem:[#allocation285_spill] sm:$0xff] %v9266_v24  ;;  %v3099_v12 = vadd.f32 %v13391_v42, %v13390_v50  ;;  %v3100_v41 = vadd.f32 %v13393_v28, %v13392_v62  ;;  %v3101_v5 = vadd.f32 %v13395_v38, %v13394_v63  ;;  %v13402_v62 = vld [vmem:[#allocation170_spill] sm:$0xff]  ;;  %v13403_v28 = vld [vmem:[#allocation313_spill] sm:$0xff] }
 0x27d   :  { %v9276_v26 = vadd.f32 %v3342_v32, %v3086_v61  ;;  %v9278_v33 = vadd.f32 %v3343_v0, %v3087_v35  ;;  %v9280_v30 = vadd.f32 %v3344_v47, %v3088_v60  ;;  %v9282_v31 = vadd.f32 %v3345_v6, %v3089_v57  ;;  %v13400_v47 = vld [vmem:[#allocation169_spill] sm:$0xff]  ;;  %v13401_v6 = vld [vmem:[#allocation312_spill] sm:$0xff]  ;;  %v13404_v38 = vld [vmem:[#allocation171_spill] sm:$0xff] }
 0x27e   :  { %v1782_v27 = vsub.f32 %v1492_v23, %v8352_v4  ;;  %v1783_v45 = vsub.f32 %v1492_v23, %v8354_v15  ;;  %v1784_v10 = vsub.f32 %v1492_v23, %v8356_v51  ;;  %v1785_v37 = vsub.f32 %v1492_v23, %v8358_v54  ;;  %v13405_v23 = vld [vmem:[#allocation314_spill] sm:$0xff]  ;;  %v13406_v34 = vld [vmem:[#allocation172_spill] sm:$0xff] }
 0x27f   :  { %13396 = vst [vmem:[#allocation8_spill] sm:$0xff] %v9276_v26  ;;  %13397 = vst [vmem:[#allocation286_spill] sm:$0xff] %v9278_v33  ;;  %v1778_v14 = vsub.f32 %v1488_v43, %v8352_v4  ;;  %v1779_v50 = vsub.f32 %v1488_v43, %v8354_v15  ;;  %v1780_v61 = vsub.f32 %v1488_v43, %v8356_v51 }
 0x280   :  { %13398 = vst [vmem:[#allocation151_spill] sm:$0xff] %v9280_v30  ;;  %13399 = vst [vmem:[#allocation287_spill] sm:$0xff] %v9282_v31  ;;  %v1781_v35 = vsub.f32 %v1488_v43, %v8358_v54  ;;  %v3354_v60 = vmul.f32 %v1782_v27, %v1782_v27  ;;  %v3355_v32 = vmul.f32 %v1783_v45, %v1783_v45 }
 0x281   :  { %v3356_v57 = vmul.f32 %v1784_v10, %v1784_v10  ;;  %v3357_v0 = vmul.f32 %v1785_v37, %v1785_v37  ;;  %v3094_v42 = vadd.f32 %v13401_v6, %v13400_v47  ;;  %v3095_v63 = vadd.f32 %v13403_v28, %v13402_v62  ;;  %v1500_v6 = vpop.permute.xlu0 %1499  ;;  %v13412_v62 = vld [vmem:[#allocation189_spill] sm:$0xff]  ;;  %v13413_v28 = vld [vmem:[#allocation323_spill] sm:$0xff] }
 0x282   :  { %v3096_v24 = vadd.f32 %v13405_v23, %v13404_v38  ;;  %v3097_v17 = vadd.f32 %v13407_v46, %v13406_v34  ;;  %v9300_v31 = vadd.f32 %v3354_v60, %v3098_v18  ;;  %v9302_v30 = vadd.f32 %v3355_v32, %v3099_v12  ;;  %v13414_v38 = vld [vmem:[#allocation190_spill] sm:$0xff]  ;;  %v13415_v23 = vld [vmem:[#allocation324_spill] sm:$0xff]  ;;  %v13416_v46 = vld [vmem:[#allocation191_spill] sm:$0xff]  ;;  %v1496_v32 = vpop.permute.xlu1 %1495 }
 0x283   :  { %v9304_v43 = vadd.f32 %v3356_v57, %v3100_v41  ;;  %v9306_v27 = vadd.f32 %v3357_v0, %v3101_v5  ;;  %v3350_v45 = vmul.f32 %v1778_v14, %v1778_v14  ;;  %v3351_v10 = vmul.f32 %v1779_v50, %v1779_v50  ;;  %v13417_v34 = vld [vmem:[#allocation325_spill] sm:$0xff]  ;;  %v13418_v12 = vld [vmem:[#allocation192_spill] sm:$0xff]  ;;  %v13419_v60 = vld [vmem:[#allocation326_spill] sm:$0xff] }
 0x284   :  { %13408 = vst [vmem:[#allocation152_spill] sm:$0xff] %v9300_v31  ;;  %13409 = vst [vmem:[#allocation288_spill] sm:$0xff] %v9302_v30  ;;  %v3352_v37 = vmul.f32 %v1780_v61, %v1780_v61  ;;  %v3353_v47 = vmul.f32 %v1781_v35, %v1781_v35  ;;  %v3106_v33 = vadd.f32 %v13413_v28, %v13412_v62  ;;  %v13430_v30 = vld [vmem:[#allocation322_spill] sm:$0xff] }
 0x285   :  { %13410 = vst [vmem:[#allocation139_spill] sm:$0xff] %v9304_v43  ;;  %13411 = vst [vmem:[#allocation281_spill] sm:$0xff] %v9306_v27  ;;  %v3107_v26 = vadd.f32 %v13415_v23, %v13414_v38  ;;  %v3108_v18 = vadd.f32 %v13417_v34, %v13416_v46  ;;  %v3109_v41 = vadd.f32 %v13419_v60, %v13418_v12  ;;  %v13425_v46 = vld [vmem:[#allocation178_spill] sm:$0xff]  ;;  %v13426_v34 = vld [vmem:[#allocation320_spill] sm:$0xff] }
 0x286   :  { %v9316_v5 = vadd.f32 %v3350_v45, %v3094_v42  ;;  %v9318_v14 = vadd.f32 %v3351_v10, %v3095_v63  ;;  %v9320_v50 = vadd.f32 %v3352_v37, %v3096_v24  ;;  %v9322_v61 = vadd.f32 %v3353_v47, %v3097_v17  ;;  %v13423_v37 = vld [vmem:[#allocation177_spill] sm:$0xff]  ;;  %v13424_v47 = vld [vmem:[#allocation319_spill] sm:$0xff]  ;;  %v13429_v43 = vld [vmem:[#allocation180_spill] sm:$0xff] }
 0x287   :  { %v1790_v35 = vsub.f32 %v1500_v6, %v8352_v4  ;;  %v1791_v57 = vsub.f32 %v1500_v6, %v8354_v15  ;;  %v1792_v0 = vsub.f32 %v1500_v6, %v8356_v51  ;;  %v1793_v62 = vsub.f32 %v1500_v6, %v8358_v54  ;;  %v13427_v60 = vld [vmem:[#allocation179_spill] sm:$0xff]  ;;  %v13428_v6 = vld [vmem:[#allocation321_spill] sm:$0xff] }
 0x288   :  { %13420 = vst [vmem:[#allocation140_spill] sm:$0xff] %v9318_v14  ;;  %13421 = vst [vmem:[#allocation282_spill] sm:$0xff] %v9320_v50  ;;  %v1786_v28 = vsub.f32 %v1496_v32, %v8352_v4  ;;  %v1787_v38 = vsub.f32 %v1496_v32, %v8354_v15  ;;  %v1788_v42 = vsub.f32 %v1496_v32, %v8356_v51 }
 0x289   :  { %13422 = vst [vmem:[#allocation141_spill] sm:$0xff] %v9322_v61  ;;  %v1789_v63 = vsub.f32 %v1496_v32, %v8358_v54  ;;  %v3362_v24 = vmul.f32 %v1790_v35, %v1790_v35  ;;  %v3363_v45 = vmul.f32 %v1791_v57, %v1791_v57  ;;  %v3364_v17 = vmul.f32 %v1792_v0, %v1792_v0 }
 0x28a   :  { %v3365_v10 = vmul.f32 %v1793_v62, %v1793_v62  ;;  %v3102_v23 = vadd.f32 %v13424_v47, %v13423_v37  ;;  %v3103_v12 = vadd.f32 %v13426_v34, %v13425_v46  ;;  %v3104_v27 = vadd.f32 %v13428_v6, %v13427_v60  ;;  %v1508_v47 = vpop.permute.xlu0 %1507  ;;  %v13435_v46 = vld [vmem:[#allocation197_spill] sm:$0xff]  ;;  %v13436_v60 = vld [vmem:[#allocation198_spill] sm:$0xff]  ;;  %v13437_v6 = vld [vmem:[#allocation331_spill] sm:$0xff] }
 0x28b   :  { %v3105_v31 = vadd.f32 %v13430_v30, %v13429_v43  ;;  %v9340_v61 = vadd.f32 %v3362_v24, %v3106_v33  ;;  %v9342_v50 = vadd.f32 %v3363_v45, %v3107_v26  ;;  %v9344_v32 = vadd.f32 %v3364_v17, %v3108_v18  ;;  %v13438_v30 = vld [vmem:[#allocation199_spill] sm:$0xff]  ;;  %v13439_v33 = vld [vmem:[#allocation332_spill] sm:$0xff]  ;;  %v13441_v24 = vld [vmem:[#allocation333_spill] sm:$0xff]  ;;  %v1504_v45 = vpop.permute.xlu1 %1503 }
 0x28c   :  { %v9346_v35 = vadd.f32 %v3365_v10, %v3109_v41  ;;  %v3358_v57 = vmul.f32 %v1786_v28, %v1786_v28  ;;  %v3359_v0 = vmul.f32 %v1787_v38, %v1787_v38  ;;  %v3360_v62 = vmul.f32 %v1788_v42, %v1788_v42  ;;  %v13440_v26 = vld [vmem:[#allocation200_spill] sm:$0xff] }
 0x28d   :  { %13431 = vst [vmem:[#allocation283_spill] sm:$0xff] %v9340_v61  ;;  %13432 = vst [vmem:[#allocation142_spill] sm:$0xff] %v9342_v50  ;;  %v3361_v37 = vmul.f32 %v1789_v63, %v1789_v63  ;;  %v3114_v34 = vadd.f32 %v8154_v48, %v13435_v46  ;;  %v3115_v14 = vadd.f32 %v13437_v6, %v13436_v60  ;;  %v13452_v50 = vld [vmem:[#allocation330_spill] sm:$0xff] }
 0x28e   :  { %13433 = vst [vmem:[#allocation284_spill] sm:$0xff] %v9344_v32  ;;  %13434 = vst [vmem:[#allocation157_spill] sm:$0xff] %v9346_v35  ;;  %v3116_v43 = vadd.f32 %v13439_v33, %v13438_v30  ;;  %v3117_v18 = vadd.f32 %v13441_v24, %v13440_v26  ;;  %v9356_v41 = vadd.f32 %v3358_v57, %v3102_v23  ;;  %v13447_v30 = vld [vmem:[#allocation186_spill] sm:$0xff]  ;;  %v13448_v33 = vld [vmem:[#allocation328_spill] sm:$0xff] }
 0x28f   :  { %v9358_v28 = vadd.f32 %v3359_v0, %v3103_v12  ;;  %v9360_v38 = vadd.f32 %v3360_v62, %v3104_v27  ;;  %v9362_v42 = vadd.f32 %v3361_v37, %v3105_v31  ;;  %v1798_v48 = vsub.f32 %v1508_v47, %v8352_v4  ;;  %v13445_v62 = vld [vmem:[#allocation185_spill] sm:$0xff]  ;;  %v13446_v37 = vld [vmem:[#allocation327_spill] sm:$0xff]  ;;  %v13451_v32 = vld [vmem:[#allocation188_spill] sm:$0xff] }
 0x290   :  { %v1799_v63 = vsub.f32 %v1508_v47, %v8354_v15  ;;  %v1800_v17 = vsub.f32 %v1508_v47, %v8356_v51  ;;  %v1801_v10 = vsub.f32 %v1508_v47, %v8358_v54  ;;  %v1794_v46 = vsub.f32 %v1504_v45, %v8352_v4  ;;  %v13449_v24 = vld [vmem:[#allocation187_spill] sm:$0xff]  ;;  %v13450_v47 = vld [vmem:[#allocation329_spill] sm:$0xff] }
 0x291   :  { %13442 = vst [vmem:[#allocation293_spill] sm:$0xff] %v9358_v28  ;;  %13443 = vst [vmem:[#allocation158_spill] sm:$0xff] %v9360_v38  ;;  %v1795_v60 = vsub.f32 %v1504_v45, %v8354_v15  ;;  %v1796_v23 = vsub.f32 %v1504_v45, %v8356_v51  ;;  %v1797_v12 = vsub.f32 %v1504_v45, %v8358_v54 }
 0x292   :  { %13444 = vst [vmem:[#allocation294_spill] sm:$0xff] %v9362_v42  ;;  %v3370_v27 = vmul.f32 %v1798_v48, %v1798_v48  ;;  %v3371_v57 = vmul.f32 %v1799_v63, %v1799_v63  ;;  %v3372_v31 = vmul.f32 %v1800_v17, %v1800_v17  ;;  %v3373_v0 = vmul.f32 %v1801_v10, %v1801_v10 }
 0x293   :  { %v3110_v6 = vadd.f32 %v13446_v37, %v13445_v62  ;;  %v3111_v26 = vadd.f32 %v13448_v33, %v13447_v30  ;;  %v3112_v35 = vadd.f32 %v13450_v47, %v13449_v24  ;;  %v3113_v61 = vadd.f32 %v13452_v50, %v13451_v32  ;;  %v1516_v37 = vpop.permute.xlu0 %1515  ;;  %v13457_v30 = vld [vmem:[#allocation205_spill] sm:$0xff]  ;;  %v13458_v24 = vld [vmem:[#allocation206_spill] sm:$0xff]  ;;  %v13460_v50 = vld [vmem:[#allocation207_spill] sm:$0xff] }
 0x294   :  { %v9380_v42 = vadd.f32 %v3370_v27, %v3114_v34  ;;  %v9382_v38 = vadd.f32 %v3371_v57, %v3115_v14  ;;  %v9384_v45 = vadd.f32 %v3372_v31, %v3116_v43  ;;  %v9386_v48 = vadd.f32 %v3373_v0, %v3117_v18  ;;  %v13459_v47 = vld [vmem:[#allocation338_spill] sm:$0xff]  ;;  %v13461_v32 = vld [vmem:[#allocation339_spill] sm:$0xff]  ;;  %v13462_v14 = vld [vmem:[#allocation208_spill] sm:$0xff]  ;;  %v1512_v57 = vpop.permute.xlu1 %1511 }
 0x295   :  { %v3366_v63 = vmul.f32 %v1794_v46, %v1794_v46  ;;  %v3367_v17 = vmul.f32 %v1795_v60, %v1795_v60  ;;  %v3368_v10 = vmul.f32 %v1796_v23, %v1796_v23  ;;  %v3369_v62 = vmul.f32 %v1797_v12, %v1797_v12  ;;  %v13463_v27 = vld [vmem:[#allocation340_spill] sm:$0xff] }
 0x296   :  { %13453 = vst [vmem:[#allocation159_spill] sm:$0xff] %v9380_v42  ;;  %13454 = vst [vmem:[#allocation295_spill] sm:$0xff] %v9382_v38  ;;  %v3122_v33 = vadd.f32 %v8190_v2, %v13457_v30  ;;  %v3123_v28 = vadd.f32 %v13459_v47, %v13458_v24  ;;  %v3124_v34 = vadd.f32 %v13461_v32, %v13460_v50  ;;  %v13470_v50 = vld [vmem:[#allocation194_spill] sm:$0xff]  ;;  %v13471_v32 = vld [vmem:[#allocation335_spill] sm:$0xff] }
 0x297   :  { %13455 = vst [vmem:[#allocation160_spill] sm:$0xff] %v9384_v45  ;;  %13456 = vst [vmem:[#allocation296_spill] sm:$0xff] %v9386_v48  ;;  %v3125_v43 = vadd.f32 %v13463_v27, %v13462_v14  ;;  %v9396_v18 = vadd.f32 %v3366_v63, %v3110_v6  ;;  %v9398_v46 = vadd.f32 %v3367_v17, %v3111_v26  ;;  %v13472_v27 = vld [vmem:[#allocation195_spill] sm:$0xff]  ;;  %v13474_v45 = vld [vmem:[#allocation196_spill] sm:$0xff] }
 0x298   :  { %v9400_v60 = vadd.f32 %v3368_v10, %v3112_v35  ;;  %v9402_v23 = vadd.f32 %v3369_v62, %v3113_v61  ;;  %v1806_v2 = vsub.f32 %v1516_v37, %v8352_v4  ;;  %v1807_v12 = vsub.f32 %v1516_v37, %v8354_v15  ;;  %v13468_v10 = vld [vmem:[#allocation193_spill] sm:$0xff]  ;;  %v13469_v62 = vld [vmem:[#allocation334_spill] sm:$0xff] }
 0x299   :  { %13464 = vst [vmem:[#allocation147_spill] sm:$0xff] %v9396_v18  ;;  %13465 = vst [vmem:[#allocation289_spill] sm:$0xff] %v9398_v46  ;;  %v1808_v31 = vsub.f32 %v1516_v37, %v8356_v51  ;;  %v1809_v0 = vsub.f32 %v1516_v37, %v8358_v54  ;;  %v1802_v30 = vsub.f32 %v1512_v57, %v8352_v4  ;;  %v13473_v37 = vld [vmem:[#allocation336_spill] sm:$0xff]  ;;  %v13475_v38 = vld [vmem:[#allocation337_spill] sm:$0xff] }
 0x29a   :  { %13466 = vst [vmem:[#allocation9_spill] sm:$0xff] %v9400_v60  ;;  %13467 = vst [vmem:[#allocation290_spill] sm:$0xff] %v9402_v23  ;;  %v1803_v24 = vsub.f32 %v1512_v57, %v8354_v15  ;;  %v1804_v6 = vsub.f32 %v1512_v57, %v8356_v51  ;;  %v1805_v26 = vsub.f32 %v1512_v57, %v8358_v54 }
 0x29b   :  { %v3378_v35 = vmul.f32 %v1806_v2, %v1806_v2  ;;  %v3379_v63 = vmul.f32 %v1807_v12, %v1807_v12  ;;  %v3380_v61 = vmul.f32 %v1808_v31, %v1808_v31  ;;  %v3381_v17 = vmul.f32 %v1809_v0, %v1809_v0 }
 0x29c   :  { %v3118_v47 = vadd.f32 %v13469_v62, %v13468_v10  ;;  %v3119_v14 = vadd.f32 %v13471_v32, %v13470_v50  ;;  %v3120_v48 = vadd.f32 %v13473_v37, %v13472_v27  ;;  %v3121_v42 = vadd.f32 %v13475_v38, %v13474_v45  ;;  %v1524_v62 = vpop.permute.xlu0 %1523  ;;  %v13480_v50 = vld [vmem:[#allocation213_spill] sm:$0xff]  ;;  %v13482_v27 = vld [vmem:[#allocation214_spill] sm:$0xff]  ;;  %v13484_v38 = vld [vmem:[#allocation215_spill] sm:$0xff] }
 0x29d   :  { %v9420_v23 = vadd.f32 %v3378_v35, %v3122_v33  ;;  %v9422_v60 = vadd.f32 %v3379_v63, %v3123_v28  ;;  %v9424_v57 = vadd.f32 %v3380_v61, %v3124_v34  ;;  %v9426_v2 = vadd.f32 %v3381_v17, %v3125_v43  ;;  %v13481_v32 = vld [vmem:[#allocation345_spill] sm:$0xff]  ;;  %v13483_v37 = vld [vmem:[#allocation346_spill] sm:$0xff]  ;;  %v13485_v45 = vld [vmem:[#allocation347_spill] sm:$0xff]  ;;  %v1520_v63 = vpop.permute.xlu1 %1519 }
 0x29e   :  { %v3374_v12 = vmul.f32 %v1802_v30, %v1802_v30  ;;  %v3375_v31 = vmul.f32 %v1803_v24, %v1803_v24  ;;  %v3376_v0 = vmul.f32 %v1804_v6, %v1804_v6  ;;  %v3377_v10 = vmul.f32 %v1805_v26, %v1805_v26  ;;  %v13486_v28 = vld [vmem:[#allocation216_spill] sm:$0xff] }
 0x29f   :  { %13476 = vst [vmem:[#allocation148_spill] sm:$0xff] %v9420_v23  ;;  %13477 = vst [vmem:[#allocation291_spill] sm:$0xff] %v9422_v60  ;;  %v3130_v46 = vadd.f32 %v13481_v32, %v13480_v50  ;;  %v3131_v18 = vadd.f32 %v13483_v37, %v13482_v27  ;;  %v3132_v33 = vadd.f32 %v13485_v45, %v13484_v38  ;;  %v13487_v35 = vld [vmem:[#allocation348_spill] sm:$0xff]  ;;  %v13492_v38 = vld [vmem:[#allocation202_spill] sm:$0xff] }
 0x2a0   :  { %13478 = vst [vmem:[#allocation149_spill] sm:$0xff] %v9424_v57  ;;  %13479 = vst [vmem:[#allocation292_spill] sm:$0xff] %v9426_v2  ;;  %v3133_v34 = vadd.f32 %v13487_v35, %v13486_v28  ;;  %v9436_v43 = vadd.f32 %v3374_v12, %v3118_v47  ;;  %v9438_v30 = vadd.f32 %v3375_v31, %v3119_v14  ;;  %v13493_v45 = vld [vmem:[#allocation342_spill] sm:$0xff]  ;;  %v13494_v35 = vld [vmem:[#allocation203_spill] sm:$0xff] }
 0x2a1   :  { %v9440_v24 = vadd.f32 %v3376_v0, %v3120_v48  ;;  %v9442_v6 = vadd.f32 %v3377_v10, %v3121_v42  ;;  %v1814_v26 = vsub.f32 %v1524_v62, %v8352_v4  ;;  %v1815_v61 = vsub.f32 %v1524_v62, %v8354_v15  ;;  %v13490_v0 = vld [vmem:[#allocation201_spill] sm:$0xff]  ;;  %v13496_v57 = vld [vmem:[#allocation204_spill] sm:$0xff] }
 0x2a2   :  { %v1816_v17 = vsub.f32 %v1524_v62, %v8356_v51  ;;  %v1817_v50 = vsub.f32 %v1524_v62, %v8358_v54  ;;  %v1810_v32 = vsub.f32 %v1520_v63, %v8352_v4  ;;  %v1811_v27 = vsub.f32 %v1520_v63, %v8354_v15  ;;  %v13491_v10 = vld [vmem:[#allocation341_spill] sm:$0xff]  ;;  %v13495_v62 = vld [vmem:[#allocation343_spill] sm:$0xff]  ;;  %v13497_v60 = vld [vmem:[#allocation344_spill] sm:$0xff] }
 0x2a3   :  { %13488 = vst [vmem:[#allocation165_spill] sm:$0xff] %v9440_v24  ;;  %13489 = vst [vmem:[#allocation301_spill] sm:$0xff] %v9442_v6  ;;  %v1812_v47 = vsub.f32 %v1520_v63, %v8356_v51  ;;  %v1813_v14 = vsub.f32 %v1520_v63, %v8358_v54  ;;  %v3386_v48 = vmul.f32 %v1814_v26, %v1814_v26 }
 0x2a4   :  { %v3387_v12 = vmul.f32 %v1815_v61, %v1815_v61  ;;  %v3388_v42 = vmul.f32 %v1816_v17, %v1816_v17  ;;  %v3389_v31 = vmul.f32 %v1817_v50, %v1817_v50  ;;  %v3126_v37 = vadd.f32 %v13491_v10, %v13490_v0  ;;  %v1532_v10 = vpop.permute.xlu0 %1531 }
 0x2a5   :  { %v3127_v28 = vadd.f32 %v13493_v45, %v13492_v38  ;;  %v3128_v2 = vadd.f32 %v13495_v62, %v13494_v35  ;;  %v3129_v23 = vadd.f32 %v13497_v60, %v13496_v57  ;;  %v9460_v6 = vadd.f32 %v3386_v48, %v3130_v46  ;;  %v13502_v38 = vld [vmem:[#allocation221_spill] sm:$0xff]  ;;  %v13503_v35 = vld [vmem:[#allocation222_spill] sm:$0xff]  ;;  %v13504_v60 = vld [vmem:[#allocation223_spill] sm:$0xff] }
 0x2a6   :  { %v9462_v24 = vadd.f32 %v3387_v12, %v3131_v18  ;;  %v9464_v63 = vadd.f32 %v3388_v42, %v3132_v33  ;;  %v9466_v26 = vadd.f32 %v3389_v31, %v3133_v34  ;;  %v3382_v61 = vmul.f32 %v1810_v32, %v1810_v32  ;;  %v13505_v18 = vld [vmem:[#allocation224_spill] sm:$0xff]  ;;  %v1528_v33 = vpop.permute.xlu1 %1527 }
 0x2a7   :  { %13498 = vst [vmem:[#allocation166_spill] sm:$0xff] %v9460_v6  ;;  %v3383_v17 = vmul.f32 %v1811_v27, %v1811_v27  ;;  %v3384_v50 = vmul.f32 %v1812_v47, %v1812_v47  ;;  %v3385_v0 = vmul.f32 %v1813_v14, %v1813_v14  ;;  %v3138_v45 = vadd.f32 %v8258_v29, %v13502_v38 }
 0x2a8   :  { %13499 = vst [vmem:[#allocation302_spill] sm:$0xff] %v9462_v24  ;;  %13500 = vst [vmem:[#allocation167_spill] sm:$0xff] %v9464_v63  ;;  %v3139_v62 = vadd.f32 %v8260_v13, %v13503_v35  ;;  %v3140_v46 = vadd.f32 %v8262_v11, %v13504_v60  ;;  %v3141_v57 = vadd.f32 %v8264_v8, %v13505_v18  ;;  %v13510_v35 = vld [vmem:[#allocation211_spill] sm:$0xff]  ;;  %v13512_v18 = vld [vmem:[#allocation212_spill] sm:$0xff]  ;;  %v1540_v24 = vpop.permute.xlu0 %1539 }
 0x2a9   :  { %13501 = vst [vmem:[#allocation303_spill] sm:$0xff] %v9466_v26  ;;  %v9476_v34 = vadd.f32 %v3382_v61, %v3126_v37  ;;  %v9478_v32 = vadd.f32 %v3383_v17, %v3127_v28  ;;  %v9480_v27 = vadd.f32 %v3384_v50, %v3128_v2  ;;  %v9482_v47 = vadd.f32 %v3385_v0, %v3129_v23  ;;  %v13506_v28 = vld [vmem:[#allocation209_spill] sm:$0xff]  ;;  %v13508_v50 = vld [vmem:[#allocation210_spill] sm:$0xff]  ;;  %v13513_v26 = vld [vmem:[#allocation352_spill] sm:$0xff] }
 0x2aa   :  { %v1822_v29 = vsub.f32 %v1532_v10, %v8352_v4  ;;  %v1823_v14 = vsub.f32 %v1532_v10, %v8354_v15  ;;  %v1824_v13 = vsub.f32 %v1532_v10, %v8356_v51  ;;  %v1825_v11 = vsub.f32 %v1532_v10, %v8358_v54  ;;  %v13507_v61 = vld [vmem:[#allocation349_spill] sm:$0xff]  ;;  %v13509_v0 = vld [vmem:[#allocation350_spill] sm:$0xff]  ;;  %v13511_v10 = vld [vmem:[#allocation351_spill] sm:$0xff] }
 0x2ab   :  { %v1818_v48 = vsub.f32 %v1528_v33, %v8352_v4  ;;  %v1819_v8 = vsub.f32 %v1528_v33, %v8354_v15  ;;  %v1820_v12 = vsub.f32 %v1528_v33, %v8356_v51  ;;  %v1821_v42 = vsub.f32 %v1528_v33, %v8358_v54 }
 0x2ac   :  { %v3394_v2 = vmul.f32 %v1822_v29, %v1822_v29  ;;  %v3395_v31 = vmul.f32 %v1823_v14, %v1823_v14  ;;  %v3396_v23 = vmul.f32 %v1824_v13, %v1824_v13  ;;  %v3397_v37 = vmul.f32 %v1825_v11, %v1825_v11 }
 0x2ad   :  { %v3134_v17 = vadd.f32 %v13507_v61, %v13506_v28  ;;  %v3135_v38 = vadd.f32 %v13509_v0, %v13508_v50  ;;  %v3136_v60 = vadd.f32 %v13511_v10, %v13510_v35  ;;  %v3137_v63 = vadd.f32 %v13513_v26, %v13512_v18  ;;  %v13526_v10 = vld [vmem:[#allocation218_spill] sm:$0xff] }
 0x2ae   :  { %v9500_v6 = vadd.f32 %v3394_v2, %v3138_v45  ;;  %v9502_v33 = vadd.f32 %v3395_v31, %v3139_v62  ;;  %v9504_v29 = vadd.f32 %v3396_v23, %v3140_v46  ;;  %v9506_v14 = vadd.f32 %v3397_v37, %v3141_v57  ;;  %v1536_v45 = vpop.permute.xlu1 %1535 }
 0x2af   :  { %v3390_v13 = vmul.f32 %v1818_v48, %v1818_v48  ;;  %v3391_v11 = vmul.f32 %v1819_v8, %v1819_v8  ;;  %v3392_v28 = vmul.f32 %v1820_v12, %v1820_v12  ;;  %v3393_v61 = vmul.f32 %v1821_v42, %v1821_v42 }
 0x2b0   :  { %13514 = vst [vmem:[#allocation168_spill] sm:$0xff] %v9500_v6  ;;  %13515 = vst [vmem:[#allocation304_spill] sm:$0xff] %v9502_v33  ;;  %v1830_v50 = vsub.f32 %v1540_v24, %v8352_v4  ;;  %v1831_v0 = vsub.f32 %v1540_v24, %v8354_v15  ;;  %v1832_v35 = vsub.f32 %v1540_v24, %v8356_v51 }
 0x2b1   :  { %13516 = vst [vmem:[#allocation153_spill] sm:$0xff] %v9504_v29  ;;  %13517 = vst [vmem:[#allocation297_spill] sm:$0xff] %v9506_v14  ;;  %v1833_v26 = vsub.f32 %v1540_v24, %v8358_v54  ;;  %v9512_v2 = vadd.f32 %v3390_v13, %v3134_v17  ;;  %v9514_v62 = vadd.f32 %v3391_v11, %v3135_v38  ;;  %v13524_v17 = vld [vmem:[#allocation217_spill] sm:$0xff]  ;;  %v13528_v13 = vld [vmem:[#allocation219_spill] sm:$0xff] }
 0x2b2   :  { %v9516_v46 = vadd.f32 %v3392_v28, %v3136_v60  ;;  %v9518_v57 = vadd.f32 %v3393_v61, %v3137_v63  ;;  %v9520_v48 = vmul.f32 %v1830_v50, %v1830_v50  ;;  %v9522_v8 = vmul.f32 %v1831_v0, %v1831_v0  ;;  %v13525_v38 = vld [vmem:[#allocation353_spill] sm:$0xff]  ;;  %v13527_v60 = vld [vmem:[#allocation354_spill] sm:$0xff]  ;;  %v13529_v11 = vld [vmem:[#allocation355_spill] sm:$0xff] }
 0x2b3   :  { %v9524_v12 = vmul.f32 %v1832_v35, %v1832_v35  ;;  %v9526_v42 = vmul.f32 %v1833_v26, %v1833_v26  ;;  %v1826_v31 = vsub.f32 %v1536_v45, %v8352_v4  ;;  %v1827_v24 = vsub.f32 %v1536_v45, %v8354_v15  ;;  %v13530_v61 = vld [vmem:[#allocation220_spill] sm:$0xff] }
 0x2b4   :  { %13518 = vst [vmem:[#allocation154_spill] sm:$0xff] %v9516_v46  ;;  %13519 = vst [vmem:[#allocation298_spill] sm:$0xff] %v9518_v57  ;;  %v1828_v23 = vsub.f32 %v1536_v45, %v8356_v51  ;;  %v1829_v37 = vsub.f32 %v1536_v45, %v8358_v54  ;;  %v3142_v63 = vadd.f32 %v13525_v38, %v13524_v17  ;;  %v13531_v50 = vld [vmem:[#allocation356_spill] sm:$0xff] }
 0x2b5   :  { %13520 = vst [vmem:[#allocation155_spill] sm:$0xff] %v9520_v48  ;;  %13521 = vst [vmem:[#allocation299_spill] sm:$0xff] %v9522_v8  ;;  %v3143_v18 = vadd.f32 %v13527_v60, %v13526_v10  ;;  %v3144_v28 = vadd.f32 %v13529_v11, %v13528_v13  ;;  %v3145_v0 = vadd.f32 %v13531_v50, %v13530_v61  ;;  %v13532_v8 = vld [vmem:[#allocation10_spill] sm:$0xff]  ;;  %v13533_v17 = vld [vmem:[#allocation20_spill] sm:$0xff]  ;;  %v1840_v13 = vpop.permute.xlu0 %1839  ;;  %v1544_v11 = vpop.permute.xlu1 %1543 }
 0x2b6   :  { %13522 = vst [vmem:[#allocation156_spill] sm:$0xff] %v9524_v12  ;;  %13523 = vst [vmem:[#allocation300_spill] sm:$0xff] %v9526_v42  ;;  %v3398_v35 = vmul.f32 %v1826_v31, %v1826_v31  ;;  %v3399_v26 = vmul.f32 %v1827_v24, %v1827_v24  ;;  %v3400_v42 = vmul.f32 %v1828_v23, %v1828_v23  ;;  %v2096_v45 = vsub.s32 3, %v13532_v8  ;;  %v13534_v10 = vld [vmem:[#allocation21_spill] sm:$0xff]  ;;  %v5867_v23 = vld [vmem:[%s6136_s27] sm:$0xff] }
 0x2b7   :  { %v3401_v12 = vmul.f32 %v1829_v37, %v1829_v37  ;;  %v2100_v48 = vsub.s32 7, %v13532_v8  ;;  %v3410_v38 = vadd.f32 %v8398_v22, %v13533_v17  ;;  %v13535_v60 = vld [vmem:[#allocation109_spill] sm:$0xff]  ;;  %v13538_v22 = vld [vmem:[#allocation22_spill] sm:$0xff] }
 0x2b8   :  { %v3411_v14 = vadd.f32 %v13535_v60, %v13534_v10  ;;  %v9546_v29 = vadd.f32 %v3398_v35, %v3142_v63  ;;  %v9548_v61 = vadd.f32 %v3399_v26, %v3143_v18  ;;  %v9550_v31 = vadd.f32 %v3400_v42, %v3144_v28  ;;  %v5868_v8 = vld [vmem:[%s6136_s27 + $0x8] sm:$0xff]  ;;  %v13539_v17 = vld [vmem:[#allocation110_spill] sm:$0xff]  ;;  %v13540_v10 = vld [vmem:[#allocation23_spill] sm:$0xff] }
 0x2b9   :  { %v9552_v24 = vadd.f32 %v3401_v12, %v3145_v0  ;;  %v2097_v37 = vrot.slane %v5867_v23, %v2096_v45  ;;  %v2101_v50 = vrot.slane %v5867_v23, %v2100_v48  ;;  %v2105_v33 = vrot.slane %v5868_v8, %v2096_v45  ;;  %v13541_v60 = vld [vmem:[#allocation111_spill] sm:$0xff] }
 0x2ba   :  { %13536 = vst [vmem:[#allocation173_spill] sm:$0xff] %v9550_v31  ;;  %v2109_v6 = vrot.slane %v5868_v8, %v2100_v48  ;;  %v3412_v57 = vadd.f32 %v13539_v17, %v13538_v22  ;;  %v3413_v46 = vadd.f32 %v13541_v60, %v13540_v10  ;;  %v1834_v63 = vsub.f32 %v1544_v11, %v8352_v4 }
 0x2bb   :  { %13537 = vst [vmem:[#allocation174_spill] sm:$0xff] %v9552_v24  ;;  %v1835_v18 = vsub.f32 %v1544_v11, %v8354_v15  ;;  %v9562_v42 = vrot.slane %v2097_v37, %v2096_v45  ;;  %v9564_v12 = vrot.slane %v2101_v50, %v2096_v45  ;;  %v9566_v28 = vrot.slane %v2105_v33, %v2096_v45  ;;  %v1852_v33 = vpop.permute.xlu0 %1851  ;;  %v13550_v24 = vld [vmem:[#allocation27_spill] sm:$0xff] }
 0x2bc   :  { %v9568_v0 = vrot.slane %v2109_v6, %v2096_v45  ;;  %v1836_v48 = vsub.f32 %v1544_v11, %v8356_v51  ;;  %v1837_v35 = vsub.f32 %v1544_v11, %v8358_v54  ;;  %v9572_v26 = vmul.f32 %v1834_v63, %v1834_v63  ;;  %v13545_v51 = vld [vmem:[#allocation24_spill] sm:$0xff]  ;;  %v13546_v45 = vld [vmem:[#allocation25_spill] sm:$0xff] }
 0x2bd   :  { %v9574_v23 = vmul.f32 %v1835_v18, %v1835_v18  ;;  %v2130_v4 = vsub.f32 %v1840_v13, %v9562_v42  ;;  %v2131_v15 = vsub.f32 %v1840_v13, %v9564_v12  ;;  %v2132_v37 = vsub.f32 %v1840_v13, %v9566_v28  ;;  %v13547_v11 = vld [vmem:[#allocation372_spill] sm:$0xff]  ;;  %v13548_v18 = vld [vmem:[#allocation26_spill] sm:$0xff] }
 0x2be   :  { %13542 = vst [vmem:[#allocation309_spill] sm:$0xff] %v9572_v26  ;;  %v2133_v50 = vsub.f32 %v1840_v13, %v9568_v0  ;;  %v9580_v8 = vmul.f32 %v1836_v48, %v1836_v48  ;;  %v9582_v6 = vmul.f32 %v1837_v35, %v1837_v35  ;;  %v3422_v54 = vadd.f32 %v8470_v9, %v13545_v51  ;;  %v13551_v13 = vld [vmem:[#allocation374_spill] sm:$0xff] }
 0x2bf   :  { %13543 = vst [vmem:[#allocation175_spill] sm:$0xff] %v9574_v23  ;;  %v3423_v22 = vadd.f32 %v13547_v11, %v13546_v45  ;;  %v3666_v17 = vmul.f32 %v2130_v4, %v2130_v4  ;;  %v3667_v10 = vmul.f32 %v2131_v15, %v2131_v15  ;;  %v3668_v60 = vmul.f32 %v2132_v37, %v2132_v37  ;;  %v13549_v23 = vld [vmem:[#allocation373_spill] sm:$0xff]  ;;  %v1844_v45 = vpop.permute.xlu1 %1843 }
 0x2c0   :  { %13544 = vst [vmem:[#allocation310_spill] sm:$0xff] %v9582_v6  ;;  %v3669_v63 = vmul.f32 %v2133_v50, %v2133_v50  ;;  %v3424_v26 = vadd.f32 %v13549_v23, %v13548_v18  ;;  %v3425_v31 = vadd.f32 %v13551_v13, %v13550_v24  ;;  %v2142_v48 = vsub.f32 %v1852_v33, %v9562_v42  ;;  %v13560_v18 = vld [vmem:[#allocation15_spill] sm:$0xff]  ;;  %v13561_v13 = vld [vmem:[#allocation105_spill] sm:$0xff] }
 0x2c1   :  { %v2143_v35 = vsub.f32 %v1852_v33, %v9564_v12  ;;  %v9594_v6 = vadd.f32 %v3666_v17, %v3410_v38  ;;  %v9596_v9 = vadd.f32 %v3667_v10, %v3411_v14  ;;  %v9598_v51 = vadd.f32 %v3668_v60, %v3412_v57 }
 0x2c2   :  { %v9600_v4 = vadd.f32 %v3669_v63, %v3413_v46  ;;  %v2144_v15 = vsub.f32 %v1852_v33, %v9566_v28  ;;  %v2145_v37 = vsub.f32 %v1852_v33, %v9568_v0  ;;  %v3678_v23 = vmul.f32 %v2142_v48, %v2142_v48  ;;  %v13559_v63 = vld [vmem:[#allocation116_spill] sm:$0xff] }
 0x2c3   :  { %13552 = vst [vmem:[#allocation176_spill] sm:$0xff] %v9594_v6  ;;  %13553 = vst [vmem:[#allocation311_spill] sm:$0xff] %v9598_v51  ;;  %v3679_v50 = vmul.f32 %v2143_v35, %v2143_v35  ;;  %vm12539_vm0 = vcmp.lt.f32.partialorder %v9594_v6, 4.0  ;;  %vm12538_vm1 = vcmp.lt.f32.partialorder %v9596_v9, 4.0  ;;  %v2134_v24 = vsub.f32 %v1844_v45, %v9562_v42  ;;  %v13562_v35 = vld [vmem:[#allocation230_spill] sm:$0xff]  ;;  %v13566_v51 = vld [vmem:[#allocation28_spill] sm:$0xff] }
 0x2c4   :  { %13554 = vst [vmem:[#allocation161_spill] sm:$0xff] %v9600_v4  ;;  %v3680_v14 = vmul.f32 %v2144_v15, %v2144_v15  ;;  %v3681_v57 = vmul.f32 %v2145_v37, %v2145_v37  ;;  %v9608_v38 = vadd.f32 %v3678_v23, %v3422_v54  ;;  %v2135_v33 = vsub.f32 %v1844_v45, %v9564_v12  ;;  %v13558_v54 = vld [vmem:[#allocation12_spill] sm:$0xff]  ;;  %v13563_v15 = vld [vmem:[#allocation106_spill] sm:$0xff]  ;;  %v13564_v23 = vld [vmem:[#allocation231_spill] sm:$0xff] }
 0x2c5   :  { %v9610_v46 = vadd.f32 %v3679_v50, %v3423_v22  ;;  %v2136_v11 = vsub.f32 %v1844_v45, %v9566_v28  ;;  %v2137_v17 = vsub.f32 %v1844_v45, %v9568_v0  ;;  %v3414_v22 = vadd.f32 %v13559_v63, %v13558_v54  ;;  %v13565_v50 = vld [vmem:[#allocation107_spill] sm:$0xff]  ;;  %v13567_v63 = vld [vmem:[#allocation29_spill] sm:$0xff] }
 0x2c6   :  { %13555 = vst [vmem:[#allocation305_spill] sm:$0xff] %v9608_v38  ;;  %v9616_v10 = vadd.f32 %v3680_v14, %v3424_v26  ;;  %v9618_v60 = vadd.f32 %v3681_v57, %v3425_v31  ;;  %vm12540_vm4 = vcmp.lt.f32.partialorder %v9608_v38, 4.0  ;;  %v3415_v48 = vadd.f32 %v13561_v13, %v13560_v18  ;;  %v1860_v14 = vpop.permute.xlu0 %1859  ;;  %v13568_v18 = vld [vmem:[#allocation379_spill] sm:$0xff] }
 0x2c7   :  { %vm12536_vm5 = vcmp.lt.f32.partialorder %v9610_v46, 4.0  ;;  %v3416_v37 = vadd.f32 %v13563_v15, %v13562_v35  ;;  %v3417_v45 = vadd.f32 %v13565_v50, %v13564_v23  ;;  %v3670_v31 = vmul.f32 %v2134_v24, %v2134_v24  ;;  %v13570_v15 = vld [vmem:[#allocation30_spill] sm:$0xff]  ;;  %v13571_v23 = vld [vmem:[#allocation380_spill] sm:$0xff]  ;;  %v13584_v6 = vld [vmem:[#allocation19_spill] sm:$0xff] }
 0x2c8   :  { %13556 = vst [vmem:[#allocation162_spill] sm:$0xff] %v9616_v10  ;;  %13557 = vst [vmem:[#allocation306_spill] sm:$0xff] %v9618_v60  ;;  %v3671_v26 = vmul.f32 %v2135_v33, %v2135_v33  ;;  %v3672_v57 = vmul.f32 %v2136_v11, %v2136_v11  ;;  %v3673_v4 = vmul.f32 %v2137_v17, %v2137_v17  ;;  %v13572_v10 = vld [vmem:[#allocation31_spill] sm:$0xff]  ;;  %v13573_v60 = vld [vmem:[#allocation381_spill] sm:$0xff] }
 0x2c9   :  { %v3430_v54 = vadd.f32 %v8508_v7, %v13566_v51  ;;  %v3431_v13 = vadd.f32 %v13568_v18, %v13567_v63  ;;  %v9636_v38 = vadd.f32 %v3670_v31, %v3414_v22  ;;  %v3432_v50 = vadd.f32 %v13571_v23, %v13570_v15  ;;  %v13577_v31 = vld [vmem:[#allocation108_spill] sm:$0xff]  ;;  %v13579_v63 = vld [vmem:[#allocation365_spill] sm:$0xff] }
 0x2ca   :  { %v9638_v35 = vadd.f32 %v3671_v26, %v3415_v48  ;;  %v3433_v24 = vadd.f32 %v13573_v60, %v13572_v10  ;;  %v9644_v33 = vadd.f32 %v3672_v57, %v3416_v37  ;;  %v9646_v11 = vadd.f32 %v3673_v4, %v3417_v45  ;;  %v1848_v4 = vpop.permute.xlu1 %1847  ;;  %v13576_v45 = vld [vmem:[#allocation16_spill] sm:$0xff]  ;;  %v13578_v57 = vld [vmem:[#allocation17_spill] sm:$0xff] }
 0x2cb   :  { %13569 = vst [vmem:[#allocation163_spill] sm:$0xff] %v9636_v38  ;;  %v2150_v17 = vsub.f32 %v1860_v14, %v9562_v42  ;;  %v2151_v7 = vsub.f32 %v1860_v14, %v9564_v12  ;;  %vm12542_vm8 = vcmp.lt.f32.partialorder %v9636_v38, 4.0  ;;  %v2152_v51 = vsub.f32 %v1860_v14, %v9566_v28  ;;  %v13583_v38 = vld [vmem:[#allocation366_spill] sm:$0xff] }
 0x2cc   :  { %13574 = vst [vmem:[#allocation307_spill] sm:$0xff] %v9644_v33  ;;  %13575 = vst [vmem:[#allocation164_spill] sm:$0xff] %v9646_v11  ;;  %vm12535_vm9 = vcmp.lt.f32.partialorder %v9638_v35, 4.0  ;;  %v2153_v22 = vsub.f32 %v1860_v14, %v9568_v0  ;;  %v3418_v26 = vadd.f32 %v13577_v31, %v13576_v45  ;;  %v3419_v18 = vadd.f32 %v13579_v63, %v13578_v57  ;;  %v13582_v14 = vld [vmem:[#allocation18_spill] sm:$0xff]  ;;  %v13585_v11 = vld [vmem:[#allocation367_spill] sm:$0xff] }
 0x2cd   :  { %v3686_v10 = vmul.f32 %v2150_v17, %v2150_v17  ;;  %v3687_v60 = vmul.f32 %v2151_v7, %v2151_v7  ;;  %v3688_v48 = vmul.f32 %v2152_v51, %v2152_v51  ;;  %v3420_v33 = vadd.f32 %v13583_v38, %v13582_v14  ;;  %v13591_v31 = vld [vmem:[#allocation387_spill] sm:$0xff]  ;;  %vm5025_vm10 = vmpackc.low (!%p5698_p2), %vm12535_vm9, %vm12538_vm1 }
 0x2ce   :  { %v3689_v37 = vmul.f32 %v2153_v22, %v2153_v22  ;;  %v3421_v17 = vadd.f32 %v13585_v11, %v13584_v6  ;;  %v2138_v22 = vsub.f32 %v1848_v4, %v9562_v42  ;;  %v2139_v45 = vsub.f32 %v1848_v4, %v9564_v12 }
 0x2cf   :  { %v9660_v15 = vadd.f32 %v3686_v10, %v3430_v54  ;;  %v9662_v23 = vadd.f32 %v3687_v60, %v3431_v13  ;;  %v9668_v7 = vadd.f32 %v3688_v48, %v3432_v50  ;;  %v2140_v54 = vsub.f32 %v1848_v4, %v9566_v28  ;;  %v1868_v50 = vpop.permute.xlu0 %1867  ;;  %v13588_v10 = vld [vmem:[#allocation33_spill] sm:$0xff]  ;;  %v13589_v60 = vld [vmem:[#allocation386_spill] sm:$0xff] }
 0x2d0   :  { %v9670_v51 = vadd.f32 %v3689_v37, %v3433_v24  ;;  %v2141_v13 = vsub.f32 %v1848_v4, %v9568_v0  ;;  %v3674_v6 = vmul.f32 %v2138_v22, %v2138_v22  ;;  %v3675_v38 = vmul.f32 %v2139_v45, %v2139_v45  ;;  %v13590_v37 = vld [vmem:[#allocation34_spill] sm:$0xff]  ;;  %v13593_v4 = vld [vmem:[#allocation35_spill] sm:$0xff] }
 0x2d1   :  { %13580 = vst [vmem:[#allocation308_spill] sm:$0xff] %v9660_v15  ;;  %13581 = vst [vmem:[#allocation181_spill] sm:$0xff] %v9662_v23  ;;  %v3676_v24 = vmul.f32 %v2140_v54, %v2140_v54  ;;  %v3438_v48 = vadd.f32 %v13589_v60, %v13588_v10  ;;  %v3439_v57 = vadd.f32 %v13591_v31, %v13590_v37  ;;  %v13594_v23 = vld [vmem:[#allocation388_spill] sm:$0xff]  ;;  %v1856_v60 = vpop.permute.xlu1 %1855 }
 0x2d2   :  { %13586 = vst [vmem:[#allocation182_spill] sm:$0xff] %v9668_v7  ;;  %13587 = vst [vmem:[#allocation316_spill] sm:$0xff] %v9670_v51  ;;  %v3677_v11 = vmul.f32 %v2141_v13, %v2141_v13  ;;  %v9684_v63 = vadd.f32 %v3674_v6, %v3418_v26  ;;  %v9686_v14 = vadd.f32 %v3675_v38, %v3419_v18  ;;  %v13595_v15 = vld [vmem:[#allocation36_spill] sm:$0xff]  ;;  %v13596_v51 = vld [vmem:[#allocation389_spill] sm:$0xff] }
 0x2d3   :  { %v3440_v7 = vadd.f32 %v13594_v23, %v13593_v4  ;;  %v3441_v22 = vadd.f32 %v13596_v51, %v13595_v15  ;;  %v9692_v45 = vadd.f32 %v3676_v24, %v3420_v33  ;;  %v2158_v13 = vsub.f32 %v1868_v50, %v9562_v42  ;;  %v13603_v4 = vld [vmem:[#allocation32_spill] sm:$0xff] }
 0x2d4   :  { %13592 = vst [vmem:[#allocation183_spill] sm:$0xff] %v9684_v63  ;;  %v9694_v54 = vadd.f32 %v3677_v11, %v3421_v17  ;;  %v2159_v10 = vsub.f32 %v1868_v50, %v9564_v12  ;;  %vm12541_vm15 = vcmp.lt.f32.partialorder %v9684_v63, 4.0  ;;  %vm12537_vm14 = vcmp.lt.f32.partialorder %v9686_v14, 4.0 }
 0x2d5   :  { %13597 = vst [vmem:[#allocation317_spill] sm:$0xff] %v9692_v45  ;;  %v2160_v26 = vsub.f32 %v1868_v50, %v9566_v28  ;;  %v2161_v18 = vsub.f32 %v1868_v50, %v9568_v0  ;;  %v3694_v33 = vmul.f32 %v2158_v13, %v2158_v13  ;;  %v2146_v51 = vsub.f32 %v1856_v60, %v9562_v42  ;;  %v13604_v13 = vld [vmem:[#allocation368_spill] sm:$0xff]  ;;  %v13610_v45 = vld [vmem:[#allocation371_spill] sm:$0xff]  ;;  %vm5026_vm11 = vmpackc.low (!%p5698_p2), %vm12536_vm5, %vm12537_vm14 }
 0x2d6   :  { %13598 = vst [vmem:[#allocation184_spill] sm:$0xff] %v9694_v54  ;;  %v3695_v15 = vmul.f32 %v2159_v10, %v2159_v10  ;;  %v2147_v6 = vsub.f32 %v1856_v60, %v9564_v12  ;;  %v2148_v11 = vsub.f32 %v1856_v60, %v9566_v28  ;;  %v2149_v50 = vsub.f32 %v1856_v60, %v9568_v0  ;;  %vm5027_vm3 = vmpackc.even (!%p5698_p2), %vm5026_vm11, %vm5025_vm10 }
 0x2d7   :  { %v3696_v23 = vmul.f32 %v2160_v26, %v2160_v26  ;;  %v3697_v17 = vmul.f32 %v2161_v18, %v2161_v18  ;;  %v9706_v38 = vadd.f32 %v3694_v33, %v3438_v48  ;;  %v3426_v10 = vadd.f32 %v13604_v13, %v13603_v4  ;;  %v13605_v26 = vld [vmem:[#allocation232_spill] sm:$0xff]  ;;  %v13606_v18 = vld [vmem:[#allocation369_spill] sm:$0xff] }
 0x2d8   :  { %v9708_v24 = vadd.f32 %v3695_v15, %v3439_v57  ;;  %v3427_v54 = vadd.f32 %v13606_v18, %v13605_v26  ;;  %v13607_v48 = vld [vmem:[#allocation233_spill] sm:$0xff]  ;;  %v13608_v57 = vld [vmem:[#allocation370_spill] sm:$0xff]  ;;  %v3685_v4 = vmul.f32 %v2149_v50, %v2149_v50  ;;  %v13611_v13 = vld [vmem:[#allocation40_spill] sm:$0xff] }
 0x2d9   :  { %13599 = vst [vmem:[#allocation318_spill] sm:$0xff] %v9706_v38  ;;  %v9712_v37 = vadd.f32 %v3696_v23, %v3440_v7  ;;  %v9714_v31 = vadd.f32 %v3697_v17, %v3441_v22  ;;  %v3428_v33 = vadd.f32 %v13608_v57, %v13607_v48  ;;  %v13609_v15 = vld [vmem:[#allocation234_spill] sm:$0xff]  ;;  %v3682_v7 = vmul.f32 %v2146_v51, %v2146_v51  ;;  %v1876_v23 = vpop.permute.xlu0 %1875  ;;  %v13612_v18 = vld [vmem:[#allocation41_spill] sm:$0xff]  ;;  %v13617_v57 = vld [vmem:[#allocation395_spill] sm:$0xff] }
 0x2da   :  { %13600 = vst [vmem:[#allocation169_spill] sm:$0xff] %v9708_v24  ;;  %v3429_v60 = vadd.f32 %v13610_v45, %v13609_v15  ;;  %v3683_v22 = vmul.f32 %v2147_v6, %v2147_v6  ;;  %v3684_v17 = vmul.f32 %v2148_v11, %v2148_v11  ;;  %v3446_v26 = vadd.f32 %v8580_v49, %v13611_v13  ;;  %v13613_v24 = vld [vmem:[#allocation394_spill] sm:$0xff]  ;;  %v1864_v13 = vpop.permute.xlu1 %1863 }
 0x2db   :  { %13601 = vst [vmem:[#allocation312_spill] sm:$0xff] %v9712_v37  ;;  %13602 = vst [vmem:[#allocation170_spill] sm:$0xff] %v9714_v31  ;;  %v3447_v38 = vadd.f32 %v13613_v24, %v13612_v18  ;;  %v9732_v63 = vadd.f32 %v3682_v7, %v3426_v10  ;;  %v13616_v45 = vld [vmem:[#allocation42_spill] sm:$0xff]  ;;  %v13618_v37 = vld [vmem:[#allocation43_spill] sm:$0xff]  ;;  %v2166_v50 = vsub.f32 %v1876_v23, %v9562_v42 }
 0x2dc   :  { %v9734_v48 = vadd.f32 %v3683_v22, %v3427_v54  ;;  %v3448_v15 = vadd.f32 %v13617_v57, %v13616_v45  ;;  %v13619_v31 = vld [vmem:[#allocation396_spill] sm:$0xff]  ;;  %v9740_v6 = vadd.f32 %v3684_v17, %v3428_v33  ;;  %v9742_v11 = vadd.f32 %v3685_v4, %v3429_v60  ;;  %v13626_v57 = vld [vmem:[#allocation235_spill] sm:$0xff] }
 0x2dd   :  { %13614 = vst [vmem:[#allocation313_spill] sm:$0xff] %v9732_v63  ;;  %v3449_v51 = vadd.f32 %v13619_v31, %v13618_v37  ;;  %v2167_v49 = vsub.f32 %v1876_v23, %v9564_v12  ;;  %v2168_v54 = vsub.f32 %v1876_v23, %v9566_v28  ;;  %v2169_v24 = vsub.f32 %v1876_v23, %v9568_v0 }
 0x2de   :  { %13615 = vst [vmem:[#allocation171_spill] sm:$0xff] %v9734_v48  ;;  %13620 = vst [vmem:[#allocation314_spill] sm:$0xff] %v9740_v6  ;;  %v3702_v37 = vmul.f32 %v2166_v50, %v2166_v50  ;;  %v2154_v60 = vsub.f32 %v1864_v13, %v9562_v42  ;;  %v2155_v7 = vsub.f32 %v1864_v13, %v9564_v12  ;;  %v13627_v50 = vld [vmem:[#allocation375_spill] sm:$0xff]  ;;  %v13633_v6 = vld [vmem:[#allocation378_spill] sm:$0xff] }
 0x2df   :  { %13621 = vst [vmem:[#allocation172_spill] sm:$0xff] %v9742_v11  ;;  %v3703_v31 = vmul.f32 %v2167_v49, %v2167_v49  ;;  %v3704_v10 = vmul.f32 %v2168_v54, %v2168_v54  ;;  %v3705_v33 = vmul.f32 %v2169_v24, %v2169_v24  ;;  %v2156_v4 = vsub.f32 %v1864_v13, %v9566_v28  ;;  %v13628_v54 = vld [vmem:[#allocation37_spill] sm:$0xff]  ;;  %v13629_v24 = vld [vmem:[#allocation376_spill] sm:$0xff] }
 0x2e0   :  { %v9754_v22 = vadd.f32 %v3702_v37, %v3446_v26  ;;  %v2157_v23 = vsub.f32 %v1864_v13, %v9568_v0  ;;  %v3434_v49 = vadd.f32 %v13627_v50, %v13626_v57  ;;  %v3435_v11 = vadd.f32 %v13629_v24, %v13628_v54  ;;  %v13631_v26 = vld [vmem:[#allocation377_spill] sm:$0xff] }
 0x2e1   :  { %v9756_v17 = vadd.f32 %v3703_v31, %v3447_v38  ;;  %v9760_v18 = vadd.f32 %v3704_v10, %v3448_v15  ;;  %v9762_v45 = vadd.f32 %v3705_v33, %v3449_v51  ;;  %v13630_v38 = vld [vmem:[#allocation38_spill] sm:$0xff]  ;;  %v13632_v31 = vld [vmem:[#allocation39_spill] sm:$0xff]  ;;  %v3690_v15 = vmul.f32 %v2154_v60, %v2154_v60  ;;  %v1884_v10 = vpop.permute.xlu0 %1883  ;;  %v13634_v50 = vld [vmem:[#allocation45_spill] sm:$0xff] }
 0x2e2   :  { %13622 = vst [vmem:[#allocation315_spill] sm:$0xff] %v9754_v22  ;;  %v3436_v37 = vadd.f32 %v13631_v26, %v13630_v38  ;;  %v3437_v13 = vadd.f32 %v13633_v6, %v13632_v31  ;;  %v3691_v51 = vmul.f32 %v2155_v7, %v2155_v7  ;;  %v3692_v33 = vmul.f32 %v2156_v4, %v2156_v4  ;;  %v13635_v54 = vld [vmem:[#allocation401_spill] sm:$0xff]  ;;  %v13636_v22 = vld [vmem:[#allocation46_spill] sm:$0xff]  ;;  %v13639_v6 = vld [vmem:[#allocation47_spill] sm:$0xff] }
 0x2e3   :  { %13623 = vst [vmem:[#allocation189_spill] sm:$0xff] %v9756_v17  ;;  %13624 = vst [vmem:[#allocation323_spill] sm:$0xff] %v9760_v18  ;;  %v3693_v57 = vmul.f32 %v2157_v23, %v2157_v23  ;;  %v3454_v24 = vadd.f32 %v13635_v54, %v13634_v50  ;;  %v13637_v17 = vld [vmem:[#allocation402_spill] sm:$0xff]  ;;  %v9780_v63 = vadd.f32 %v3690_v15, %v3434_v49  ;;  %v13640_v26 = vld [vmem:[#allocation403_spill] sm:$0xff]  ;;  %v1872_v54 = vpop.permute.xlu1 %1871 }
 0x2e4   :  { %13625 = vst [vmem:[#allocation190_spill] sm:$0xff] %v9762_v45  ;;  %v3455_v48 = vadd.f32 %v13637_v17, %v13636_v22  ;;  %v9782_v38 = vadd.f32 %v3691_v51, %v3435_v11  ;;  %v3456_v31 = vadd.f32 %v13640_v26, %v13639_v6  ;;  %v13641_v18 = vld [vmem:[#allocation48_spill] sm:$0xff]  ;;  %v9788_v7 = vadd.f32 %v3692_v33, %v3436_v37 }
 0x2e5   :  { %v13642_v45 = vld [vmem:[#allocation404_spill] sm:$0xff]  ;;  %v9790_v4 = vadd.f32 %v3693_v57, %v3437_v13  ;;  %v2174_v23 = vsub.f32 %v1884_v10, %v9562_v42  ;;  %v2175_v50 = vsub.f32 %v1884_v10, %v9564_v12  ;;  %v2176_v11 = vsub.f32 %v1884_v10, %v9566_v28 }
 0x2e6   :  { %13638 = vst [vmem:[#allocation324_spill] sm:$0xff] %v9782_v38  ;;  %v3457_v60 = vadd.f32 %v13642_v45, %v13641_v18  ;;  %13643 = vst [vmem:[#allocation191_spill] sm:$0xff] %v9788_v7  ;;  %v2177_v22 = vsub.f32 %v1884_v10, %v9568_v0  ;;  %v2162_v37 = vsub.f32 %v1872_v54, %v9562_v42  ;;  %v13649_v26 = vld [vmem:[#allocation44_spill] sm:$0xff]  ;;  %v13656_v7 = vld [vmem:[#allocation385_spill] sm:$0xff] }
 0x2e7   :  { %13644 = vst [vmem:[#allocation325_spill] sm:$0xff] %v9790_v4  ;;  %v3710_v17 = vmul.f32 %v2174_v23, %v2174_v23  ;;  %v3711_v18 = vmul.f32 %v2175_v50, %v2175_v50  ;;  %v3712_v45 = vmul.f32 %v2176_v11, %v2176_v11  ;;  %v2163_v13 = vsub.f32 %v1872_v54, %v9564_v12  ;;  %v13650_v23 = vld [vmem:[#allocation382_spill] sm:$0xff]  ;;  %v13651_v11 = vld [vmem:[#allocation236_spill] sm:$0xff] }
 0x2e8   :  { %v3713_v49 = vmul.f32 %v2177_v22, %v2177_v22  ;;  %v2164_v33 = vsub.f32 %v1872_v54, %v9566_v28  ;;  %v2165_v10 = vsub.f32 %v1872_v54, %v9568_v0  ;;  %v3442_v50 = vadd.f32 %v13650_v23, %v13649_v26  ;;  %v13652_v22 = vld [vmem:[#allocation383_spill] sm:$0xff]  ;;  %v13657_v23 = vld [vmem:[#allocation52_spill] sm:$0xff] }
 0x2e9   :  { %v9802_v15 = vadd.f32 %v3710_v17, %v3454_v24  ;;  %v9804_v51 = vadd.f32 %v3711_v18, %v3455_v48  ;;  %v9808_v57 = vadd.f32 %v3712_v45, %v3456_v31  ;;  %v3443_v4 = vadd.f32 %v13652_v22, %v13651_v11  ;;  %v13653_v48 = vld [vmem:[#allocation237_spill] sm:$0xff]  ;;  %v13654_v24 = vld [vmem:[#allocation384_spill] sm:$0xff]  ;;  %v13655_v18 = vld [vmem:[#allocation238_spill] sm:$0xff]  ;;  %v1892_v45 = vpop.permute.xlu0 %1891 }
 0x2ea   :  { %v9810_v6 = vadd.f32 %v3713_v49, %v3457_v60  ;;  %v3444_v17 = vadd.f32 %v13654_v24, %v13653_v48  ;;  %v3445_v54 = vadd.f32 %v13656_v7, %v13655_v18  ;;  %v3698_v31 = vmul.f32 %v2162_v37, %v2162_v37  ;;  %v13658_v22 = vld [vmem:[#allocation53_spill] sm:$0xff]  ;;  %v13661_v7 = vld [vmem:[#allocation54_spill] sm:$0xff] }
 0x2eb   :  { %13645 = vst [vmem:[#allocation192_spill] sm:$0xff] %v9802_v15  ;;  %13646 = vst [vmem:[#allocation326_spill] sm:$0xff] %v9804_v51  ;;  %v3699_v60 = vmul.f32 %v2163_v13, %v2163_v13  ;;  %v3700_v49 = vmul.f32 %v2164_v33, %v2164_v33  ;;  %v3701_v26 = vmul.f32 %v2165_v10, %v2165_v10  ;;  %v13659_v51 = vld [vmem:[#allocation409_spill] sm:$0xff]  ;;  %v13662_v24 = vld [vmem:[#allocation410_spill] sm:$0xff] }
 0x2ec   :  { %13647 = vst [vmem:[#allocation177_spill] sm:$0xff] %v9808_v57  ;;  %13648 = vst [vmem:[#allocation319_spill] sm:$0xff] %v9810_v6  ;;  %v3462_v11 = vadd.f32 %v8652_v16, %v13657_v23  ;;  %v3463_v15 = vadd.f32 %v13659_v51, %v13658_v22  ;;  %v9828_v38 = vadd.f32 %v3698_v31, %v3442_v50  ;;  %v13663_v57 = vld [vmem:[#allocation55_spill] sm:$0xff]  ;;  %v1880_v23 = vpop.permute.xlu1 %1879 }
 0x2ed   :  { %v9830_v48 = vadd.f32 %v3699_v60, %v3443_v4  ;;  %v3464_v18 = vadd.f32 %v13662_v24, %v13661_v7  ;;  %v13664_v6 = vld [vmem:[#allocation411_spill] sm:$0xff]  ;;  %v9836_v13 = vadd.f32 %v3700_v49, %v3444_v17  ;;  %v9838_v33 = vadd.f32 %v3701_v26, %v3445_v54 }
 0x2ee   :  { %v3465_v37 = vadd.f32 %v13664_v6, %v13663_v57  ;;  %v2182_v10 = vsub.f32 %v1892_v45, %v9562_v42  ;;  %v2183_v16 = vsub.f32 %v1892_v45, %v9564_v12  ;;  %v2184_v4 = vsub.f32 %v1892_v45, %v9566_v28  ;;  %v13671_v24 = vld [vmem:[#allocation239_spill] sm:$0xff] }
 0x2ef   :  { %13660 = vst [vmem:[#allocation178_spill] sm:$0xff] %v9830_v48  ;;  %13665 = vst [vmem:[#allocation320_spill] sm:$0xff] %v9836_v13  ;;  %v2185_v51 = vsub.f32 %v1892_v45, %v9568_v0  ;;  %v2170_v54 = vsub.f32 %v1880_v23, %v9562_v42  ;;  %v2171_v31 = vsub.f32 %v1880_v23, %v9564_v12  ;;  %v13678_v13 = vld [vmem:[#allocation393_spill] sm:$0xff] }
 0x2f0   :  { %13666 = vst [vmem:[#allocation179_spill] sm:$0xff] %v9838_v33  ;;  %v3718_v57 = vmul.f32 %v2182_v10, %v2182_v10  ;;  %v3719_v6 = vmul.f32 %v2183_v16, %v2183_v16  ;;  %v3720_v50 = vmul.f32 %v2184_v4, %v2184_v4  ;;  %v2172_v26 = vsub.f32 %v1880_v23, %v9566_v28  ;;  %v13672_v10 = vld [vmem:[#allocation390_spill] sm:$0xff]  ;;  %v13673_v4 = vld [vmem:[#allocation49_spill] sm:$0xff] }
 0x2f1   :  { %v3721_v17 = vmul.f32 %v2185_v51, %v2185_v51  ;;  %v2173_v45 = vsub.f32 %v1880_v23, %v9568_v0  ;;  %v3450_v16 = vadd.f32 %v13672_v10, %v13671_v24  ;;  %v13674_v51 = vld [vmem:[#allocation391_spill] sm:$0xff]  ;;  %v13679_v10 = vld [vmem:[#allocation57_spill] sm:$0xff] }
 0x2f2   :  { %v9850_v60 = vadd.f32 %v3718_v57, %v3462_v11  ;;  %v9852_v49 = vadd.f32 %v3719_v6, %v3463_v15  ;;  %v9856_v22 = vadd.f32 %v3720_v50, %v3464_v18  ;;  %v3451_v33 = vadd.f32 %v13674_v51, %v13673_v4  ;;  %v13675_v15 = vld [vmem:[#allocation50_spill] sm:$0xff]  ;;  %v13676_v11 = vld [vmem:[#allocation392_spill] sm:$0xff]  ;;  %v13677_v6 = vld [vmem:[#allocation51_spill] sm:$0xff]  ;;  %v1900_v50 = vpop.permute.xlu0 %1899 }
 0x2f3   :  { %v9858_v7 = vadd.f32 %v3721_v17, %v3465_v37  ;;  %v3452_v57 = vadd.f32 %v13676_v11, %v13675_v15  ;;  %v3453_v23 = vadd.f32 %v13678_v13, %v13677_v6  ;;  %v3706_v18 = vmul.f32 %v2170_v54, %v2170_v54  ;;  %v13680_v51 = vld [vmem:[#allocation58_spill] sm:$0xff]  ;;  %v13684_v13 = vld [vmem:[#allocation59_spill] sm:$0xff]  ;;  %v13685_v11 = vld [vmem:[#allocation417_spill] sm:$0xff] }
 0x2f4   :  { %13667 = vst [vmem:[#allocation321_spill] sm:$0xff] %v9850_v60  ;;  %13668 = vst [vmem:[#allocation180_spill] sm:$0xff] %v9852_v49  ;;  %v3707_v37 = vmul.f32 %v2171_v31, %v2171_v31  ;;  %v3708_v17 = vmul.f32 %v2172_v26, %v2172_v26  ;;  %v3709_v24 = vmul.f32 %v2173_v45, %v2173_v45  ;;  %v13681_v49 = vld [vmem:[#allocation416_spill] sm:$0xff] }
 0x2f5   :  { %13669 = vst [vmem:[#allocation322_spill] sm:$0xff] %v9856_v22  ;;  %13670 = vst [vmem:[#allocation197_spill] sm:$0xff] %v9858_v7  ;;  %v3470_v4 = vadd.f32 %v8688_v40, %v13679_v10  ;;  %v3471_v60 = vadd.f32 %v13681_v49, %v13680_v51  ;;  %v9876_v48 = vadd.f32 %v3706_v18, %v3450_v16  ;;  %v13686_v22 = vld [vmem:[#allocation60_spill] sm:$0xff]  ;;  %v13687_v7 = vld [vmem:[#allocation418_spill] sm:$0xff]  ;;  %v1888_v10 = vpop.permute.xlu1 %1887 }
 0x2f6   :  { %v9878_v15 = vadd.f32 %v3707_v37, %v3451_v33  ;;  %v3472_v6 = vadd.f32 %v13685_v11, %v13684_v13  ;;  %v3473_v54 = vadd.f32 %v13687_v7, %v13686_v22  ;;  %v9884_v31 = vadd.f32 %v3708_v17, %v3452_v57  ;;  %v13694_v11 = vld [vmem:[#allocation56_spill] sm:$0xff] }
 0x2f7   :  { %13682 = vst [vmem:[#allocation198_spill] sm:$0xff] %v9876_v48  ;;  %v9886_v26 = vadd.f32 %v3709_v24, %v3453_v23  ;;  %v2190_v45 = vsub.f32 %v1900_v50, %v9562_v42  ;;  %v2191_v40 = vsub.f32 %v1900_v50, %v9564_v12  ;;  %v2192_v33 = vsub.f32 %v1900_v50, %v9566_v28 }
 0x2f8   :  { %13683 = vst [vmem:[#allocation331_spill] sm:$0xff] %v9878_v15  ;;  %13688 = vst [vmem:[#allocation199_spill] sm:$0xff] %v9884_v31  ;;  %v2193_v49 = vsub.f32 %v1900_v50, %v9568_v0  ;;  %v2178_v23 = vsub.f32 %v1888_v10, %v9562_v42  ;;  %v2179_v18 = vsub.f32 %v1888_v10, %v9564_v12  ;;  %v13701_v31 = vld [vmem:[#allocation400_spill] sm:$0xff] }
 0x2f9   :  { %13689 = vst [vmem:[#allocation332_spill] sm:$0xff] %v9886_v26  ;;  %v3726_v22 = vmul.f32 %v2190_v45, %v2190_v45  ;;  %v3727_v7 = vmul.f32 %v2191_v40, %v2191_v40  ;;  %v3728_v16 = vmul.f32 %v2192_v33, %v2192_v33  ;;  %v2180_v24 = vsub.f32 %v1888_v10, %v9566_v28  ;;  %v13695_v45 = vld [vmem:[#allocation397_spill] sm:$0xff]  ;;  %v13696_v33 = vld [vmem:[#allocation240_spill] sm:$0xff] }
 0x2fa   :  { %v3729_v57 = vmul.f32 %v2193_v49, %v2193_v49  ;;  %v2181_v50 = vsub.f32 %v1888_v10, %v9568_v0  ;;  %v3458_v40 = vadd.f32 %v13695_v45, %v13694_v11  ;;  %v13697_v49 = vld [vmem:[#allocation398_spill] sm:$0xff]  ;;  %v13702_v45 = vld [vmem:[#allocation64_spill] sm:$0xff] }
 0x2fb   :  { %v9898_v37 = vadd.f32 %v3726_v22, %v3470_v4  ;;  %v9900_v17 = vadd.f32 %v3727_v7, %v3471_v60  ;;  %v9904_v51 = vadd.f32 %v3728_v16, %v3472_v6  ;;  %v3459_v26 = vadd.f32 %v13697_v49, %v13696_v33  ;;  %v13698_v60 = vld [vmem:[#allocation241_spill] sm:$0xff]  ;;  %v13699_v4 = vld [vmem:[#allocation399_spill] sm:$0xff]  ;;  %v13700_v7 = vld [vmem:[#allocation242_spill] sm:$0xff]  ;;  %v1908_v16 = vpop.permute.xlu0 %1907 }
 0x2fc   :  { %v9906_v13 = vadd.f32 %v3729_v57, %v3473_v54  ;;  %v3460_v22 = vadd.f32 %v13699_v4, %v13698_v60  ;;  %v3461_v10 = vadd.f32 %v13701_v31, %v13700_v7  ;;  %v3714_v6 = vmul.f32 %v2178_v23, %v2178_v23  ;;  %v13703_v33 = vld [vmem:[#allocation423_spill] sm:$0xff]  ;;  %v13707_v31 = vld [vmem:[#allocation66_spill] sm:$0xff]  ;;  %v13708_v4 = vld [vmem:[#allocation425_spill] sm:$0xff] }
 0x2fd   :  { %13690 = vst [vmem:[#allocation200_spill] sm:$0xff] %v9898_v37  ;;  %13691 = vst [vmem:[#allocation333_spill] sm:$0xff] %v9900_v17  ;;  %v3715_v54 = vmul.f32 %v2179_v18, %v2179_v18  ;;  %v3716_v57 = vmul.f32 %v2180_v24, %v2180_v24  ;;  %v3717_v11 = vmul.f32 %v2181_v50, %v2181_v50  ;;  %v13704_v37 = vld [vmem:[#allocation65_spill] sm:$0xff]  ;;  %v13705_v17 = vld [vmem:[#allocation424_spill] sm:$0xff] }
 0x2fe   :  { %13692 = vst [vmem:[#allocation185_spill] sm:$0xff] %v9904_v51  ;;  %13693 = vst [vmem:[#allocation327_spill] sm:$0xff] %v9906_v13  ;;  %v3478_v49 = vadd.f32 %v13703_v33, %v13702_v45  ;;  %v3479_v15 = vadd.f32 %v13705_v17, %v13704_v37  ;;  %v9924_v48 = vadd.f32 %v3714_v6, %v3458_v40  ;;  %v13709_v51 = vld [vmem:[#allocation67_spill] sm:$0xff]  ;;  %v13710_v13 = vld [vmem:[#allocation426_spill] sm:$0xff]  ;;  %v1896_v33 = vpop.permute.xlu1 %1895 }
 0x2ff   :  { %v9926_v60 = vadd.f32 %v3715_v54, %v3459_v26  ;;  %v3480_v7 = vadd.f32 %v13708_v4, %v13707_v31  ;;  %v3481_v23 = vadd.f32 %v13710_v13, %v13709_v51  ;;  %v9932_v18 = vadd.f32 %v3716_v57, %v3460_v22  ;;  %v13717_v4 = vld [vmem:[#allocation243_spill] sm:$0xff] }
 0x300   :  { %v9934_v24 = vadd.f32 %v3717_v11, %v3461_v10  ;;  %v2198_v50 = vsub.f32 %v1908_v16, %v9562_v42  ;;  %v2199_v45 = vsub.f32 %v1908_v16, %v9564_v12  ;;  %v2200_v26 = vsub.f32 %v1908_v16, %v9566_v28 }
 0x301   :  { %13706 = vst [vmem:[#allocation186_spill] sm:$0xff] %v9926_v60  ;;  %13711 = vst [vmem:[#allocation328_spill] sm:$0xff] %v9932_v18  ;;  %v2201_v37 = vsub.f32 %v1908_v16, %v9568_v0  ;;  %v2186_v22 = vsub.f32 %v1896_v33, %v9562_v42  ;;  %v2187_v10 = vsub.f32 %v1896_v33, %v9564_v12  ;;  %v13724_v18 = vld [vmem:[#allocation408_spill] sm:$0xff] }
 0x302   :  { %13712 = vst [vmem:[#allocation187_spill] sm:$0xff] %v9934_v24  ;;  %v3734_v17 = vmul.f32 %v2198_v50, %v2198_v50  ;;  %v3735_v51 = vmul.f32 %v2199_v45, %v2199_v45  ;;  %v3736_v13 = vmul.f32 %v2200_v26, %v2200_v26  ;;  %v2188_v57 = vsub.f32 %v1896_v33, %v9566_v28  ;;  %v13718_v50 = vld [vmem:[#allocation405_spill] sm:$0xff] }
 0x303   :  { %v3737_v40 = vmul.f32 %v2201_v37, %v2201_v37  ;;  %v2189_v16 = vsub.f32 %v1896_v33, %v9568_v0  ;;  %v3466_v45 = vadd.f32 %v13718_v50, %v13717_v4  ;;  %v13719_v26 = vld [vmem:[#allocation61_spill] sm:$0xff]  ;;  %v13720_v37 = vld [vmem:[#allocation406_spill] sm:$0xff] }
 0x304   :  { %v9946_v6 = vadd.f32 %v3734_v17, %v3478_v49  ;;  %v9948_v54 = vadd.f32 %v3735_v51, %v3479_v15  ;;  %v9952_v11 = vadd.f32 %v3736_v13, %v3480_v7  ;;  %v3467_v24 = vadd.f32 %v13720_v37, %v13719_v26  ;;  %v13721_v15 = vld [vmem:[#allocation62_spill] sm:$0xff]  ;;  %v13722_v49 = vld [vmem:[#allocation407_spill] sm:$0xff]  ;;  %v1916_v13 = vpop.permute.xlu0 %1915  ;;  %v13725_v50 = vld [vmem:[#allocation69_spill] sm:$0xff] }
 0x305   :  { %v9954_v31 = vadd.f32 %v3737_v40, %v3481_v23  ;;  %v3468_v17 = vadd.f32 %v13722_v49, %v13721_v15  ;;  %v13723_v51 = vld [vmem:[#allocation63_spill] sm:$0xff]  ;;  %v3722_v7 = vmul.f32 %v2186_v22, %v2186_v22  ;;  %v3723_v23 = vmul.f32 %v2187_v10, %v2187_v10  ;;  %v13726_v37 = vld [vmem:[#allocation70_spill] sm:$0xff]  ;;  %v13731_v49 = vld [vmem:[#allocation432_spill] sm:$0xff] }
 0x306   :  { %13713 = vst [vmem:[#allocation329_spill] sm:$0xff] %v9946_v6  ;;  %13714 = vst [vmem:[#allocation188_spill] sm:$0xff] %v9948_v54  ;;  %v3469_v33 = vadd.f32 %v13724_v18, %v13723_v51  ;;  %v3724_v40 = vmul.f32 %v2188_v57, %v2188_v57  ;;  %v3725_v4 = vmul.f32 %v2189_v16, %v2189_v16  ;;  %v13727_v54 = vld [vmem:[#allocation431_spill] sm:$0xff] }
 0x307   :  { %13715 = vst [vmem:[#allocation330_spill] sm:$0xff] %v9952_v11  ;;  %13716 = vst [vmem:[#allocation205_spill] sm:$0xff] %v9954_v31  ;;  %v3486_v26 = vadd.f32 %v8752_v20, %v13725_v50  ;;  %v3487_v6 = vadd.f32 %v13727_v54, %v13726_v37  ;;  %v9972_v60 = vadd.f32 %v3722_v7, %v3466_v45  ;;  %v13730_v18 = vld [vmem:[#allocation71_spill] sm:$0xff]  ;;  %v13732_v11 = vld [vmem:[#allocation72_spill] sm:$0xff]  ;;  %v1904_v50 = vpop.permute.xlu1 %1903 }
 0x308   :  { %v9974_v15 = vadd.f32 %v3723_v23, %v3467_v24  ;;  %v3488_v51 = vadd.f32 %v13731_v49, %v13730_v18  ;;  %v13733_v31 = vld [vmem:[#allocation433_spill] sm:$0xff]  ;;  %v9980_v10 = vadd.f32 %v3724_v40, %v3468_v17  ;;  %v9982_v57 = vadd.f32 %v3725_v4, %v3469_v33  ;;  %v13740_v49 = vld [vmem:[#allocation68_spill] sm:$0xff] }
 0x309   :  { %13728 = vst [vmem:[#allocation206_spill] sm:$0xff] %v9972_v60  ;;  %v3489_v22 = vadd.f32 %v13733_v31, %v13732_v11  ;;  %v2206_v16 = vsub.f32 %v1916_v13, %v9562_v42  ;;  %v2207_v20 = vsub.f32 %v1916_v13, %v9564_v12  ;;  %v2208_v24 = vsub.f32 %v1916_v13, %v9566_v28 }
 0x30a   :  { %13729 = vst [vmem:[#allocation338_spill] sm:$0xff] %v9974_v15  ;;  %13734 = vst [vmem:[#allocation207_spill] sm:$0xff] %v9980_v10  ;;  %v2209_v54 = vsub.f32 %v1916_v13, %v9568_v0  ;;  %v2194_v33 = vsub.f32 %v1904_v50, %v9562_v42  ;;  %v2195_v7 = vsub.f32 %v1904_v50, %v9564_v12  ;;  %v13747_v10 = vld [vmem:[#allocation415_spill] sm:$0xff] }
 0x30b   :  { %13735 = vst [vmem:[#allocation339_spill] sm:$0xff] %v9982_v57  ;;  %v3742_v11 = vmul.f32 %v2206_v16, %v2206_v16  ;;  %v3743_v31 = vmul.f32 %v2207_v20, %v2207_v20  ;;  %v3744_v45 = vmul.f32 %v2208_v24, %v2208_v24  ;;  %v2196_v4 = vsub.f32 %v1904_v50, %v9566_v28  ;;  %v13741_v16 = vld [vmem:[#allocation412_spill] sm:$0xff] }
 0x30c   :  { %v3745_v17 = vmul.f32 %v2209_v54, %v2209_v54  ;;  %v2197_v13 = vsub.f32 %v1904_v50, %v9568_v0  ;;  %v3474_v20 = vadd.f32 %v13741_v16, %v13740_v49  ;;  %v13742_v24 = vld [vmem:[#allocation244_spill] sm:$0xff]  ;;  %v13743_v54 = vld [vmem:[#allocation413_spill] sm:$0xff] }
 0x30d   :  { %v9994_v23 = vadd.f32 %v3742_v11, %v3486_v26  ;;  %v9996_v40 = vadd.f32 %v3743_v31, %v3487_v6  ;;  %v10000_v37 = vadd.f32 %v3744_v45, %v3488_v51  ;;  %v3475_v57 = vadd.f32 %v13743_v54, %v13742_v24  ;;  %v13744_v6 = vld [vmem:[#allocation245_spill] sm:$0xff]  ;;  %v13745_v26 = vld [vmem:[#allocation414_spill] sm:$0xff]  ;;  %v1924_v45 = vpop.permute.xlu0 %1923  ;;  %v13748_v16 = vld [vmem:[#allocation76_spill] sm:$0xff] }
 0x30e   :  { %v10002_v18 = vadd.f32 %v3745_v17, %v3489_v22  ;;  %v3476_v11 = vadd.f32 %v13745_v26, %v13744_v6  ;;  %v13746_v31 = vld [vmem:[#allocation246_spill] sm:$0xff]  ;;  %v3730_v51 = vmul.f32 %v2194_v33, %v2194_v33  ;;  %v3731_v22 = vmul.f32 %v2195_v7, %v2195_v7  ;;  %v13755_v26 = vld [vmem:[#allocation440_spill] sm:$0xff] }
 0x30f   :  { %13736 = vst [vmem:[#allocation208_spill] sm:$0xff] %v9994_v23  ;;  %13737 = vst [vmem:[#allocation340_spill] sm:$0xff] %v9996_v40  ;;  %v3477_v50 = vadd.f32 %v13747_v10, %v13746_v31  ;;  %v3732_v17 = vmul.f32 %v2196_v4, %v2196_v4  ;;  %v3733_v49 = vmul.f32 %v2197_v13, %v2197_v13  ;;  %v13749_v24 = vld [vmem:[#allocation438_spill] sm:$0xff]  ;;  %v13750_v23 = vld [vmem:[#allocation77_spill] sm:$0xff] }
 0x310   :  { %13738 = vst [vmem:[#allocation193_spill] sm:$0xff] %v10000_v37  ;;  %13739 = vst [vmem:[#allocation334_spill] sm:$0xff] %v10002_v18  ;;  %v3494_v54 = vadd.f32 %v13749_v24, %v13748_v16  ;;  %v13751_v40 = vld [vmem:[#allocation439_spill] sm:$0xff]  ;;  %v10020_v60 = vadd.f32 %v3730_v51, %v3474_v20  ;;  %v10022_v6 = vadd.f32 %v3731_v22, %v3475_v57  ;;  %v13754_v10 = vld [vmem:[#allocation78_spill] sm:$0xff]  ;;  %v1912_v24 = vpop.permute.xlu1 %1911 }
 0x311   :  { %v3495_v15 = vadd.f32 %v13751_v40, %v13750_v23  ;;  %v3496_v31 = vadd.f32 %v13755_v26, %v13754_v10  ;;  %v13756_v37 = vld [vmem:[#allocation79_spill] sm:$0xff]  ;;  %v13757_v18 = vld [vmem:[#allocation441_spill] sm:$0xff]  ;;  %v10028_v7 = vadd.f32 %v3732_v17, %v3476_v11  ;;  %v10030_v4 = vadd.f32 %v3733_v49, %v3477_v50 }
 0x312   :  { %13752 = vst [vmem:[#allocation194_spill] sm:$0xff] %v10020_v60  ;;  %13753 = vst [vmem:[#allocation335_spill] sm:$0xff] %v10022_v6  ;;  %v3497_v33 = vadd.f32 %v13757_v18, %v13756_v37  ;;  %v2214_v13 = vsub.f32 %v1924_v45, %v9562_v42  ;;  %v2215_v16 = vsub.f32 %v1924_v45, %v9564_v12  ;;  %v13764_v26 = vld [vmem:[#allocation247_spill] sm:$0xff] }
 0x313   :  { %13758 = vst [vmem:[#allocation195_spill] sm:$0xff] %v10028_v7  ;;  %13759 = vst [vmem:[#allocation336_spill] sm:$0xff] %v10030_v4  ;;  %v2216_v57 = vsub.f32 %v1924_v45, %v9566_v28  ;;  %v2217_v23 = vsub.f32 %v1924_v45, %v9568_v0  ;;  %v2202_v11 = vsub.f32 %v1912_v24, %v9562_v42  ;;  %v13771_v7 = vld [vmem:[#allocation422_spill] sm:$0xff] }
 0x314   :  { %v3750_v40 = vmul.f32 %v2214_v13, %v2214_v13  ;;  %v3751_v37 = vmul.f32 %v2215_v16, %v2215_v16  ;;  %v2203_v50 = vsub.f32 %v1912_v24, %v9564_v12  ;;  %v2204_v17 = vsub.f32 %v1912_v24, %v9566_v28  ;;  %v13765_v13 = vld [vmem:[#allocation419_spill] sm:$0xff] }
 0x315   :  { %v3752_v18 = vmul.f32 %v2216_v57, %v2216_v57  ;;  %v3753_v20 = vmul.f32 %v2217_v23, %v2217_v23  ;;  %v2205_v45 = vsub.f32 %v1912_v24, %v9568_v0  ;;  %v3482_v16 = vadd.f32 %v13765_v13, %v13764_v26  ;;  %v13766_v57 = vld [vmem:[#allocation73_spill] sm:$0xff]  ;;  %v13767_v23 = vld [vmem:[#allocation420_spill] sm:$0xff] }
 0x316   :  { %v10042_v51 = vadd.f32 %v3750_v40, %v3494_v54  ;;  %v10044_v22 = vadd.f32 %v3751_v37, %v3495_v15  ;;  %v3483_v4 = vadd.f32 %v13767_v23, %v13766_v57  ;;  %v13768_v15 = vld [vmem:[#allocation74_spill] sm:$0xff]  ;;  %v13769_v54 = vld [vmem:[#allocation421_spill] sm:$0xff]  ;;  %v13770_v37 = vld [vmem:[#allocation75_spill] sm:$0xff] }
 0x317   :  { %v10048_v49 = vadd.f32 %v3752_v18, %v3496_v31  ;;  %v10050_v10 = vadd.f32 %v3753_v20, %v3497_v33  ;;  %v3484_v40 = vadd.f32 %v13769_v54, %v13768_v15  ;;  %v3485_v24 = vadd.f32 %v13771_v7, %v13770_v37  ;;  %v1932_v18 = vpop.permute.xlu0 %1931  ;;  %v13772_v13 = vld [vmem:[#allocation81_spill] sm:$0xff]  ;;  %v13773_v57 = vld [vmem:[#allocation446_spill] sm:$0xff]  ;;  %v13778_v7 = vld [vmem:[#allocation83_spill] sm:$0xff] }
 0x318   :  { %13760 = vst [vmem:[#allocation196_spill] sm:$0xff] %v10042_v51  ;;  %13761 = vst [vmem:[#allocation337_spill] sm:$0xff] %v10044_v22  ;;  %v3738_v31 = vmul.f32 %v2202_v11, %v2202_v11  ;;  %v3739_v33 = vmul.f32 %v2203_v50, %v2203_v50  ;;  %v3740_v20 = vmul.f32 %v2204_v17, %v2204_v17  ;;  %v13774_v51 = vld [vmem:[#allocation82_spill] sm:$0xff]  ;;  %v13775_v22 = vld [vmem:[#allocation447_spill] sm:$0xff] }
 0x319   :  { %13762 = vst [vmem:[#allocation213_spill] sm:$0xff] %v10048_v49  ;;  %13763 = vst [vmem:[#allocation345_spill] sm:$0xff] %v10050_v10  ;;  %v3741_v26 = vmul.f32 %v2205_v45, %v2205_v45  ;;  %v3502_v23 = vadd.f32 %v13773_v57, %v13772_v13  ;;  %v3503_v6 = vadd.f32 %v13775_v22, %v13774_v51  ;;  %v13779_v54 = vld [vmem:[#allocation448_spill] sm:$0xff]  ;;  %v13781_v10 = vld [vmem:[#allocation449_spill] sm:$0xff]  ;;  %v1920_v57 = vpop.permute.xlu1 %1919 }
 0x31a   :  { %v10068_v60 = vadd.f32 %v3738_v31, %v3482_v16  ;;  %v10070_v15 = vadd.f32 %v3739_v33, %v3483_v4  ;;  %v3504_v37 = vadd.f32 %v13779_v54, %v13778_v7  ;;  %v13780_v49 = vld [vmem:[#allocation84_spill] sm:$0xff]  ;;  %v10076_v50 = vadd.f32 %v3740_v20, %v3484_v40 }
 0x31b   :  { %v3505_v11 = vadd.f32 %v13781_v10, %v13780_v49  ;;  %v10078_v17 = vadd.f32 %v3741_v26, %v3485_v24  ;;  %v2222_v45 = vsub.f32 %v1932_v18, %v9562_v42  ;;  %v2223_v13 = vsub.f32 %v1932_v18, %v9564_v12  ;;  %v13788_v54 = vld [vmem:[#allocation80_spill] sm:$0xff] }
 0x31c   :  { %13776 = vst [vmem:[#allocation214_spill] sm:$0xff] %v10068_v60  ;;  %13777 = vst [vmem:[#allocation346_spill] sm:$0xff] %v10070_v15  ;;  %v2224_v4 = vsub.f32 %v1932_v18, %v9566_v28  ;;  %v2225_v51 = vsub.f32 %v1932_v18, %v9568_v0  ;;  %v2210_v40 = vsub.f32 %v1920_v57, %v9562_v42 }
 0x31d   :  { %13782 = vst [vmem:[#allocation215_spill] sm:$0xff] %v10076_v50  ;;  %13783 = vst [vmem:[#allocation347_spill] sm:$0xff] %v10078_v17  ;;  %v3758_v22 = vmul.f32 %v2222_v45, %v2222_v45  ;;  %v3759_v49 = vmul.f32 %v2223_v13, %v2223_v13  ;;  %v2211_v24 = vsub.f32 %v1920_v57, %v9564_v12  ;;  %v13789_v45 = vld [vmem:[#allocation427_spill] sm:$0xff]  ;;  %v13795_v50 = vld [vmem:[#allocation430_spill] sm:$0xff] }
 0x31e   :  { %v3760_v10 = vmul.f32 %v2224_v4, %v2224_v4  ;;  %v3761_v16 = vmul.f32 %v2225_v51, %v2225_v51  ;;  %v2212_v20 = vsub.f32 %v1920_v57, %v9566_v28  ;;  %v2213_v18 = vsub.f32 %v1920_v57, %v9568_v0  ;;  %v13790_v4 = vld [vmem:[#allocation248_spill] sm:$0xff] }
 0x31f   :  { %v10090_v31 = vadd.f32 %v3758_v22, %v3502_v23  ;;  %v10092_v33 = vadd.f32 %v3759_v49, %v3503_v6  ;;  %v3490_v13 = vadd.f32 %v13789_v45, %v13788_v54  ;;  %v13791_v51 = vld [vmem:[#allocation428_spill] sm:$0xff]  ;;  %v13792_v6 = vld [vmem:[#allocation249_spill] sm:$0xff]  ;;  %v13794_v49 = vld [vmem:[#allocation250_spill] sm:$0xff] }
 0x320   :  { %v10096_v26 = vadd.f32 %v3760_v10, %v3504_v37  ;;  %v10098_v7 = vadd.f32 %v3761_v16, %v3505_v11  ;;  %v3491_v17 = vadd.f32 %v13791_v51, %v13790_v4  ;;  %v13793_v23 = vld [vmem:[#allocation429_spill] sm:$0xff]  ;;  %v3493_v57 = vadd.f32 %v13795_v50, %v13794_v49  ;;  %v1940_v10 = vpop.permute.xlu0 %1939  ;;  %v13796_v45 = vld [vmem:[#allocation88_spill] sm:$0xff]  ;;  %v13797_v4 = vld [vmem:[#allocation454_spill] sm:$0xff] }
 0x321   :  { %13784 = vst [vmem:[#allocation216_spill] sm:$0xff] %v10090_v31  ;;  %13785 = vst [vmem:[#allocation348_spill] sm:$0xff] %v10092_v33  ;;  %v3492_v22 = vadd.f32 %v13793_v23, %v13792_v6  ;;  %v3746_v37 = vmul.f32 %v2210_v40, %v2210_v40  ;;  %v3747_v11 = vmul.f32 %v2211_v24, %v2211_v24  ;;  %v13798_v31 = vld [vmem:[#allocation89_spill] sm:$0xff]  ;;  %v13799_v33 = vld [vmem:[#allocation455_spill] sm:$0xff] }
 0x322   :  { %13786 = vst [vmem:[#allocation201_spill] sm:$0xff] %v10096_v26  ;;  %13787 = vst [vmem:[#allocation341_spill] sm:$0xff] %v10098_v7  ;;  %v3748_v16 = vmul.f32 %v2212_v20, %v2212_v20  ;;  %v3749_v54 = vmul.f32 %v2213_v18, %v2213_v18  ;;  %v3510_v51 = vadd.f32 %v13797_v4, %v13796_v45  ;;  %v13800_v50 = vld [vmem:[#allocation90_spill] sm:$0xff]  ;;  %v13801_v23 = vld [vmem:[#allocation456_spill] sm:$0xff]  ;;  %v1928_v4 = vpop.permute.xlu1 %1927 }
 0x323   :  { %v3511_v15 = vadd.f32 %v13799_v33, %v13798_v31  ;;  %v10116_v60 = vadd.f32 %v3746_v37, %v3490_v13  ;;  %v10118_v6 = vadd.f32 %v3747_v11, %v3491_v17  ;;  %v3512_v49 = vadd.f32 %v13801_v23, %v13800_v50  ;;  %v13802_v26 = vld [vmem:[#allocation91_spill] sm:$0xff]  ;;  %v13803_v7 = vld [vmem:[#allocation457_spill] sm:$0xff] }
 0x324   :  { %v3513_v40 = vadd.f32 %v13803_v7, %v13802_v26  ;;  %v10124_v24 = vadd.f32 %v3748_v16, %v3492_v22  ;;  %v10126_v20 = vadd.f32 %v3749_v54, %v3493_v57  ;;  %v2230_v18 = vsub.f32 %v1940_v10, %v9562_v42  ;;  %v13810_v23 = vld [vmem:[#allocation251_spill] sm:$0xff] }
 0x325   :  { %v2231_v45 = vsub.f32 %v1940_v10, %v9564_v12  ;;  %v2232_v17 = vsub.f32 %v1940_v10, %v9566_v28  ;;  %v2233_v31 = vsub.f32 %v1940_v10, %v9568_v0  ;;  %v2218_v22 = vsub.f32 %v1928_v4, %v9562_v42 }
 0x326   :  { %13804 = vst [vmem:[#allocation202_spill] sm:$0xff] %v10124_v24  ;;  %13805 = vst [vmem:[#allocation342_spill] sm:$0xff] %v10126_v20  ;;  %v3766_v33 = vmul.f32 %v2230_v18, %v2230_v18  ;;  %v2219_v57 = vsub.f32 %v1928_v4, %v9564_v12  ;;  %v2220_v16 = vsub.f32 %v1928_v4, %v9566_v28  ;;  %v13811_v18 = vld [vmem:[#allocation434_spill] sm:$0xff]  ;;  %v13817_v24 = vld [vmem:[#allocation437_spill] sm:$0xff] }
 0x327   :  { %v3767_v26 = vmul.f32 %v2231_v45, %v2231_v45  ;;  %v3768_v7 = vmul.f32 %v2232_v17, %v2232_v17  ;;  %v3769_v13 = vmul.f32 %v2233_v31, %v2233_v31  ;;  %v2221_v10 = vsub.f32 %v1928_v4, %v9568_v0  ;;  %v13812_v17 = vld [vmem:[#allocation85_spill] sm:$0xff]  ;;  %v13813_v31 = vld [vmem:[#allocation435_spill] sm:$0xff] }
 0x328   :  { %v10138_v37 = vadd.f32 %v3766_v33, %v3510_v51  ;;  %v3498_v45 = vadd.f32 %v13811_v18, %v13810_v23  ;;  %v3499_v20 = vadd.f32 %v13813_v31, %v13812_v17  ;;  %v13815_v51 = vld [vmem:[#allocation436_spill] sm:$0xff]  ;;  %v13818_v18 = vld [vmem:[#allocation93_spill] sm:$0xff]  ;;  %v13819_v31 = vld [vmem:[#allocation94_spill] sm:$0xff] }
 0x329   :  { %v10140_v11 = vadd.f32 %v3767_v26, %v3511_v15  ;;  %v10144_v54 = vadd.f32 %v3768_v7, %v3512_v49  ;;  %v10146_v50 = vadd.f32 %v3769_v13, %v3513_v40  ;;  %v13814_v15 = vld [vmem:[#allocation86_spill] sm:$0xff]  ;;  %v13816_v26 = vld [vmem:[#allocation87_spill] sm:$0xff]  ;;  %v3754_v49 = vmul.f32 %v2218_v22, %v2218_v22  ;;  %v1948_v7 = vpop.permute.xlu0 %1947 }
 0x32a   :  { %13806 = vst [vmem:[#allocation203_spill] sm:$0xff] %v10138_v37  ;;  %v3500_v33 = vadd.f32 %v13815_v51, %v13814_v15  ;;  %v3501_v4 = vadd.f32 %v13817_v24, %v13816_v26  ;;  %v3755_v40 = vmul.f32 %v2219_v57, %v2219_v57  ;;  %v3756_v13 = vmul.f32 %v2220_v16, %v2220_v16  ;;  %v13820_v24 = vld [vmem:[#allocation95_spill] sm:$0xff]  ;;  %v13821_v26 = vld [vmem:[#allocation96_spill] sm:$0xff] }
 0x32b   :  { %13807 = vst [vmem:[#allocation343_spill] sm:$0xff] %v10140_v11  ;;  %13808 = vst [vmem:[#allocation204_spill] sm:$0xff] %v10144_v54  ;;  %v3757_v23 = vmul.f32 %v2221_v10, %v2221_v10  ;;  %v3518_v17 = vadd.f32 %v8860_v39, %v13818_v18  ;;  %v3519_v11 = vadd.f32 %v8862_v25, %v13819_v31  ;;  %v1936_v18 = vpop.permute.xlu1 %1935 }
 0x32c   :  { %13809 = vst [vmem:[#allocation344_spill] sm:$0xff] %v10146_v50  ;;  %v10164_v37 = vadd.f32 %v3754_v49, %v3498_v45  ;;  %v10166_v15 = vadd.f32 %v3755_v40, %v3499_v20  ;;  %v3520_v51 = vadd.f32 %v8864_v21, %v13820_v24  ;;  %v13822_v50 = vld [vmem:[#allocation462_spill] sm:$0xff]  ;;  %v10172_v57 = vadd.f32 %v3756_v13, %v3500_v33 }
 0x32d   :  { %v3521_v22 = vadd.f32 %v13822_v50, %v13821_v26  ;;  %v10174_v16 = vadd.f32 %v3757_v23, %v3501_v4  ;;  %v2238_v10 = vsub.f32 %v1948_v7, %v9562_v42  ;;  %v2239_v39 = vsub.f32 %v1948_v7, %v9564_v12  ;;  %v13829_v26 = vld [vmem:[#allocation92_spill] sm:$0xff] }
 0x32e   :  { %13823 = vst [vmem:[#allocation221_spill] sm:$0xff] %v10172_v57  ;;  %v2240_v25 = vsub.f32 %v1948_v7, %v9566_v28  ;;  %v2241_v21 = vsub.f32 %v1948_v7, %v9568_v0  ;;  %v2226_v4 = vsub.f32 %v1936_v18, %v9562_v42  ;;  %v2227_v49 = vsub.f32 %v1936_v18, %v9564_v12 }
 0x32f   :  { %13824 = vst [vmem:[#allocation222_spill] sm:$0xff] %v10174_v16  ;;  %v3774_v20 = vmul.f32 %v2238_v10, %v2238_v10  ;;  %v3775_v50 = vmul.f32 %v2239_v39, %v2239_v39  ;;  %v2228_v23 = vsub.f32 %v1936_v18, %v9566_v28  ;;  %v2229_v7 = vsub.f32 %v1936_v18, %v9568_v0  ;;  %v13830_v10 = vld [vmem:[#allocation442_spill] sm:$0xff]  ;;  %v13836_v16 = vld [vmem:[#allocation445_spill] sm:$0xff] }
 0x330   :  { %v3776_v45 = vmul.f32 %v2240_v25, %v2240_v25  ;;  %v3777_v33 = vmul.f32 %v2241_v21, %v2241_v21  ;;  %v3506_v39 = vadd.f32 %v13830_v10, %v13829_v26  ;;  %v13831_v25 = vld [vmem:[#allocation252_spill] sm:$0xff]  ;;  %v13832_v21 = vld [vmem:[#allocation443_spill] sm:$0xff] }
 0x331   :  { %v10186_v40 = vadd.f32 %v3774_v20, %v3518_v17  ;;  %v10188_v13 = vadd.f32 %v3775_v50, %v3519_v11  ;;  %v3507_v54 = vadd.f32 %v13832_v21, %v13831_v25  ;;  %v13833_v11 = vld [vmem:[#allocation253_spill] sm:$0xff]  ;;  %v13834_v17 = vld [vmem:[#allocation444_spill] sm:$0xff]  ;;  %v13835_v50 = vld [vmem:[#allocation254_spill] sm:$0xff]  ;;  %v3765_v26 = vmul.f32 %v2229_v7, %v2229_v7 }
 0x332   :  { %v10192_v31 = vadd.f32 %v3776_v45, %v3520_v51  ;;  %v10194_v24 = vadd.f32 %v3777_v33, %v3521_v22  ;;  %v3508_v20 = vadd.f32 %v13834_v17, %v13833_v11  ;;  %v3509_v18 = vadd.f32 %v13836_v16, %v13835_v50  ;;  %v1956_v45 = vpop.permute.xlu0 %1955  ;;  %v13837_v10 = vld [vmem:[#allocation100_spill] sm:$0xff]  ;;  %v13838_v21 = vld [vmem:[#allocation101_spill] sm:$0xff]  ;;  %v13840_v16 = vld [vmem:[#allocation102_spill] sm:$0xff] }
 0x333   :  { %13825 = vst [vmem:[#allocation223_spill] sm:$0xff] %v10186_v40  ;;  %13826 = vst [vmem:[#allocation224_spill] sm:$0xff] %v10188_v13  ;;  %v3762_v51 = vmul.f32 %v2226_v4, %v2226_v4  ;;  %v3763_v22 = vmul.f32 %v2227_v49, %v2227_v49  ;;  %v3764_v33 = vmul.f32 %v2228_v23, %v2228_v23  ;;  %v13839_v13 = vld [vmem:[#allocation467_spill] sm:$0xff]  ;;  %v13841_v17 = vld [vmem:[#allocation468_spill] sm:$0xff] }
 0x334   :  { %13827 = vst [vmem:[#allocation209_spill] sm:$0xff] %v10192_v31  ;;  %13828 = vst [vmem:[#allocation349_spill] sm:$0xff] %v10194_v24  ;;  %v3526_v25 = vadd.f32 %v8886_v53, %v13837_v10  ;;  %v3527_v40 = vadd.f32 %v13839_v13, %v13838_v21  ;;  %v3528_v50 = vadd.f32 %v13841_v17, %v13840_v16  ;;  %v13842_v31 = vld [vmem:[#allocation103_spill] sm:$0xff]  ;;  %v13843_v24 = vld [vmem:[#allocation469_spill] sm:$0xff]  ;;  %v1944_v10 = vpop.permute.xlu1 %1943 }
 0x335   :  { %v10212_v57 = vadd.f32 %v3762_v51, %v3506_v39  ;;  %v10214_v11 = vadd.f32 %v3763_v22, %v3507_v54  ;;  %v3529_v4 = vadd.f32 %v13843_v24, %v13842_v31  ;;  %v10220_v49 = vadd.f32 %v3764_v33, %v3508_v20  ;;  %v13850_v17 = vld [vmem:[#allocation255_spill] sm:$0xff] }
 0x336   :  { %v10222_v23 = vadd.f32 %v3765_v26, %v3509_v18  ;;  %v2246_v7 = vsub.f32 %v1956_v45, %v9562_v42  ;;  %v2247_v53 = vsub.f32 %v1956_v45, %v9564_v12  ;;  %v2248_v54 = vsub.f32 %v1956_v45, %v9566_v28 }
 0x337   :  { %13844 = vst [vmem:[#allocation210_spill] sm:$0xff] %v10220_v49  ;;  %v2249_v13 = vsub.f32 %v1956_v45, %v9568_v0  ;;  %v2234_v18 = vsub.f32 %v1944_v10, %v9562_v42  ;;  %v2235_v51 = vsub.f32 %v1944_v10, %v9564_v12  ;;  %v2236_v26 = vsub.f32 %v1944_v10, %v9566_v28  ;;  %v1964_v49 = vpop.permute.xlu0 %1963 }
 0x338   :  { %13845 = vst [vmem:[#allocation350_spill] sm:$0xff] %v10222_v23  ;;  %v3782_v31 = vmul.f32 %v2246_v7, %v2246_v7  ;;  %v3783_v24 = vmul.f32 %v2247_v53, %v2247_v53  ;;  %v3784_v39 = vmul.f32 %v2248_v54, %v2248_v54  ;;  %v2237_v45 = vsub.f32 %v1944_v10, %v9568_v0  ;;  %v13851_v7 = vld [vmem:[#allocation450_spill] sm:$0xff]  ;;  %v13852_v54 = vld [vmem:[#allocation97_spill] sm:$0xff] }
 0x339   :  { %v3785_v20 = vmul.f32 %v2249_v13, %v2249_v13  ;;  %v3514_v53 = vadd.f32 %v13851_v7, %v13850_v17  ;;  %v13853_v13 = vld [vmem:[#allocation451_spill] sm:$0xff]  ;;  %v13857_v10 = vld [vmem:[#allocation453_spill] sm:$0xff]  ;;  %v2254_v7 = vsub.f32 %v1964_v49, %v9562_v42 }
 0x33a   :  { %v10234_v22 = vadd.f32 %v3782_v31, %v3526_v25  ;;  %v10236_v33 = vadd.f32 %v3783_v24, %v3527_v40  ;;  %v10240_v21 = vadd.f32 %v3784_v39, %v3528_v50  ;;  %v3515_v23 = vadd.f32 %v13853_v13, %v13852_v54  ;;  %v13854_v40 = vld [vmem:[#allocation98_spill] sm:$0xff]  ;;  %v13855_v25 = vld [vmem:[#allocation452_spill] sm:$0xff]  ;;  %v13856_v24 = vld [vmem:[#allocation99_spill] sm:$0xff] }
 0x33b   :  { %v10242_v16 = vadd.f32 %v3785_v20, %v3529_v4  ;;  %v3516_v31 = vadd.f32 %v13855_v25, %v13854_v40  ;;  %v3517_v50 = vadd.f32 %v13857_v10, %v13856_v24  ;;  %v3770_v4 = vmul.f32 %v2234_v18, %v2234_v18 }
 0x33c   :  { %13846 = vst [vmem:[#allocation211_spill] sm:$0xff] %v10234_v22  ;;  %13847 = vst [vmem:[#allocation351_spill] sm:$0xff] %v10236_v33  ;;  %v3771_v39 = vmul.f32 %v2235_v51, %v2235_v51  ;;  %v3772_v20 = vmul.f32 %v2236_v26, %v2236_v26  ;;  %v3773_v17 = vmul.f32 %v2237_v45, %v2237_v45  ;;  %v1952_v26 = vpop.permute.xlu1 %1951 }
 0x33d   :  { %13848 = vst [vmem:[#allocation212_spill] sm:$0xff] %v10240_v21  ;;  %13849 = vst [vmem:[#allocation352_spill] sm:$0xff] %v10242_v16  ;;  %v2255_v54 = vsub.f32 %v1964_v49, %v9564_v12  ;;  %v10258_v13 = vadd.f32 %v3770_v4, %v3514_v53  ;;  %v2256_v40 = vsub.f32 %v1964_v49, %v9566_v28 }
 0x33e   :  { %v10260_v33 = vadd.f32 %v3771_v39, %v3515_v23  ;;  %v2257_v25 = vsub.f32 %v1964_v49, %v9568_v0  ;;  %v10264_v24 = vadd.f32 %v3772_v20, %v3516_v31  ;;  %v10266_v10 = vadd.f32 %v3773_v17, %v3517_v50 }
 0x33f   :  { %v3790_v18 = vmul.f32 %v2254_v7, %v2254_v7  ;;  %v3791_v51 = vmul.f32 %v2255_v54, %v2255_v54  ;;  %v3792_v45 = vmul.f32 %v2256_v40, %v2256_v40  ;;  %v2242_v4 = vsub.f32 %v1952_v26, %v9562_v42  ;;  %v13864_v7 = vld [vmem:[#allocation256_spill] sm:$0xff]  ;;  %v13865_v54 = vld [vmem:[#allocation459_spill] sm:$0xff] }
 0x340   :  { %v3793_v53 = vmul.f32 %v2257_v25, %v2257_v25  ;;  %v2243_v39 = vsub.f32 %v1952_v26, %v9564_v12  ;;  %v2245_v20 = vsub.f32 %v1952_v26, %v9568_v0  ;;  %v3523_v40 = vadd.f32 %v13865_v54, %v13864_v7  ;;  %v13866_v25 = vld [vmem:[#allocation257_spill] sm:$0xff] }
 0x341   :  { %v10273_v23 = vadd.f32 %v3790_v18, %v8917_v3  ;;  %v10276_v49 = vadd.f32 %v3791_v51, %v8920_v58  ;;  %v10279_v31 = vadd.f32 %v3792_v45, %v8923_v19  ;;  %v2244_v3 = vsub.f32 %v1952_v26, %v9566_v28  ;;  %v1972_v58 = vpop.permute.xlu0 %1971  ;;  %v13862_v19 = vld [vmem:[#allocation104_spill] sm:$0xff]  ;;  %v13868_v45 = vld [vmem:[#allocation258_spill] sm:$0xff] }
 0x342   :  { %v10282_v50 = vadd.f32 %v3793_v53, %v8926_v55  ;;  %v13863_v55 = vld [vmem:[#allocation458_spill] sm:$0xff]  ;;  %v13867_v18 = vld [vmem:[#allocation460_spill] sm:$0xff]  ;;  %v13869_v53 = vld [vmem:[#allocation461_spill] sm:$0xff]  ;;  %v3778_v21 = vmul.f32 %v2242_v4, %v2242_v4  ;;  %v2265_v7 = vsub.f32 %v1972_v58, %v9568_v0 }
 0x343   :  { %13858 = vst [vmem:[#allocation217_spill] sm:$0xff] %v10273_v23  ;;  %13859 = vst [vmem:[#allocation353_spill] sm:$0xff] %v10276_v49  ;;  %v3522_v17 = vadd.f32 %v13863_v55, %v13862_v19  ;;  %v3524_v51 = vadd.f32 %v13867_v18, %v13866_v25  ;;  %v3525_v16 = vadd.f32 %v13869_v53, %v13868_v45  ;;  %v13873_v53 = vld [vmem:[#allocation463_spill] sm:$0xff] }
 0x344   :  { %13860 = vst [vmem:[#allocation218_spill] sm:$0xff] %v10279_v31  ;;  %13861 = vst [vmem:[#allocation354_spill] sm:$0xff] %v10282_v50  ;;  %v3779_v49 = vmul.f32 %v2243_v39, %v2243_v39  ;;  %v3780_v26 = vmul.f32 %v2244_v3, %v2244_v3  ;;  %v3781_v23 = vmul.f32 %v2245_v20, %v2245_v20  ;;  %v1960_v3 = vpop.permute.xlu1 %1959 }
 0x345   :  { %v2262_v31 = vsub.f32 %v1972_v58, %v9562_v42  ;;  %v2263_v50 = vsub.f32 %v1972_v58, %v9564_v12  ;;  %v10302_v22 = vadd.f32 %v3778_v21, %v3522_v17  ;;  %v2264_v55 = vsub.f32 %v1972_v58, %v9566_v28  ;;  %v1980_v17 = vpop.permute.xlu0 %1979 }
 0x346   :  { %v10304_v19 = vadd.f32 %v3779_v49, %v3523_v40  ;;  %v10308_v54 = vadd.f32 %v3780_v26, %v3524_v51  ;;  %v10310_v25 = vadd.f32 %v3781_v23, %v3525_v16  ;;  %v3801_v21 = vmul.f32 %v2265_v7, %v2265_v7 }
 0x347   :  { %v3798_v4 = vmul.f32 %v2262_v31, %v2262_v31  ;;  %v3799_v39 = vmul.f32 %v2263_v50, %v2263_v50  ;;  %v3800_v20 = vmul.f32 %v2264_v55, %v2264_v55  ;;  %v2250_v31 = vsub.f32 %v1960_v3, %v9562_v42  ;;  %v13874_v55 = vld [vmem:[#allocation464_spill] sm:$0xff] }
 0x348   :  { %v10326_v23 = vadd.f32 %v3801_v21, %v8979_v56  ;;  %v2251_v50 = vsub.f32 %v1960_v3, %v9564_v12  ;;  %v2270_v51 = vsub.f32 %v1980_v17, %v9562_v42  ;;  %v2271_v45 = vsub.f32 %v1980_v17, %v9564_v12  ;;  %v13876_v21 = vld [vmem:[#allocation466_spill] sm:$0xff] }
 0x349   :  { %v10317_v49 = vadd.f32 %v3798_v4, %v8973_v1  ;;  %v10320_v58 = vadd.f32 %v3799_v39, %v8975_v59  ;;  %v10323_v16 = vadd.f32 %v3800_v20, %v8977_v52  ;;  %v2252_v1 = vsub.f32 %v1960_v3, %v9566_v28 }
 0x34a   :  { %13872 = vst [vmem:[#allocation220_spill] sm:$0xff] %v10326_v23  ;;  %v2253_v59 = vsub.f32 %v1960_v3, %v9568_v0  ;;  %v3786_v52 = vmul.f32 %v2250_v31, %v2250_v31  ;;  %v3787_v56 = vmul.f32 %v2251_v50, %v2251_v50  ;;  %v2272_v4 = vsub.f32 %v1980_v17, %v9566_v28  ;;  %v13875_v3 = vld [vmem:[#allocation465_spill] sm:$0xff]  ;;  %v13884_v23 = vld [vmem:[#allocation471_spill] sm:$0xff] }
 0x34b   :  { %13870 = vst [vmem:[#allocation219_spill] sm:$0xff] %v10320_v58  ;;  %13871 = vst [vmem:[#allocation355_spill] sm:$0xff] %v10323_v16  ;;  %v3788_v40 = vmul.f32 %v2252_v1, %v2252_v1  ;;  %v2273_v39 = vsub.f32 %v1980_v17, %v9568_v0  ;;  %v3806_v50 = vmul.f32 %v2270_v51, %v2270_v51 }
 0x34c   :  { %v3789_v18 = vmul.f32 %v2253_v59, %v2253_v59  ;;  %v10339_v26 = vadd.f32 %v3786_v52, %v13873_v53  ;;  %v10342_v7 = vadd.f32 %v3787_v56, %v13874_v55  ;;  %v3807_v1 = vmul.f32 %v2271_v45, %v2271_v45  ;;  %v1968_v59 = vpop.permute.xlu1 %1967  ;;  %v13881_v45 = vld [vmem:[#allocation263_spill] sm:$0xff] }
 0x34d   :  { %v10347_v20 = vadd.f32 %v3788_v40, %v13875_v3  ;;  %v3808_v52 = vmul.f32 %v2272_v4, %v2272_v4  ;;  %v3809_v56 = vmul.f32 %v2273_v39, %v2273_v39  ;;  %v10357_v17 = vadd.f32 %v3806_v50, %v9017_v44  ;;  %v1988_v39 = vpop.permute.xlu0 %1987 }
 0x34e   :  { %v10350_v31 = vadd.f32 %v3789_v18, %v13876_v21  ;;  %v10360_v40 = vadd.f32 %v3807_v1, %v9019_v36  ;;  %v13879_v18 = vld [vmem:[#allocation129_spill] sm:$0xff]  ;;  %v2258_v55 = vsub.f32 %v1968_v59, %v9562_v42  ;;  %v2259_v4 = vsub.f32 %v1968_v59, %v9564_v12 }
 0x34f   :  { %13877 = vst [vmem:[#allocation356_spill] sm:$0xff] %v10357_v17  ;;  %v10363_v51 = vadd.f32 %v3808_v52, %v13879_v18  ;;  %v10366_v53 = vadd.f32 %v3809_v56, %v13881_v45  ;;  %v2260_v44 = vsub.f32 %v1968_v59, %v9566_v28  ;;  %v2261_v36 = vsub.f32 %v1968_v59, %v9568_v0  ;;  %v13883_v18 = vld [vmem:[#allocation470_spill] sm:$0xff] }
 0x350   :  { %13878 = vst [vmem:[#allocation20_spill] sm:$0xff] %v10360_v40  ;;  %v3794_v3 = vmul.f32 %v2258_v55, %v2258_v55  ;;  %v3795_v21 = vmul.f32 %v2259_v4, %v2259_v4  ;;  %v2278_v52 = vsub.f32 %v1988_v39, %v9562_v42  ;;  %v2279_v56 = vsub.f32 %v1988_v39, %v9564_v12  ;;  %v13886_v40 = vld [vmem:[#allocation472_spill] sm:$0xff]  ;;  %v13888_v55 = vld [vmem:[#allocation473_spill] sm:$0xff]  ;;  %v1976_v58 = vpop.permute.xlu1 %1975 }
 0x351   :  { %13880 = vst [vmem:[#allocation21_spill] sm:$0xff] %v10363_v51  ;;  %13882 = vst [vmem:[#allocation109_spill] sm:$0xff] %v10366_v53  ;;  %v3796_v50 = vmul.f32 %v2260_v44, %v2260_v44  ;;  %v3797_v1 = vmul.f32 %v2261_v36, %v2261_v36  ;;  %v2280_v59 = vsub.f32 %v1988_v39, %v9566_v28 }
 0x352   :  { %v10379_v45 = vadd.f32 %v3794_v3, %v13883_v18  ;;  %v10382_v16 = vadd.f32 %v3795_v21, %v13884_v23  ;;  %v2281_v51 = vsub.f32 %v1988_v39, %v9568_v0  ;;  %v3814_v44 = vmul.f32 %v2278_v52, %v2278_v52  ;;  %v13890_v39 = vld [vmem:[#allocation118_spill] sm:$0xff] }
 0x353   :  { %v10387_v53 = vadd.f32 %v3796_v50, %v13886_v40  ;;  %v10390_v4 = vadd.f32 %v3797_v1, %v13888_v55  ;;  %v3815_v36 = vmul.f32 %v2279_v56, %v2279_v56  ;;  %v3816_v3 = vmul.f32 %v2280_v59, %v2280_v59  ;;  %v13892_v40 = vld [vmem:[#allocation260_spill] sm:$0xff]  ;;  %v13894_v1 = vld [vmem:[#allocation119_spill] sm:$0xff]  ;;  %v13896_v56 = vld [vmem:[#allocation261_spill] sm:$0xff]  ;;  %v1996_v59 = vpop.permute.xlu0 %1995 }
 0x354   :  { %13885 = vst [vmem:[#allocation22_spill] sm:$0xff] %v10382_v16  ;;  %v3817_v23 = vmul.f32 %v2281_v51, %v2281_v51  ;;  %v10397_v21 = vadd.f32 %v3814_v44, %v13890_v39  ;;  %v2266_v55 = vsub.f32 %v1976_v58, %v9562_v42  ;;  %v2267_v51 = vsub.f32 %v1976_v58, %v9564_v12  ;;  %v13902_v16 = vld [vmem:[#allocation123_spill] sm:$0xff]  ;;  %v1984_v17 = vpop.permute.xlu1 %1983 }
 0x355   :  { %13887 = vst [vmem:[#allocation110_spill] sm:$0xff] %v10387_v53  ;;  %13889 = vst [vmem:[#allocation23_spill] sm:$0xff] %v10390_v4  ;;  %v10400_v50 = vadd.f32 %v3815_v36, %v13892_v40  ;;  %v10403_v52 = vadd.f32 %v3816_v3, %v13894_v1  ;;  %v2268_v44 = vsub.f32 %v1976_v58, %v9566_v28  ;;  %v13898_v4 = vld [vmem:[#allocation121_spill] sm:$0xff] }
 0x356   :  { %13891 = vst [vmem:[#allocation111_spill] sm:$0xff] %v10397_v21  ;;  %v10406_v18 = vadd.f32 %v3817_v23, %v13896_v56  ;;  %v2269_v36 = vsub.f32 %v1976_v58, %v9568_v0  ;;  %v3802_v3 = vmul.f32 %v2266_v55, %v2266_v55  ;;  %v3803_v23 = vmul.f32 %v2267_v51, %v2267_v51  ;;  %v13904_v55 = vld [vmem:[#allocation112_spill] sm:$0xff] }
 0x357   :  { %13893 = vst [vmem:[#allocation24_spill] sm:$0xff] %v10400_v50  ;;  %13895 = vst [vmem:[#allocation25_spill] sm:$0xff] %v10403_v52  ;;  %v3804_v39 = vmul.f32 %v2268_v44, %v2268_v44  ;;  %v2286_v1 = vsub.f32 %v1996_v59, %v9562_v42  ;;  %v2287_v56 = vsub.f32 %v1996_v59, %v9564_v12  ;;  %v13900_v50 = vld [vmem:[#allocation122_spill] sm:$0xff] }
 0x358   :  { %13897 = vst [vmem:[#allocation372_spill] sm:$0xff] %v10406_v18  ;;  %v3805_v40 = vmul.f32 %v2269_v36, %v2269_v36  ;;  %v10419_v21 = vadd.f32 %v3802_v3, %v13898_v4  ;;  %v10422_v53 = vadd.f32 %v3803_v23, %v13900_v50  ;;  %v2288_v58 = vsub.f32 %v1996_v59, %v9566_v28 }
 0x359   :  { %v2289_v52 = vsub.f32 %v1996_v59, %v9568_v0  ;;  %v10427_v18 = vadd.f32 %v3804_v39, %v13902_v16  ;;  %v3822_v44 = vmul.f32 %v2286_v1, %v2286_v1  ;;  %v3823_v36 = vmul.f32 %v2287_v56, %v2287_v56  ;;  %v13906_v59 = vld [vmem:[#allocation136_spill] sm:$0xff]  ;;  %v13908_v16 = vld [vmem:[#allocation270_spill] sm:$0xff]  ;;  %v13910_v39 = vld [vmem:[#allocation137_spill] sm:$0xff] }
 0x35a   :  { %13899 = vst [vmem:[#allocation26_spill] sm:$0xff] %v10419_v21  ;;  %13901 = vst [vmem:[#allocation373_spill] sm:$0xff] %v10422_v53  ;;  %v10430_v51 = vadd.f32 %v3805_v40, %v13904_v55  ;;  %v3824_v4 = vmul.f32 %v2288_v58, %v2288_v58  ;;  %v13912_v1 = vld [vmem:[#allocation271_spill] sm:$0xff]  ;;  %v2274_v55 = vsub.f32 %v1984_v17, %v9562_v42  ;;  %v2004_v58 = vpop.permute.xlu0 %2003  ;;  %v1992_v21 = vpop.permute.xlu1 %1991 }
 0x35b   :  { %13903 = vst [vmem:[#allocation27_spill] sm:$0xff] %v10427_v18  ;;  %v3825_v50 = vmul.f32 %v2289_v52, %v2289_v52  ;;  %v10437_v3 = vadd.f32 %v3822_v44, %v13906_v59  ;;  %v10440_v23 = vadd.f32 %v3823_v36, %v13908_v16  ;;  %v2275_v52 = vsub.f32 %v1984_v17, %v9564_v12  ;;  %v13918_v53 = vld [vmem:[#allocation115_spill] sm:$0xff] }
 0x35c   :  { %13905 = vst [vmem:[#allocation374_spill] sm:$0xff] %v10430_v51  ;;  %v10443_v40 = vadd.f32 %v3824_v4, %v13910_v39  ;;  %v2276_v44 = vsub.f32 %v1984_v17, %v9566_v28  ;;  %v2277_v36 = vsub.f32 %v1984_v17, %v9568_v0  ;;  %v3810_v4 = vmul.f32 %v2274_v55, %v2274_v55  ;;  %v13914_v51 = vld [vmem:[#allocation113_spill] sm:$0xff]  ;;  %v13920_v55 = vld [vmem:[#allocation128_spill] sm:$0xff] }
 0x35d   :  { %13907 = vst [vmem:[#allocation12_spill] sm:$0xff] %v10437_v3  ;;  %13909 = vst [vmem:[#allocation116_spill] sm:$0xff] %v10440_v23  ;;  %v10446_v56 = vadd.f32 %v3825_v50, %v13912_v1  ;;  %v3811_v50 = vmul.f32 %v2275_v52, %v2275_v52  ;;  %v2294_v39 = vsub.f32 %v2004_v58, %v9562_v42  ;;  %v13916_v23 = vld [vmem:[#allocation114_spill] sm:$0xff] }
 0x35e   :  { %13911 = vst [vmem:[#allocation15_spill] sm:$0xff] %v10443_v40  ;;  %v3812_v59 = vmul.f32 %v2276_v44, %v2276_v44  ;;  %v3813_v16 = vmul.f32 %v2277_v36, %v2277_v36  ;;  %v2295_v1 = vsub.f32 %v2004_v58, %v9564_v12  ;;  %v10459_v3 = vadd.f32 %v3810_v4, %v13914_v51 }
 0x35f   :  { %13913 = vst [vmem:[#allocation105_spill] sm:$0xff] %v10446_v56  ;;  %v10462_v18 = vadd.f32 %v3811_v50, %v13916_v23  ;;  %v2296_v17 = vsub.f32 %v2004_v58, %v9566_v28  ;;  %v2297_v40 = vsub.f32 %v2004_v58, %v9568_v0  ;;  %v3830_v44 = vmul.f32 %v2294_v39, %v2294_v39  ;;  %v13922_v58 = vld [vmem:[#allocation125_spill] sm:$0xff]  ;;  %v13928_v39 = vld [vmem:[#allocation267_spill] sm:$0xff] }
 0x360   :  { %13915 = vst [vmem:[#allocation230_spill] sm:$0xff] %v10459_v3  ;;  %v10467_v56 = vadd.f32 %v3812_v59, %v13918_v53  ;;  %v10470_v52 = vadd.f32 %v3813_v16, %v13920_v55  ;;  %v3831_v36 = vmul.f32 %v2295_v1, %v2295_v1  ;;  %v13924_v53 = vld [vmem:[#allocation266_spill] sm:$0xff]  ;;  %v2282_v55 = vsub.f32 %v1992_v21, %v9562_v42  ;;  %v2000_v3 = vpop.permute.xlu1 %1999 }
 0x361   :  { %13917 = vst [vmem:[#allocation106_spill] sm:$0xff] %v10462_v18  ;;  %v3832_v51 = vmul.f32 %v2296_v17, %v2296_v17  ;;  %v3833_v23 = vmul.f32 %v2297_v40, %v2297_v40  ;;  %v10477_v4 = vadd.f32 %v3830_v44, %v13922_v58  ;;  %v13926_v59 = vld [vmem:[#allocation126_spill] sm:$0xff]  ;;  %v2283_v40 = vsub.f32 %v1992_v21, %v9564_v12  ;;  %v2012_v17 = vpop.permute.xlu0 %2011  ;;  %v13934_v18 = vld [vmem:[#allocation117_spill] sm:$0xff] }
 0x362   :  { %13919 = vst [vmem:[#allocation231_spill] sm:$0xff] %v10467_v56  ;;  %13921 = vst [vmem:[#allocation107_spill] sm:$0xff] %v10470_v52  ;;  %v10480_v50 = vadd.f32 %v3831_v36, %v13924_v53  ;;  %v2284_v44 = vsub.f32 %v1992_v21, %v9566_v28  ;;  %v2285_v36 = vsub.f32 %v1992_v21, %v9568_v0  ;;  %v13930_v52 = vld [vmem:[#allocation130_spill] sm:$0xff] }
 0x363   :  { %13923 = vst [vmem:[#allocation28_spill] sm:$0xff] %v10477_v4  ;;  %v10483_v16 = vadd.f32 %v3832_v51, %v13926_v59  ;;  %v10486_v1 = vadd.f32 %v3833_v23, %v13928_v39  ;;  %v3818_v51 = vmul.f32 %v2282_v55, %v2282_v55  ;;  %v3819_v23 = vmul.f32 %v2283_v40, %v2283_v40  ;;  %v13936_v55 = vld [vmem:[#allocation259_spill] sm:$0xff] }
 0x364   :  { %13925 = vst [vmem:[#allocation29_spill] sm:$0xff] %v10480_v50  ;;  %v3820_v58 = vmul.f32 %v2284_v44, %v2284_v44  ;;  %v3821_v53 = vmul.f32 %v2285_v36, %v2285_v36  ;;  %v2302_v59 = vsub.f32 %v2012_v17, %v9562_v42  ;;  %v2303_v39 = vsub.f32 %v2012_v17, %v9564_v12  ;;  %v13932_v50 = vld [vmem:[#allocation264_spill] sm:$0xff] }
 0x365   :  { %13927 = vst [vmem:[#allocation379_spill] sm:$0xff] %v10483_v16  ;;  %13929 = vst [vmem:[#allocation30_spill] sm:$0xff] %v10486_v1  ;;  %v10499_v4 = vadd.f32 %v3818_v51, %v13930_v52  ;;  %v10502_v56 = vadd.f32 %v3819_v23, %v13932_v50  ;;  %v2304_v21 = vsub.f32 %v2012_v17, %v9566_v28 }
 0x366   :  { %v2305_v16 = vsub.f32 %v2012_v17, %v9568_v0  ;;  %v10507_v1 = vadd.f32 %v3820_v58, %v13934_v18  ;;  %v10510_v40 = vadd.f32 %v3821_v53, %v13936_v55  ;;  %v3838_v44 = vmul.f32 %v2302_v59, %v2302_v59  ;;  %v13938_v17 = vld [vmem:[#allocation144_spill] sm:$0xff]  ;;  %v13940_v18 = vld [vmem:[#allocation278_spill] sm:$0xff]  ;;  %v13942_v58 = vld [vmem:[#allocation145_spill] sm:$0xff] }
 0x367   :  { %13931 = vst [vmem:[#allocation380_spill] sm:$0xff] %v10499_v4  ;;  %13933 = vst [vmem:[#allocation31_spill] sm:$0xff] %v10502_v56  ;;  %v3839_v36 = vmul.f32 %v2303_v39, %v2303_v39  ;;  %v3840_v52 = vmul.f32 %v2304_v21, %v2304_v21  ;;  %v13944_v59 = vld [vmem:[#allocation279_spill] sm:$0xff]  ;;  %v2290_v55 = vsub.f32 %v2000_v3, %v9562_v42  ;;  %v2020_v21 = vpop.permute.xlu0 %2019  ;;  %v2008_v4 = vpop.permute.xlu1 %2007 }
 0x368   :  { %13935 = vst [vmem:[#allocation381_spill] sm:$0xff] %v10507_v1  ;;  %13937 = vst [vmem:[#allocation16_spill] sm:$0xff] %v10510_v40  ;;  %v3841_v50 = vmul.f32 %v2305_v16, %v2305_v16  ;;  %v10517_v51 = vadd.f32 %v3838_v44, %v13938_v17  ;;  %v2291_v16 = vsub.f32 %v2000_v3, %v9564_v12  ;;  %v13946_v40 = vld [vmem:[#allocation120_spill] sm:$0xff]  ;;  %v13950_v56 = vld [vmem:[#allocation135_spill] sm:$0xff] }
 0x369   :  { %v10520_v23 = vadd.f32 %v3839_v36, %v13940_v18  ;;  %v10523_v53 = vadd.f32 %v3840_v52, %v13942_v58  ;;  %v2292_v44 = vsub.f32 %v2000_v3, %v9566_v28  ;;  %v2293_v36 = vsub.f32 %v2000_v3, %v9568_v0 }
 0x36a   :  { %13939 = vst [vmem:[#allocation108_spill] sm:$0xff] %v10517_v51  ;;  %v10526_v39 = vadd.f32 %v3841_v50, %v13944_v59  ;;  %v3826_v52 = vmul.f32 %v2290_v55, %v2290_v55  ;;  %v3827_v50 = vmul.f32 %v2291_v16, %v2291_v16  ;;  %v2310_v58 = vsub.f32 %v2020_v21, %v9562_v42  ;;  %v13952_v55 = vld [vmem:[#allocation269_spill] sm:$0xff] }
 0x36b   :  { %13941 = vst [vmem:[#allocation17_spill] sm:$0xff] %v10520_v23  ;;  %13943 = vst [vmem:[#allocation365_spill] sm:$0xff] %v10523_v53  ;;  %v3828_v17 = vmul.f32 %v2292_v44, %v2292_v44  ;;  %v3829_v18 = vmul.f32 %v2293_v36, %v2293_v36  ;;  %v2311_v59 = vsub.f32 %v2020_v21, %v9564_v12  ;;  %v13948_v23 = vld [vmem:[#allocation262_spill] sm:$0xff] }
 0x36c   :  { %13945 = vst [vmem:[#allocation18_spill] sm:$0xff] %v10526_v39  ;;  %v10539_v51 = vadd.f32 %v3826_v52, %v13946_v40  ;;  %v10542_v1 = vadd.f32 %v3827_v50, %v13948_v23  ;;  %v2312_v3 = vsub.f32 %v2020_v21, %v9566_v28  ;;  %v2313_v53 = vsub.f32 %v2020_v21, %v9568_v0  ;;  %v13954_v21 = vld [vmem:[#allocation132_spill] sm:$0xff] }
 0x36d   :  { %v10547_v39 = vadd.f32 %v3828_v17, %v13950_v56  ;;  %v10550_v16 = vadd.f32 %v3829_v18, %v13952_v55  ;;  %v3846_v44 = vmul.f32 %v2310_v58, %v2310_v58  ;;  %v3847_v36 = vmul.f32 %v2311_v59, %v2311_v59  ;;  %v13956_v56 = vld [vmem:[#allocation274_spill] sm:$0xff]  ;;  %v13958_v17 = vld [vmem:[#allocation133_spill] sm:$0xff]  ;;  %v13960_v58 = vld [vmem:[#allocation275_spill] sm:$0xff] }
 0x36e   :  { %13947 = vst [vmem:[#allocation366_spill] sm:$0xff] %v10539_v51  ;;  %13949 = vst [vmem:[#allocation19_spill] sm:$0xff] %v10542_v1  ;;  %v3848_v40 = vmul.f32 %v2312_v3, %v2312_v3  ;;  %v3849_v23 = vmul.f32 %v2313_v53, %v2313_v53  ;;  %v2298_v55 = vsub.f32 %v2008_v4, %v9562_v42  ;;  %v2028_v3 = vpop.permute.xlu0 %2027  ;;  %v13966_v1 = vld [vmem:[#allocation124_spill] sm:$0xff]  ;;  %v2016_v51 = vpop.permute.xlu1 %2015 }
 0x36f   :  { %13951 = vst [vmem:[#allocation367_spill] sm:$0xff] %v10547_v39  ;;  %13953 = vst [vmem:[#allocation33_spill] sm:$0xff] %v10550_v16  ;;  %v10557_v52 = vadd.f32 %v3846_v44, %v13954_v21  ;;  %v10560_v50 = vadd.f32 %v3847_v36, %v13956_v56  ;;  %v2299_v53 = vsub.f32 %v2008_v4, %v9564_v12  ;;  %v13962_v16 = vld [vmem:[#allocation138_spill] sm:$0xff] }
 0x370   :  { %v10563_v18 = vadd.f32 %v3848_v40, %v13958_v17  ;;  %v10566_v59 = vadd.f32 %v3849_v23, %v13960_v58  ;;  %v2300_v44 = vsub.f32 %v2008_v4, %v9566_v28  ;;  %v2301_v36 = vsub.f32 %v2008_v4, %v9568_v0 }
 0x371   :  { %13955 = vst [vmem:[#allocation386_spill] sm:$0xff] %v10557_v52  ;;  %13957 = vst [vmem:[#allocation34_spill] sm:$0xff] %v10560_v50  ;;  %v3834_v40 = vmul.f32 %v2298_v55, %v2298_v55  ;;  %v3835_v23 = vmul.f32 %v2299_v53, %v2299_v53  ;;  %v2318_v17 = vsub.f32 %v2028_v3, %v9562_v42  ;;  %v13964_v50 = vld [vmem:[#allocation272_spill] sm:$0xff]  ;;  %v13968_v55 = vld [vmem:[#allocation265_spill] sm:$0xff] }
 0x372   :  { %13959 = vst [vmem:[#allocation387_spill] sm:$0xff] %v10563_v18  ;;  %13961 = vst [vmem:[#allocation35_spill] sm:$0xff] %v10566_v59  ;;  %v3836_v21 = vmul.f32 %v2300_v44, %v2300_v44  ;;  %v3837_v56 = vmul.f32 %v2301_v36, %v2301_v36  ;;  %v2319_v58 = vsub.f32 %v2028_v3, %v9564_v12 }
 0x373   :  { %v10579_v52 = vadd.f32 %v3834_v40, %v13962_v16  ;;  %v10582_v39 = vadd.f32 %v3835_v23, %v13964_v50  ;;  %v2320_v4 = vsub.f32 %v2028_v3, %v9566_v28  ;;  %v2321_v18 = vsub.f32 %v2028_v3, %v9568_v0  ;;  %v13970_v3 = vld [vmem:[#allocation8_spill] sm:$0xff] }
 0x374   :  { %v10587_v59 = vadd.f32 %v3836_v21, %v13966_v1  ;;  %v10590_v53 = vadd.f32 %v3837_v56, %v13968_v55  ;;  %v3854_v44 = vmul.f32 %v2318_v17, %v2318_v17  ;;  %v3855_v36 = vmul.f32 %v2319_v58, %v2319_v58  ;;  %v13972_v1 = vld [vmem:[#allocation286_spill] sm:$0xff]  ;;  %v13974_v21 = vld [vmem:[#allocation151_spill] sm:$0xff] }
 0x375   :  { %13963 = vst [vmem:[#allocation388_spill] sm:$0xff] %v10579_v52  ;;  %13965 = vst [vmem:[#allocation36_spill] sm:$0xff] %v10582_v39  ;;  %v3856_v16 = vmul.f32 %v2320_v4, %v2320_v4  ;;  %v3857_v50 = vmul.f32 %v2321_v18, %v2321_v18  ;;  %v13976_v17 = vld [vmem:[#allocation287_spill] sm:$0xff]  ;;  %v2306_v55 = vsub.f32 %v2016_v51, %v9562_v42  ;;  %v2036_v4 = vpop.permute.xlu0 %2035  ;;  %v2024_v52 = vpop.permute.xlu1 %2023 }
 0x376   :  { %13967 = vst [vmem:[#allocation389_spill] sm:$0xff] %v10587_v59  ;;  %13969 = vst [vmem:[#allocation32_spill] sm:$0xff] %v10590_v53  ;;  %v10597_v40 = vadd.f32 %v3854_v44, %v13970_v3  ;;  %v10600_v23 = vadd.f32 %v3855_v36, %v13972_v1  ;;  %v2307_v18 = vsub.f32 %v2016_v51, %v9564_v12  ;;  %v13978_v53 = vld [vmem:[#allocation127_spill] sm:$0xff] }
 0x377   :  { %v10603_v56 = vadd.f32 %v3856_v16, %v13974_v21  ;;  %v10606_v58 = vadd.f32 %v3857_v50, %v13976_v17  ;;  %v2308_v44 = vsub.f32 %v2016_v51, %v9566_v28  ;;  %v2309_v36 = vsub.f32 %v2016_v51, %v9568_v0  ;;  %v13981_v39 = vld [vmem:[#allocation143_spill] sm:$0xff] }
 0x378   :  { %13971 = vst [vmem:[#allocation368_spill] sm:$0xff] %v10597_v40  ;;  %13973 = vst [vmem:[#allocation232_spill] sm:$0xff] %v10600_v23  ;;  %v3842_v16 = vmul.f32 %v2306_v55, %v2306_v55  ;;  %v3843_v50 = vmul.f32 %v2307_v18, %v2307_v18  ;;  %v2326_v21 = vsub.f32 %v2036_v4, %v9562_v42  ;;  %v13979_v23 = vld [vmem:[#allocation268_spill] sm:$0xff]  ;;  %v13983_v55 = vld [vmem:[#allocation277_spill] sm:$0xff] }
 0x379   :  { %13975 = vst [vmem:[#allocation369_spill] sm:$0xff] %v10603_v56  ;;  %13977 = vst [vmem:[#allocation233_spill] sm:$0xff] %v10606_v58  ;;  %v3844_v3 = vmul.f32 %v2308_v44, %v2308_v44  ;;  %v3845_v1 = vmul.f32 %v2309_v36, %v2309_v36  ;;  %v2327_v17 = vsub.f32 %v2036_v4, %v9564_v12 }
 0x37a   :  { %v10619_v40 = vadd.f32 %v3842_v16, %v13978_v53  ;;  %v10622_v59 = vadd.f32 %v3843_v50, %v13979_v23  ;;  %v2328_v51 = vsub.f32 %v2036_v4, %v9566_v28  ;;  %v2329_v56 = vsub.f32 %v2036_v4, %v9568_v0  ;;  %v13988_v50 = vld [vmem:[#allocation282_spill] sm:$0xff] }
 0x37b   :  { %v10627_v58 = vadd.f32 %v3844_v3, %v13981_v39  ;;  %v10630_v18 = vadd.f32 %v3845_v1, %v13983_v55  ;;  %v3862_v44 = vmul.f32 %v2326_v21, %v2326_v21  ;;  %v3863_v36 = vmul.f32 %v2327_v17, %v2327_v17  ;;  %v13986_v39 = vld [vmem:[#allocation140_spill] sm:$0xff]  ;;  %v13990_v1 = vld [vmem:[#allocation141_spill] sm:$0xff] }
 0x37c   :  { %13980 = vst [vmem:[#allocation370_spill] sm:$0xff] %v10622_v59  ;;  %v3864_v53 = vmul.f32 %v2328_v51, %v2328_v51  ;;  %v3865_v23 = vmul.f32 %v2329_v56, %v2329_v56  ;;  %v2314_v17 = vsub.f32 %v2024_v52, %v9562_v42  ;;  %v2315_v56 = vsub.f32 %v2024_v52, %v9564_v12  ;;  %v2044_v51 = vpop.permute.xlu0 %2043  ;;  %v2032_v59 = vpop.permute.xlu1 %2031 }
 0x37d   :  { %13982 = vst [vmem:[#allocation234_spill] sm:$0xff] %v10627_v58  ;;  %13984 = vst [vmem:[#allocation371_spill] sm:$0xff] %v10630_v18  ;;  %v10637_v4 = vadd.f32 %v3862_v44, %v9316_v5  ;;  %v10640_v16 = vadd.f32 %v3863_v36, %v13986_v39  ;;  %v2316_v5 = vsub.f32 %v2024_v52, %v9566_v28  ;;  %v13995_v58 = vld [vmem:[#allocation131_spill] sm:$0xff] }
 0x37e   :  { %v10643_v3 = vadd.f32 %v3864_v53, %v13988_v50  ;;  %v10646_v21 = vadd.f32 %v3865_v23, %v13990_v1  ;;  %v2317_v55 = vsub.f32 %v2024_v52, %v9568_v0  ;;  %v3850_v44 = vmul.f32 %v2314_v17, %v2314_v17  ;;  %v13992_v1 = vld [vmem:[#allocation146_spill] sm:$0xff]  ;;  %v13997_v17 = vld [vmem:[#allocation273_spill] sm:$0xff] }
 0x37f   :  { %13985 = vst [vmem:[#allocation40_spill] sm:$0xff] %v10637_v4  ;;  %13987 = vst [vmem:[#allocation41_spill] sm:$0xff] %v10640_v16  ;;  %v3851_v36 = vmul.f32 %v2315_v56, %v2315_v56  ;;  %v3852_v53 = vmul.f32 %v2316_v5, %v2316_v5  ;;  %v2334_v39 = vsub.f32 %v2044_v51, %v9562_v42  ;;  %v13993_v16 = vld [vmem:[#allocation280_spill] sm:$0xff] }
 0x380   :  { %13989 = vst [vmem:[#allocation394_spill] sm:$0xff] %v10643_v3  ;;  %13991 = vst [vmem:[#allocation42_spill] sm:$0xff] %v10646_v21  ;;  %v3853_v23 = vmul.f32 %v2317_v55, %v2317_v55  ;;  %v2335_v50 = vsub.f32 %v2044_v51, %v9564_v12  ;;  %v10659_v4 = vadd.f32 %v3850_v44, %v13992_v1 }
 0x381   :  { %v10662_v18 = vadd.f32 %v3851_v36, %v13993_v16  ;;  %v2336_v52 = vsub.f32 %v2044_v51, %v9566_v28  ;;  %v2337_v3 = vsub.f32 %v2044_v51, %v9568_v0  ;;  %v10667_v21 = vadd.f32 %v3852_v53, %v13995_v58  ;;  %v14000_v58 = vld [vmem:[#allocation293_spill] sm:$0xff]  ;;  %v14002_v53 = vld [vmem:[#allocation158_spill] sm:$0xff] }
 0x382   :  { %v10670_v56 = vadd.f32 %v3853_v23, %v13997_v17  ;;  %v3870_v5 = vmul.f32 %v2334_v39, %v2334_v39  ;;  %v3871_v55 = vmul.f32 %v2335_v50, %v2335_v50  ;;  %v14004_v39 = vld [vmem:[#allocation294_spill] sm:$0xff]  ;;  %v2322_v1 = vsub.f32 %v2032_v59, %v9562_v42 }
 0x383   :  { %13994 = vst [vmem:[#allocation395_spill] sm:$0xff] %v10662_v18  ;;  %13996 = vst [vmem:[#allocation43_spill] sm:$0xff] %v10667_v21  ;;  %v3872_v44 = vmul.f32 %v2336_v52, %v2336_v52  ;;  %v3873_v16 = vmul.f32 %v2337_v3, %v2337_v3  ;;  %v2323_v3 = vsub.f32 %v2032_v59, %v9564_v12  ;;  %v2052_v52 = vpop.permute.xlu0 %2051  ;;  %v14010_v21 = vld [vmem:[#allocation150_spill] sm:$0xff]  ;;  %v2040_v18 = vpop.permute.xlu1 %2039 }
 0x384   :  { %13998 = vst [vmem:[#allocation396_spill] sm:$0xff] %v10670_v56  ;;  %v10677_v51 = vadd.f32 %v3870_v5, %v9356_v41  ;;  %v10680_v36 = vadd.f32 %v3871_v55, %v14000_v58  ;;  %v2324_v41 = vsub.f32 %v2032_v59, %v9566_v28  ;;  %v2325_v17 = vsub.f32 %v2032_v59, %v9568_v0 }
 0x385   :  { %v10683_v23 = vadd.f32 %v3872_v44, %v14002_v53  ;;  %v10686_v50 = vadd.f32 %v3873_v16, %v14004_v39  ;;  %v3858_v5 = vmul.f32 %v2322_v1, %v2322_v1  ;;  %v3859_v55 = vmul.f32 %v2323_v3, %v2323_v3  ;;  %v14006_v39 = vld [vmem:[#allocation134_spill] sm:$0xff]  ;;  %v14012_v1 = vld [vmem:[#allocation285_spill] sm:$0xff] }
 0x386   :  { %13999 = vst [vmem:[#allocation235_spill] sm:$0xff] %v10677_v51  ;;  %14001 = vst [vmem:[#allocation375_spill] sm:$0xff] %v10680_v36  ;;  %v3860_v44 = vmul.f32 %v2324_v41, %v2324_v41  ;;  %v3861_v16 = vmul.f32 %v2325_v17, %v2325_v17  ;;  %v2342_v58 = vsub.f32 %v2052_v52, %v9562_v42  ;;  %v14008_v36 = vld [vmem:[#allocation276_spill] sm:$0xff] }
 0x387   :  { %14003 = vst [vmem:[#allocation37_spill] sm:$0xff] %v10683_v23  ;;  %14005 = vst [vmem:[#allocation376_spill] sm:$0xff] %v10686_v50  ;;  %v2343_v53 = vsub.f32 %v2052_v52, %v9564_v12  ;;  %v10699_v51 = vadd.f32 %v3858_v5, %v14006_v39  ;;  %v10702_v56 = vadd.f32 %v3859_v55, %v14008_v36 }
 0x388   :  { %v2344_v59 = vsub.f32 %v2052_v52, %v9566_v28  ;;  %v2345_v23 = vsub.f32 %v2052_v52, %v9568_v0  ;;  %v10707_v50 = vadd.f32 %v3860_v44, %v14010_v21  ;;  %v10710_v3 = vadd.f32 %v3861_v16, %v14012_v1  ;;  %v14014_v52 = vld [vmem:[#allocation147_spill] sm:$0xff]  ;;  %v14016_v21 = vld [vmem:[#allocation289_spill] sm:$0xff] }
 0x389   :  { %14007 = vst [vmem:[#allocation38_spill] sm:$0xff] %v10699_v51  ;;  %14009 = vst [vmem:[#allocation377_spill] sm:$0xff] %v10702_v56  ;;  %v3878_v41 = vmul.f32 %v2342_v58, %v2342_v58  ;;  %v3879_v17 = vmul.f32 %v2343_v53, %v2343_v53  ;;  %v14018_v16 = vld [vmem:[#allocation9_spill] sm:$0xff]  ;;  %v14020_v53 = vld [vmem:[#allocation290_spill] sm:$0xff]  ;;  %v2330_v1 = vsub.f32 %v2040_v18, %v9562_v42  ;;  %v2048_v51 = vpop.permute.xlu1 %2047 }
 0x38a   :  { %14011 = vst [vmem:[#allocation39_spill] sm:$0xff] %v10707_v50  ;;  %14013 = vst [vmem:[#allocation378_spill] sm:$0xff] %v10710_v3  ;;  %v3880_v5 = vmul.f32 %v2344_v59, %v2344_v59  ;;  %v3881_v36 = vmul.f32 %v2345_v23, %v2345_v23  ;;  %v2331_v23 = vsub.f32 %v2040_v18, %v9564_v12  ;;  %v2060_v59 = vpop.permute.xlu0 %2059  ;;  %v14022_v3 = vld [vmem:[#allocation152_spill] sm:$0xff]  ;;  %v14024_v56 = vld [vmem:[#allocation139_spill] sm:$0xff] }
 0x38b   :  { %v10717_v55 = vadd.f32 %v3878_v41, %v14014_v52  ;;  %v10720_v44 = vadd.f32 %v3879_v17, %v14016_v21  ;;  %v2332_v41 = vsub.f32 %v2040_v18, %v9566_v28  ;;  %v2333_v17 = vsub.f32 %v2040_v18, %v9568_v0 }
 0x38c   :  { %v10723_v58 = vadd.f32 %v3880_v5, %v14018_v16  ;;  %v10726_v39 = vadd.f32 %v3881_v36, %v14020_v53  ;;  %v3866_v5 = vmul.f32 %v2330_v1, %v2330_v1  ;;  %v3867_v36 = vmul.f32 %v2331_v23, %v2331_v23  ;;  %v14026_v1 = vld [vmem:[#allocation281_spill] sm:$0xff] }
 0x38d   :  { %14015 = vst [vmem:[#allocation45_spill] sm:$0xff] %v10717_v55  ;;  %14017 = vst [vmem:[#allocation401_spill] sm:$0xff] %v10720_v44  ;;  %v3868_v52 = vmul.f32 %v2332_v41, %v2332_v41  ;;  %v3869_v21 = vmul.f32 %v2333_v17, %v2333_v17  ;;  %v2350_v16 = vsub.f32 %v2060_v59, %v9562_v42  ;;  %v14023_v44 = vld [vmem:[#allocation288_spill] sm:$0xff] }
 0x38e   :  { %14019 = vst [vmem:[#allocation46_spill] sm:$0xff] %v10723_v58  ;;  %14021 = vst [vmem:[#allocation402_spill] sm:$0xff] %v10726_v39  ;;  %v2351_v53 = vsub.f32 %v2060_v59, %v9564_v12  ;;  %v10739_v55 = vadd.f32 %v3866_v5, %v14022_v3  ;;  %v10742_v50 = vadd.f32 %v3867_v36, %v14023_v44  ;;  %v14030_v5 = vld [vmem:[#allocation165_spill] sm:$0xff] }
 0x38f   :  { %v2352_v18 = vsub.f32 %v2060_v59, %v9566_v28  ;;  %v2353_v58 = vsub.f32 %v2060_v59, %v9568_v0  ;;  %v10747_v39 = vadd.f32 %v3868_v52, %v14024_v56  ;;  %v10750_v23 = vadd.f32 %v3869_v21, %v14026_v1  ;;  %v14032_v52 = vld [vmem:[#allocation301_spill] sm:$0xff] }
 0x390   :  { %v3886_v41 = vmul.f32 %v2350_v16, %v2350_v16  ;;  %v3887_v17 = vmul.f32 %v2351_v53, %v2351_v53  ;;  %v2338_v16 = vsub.f32 %v2048_v51, %v9562_v42  ;;  %v2068_v53 = vpop.permute.xlu0 %2067 }
 0x391   :  { %14025 = vst [vmem:[#allocation47_spill] sm:$0xff] %v10747_v39  ;;  %14027 = vst [vmem:[#allocation403_spill] sm:$0xff] %v10750_v23  ;;  %v3888_v3 = vmul.f32 %v2352_v18, %v2352_v18  ;;  %v3889_v44 = vmul.f32 %v2353_v58, %v2353_v58  ;;  %v2339_v58 = vsub.f32 %v2048_v51, %v9564_v12  ;;  %v14037_v23 = vld [vmem:[#allocation284_spill] sm:$0xff]  ;;  %v2056_v39 = vpop.permute.xlu1 %2055 }
 0x392   :  { %v10757_v59 = vadd.f32 %v3886_v41, %v9436_v43  ;;  %v10760_v56 = vadd.f32 %v3887_v17, %v9438_v30  ;;  %v2340_v43 = vsub.f32 %v2048_v51, %v9566_v28  ;;  %v2341_v30 = vsub.f32 %v2048_v51, %v9568_v0 }
 0x393   :  { %v10763_v36 = vadd.f32 %v3888_v3, %v14030_v5  ;;  %v10766_v21 = vadd.f32 %v3889_v44, %v14032_v52  ;;  %v3874_v18 = vmul.f32 %v2338_v16, %v2338_v16  ;;  %v3875_v1 = vmul.f32 %v2339_v58, %v2339_v58  ;;  %v14034_v5 = vld [vmem:[#allocation283_spill] sm:$0xff]  ;;  %v14039_v16 = vld [vmem:[#allocation157_spill] sm:$0xff] }
 0x394   :  { %14028 = vst [vmem:[#allocation48_spill] sm:$0xff] %v10757_v59  ;;  %14029 = vst [vmem:[#allocation404_spill] sm:$0xff] %v10760_v56  ;;  %v3876_v41 = vmul.f32 %v2340_v43, %v2340_v43  ;;  %v3877_v17 = vmul.f32 %v2341_v30, %v2341_v30  ;;  %v2358_v3 = vsub.f32 %v2068_v53, %v9562_v42  ;;  %v14035_v56 = vld [vmem:[#allocation142_spill] sm:$0xff] }
 0x395   :  { %14031 = vst [vmem:[#allocation44_spill] sm:$0xff] %v10763_v36  ;;  %14033 = vst [vmem:[#allocation382_spill] sm:$0xff] %v10766_v21  ;;  %v2359_v44 = vsub.f32 %v2068_v53, %v9564_v12  ;;  %v10779_v52 = vadd.f32 %v3874_v18, %v14034_v5  ;;  %v10782_v59 = vadd.f32 %v3875_v1, %v14035_v56 }
 0x396   :  { %v2360_v51 = vsub.f32 %v2068_v53, %v9566_v28  ;;  %v2361_v36 = vsub.f32 %v2068_v53, %v9568_v0  ;;  %v10787_v21 = vadd.f32 %v3876_v41, %v14037_v23  ;;  %v10790_v58 = vadd.f32 %v3877_v17, %v14039_v16 }
 0x397   :  { %14036 = vst [vmem:[#allocation236_spill] sm:$0xff] %v10782_v59  ;;  %v3894_v43 = vmul.f32 %v2358_v3, %v2358_v3  ;;  %v3895_v30 = vmul.f32 %v2359_v44, %v2359_v44  ;;  %v2346_v17 = vsub.f32 %v2056_v39, %v9562_v42  ;;  %v2076_v3 = vpop.permute.xlu0 %2075 }
 0x398   :  { %14038 = vst [vmem:[#allocation383_spill] sm:$0xff] %v10787_v21  ;;  %14040 = vst [vmem:[#allocation237_spill] sm:$0xff] %v10790_v58  ;;  %v3896_v18 = vmul.f32 %v2360_v51, %v2360_v51  ;;  %v3897_v56 = vmul.f32 %v2361_v36, %v2361_v36  ;;  %v2347_v36 = vsub.f32 %v2056_v39, %v9564_v12 }
 0x399   :  { %v10797_v53 = vadd.f32 %v3894_v43, %v9476_v34  ;;  %v10800_v23 = vadd.f32 %v3895_v30, %v9478_v32  ;;  %v2348_v34 = vsub.f32 %v2056_v39, %v9566_v28  ;;  %v2349_v32 = vsub.f32 %v2056_v39, %v9568_v0  ;;  %v14045_v43 = vld [vmem:[#allocation159_spill] sm:$0xff] }
 0x39a   :  { %v10803_v1 = vadd.f32 %v3896_v18, %v9480_v27  ;;  %v10806_v41 = vadd.f32 %v3897_v56, %v9482_v47  ;;  %v3882_v27 = vmul.f32 %v2346_v17, %v2346_v17  ;;  %v3883_v47 = vmul.f32 %v2347_v36, %v2347_v36  ;;  %v14046_v18 = vld [vmem:[#allocation295_spill] sm:$0xff]  ;;  %v14050_v17 = vld [vmem:[#allocation296_spill] sm:$0xff] }
 0x39b   :  { %14041 = vst [vmem:[#allocation384_spill] sm:$0xff] %v10797_v53  ;;  %14042 = vst [vmem:[#allocation238_spill] sm:$0xff] %v10800_v23  ;;  %v3884_v44 = vmul.f32 %v2348_v34, %v2348_v34  ;;  %v3885_v5 = vmul.f32 %v2349_v32, %v2349_v32  ;;  %v2366_v51 = vsub.f32 %v2076_v3, %v9562_v42  ;;  %v14048_v23 = vld [vmem:[#allocation160_spill] sm:$0xff]  ;;  %v2064_v53 = vpop.permute.xlu1 %2063 }
 0x39c   :  { %14043 = vst [vmem:[#allocation385_spill] sm:$0xff] %v10803_v1  ;;  %14044 = vst [vmem:[#allocation52_spill] sm:$0xff] %v10806_v41  ;;  %v2367_v16 = vsub.f32 %v2076_v3, %v9564_v12  ;;  %v10819_v30 = vadd.f32 %v3882_v27, %v14045_v43  ;;  %v10822_v56 = vadd.f32 %v3883_v47, %v14046_v18  ;;  %v2084_v18 = vpop.permute.xlu0 %2083 }
 0x39d   :  { %v2368_v39 = vsub.f32 %v2076_v3, %v9566_v28  ;;  %v2369_v1 = vsub.f32 %v2076_v3, %v9568_v0  ;;  %v10827_v41 = vadd.f32 %v3884_v44, %v14048_v23  ;;  %v10830_v36 = vadd.f32 %v3885_v5, %v14050_v17  ;;  %v14054_v44 = vld [vmem:[#allocation154_spill] sm:$0xff] }
 0x39e   :  { %14047 = vst [vmem:[#allocation53_spill] sm:$0xff] %v10822_v56  ;;  %v3902_v34 = vmul.f32 %v2366_v51, %v2366_v51  ;;  %v3903_v32 = vmul.f32 %v2367_v16, %v2367_v16  ;;  %v14056_v51 = vld [vmem:[#allocation298_spill] sm:$0xff]  ;;  %v2354_v43 = vsub.f32 %v2064_v53, %v9562_v42  ;;  %v14094_v56 = vld [vmem:[#allocation304_spill] sm:$0xff] }
 0x39f   :  { %14049 = vst [vmem:[#allocation409_spill] sm:$0xff] %v10827_v41  ;;  %14051 = vst [vmem:[#allocation54_spill] sm:$0xff] %v10830_v36  ;;  %v3904_v27 = vmul.f32 %v2368_v39, %v2368_v39  ;;  %v3905_v47 = vmul.f32 %v2369_v1, %v2369_v1  ;;  %v2355_v1 = vsub.f32 %v2064_v53, %v9564_v12  ;;  %v14062_v36 = vld [vmem:[#allocation149_spill] sm:$0xff]  ;;  %v2072_v58 = vpop.permute.xlu1 %2071 }
 0x3a0   :  { %v10837_v3 = vadd.f32 %v3902_v34, %v9512_v2  ;;  %v10840_v23 = vadd.f32 %v3903_v32, %v9514_v62  ;;  %v2356_v2 = vsub.f32 %v2064_v53, %v9566_v28  ;;  %v2357_v62 = vsub.f32 %v2064_v53, %v9568_v0 }
 0x3a1   :  { %v10843_v5 = vadd.f32 %v3904_v27, %v14054_v44  ;;  %v10846_v16 = vadd.f32 %v3905_v47, %v14056_v51  ;;  %v3890_v39 = vmul.f32 %v2354_v43, %v2354_v43  ;;  %v3891_v17 = vmul.f32 %v2355_v1, %v2355_v1  ;;  %v14058_v44 = vld [vmem:[#allocation148_spill] sm:$0xff] }
 0x3a2   :  { %14052 = vst [vmem:[#allocation410_spill] sm:$0xff] %v10837_v3  ;;  %14053 = vst [vmem:[#allocation55_spill] sm:$0xff] %v10840_v23  ;;  %v3892_v34 = vmul.f32 %v2356_v2, %v2356_v2  ;;  %v3893_v32 = vmul.f32 %v2357_v62, %v2357_v62  ;;  %v2374_v27 = vsub.f32 %v2084_v18, %v9562_v42  ;;  %v14060_v23 = vld [vmem:[#allocation291_spill] sm:$0xff]  ;;  %v14064_v43 = vld [vmem:[#allocation292_spill] sm:$0xff] }
 0x3a3   :  { %14055 = vst [vmem:[#allocation411_spill] sm:$0xff] %v10843_v5  ;;  %14057 = vst [vmem:[#allocation239_spill] sm:$0xff] %v10846_v16  ;;  %v2375_v47 = vsub.f32 %v2084_v18, %v9564_v12  ;;  %v10859_v51 = vadd.f32 %v3890_v39, %v14058_v44  ;;  %v10862_v3 = vadd.f32 %v3891_v17, %v14060_v23  ;;  %v14068_v17 = vld [vmem:[#allocation173_spill] sm:$0xff]  ;;  %v2080_v21 = vpop.permute.xlu1 %2079 }
 0x3a4   :  { %v2376_v53 = vsub.f32 %v2084_v18, %v9566_v28  ;;  %v2377_v5 = vsub.f32 %v2084_v18, %v9568_v0  ;;  %v10867_v16 = vadd.f32 %v3892_v34, %v14062_v36  ;;  %v10870_v1 = vadd.f32 %v3893_v32, %v14064_v43  ;;  %v14070_v32 = vld [vmem:[#allocation174_spill] sm:$0xff] }
 0x3a5   :  { %14059 = vst [vmem:[#allocation390_spill] sm:$0xff] %v10859_v51  ;;  %14061 = vst [vmem:[#allocation49_spill] sm:$0xff] %v10862_v3  ;;  %v3910_v2 = vmul.f32 %v2374_v27, %v2374_v27  ;;  %v3911_v62 = vmul.f32 %v2375_v47, %v2375_v47  ;;  %v2362_v47 = vsub.f32 %v2072_v58, %v9562_v42 }
 0x3a6   :  { %14063 = vst [vmem:[#allocation391_spill] sm:$0xff] %v10867_v16  ;;  %14065 = vst [vmem:[#allocation50_spill] sm:$0xff] %v10870_v1  ;;  %v3912_v39 = vmul.f32 %v2376_v53, %v2376_v53  ;;  %v3913_v23 = vmul.f32 %v2377_v5, %v2377_v5  ;;  %v2363_v5 = vsub.f32 %v2072_v58, %v9564_v12  ;;  %v14076_v1 = vld [vmem:[#allocation166_spill] sm:$0xff] }
 0x3a7   :  { %v10877_v18 = vadd.f32 %v3910_v2, %v9546_v29  ;;  %v10880_v36 = vadd.f32 %v3911_v62, %v9548_v61  ;;  %v2364_v29 = vsub.f32 %v2072_v58, %v9566_v28  ;;  %v2365_v44 = vsub.f32 %v2072_v58, %v9568_v0  ;;  %v14072_v62 = vld [vmem:[#allocation225_spill] sm:$0xff]  ;;  %v14078_v16 = vld [vmem:[#allocation302_spill] sm:$0xff]  ;;  %v14080_v58 = vld [vmem:[#allocation227_spill] sm:$0xff] }
 0x3a8   :  { %v10883_v34 = vadd.f32 %v3912_v39, %v14068_v17  ;;  %v10886_v27 = vadd.f32 %v3913_v23, %v14070_v32  ;;  %v3898_v61 = vmul.f32 %v2362_v47, %v2362_v47  ;;  %v3899_v53 = vmul.f32 %v2363_v5, %v2363_v5  ;;  %v14073_v39 = vld [vmem:[#allocation361_spill] sm:$0xff]  ;;  %v14074_v17 = vld [vmem:[#allocation226_spill] sm:$0xff]  ;;  %v14083_v47 = vld [vmem:[#allocation364_spill] sm:$0xff] }
 0x3a9   :  { %14066 = vst [vmem:[#allocation392_spill] sm:$0xff] %v10877_v18  ;;  %14067 = vst [vmem:[#allocation51_spill] sm:$0xff] %v10880_v36  ;;  %v3900_v43 = vmul.f32 %v2364_v29, %v2364_v29  ;;  %v3901_v2 = vmul.f32 %v2365_v44, %v2365_v44  ;;  %v3150_v23 = vadd.f32 %v14073_v39, %v14072_v62  ;;  %v14075_v32 = vld [vmem:[#allocation362_spill] sm:$0xff]  ;;  %v2092_v29 = vpop.permute.xlu0 %2091  ;;  %v14084_v44 = vld [vmem:[#allocation167_spill] sm:$0xff] }
 0x3aa   :  { %14069 = vst [vmem:[#allocation393_spill] sm:$0xff] %v10883_v34  ;;  %14071 = vst [vmem:[#allocation57_spill] sm:$0xff] %v10886_v27  ;;  %v3151_v18 = vadd.f32 %v14075_v32, %v14074_v17  ;;  %v10901_v36 = vadd.f32 %v3898_v61, %v14076_v1  ;;  %v10904_v3 = vadd.f32 %v3899_v53, %v14078_v16  ;;  %v14081_v34 = vld [vmem:[#allocation363_spill] sm:$0xff]  ;;  %v14082_v27 = vld [vmem:[#allocation228_spill] sm:$0xff] }
 0x3ab   :  { %v3152_v51 = vadd.f32 %v14081_v34, %v14080_v58  ;;  %v3153_v5 = vadd.f32 %v14083_v47, %v14082_v27  ;;  %v10911_v41 = vadd.f32 %v3900_v43, %v14084_v44  ;;  %v14086_v62 = vld [vmem:[#allocation303_spill] sm:$0xff]  ;;  %v14088_v17 = vld [vmem:[#allocation309_spill] sm:$0xff]  ;;  %v14090_v34 = vld [vmem:[#allocation310_spill] sm:$0xff]  ;;  %v2382_v53 = vsub.f32 %v2092_v29, %v9562_v42 }
 0x3ac   :  { %14077 = vst [vmem:[#allocation58_spill] sm:$0xff] %v10901_v36  ;;  %14079 = vst [vmem:[#allocation416_spill] sm:$0xff] %v10904_v3  ;;  %v10914_v39 = vadd.f32 %v3901_v2, %v14086_v62  ;;  %v3662_v32 = vadd.f32 %v14088_v17, %v3150_v23  ;;  %v14089_v1 = vld [vmem:[#allocation175_spill] sm:$0xff]  ;;  %v2383_v43 = vsub.f32 %v2092_v29, %v9564_v12 }
 0x3ad   :  { %14085 = vst [vmem:[#allocation59_spill] sm:$0xff] %v10911_v41  ;;  %v3663_v61 = vadd.f32 %v14089_v1, %v3151_v18  ;;  %v3664_v16 = vadd.f32 %v9580_v8, %v3152_v51  ;;  %v3665_v27 = vadd.f32 %v14090_v34, %v3153_v5  ;;  %v2384_v2 = vsub.f32 %v2092_v29, %v9566_v28 }
 0x3ae   :  { %14087 = vst [vmem:[#allocation417_spill] sm:$0xff] %v10914_v39  ;;  %v2385_v18 = vsub.f32 %v2092_v29, %v9568_v0  ;;  %v2370_v23 = vsub.f32 %v2080_v21, %v9562_v42  ;;  %v2371_v58 = vsub.f32 %v2080_v21, %v9564_v12  ;;  %v3918_v47 = vmul.f32 %v2382_v53, %v2382_v53  ;;  %v14093_v53 = vld [vmem:[#allocation168_spill] sm:$0xff] }
 0x3af   :  { %v3919_v8 = vmul.f32 %v2383_v43, %v2383_v43  ;;  %v2372_v51 = vsub.f32 %v2080_v21, %v9566_v28  ;;  %v2373_v5 = vsub.f32 %v2080_v21, %v9568_v0  ;;  %v3920_v44 = vmul.f32 %v2384_v2, %v2384_v2  ;;  %v2088_v21 = vpop.permute.xlu1 %2087  ;;  %v14097_v2 = vld [vmem:[#allocation297_spill] sm:$0xff] }
 0x3b0   :  { %v3921_v62 = vmul.f32 %v2385_v18, %v2385_v18  ;;  %v3906_v17 = vmul.f32 %v2370_v23, %v2370_v23  ;;  %v3907_v1 = vmul.f32 %v2371_v58, %v2371_v58  ;;  %v10932_v34 = vadd.f32 %v3918_v47, %v3662_v32  ;;  %v14095_v32 = vld [vmem:[#allocation153_spill] sm:$0xff] }
 0x3b1   :  { %v10934_v39 = vadd.f32 %v3919_v8, %v3663_v61  ;;  %v3908_v41 = vmul.f32 %v2372_v51, %v2372_v51  ;;  %v3909_v29 = vmul.f32 %v2373_v5, %v2373_v5  ;;  %v10936_v3 = vadd.f32 %v3920_v44, %v3664_v16  ;;  %v14099_v23 = vld [vmem:[#allocation229_spill] sm:$0xff]  ;;  %v14102_v51 = vld [vmem:[#allocation358_spill] sm:$0xff]  ;;  %v14103_v44 = vld [vmem:[#allocation11_spill] sm:$0xff] }
 0x3b2   :  { %v10938_v36 = vadd.f32 %v3921_v62, %v3665_v27  ;;  %v10941_v43 = vadd.f32 %v3906_v17, %v14093_v53  ;;  %v10944_v59 = vadd.f32 %v3907_v1, %v14094_v56  ;;  %v2378_v56 = vsub.f32 %v2088_v21, %v9562_v42  ;;  %v14100_v58 = vld [vmem:[#allocation357_spill] sm:$0xff]  ;;  %v14104_v62 = vld [vmem:[#allocation359_spill] sm:$0xff]  ;;  %v14105_v1 = vld [vmem:[#allocation14_spill] sm:$0xff] }
 0x3b3   :  { %14091 = vst [vmem:[#allocation60_spill] sm:$0xff] %v10936_v3  ;;  %v10949_v61 = vadd.f32 %v3908_v41, %v14095_v32  ;;  %v10952_v18 = vadd.f32 %v3909_v29, %v14097_v2  ;;  %v2379_v41 = vsub.f32 %v2088_v21, %v9564_v12  ;;  %v2380_v16 = vsub.f32 %v2088_v21, %v9566_v28  ;;  %v14101_v8 = vld [vmem:[#allocation13_spill] sm:$0xff]  ;;  %v14106_v29 = vld [vmem:[#allocation360_spill] sm:$0xff]  ;;  %v14107_v2 = vld [vmem:[#allocation155_spill] sm:$0xff]  ;;  %4439 = sbr.rel (%p5698_p2) target bundleno = 1210 (0x4ba), region = 13 }
 0x3b4   :  { %14092 = vst [vmem:[#allocation418_spill] sm:$0xff] %v10938_v36  ;;  %v2381_v27 = vsub.f32 %v2088_v21, %v9568_v0  ;;  %v3146_v47 = vadd.f32 %v14100_v58, %v14099_v23  ;;  %v3147_v5 = vadd.f32 %v14102_v51, %v14101_v8  ;;  %v3148_v17 = vadd.f32 %v14104_v62, %v14103_v44  ;;  %v14108_v36 = vld [vmem:[#allocation299_spill] sm:$0xff]  ;;  %v14109_v21 = vld [vmem:[#allocation156_spill] sm:$0xff]  ;;  %v14138_v62 = vld [vmem:[#allocation318_spill] sm:$0xff] (!%p5698_p2) }
 0x3b5   :  { %14096 = vst [vmem:[#allocation56_spill] sm:$0xff] %v10949_v61  ;;  %14098 = vst [vmem:[#allocation397_spill] sm:$0xff] %v10952_v18  ;;  %v3149_v53 = vadd.f32 %v14106_v29, %v14105_v1  ;;  %v3914_v32 = vmul.f32 %v2378_v56, %v2378_v56  ;;  %v3915_v42 = vmul.f32 %v2379_v41, %v2379_v41  ;;  %v14110_v23 = vld [vmem:[#allocation300_spill] sm:$0xff]  ;;  %v14112_v41 = vlaneseq (!%p5698_p2)  ;;  %v14140_v1 = vld [vmem:[#allocation171_spill] sm:$0xff] (!%p5698_p2) }
 0x3b6   :  { %v3658_v12 = vadd.f32 %v14107_v2, %v3146_v47  ;;  %v3659_v28 = vadd.f32 %v14108_v36, %v3147_v5  ;;  %v3916_v18 = vmul.f32 %v2380_v16, %v2380_v16  ;;  %v3917_v0 = vmul.f32 %v2381_v27, %v2381_v27  ;;  %v14133_v27 = vld [vmem:[#allocation313_spill] sm:$0xff] (!%p5698_p2) }
 0x3b7   :  { %v3660_v3 = vadd.f32 %v14109_v21, %v3148_v17  ;;  %v3661_v58 = vadd.f32 %v14110_v23, %v3149_v53  ;;  %v10998_v16 = vand.u32 (!%p5698_p2), 127, %v14112_v41  ;;  %v5897_v47 = vmov (!%p5698_p2), 0  }
 0x3b8   :  { %v10976_v61 = vadd.f32 %v3914_v32, %v3658_v12  ;;  %v10978_v8 = vadd.f32 %v3915_v42, %v3659_v28  ;;  %v5215_v5 = vsel (!%p5698_p2), %vm5027_vm3, 16843009, %v5897_v47  ;;  %v14117_v32 = vld [vmem:[#allocation311_spill] sm:$0xff] (!%p5698_p2)  ;;  %v14121_v12 = vld [vmem:[#allocation317_spill] sm:$0xff] (!%p5698_p2)  ;;  %v14123_v28 = vld [vmem:[#allocation162_spill] sm:$0xff] (!%p5698_p2) }
 0x3b9   :  { %v10980_v51 = vadd.f32 %v3916_v18, %v3660_v3  ;;  %v10982_v44 = vadd.f32 %v3917_v0, %v3661_v58  ;;  %v14111_v3 = vld [vmem:[#allocation10_spill] sm:$0xff] (!%p5698_p2)  ;;  %5279 = vst [vmem:[#allocation5 + $0x8] sm:$0xff] (!%p5698_p2), %v5215_v5  ;;  %v14119_v42 = vld [vmem:[#allocation307_spill] sm:$0xff] (!%p5698_p2)  ;;  %v14125_v58 = vld [vmem:[#allocation161_spill] sm:$0xff] (!%p5698_p2) }
 0x3ba   :  { %v4442_v36 = vadd.s32 8, %v14111_v3  ;;  %v4443_v18 = vadd.s32 16, %v14111_v3  ;;  %v4444_v56 = vadd.s32 24, %v14111_v3  ;;  %vm4510_vm12 = vcmp.ne.s32.totalorder %v14111_v3, %v10998_v16  ;;  %v14135_v5 = vld [vmem:[#allocation308_spill] sm:$0xff] }
 0x3bb   :  { %vm4766_vm2 = vmand %vm12539_vm0, %vm4510_vm12  ;;  %v4445_v29 = vadd.s32 32, %v14111_v3  ;;  %vm14118_vm12 = vcmp.lt.f32.partialorder %v14117_v32, 4.0  ;;  %vm14120_vm3 = vcmp.lt.f32.partialorder %v14119_v42, 4.0  ;;  %v4446_v2 = vadd.s32 40, %v14111_v3  ;;  %v14146_v32 = vld [vmem:[#allocation169_spill] sm:$0xff] }
 0x3bc   :  { %vm4514_vm7 = vcmp.ne.s32.totalorder %v4442_v36, %v10998_v16  ;;  %vm4518_vm13 = vcmp.ne.s32.totalorder %v4443_v18, %v10998_v16  ;;  %vm4522_vm6 = vcmp.ne.s32.totalorder %v4444_v56, %v10998_v16  ;;  %vm5028_vm0 = vmpackc.low %vm14120_vm3, %vm14118_vm12  ;;  %v4447_v0 = vadd.s32 48, %v14111_v3  ;;  %v14127_v36 = vld [vmem:[#allocation164_spill] sm:$0xff]  ;;  %v14131_v56 = vld [vmem:[#allocation306_spill] sm:$0xff] }
 0x3bd   :  { %vm4770_vm9 = vmand %vm12542_vm8, %vm4514_vm7  ;;  %vm14122_vm7 = vcmp.lt.f32.partialorder %v14121_v12, 4.0  ;;  %v4448_v21 = vadd.s32 56, %v14111_v3  ;;  %v14129_v18 = vld [vmem:[#allocation184_spill] sm:$0xff]  ;;  %vm4530_vm3 = vcmp.ne.s32.totalorder %v4446_v2, %v10998_v16  ;;  %v4449_v42 = vadd.s32 64, %v14111_v3  ;;  %v14148_v12 = vld [vmem:[#allocation314_spill] sm:$0xff] }
 0x3be   :  { %vm4774_vm5 = vmand %vm12541_vm15, %vm4518_vm13  ;;  %vm14124_vm13 = vcmp.lt.f32.partialorder %v14123_v28, 4.0  ;;  %v14150_v28 = vld [vmem:[#allocation182_spill] sm:$0xff] }
 0x3bf   :  { %vm4778_vm14 = vmand %vm12540_vm4, %vm4522_vm6  ;;  %vm14137_vm4 = vcmp.lt.f32.partialorder %v9780_v63, 4.0 }
 0x3c0   :  { %vm5022_vm1 = vmpackc.low %vm4770_vm9, %vm4766_vm2  ;;  %vm14126_vm2 = vcmp.lt.f32.partialorder %v14125_v58, 4.0  ;;  %v4451_v58 = vadd.s32 80, %v14111_v3 }
 0x3c1   :  { %vm5023_vm10 = vmpackc.low %vm4778_vm14, %vm4774_vm5  ;;  %vm14128_vm5 = vcmp.lt.f32.partialorder %v14127_v36, 4.0  ;;  %vm4526_vm14 = vcmp.ne.s32.totalorder %v4445_v29, %v10998_v16  ;;  %v14142_v29 = vld [vmem:[#allocation181_spill] sm:$0xff]  ;;  %v4452_v36 = vadd.s32 88, %v14111_v3 }
 0x3c2   :  { %vm5024_vm11 = vmpackc.even %vm5023_vm10, %vm5022_vm1  ;;  %vm14130_vm10 = vcmp.lt.f32.partialorder %v14129_v18, 4.0 }
 0x3c3   :  { %v5214_v53 = vsel %vm5024_vm11, 16843009, %v5897_v47  ;;  %vm5029_vm6 = vmpackc.low %vm14124_vm13, %vm14122_vm7  ;;  %vm14132_vm11 = vcmp.lt.f32.partialorder %v14131_v56, 4.0  ;;  %vm4534_vm7 = vcmp.ne.s32.totalorder %v4447_v0, %v10998_v16  ;;  %vm4538_vm13 = vcmp.ne.s32.totalorder %v4448_v21, %v10998_v16  ;;  %v14152_v21 = vld [vmem:[#allocation191_spill] sm:$0xff]  ;;  %v14156_v56 = vld [vmem:[#allocation172_spill] sm:$0xff] }
 0x3c4   :  { %5278 = vst [vmem:[#allocation5] sm:$0xff] %v5214_v53  ;;  %vm5030_vm1 = vmpackc.even %vm5029_vm6, %vm5028_vm0  ;;  %vm14134_vm6 = vcmp.lt.f32.partialorder %v14133_v27, 4.0  ;;  %v14144_v53 = vld [vmem:[#allocation324_spill] sm:$0xff]  ;;  %v4450_v0 = vadd.s32 72, %v14111_v3  ;;  %v14160_v27 = vld [vmem:[#allocation325_spill] sm:$0xff] }
 0x3c5   :  { %v5216_v23 = vsel %vm5030_vm1, 16843009, %v5897_v47  ;;  %vm5031_vm9 = vmpackc.low %vm14128_vm5, %vm14126_vm2  ;;  %vm14136_vm2 = vcmp.lt.f32.partialorder %v14135_v5, 4.0  ;;  %v14162_v5 = vld [vmem:[#allocation170_spill] sm:$0xff] }
 0x3c6   :  { %5280 = vst [vmem:[#allocation5 + $0x10] sm:$0xff] %v5216_v23  ;;  %vm5032_vm12 = vmpackc.low %vm14132_vm11, %vm14130_vm10  ;;  %vm14139_vm10 = vcmp.lt.f32.partialorder %v14138_v62, 4.0  ;;  %v14154_v23 = vld [vmem:[#allocation312_spill] sm:$0xff] }
 0x3c7   :  { %vm5033_vm0 = vmpackc.even %vm5032_vm12, %vm5031_vm9 }
 0x3c8   :  { %v5217_v41 = vsel %vm5033_vm0, 16843009, %v5897_v47  ;;  %vm4782_vm1 = vmand %vm14134_vm6, %vm4526_vm14  ;;  %vm14141_vm0 = vcmp.lt.f32.partialorder %v14140_v1, 4.0  ;;  %vm14143_vm6 = vcmp.lt.f32.partialorder %v14142_v29, 4.0  ;;  %v14167_v1 = vld [vmem:[#allocation198_spill] sm:$0xff]  ;;  %v14169_v29 = vld [vmem:[#allocation192_spill] sm:$0xff] }
 0x3c9   :  { %5281 = vst [vmem:[#allocation5 + $0x18] sm:$0xff] %v5217_v41  ;;  %vm4786_vm5 = vmand %vm14136_vm2, %vm4530_vm3  ;;  %vm14145_vm2 = vcmp.lt.f32.partialorder %v14144_v53, 4.0  ;;  %vm14147_vm3 = vcmp.lt.f32.partialorder %v14146_v32, 4.0  ;;  %v14158_v41 = vld [vmem:[#allocation316_spill] sm:$0xff]  ;;  %v14171_v32 = vld [vmem:[#allocation178_spill] sm:$0xff] }
 0x3ca   :  { %vm4790_vm15 = vmand %vm14137_vm4, %vm4534_vm7 }
 0x3cb   :  { %vm4794_vm11 = vmand %vm14139_vm10, %vm4538_vm13 }
 0x3cc   :  { %vm5034_vm9 = vmpackc.low %vm4786_vm5, %vm4782_vm1  ;;  %vm14153_vm1 = vcmp.lt.f32.partialorder %v14152_v21, 4.0  ;;  %vm14155_vm5 = vcmp.lt.f32.partialorder %v14154_v23, 4.0  ;;  %v14179_v21 = vld [vmem:[#allocation320_spill] sm:$0xff]  ;;  %v14181_v23 = vld [vmem:[#allocation323_spill] sm:$0xff] }
 0x3cd   :  { %vm5035_vm12 = vmpackc.low %vm4794_vm11, %vm4790_vm15  ;;  %vm14149_vm15 = vcmp.lt.f32.partialorder %v14148_v12, 4.0  ;;  %v14177_v12 = vld [vmem:[#allocation326_spill] sm:$0xff] }
 0x3ce   :  { %vm5036_vm8 = vmpackc.even %vm5035_vm12, %vm5034_vm9  ;;  %vm14157_vm9 = vcmp.lt.f32.partialorder %v14156_v56, 4.0  ;;  %vm14159_vm12 = vcmp.lt.f32.partialorder %v14158_v41, 4.0  ;;  %v4455_v56 = vadd.s32 112, %v14111_v3  ;;  %v4456_v41 = vadd.s32 120, %v14111_v3 }
 0x3cf   :  { %v5218_v17 = vsel %vm5036_vm8, 16843009, %v5897_v47  ;;  %vm5037_vm14 = vmpackc.low %vm14143_vm6, %vm14141_vm0  ;;  %vm14151_vm8 = vcmp.lt.f32.partialorder %v14150_v28, 4.0  ;;  %vm4542_vm6 = vcmp.ne.s32.totalorder %v4449_v42, %v10998_v16  ;;  %v14173_v42 = vld [vmem:[#allocation189_spill] sm:$0xff]  ;;  %v4453_v28 = vadd.s32 96, %v14111_v3 }
 0x3d0   :  { %5282 = vst [vmem:[#allocation5 + $0x20] sm:$0xff] %v5218_v17  ;;  %vm5038_vm4 = vmpackc.low %vm14147_vm3, %vm14145_vm2  ;;  %vm14163_vm2 = vcmp.lt.f32.partialorder %v14162_v5, 4.0  ;;  %v14165_v17 = vld [vmem:[#allocation315_spill] sm:$0xff] }
 0x3d1   :  { %vm5039_vm7 = vmpackc.even %vm5038_vm4, %vm5037_vm14  ;;  %vm14161_vm14 = vcmp.lt.f32.partialorder %v14160_v27, 4.0  ;;  %vm4546_vm4 = vcmp.ne.s32.totalorder %v4450_v0, %v10998_v16  ;;  %v14187_v5 = vld [vmem:[#allocation179_spill] sm:$0xff] }
 0x3d2   :  { %v5219_v2 = vsel %vm5039_vm7, 16843009, %v5897_v47  ;;  %vm5040_vm13 = vmpackc.low %vm14151_vm8, %vm14149_vm15  ;;  %vm4550_vm15 = vcmp.ne.s32.totalorder %v4451_v58, %v10998_v16  ;;  %vm4554_vm8 = vcmp.ne.s32.totalorder %v4452_v36, %v10998_v16  ;;  %v4454_v58 = vadd.s32 104, %v14111_v3  ;;  %v14183_v36 = vld [vmem:[#allocation199_spill] sm:$0xff] }
 0x3d3   :  { %5283 = vst [vmem:[#allocation5 + $0x28] sm:$0xff] %v5219_v2  ;;  %vm5041_vm10 = vmpackc.low %vm14155_vm5, %vm14153_vm1  ;;  %vm14166_vm5 = vcmp.lt.f32.partialorder %v14165_v17, 4.0  ;;  %v14175_v2 = vld [vmem:[#allocation331_spill] sm:$0xff]  ;;  %v14191_v17 = vld [vmem:[#allocation332_spill] sm:$0xff] }
 0x3d4   :  { %vm5042_vm11 = vmpackc.even %vm5041_vm10, %vm5040_vm13  ;;  %vm14164_vm13 = vcmp.lt.f32.partialorder %v9828_v38, 4.0 }
 0x3d5   :  { %v5220_v18 = vsel %vm5042_vm11, 16843009, %v5897_v47  ;;  %vm5043_vm0 = vmpackc.low %vm14159_vm12, %vm14157_vm9  ;;  %vm14168_vm11 = vcmp.lt.f32.partialorder %v14167_v1, 4.0  ;;  %vm14170_vm12 = vcmp.lt.f32.partialorder %v14169_v29, 4.0  ;;  %v14193_v1 = vld [vmem:[#allocation319_spill] sm:$0xff] }
 0x3d6   :  { %5284 = vst [vmem:[#allocation5 + $0x30] sm:$0xff] %v5220_v18  ;;  %vm5044_vm3 = vmpackc.low %vm14163_vm2, %vm14161_vm14  ;;  %v14185_v18 = vld [vmem:[#allocation177_spill] sm:$0xff] }
 0x3d7   :  { %vm5045_vm7 = vmpackc.even %vm5044_vm3, %vm5043_vm0 }
 0x3d8   :  { %v5221_v62 = vsel %vm5045_vm7, 16843009, %v5897_v47  ;;  %vm4798_vm1 = vmand %vm14164_vm13, %vm4542_vm6  ;;  %vm14172_vm7 = vcmp.lt.f32.partialorder %v14171_v32, 4.0  ;;  %vm14174_vm6 = vcmp.lt.f32.partialorder %v14173_v42, 4.0  ;;  %v14198_v32 = vld [vmem:[#allocation206_spill] sm:$0xff]  ;;  %v14200_v42 = vld [vmem:[#allocation200_spill] sm:$0xff] }
 0x3d9   :  { %5285 = vst [vmem:[#allocation5 + $0x38] sm:$0xff] %v5221_v62  ;;  %vm4802_vm10 = vmand %vm14166_vm5, %vm4546_vm4  ;;  %vm14176_vm4 = vcmp.lt.f32.partialorder %v14175_v2, 4.0  ;;  %vm14178_vm5 = vcmp.lt.f32.partialorder %v14177_v12, 4.0  ;;  %v14189_v62 = vld [vmem:[#allocation190_spill] sm:$0xff] }
 0x3da   :  { %vm4806_vm9 = vmand %vm14168_vm11, %vm4550_vm15  ;;  %v14202_v12 = vld [vmem:[#allocation186_spill] sm:$0xff] }
 0x3db   :  { %vm4810_vm14 = vmand %vm14170_vm12, %vm4554_vm8  ;;  %vm14180_vm8 = vcmp.lt.f32.partialorder %v14179_v21, 4.0  ;;  %vm14186_vm12 = vcmp.lt.f32.partialorder %v14185_v18, 4.0  ;;  %v14208_v21 = vld [vmem:[#allocation333_spill] sm:$0xff]  ;;  %v14214_v18 = vld [vmem:[#allocation207_spill] sm:$0xff] }
 0x3dc   :  { %vm5046_vm0 = vmpackc.low %vm4802_vm10, %vm4798_vm1  ;;  %vm14182_vm1 = vcmp.lt.f32.partialorder %v14181_v23, 4.0 }
 0x3dd   :  { %vm5047_vm2 = vmpackc.low %vm4810_vm14, %vm4806_vm9  ;;  %vm14184_vm9 = vcmp.lt.f32.partialorder %v14183_v36, 4.0  ;;  %v14212_v36 = vld [vmem:[#allocation322_spill] sm:$0xff] }
 0x3de   :  { %vm5048_vm3 = vmpackc.even %vm5047_vm2, %vm5046_vm0  ;;  %vm14188_vm2 = vcmp.lt.f32.partialorder %v14187_v5, 4.0 }
 0x3df   :  { %v5222_v53 = vsel %vm5048_vm3, 16843009, %v5897_v47  ;;  %vm5049_vm13 = vmpackc.low %vm14174_vm6, %vm14172_vm7  ;;  %vm14190_vm3 = vcmp.lt.f32.partialorder %v14189_v62, 4.0  ;;  %vm4558_vm6 = vcmp.ne.s32.totalorder %v4453_v28, %v10998_v16  ;;  %v14204_v28 = vld [vmem:[#allocation180_spill] sm:$0xff]  ;;  %v14218_v62 = vld [vmem:[#allocation187_spill] sm:$0xff] }
 0x3e0   :  { %5286 = vst [vmem:[#allocation5 + $0x40] sm:$0xff] %v5222_v53  ;;  %vm5050_vm11 = vmpackc.low %vm14178_vm5, %vm14176_vm4  ;;  %vm14194_vm4 = vcmp.lt.f32.partialorder %v14193_v1, 4.0  ;;  %v14196_v53 = vld [vmem:[#allocation321_spill] sm:$0xff]  ;;  %v4458_v1 = vadd.s32 136, %v14111_v3 }
 0x3e1   :  { %vm5051_vm15 = vmpackc.even %vm5050_vm11, %vm5049_vm13  ;;  %vm14192_vm13 = vcmp.lt.f32.partialorder %v14191_v17, 4.0  ;;  %vm4562_vm11 = vcmp.ne.s32.totalorder %v4454_v58, %v10998_v16  ;;  %v14210_v58 = vld [vmem:[#allocation328_spill] sm:$0xff]  ;;  %v14220_v17 = vld [vmem:[#allocation197_spill] sm:$0xff] }
 0x3e2   :  { %v5223_v0 = vsel %vm5051_vm15, 16843009, %v5897_v47  ;;  %vm5052_vm10 = vmpackc.low %vm14182_vm1, %vm14180_vm8  ;;  %vm4566_vm8 = vcmp.ne.s32.totalorder %v4455_v56, %v10998_v16  ;;  %vm4570_vm1 = vcmp.ne.s32.totalorder %v4456_v41, %v10998_v16  ;;  %v14216_v56 = vld [vmem:[#allocation185_spill] sm:$0xff]  ;;  %v4457_v41 = vadd.s32 128, %v14111_v3 }
 0x3e3   :  { %5287 = vst [vmem:[#allocation5 + $0x48] sm:$0xff] %v5223_v0  ;;  %vm5053_vm14 = vmpackc.low %vm14186_vm12, %vm14184_vm9  ;;  %vm14197_vm12 = vcmp.lt.f32.partialorder %v14196_v53, 4.0  ;;  %v14206_v0 = vld [vmem:[#allocation338_spill] sm:$0xff]  ;;  %v14224_v53 = vld [vmem:[#allocation327_spill] sm:$0xff] }
 0x3e4   :  { %vm5054_vm0 = vmpackc.even %vm5053_vm14, %vm5052_vm10  ;;  %vm14195_vm10 = vcmp.lt.f32.partialorder %v9924_v48, 4.0 }
 0x3e5   :  { %v5224_v27 = vsel %vm5054_vm0, 16843009, %v5897_v47  ;;  %vm5055_vm7 = vmpackc.low %vm14190_vm3, %vm14188_vm2  ;;  %vm14199_vm0 = vcmp.lt.f32.partialorder %v14198_v32, 4.0  ;;  %vm14201_vm3 = vcmp.lt.f32.partialorder %v14200_v42, 4.0  ;;  %v4459_v32 = vadd.s32 144, %v14111_v3 }
 0x3e6   :  { %5288 = vst [vmem:[#allocation5 + $0x50] sm:$0xff] %v5224_v27  ;;  %vm5056_vm5 = vmpackc.low %vm14194_vm4, %vm14192_vm13  ;;  %v11165_v27 = vadd.s32 128, %v10998_v16  ;;  %v4460_v42 = vadd.s32 152, %v14111_v3 }
 0x3e7   :  { %vm5057_vm15 = vmpackc.even %vm5056_vm5, %vm5055_vm7 }
 0x3e8   :  { %v5225_v29 = vsel %vm5057_vm15, 16843009, %v5897_v47  ;;  %vm4814_vm9 = vmand %vm14195_vm10, %vm4558_vm6  ;;  %vm14203_vm15 = vcmp.lt.f32.partialorder %v14202_v12, 4.0  ;;  %vm14205_vm6 = vcmp.lt.f32.partialorder %v14204_v28, 4.0  ;;  %v14226_v12 = vld [vmem:[#allocation194_spill] sm:$0xff]  ;;  %v14228_v28 = vld [vmem:[#allocation329_spill] sm:$0xff] }
 0x3e9   :  { %5289 = vst [vmem:[#allocation5 + $0x58] sm:$0xff] %v5225_v29  ;;  %vm4818_vm14 = vmand %vm14197_vm12, %vm4562_vm11  ;;  %vm14207_vm11 = vcmp.lt.f32.partialorder %v14206_v0, 4.0  ;;  %vm14209_vm12 = vcmp.lt.f32.partialorder %v14208_v21, 4.0  ;;  %v14222_v29 = vld [vmem:[#allocation339_spill] sm:$0xff]  ;;  %v14230_v0 = vld [vmem:[#allocation214_spill] sm:$0xff] }
 0x3ea   :  { %vm4822_vm2 = vmand %vm14199_vm0, %vm4566_vm8  ;;  %v14232_v21 = vld [vmem:[#allocation208_spill] sm:$0xff] }
 0x3eb   :  { %vm4826_vm13 = vmand %vm14201_vm3, %vm4570_vm1  ;;  %vm14211_vm1 = vcmp.lt.f32.partialorder %v14210_v58, 4.0  ;;  %vm14217_vm3 = vcmp.lt.f32.partialorder %v14216_v56, 4.0  ;;  %v14234_v58 = vld [vmem:[#allocation335_spill] sm:$0xff]  ;;  %v14240_v56 = vld [vmem:[#allocation340_spill] sm:$0xff] }
 0x3ec   :  { %vm5058_vm7 = vmpackc.low %vm4818_vm14, %vm4814_vm9  ;;  %vm14213_vm9 = vcmp.lt.f32.partialorder %v14212_v36, 4.0  ;;  %v14236_v36 = vld [vmem:[#allocation188_spill] sm:$0xff] }
 0x3ed   :  { %vm5059_vm4 = vmpackc.low %vm4826_vm13, %vm4822_vm2  ;;  %vm14215_vm2 = vcmp.lt.f32.partialorder %v14214_v18, 4.0  ;;  %v14238_v18 = vld [vmem:[#allocation346_spill] sm:$0xff] }
 0x3ee   :  { %vm5060_vm5 = vmpackc.even %vm5059_vm4, %vm5058_vm7  ;;  %vm14219_vm4 = vcmp.lt.f32.partialorder %v14218_v62, 4.0  ;;  %v14244_v62 = vld [vmem:[#allocation330_spill] sm:$0xff] }
 0x3ef   :  { %v5226_v2 = vsel %vm5060_vm5, 16843009, %v5897_v47  ;;  %vm5061_vm10 = vmpackc.low %vm14205_vm6, %vm14203_vm15  ;;  %vm14221_vm5 = vcmp.lt.f32.partialorder %v14220_v17, 4.0  ;;  %vm14223_vm6 = vcmp.lt.f32.partialorder %v14222_v29, 4.0  ;;  %v14246_v17 = vld [vmem:[#allocation215_spill] sm:$0xff]  ;;  %v4461_v29 = vadd.s32 160, %v14111_v3 }
 0x3f0   :  { %5290 = vst [vmem:[#allocation5 + $0x60] sm:$0xff] %v5226_v2  ;;  %vm5062_vm0 = vmpackc.low %vm14209_vm12, %vm14207_vm11 }
 0x3f1   :  { %vm5063_vm8 = vmpackc.even %vm5062_vm0, %vm5061_vm10  ;;  %vm14225_vm10 = vcmp.lt.f32.partialorder %v14224_v53, 4.0  ;;  %vm14227_vm0 = vcmp.lt.f32.partialorder %v14226_v12, 4.0  ;;  %v14254_v12 = vld [vmem:[#allocation347_spill] sm:$0xff] }
 0x3f2   :  { %v5227_v23 = vsel %vm5063_vm8, 16843009, %v5897_v47  ;;  %vm5064_vm14 = vmpackc.low %vm14213_vm9, %vm14211_vm1  ;;  %vm14229_vm8 = vcmp.lt.f32.partialorder %v14228_v28, 4.0  ;;  %vm4575_vm9 = vcmp.ne.s32.totalorder %v4457_v41, %v11165_v27  ;;  %v14256_v28 = vld [vmem:[#allocation334_spill] sm:$0xff] }
 0x3f3   :  { %5291 = vst [vmem:[#allocation5 + $0x68] sm:$0xff] %v5227_v23  ;;  %vm5065_vm13 = vmpackc.low %vm14217_vm3, %vm14215_vm2  ;;  %vm14233_vm2 = vcmp.lt.f32.partialorder %v14232_v21, 4.0  ;;  %v4464_v21 = vadd.s32 184, %v14111_v3 }
 0x3f4   :  { %vm5066_vm7 = vmpackc.even %vm5065_vm13, %vm5064_vm14  ;;  %vm14231_vm14 = vcmp.lt.f32.partialorder %v14230_v0, 4.0  ;;  %vm4579_vm13 = vcmp.ne.s32.totalorder %v4458_v1, %v11165_v27  ;;  %v14248_v1 = vld [vmem:[#allocation193_spill] sm:$0xff]  ;;  %v4463_v0 = vadd.s32 176, %v14111_v3 }
 0x3f5   :  { %v5228_v5 = vsel %vm5066_vm7, 16843009, %v5897_v47  ;;  %vm5067_vm15 = vmpackc.low %vm14221_vm5, %vm14219_vm4  ;;  %vm4583_vm4 = vcmp.ne.s32.totalorder %v4459_v32, %v11165_v27  ;;  %vm4587_vm5 = vcmp.ne.s32.totalorder %v4460_v42, %v11165_v27  ;;  %v14250_v32 = vld [vmem:[#allocation336_spill] sm:$0xff]  ;;  %v14252_v42 = vld [vmem:[#allocation205_spill] sm:$0xff] }
 0x3f6   :  { %5292 = vst [vmem:[#allocation5 + $0x70] sm:$0xff] %v5228_v5  ;;  %vm5068_vm11 = vmpackc.low %vm14225_vm10, %vm14223_vm6  ;;  %vm14237_vm10 = vcmp.lt.f32.partialorder %v14236_v36, 4.0  ;;  %v14242_v5 = vld [vmem:[#allocation195_spill] sm:$0xff]  ;;  %v14262_v36 = vld [vmem:[#allocation216_spill] sm:$0xff] }
 0x3f7   :  { %vm5069_vm12 = vmpackc.even %vm5068_vm11, %vm5067_vm15  ;;  %vm14235_vm15 = vcmp.lt.f32.partialorder %v14234_v58, 4.0  ;;  %v14259_v58 = vld [vmem:[#allocation196_spill] sm:$0xff] }
 0x3f8   :  { %v5229_v2 = vsel %vm5069_vm12, 16843009, %v5897_v47  ;;  %vm5070_vm1 = vmpackc.low %vm14229_vm8, %vm14227_vm0  ;;  %vm14239_vm12 = vcmp.lt.f32.partialorder %v14238_v18, 4.0  ;;  %vm14241_vm8 = vcmp.lt.f32.partialorder %v14240_v56, 4.0  ;;  %v14265_v56 = vld [vmem:[#allocation337_spill] sm:$0xff] }
 0x3f9   :  { %5293 = vst [vmem:[#allocation5 + $0x78] sm:$0xff] %v5229_v2  ;;  %vm5071_vm3 = vmpackc.low %vm14233_vm2, %vm14231_vm14  ;;  %v4462_v2 = vadd.s32 168, %v14111_v3 }
 0x3fa   :  { %vm5072_vm7 = vmpackc.even %vm5071_vm3, %vm5070_vm1 }
 0x3fb   :  { %v5230_v23 = vsel %vm5072_vm7, 16843009, %v5897_v47  ;;  %vm4831_vm6 = vmand %vm14235_vm15, %vm4575_vm9  ;;  %vm14243_vm7 = vcmp.lt.f32.partialorder %v14242_v5, 4.0  ;;  %vm14245_vm9 = vcmp.lt.f32.partialorder %v14244_v62, 4.0  ;;  %v14270_v62 = vld [vmem:[#allocation202_spill] sm:$0xff] }
 0x3fc   :  { %5294 = vst [vmem:[#allocation5 + $0x80] sm:$0xff] %v5230_v23  ;;  %vm4835_vm11 = vmand %vm14237_vm10, %vm4579_vm13  ;;  %vm14247_vm10 = vcmp.lt.f32.partialorder %v14246_v17, 4.0  ;;  %vm14249_vm13 = vcmp.lt.f32.partialorder %v14248_v1, 4.0  ;;  %v14272_v17 = vld [vmem:[#allocation213_spill] sm:$0xff] }
 0x3fd   :  { %vm4839_vm0 = vmand %vm14239_vm12, %vm4583_vm4  ;;  %v14274_v1 = vld [vmem:[#allocation221_spill] sm:$0xff] }
 0x3fe   :  { %vm4843_vm14 = vmand %vm14241_vm8, %vm4587_vm5  ;;  %vm14251_vm5 = vcmp.lt.f32.partialorder %v14250_v32, 4.0  ;;  %vm14257_vm8 = vcmp.lt.f32.partialorder %v14256_v28, 4.0  ;;  %v14282_v28 = vld [vmem:[#allocation222_spill] sm:$0xff] }
 0x3ff   :  { %vm5073_vm1 = vmpackc.low %vm4835_vm11, %vm4831_vm6  ;;  %vm14253_vm6 = vcmp.lt.f32.partialorder %v14252_v42, 4.0  ;;  %v14278_v42 = vld [vmem:[#allocation342_spill] sm:$0xff] }
 0x400   :  { %vm5074_vm2 = vmpackc.low %vm4843_vm14, %vm4839_vm0  ;;  %vm14255_vm0 = vcmp.lt.f32.partialorder %v14254_v12, 4.0  ;;  %v4466_v12 = vadd.s32 200, %v14111_v3 }
 0x401   :  { %vm5075_vm3 = vmpackc.even %vm5074_vm2, %vm5073_vm1  ;;  %vm14258_vm2 = vcmp.lt.f32.partialorder %v10116_v60, 4.0 }
 0x402   :  { %v5231_v41 = vsel %vm5075_vm3, 16843009, %v5897_v47  ;;  %vm5076_vm15 = vmpackc.low %vm14245_vm9, %vm14243_vm7  ;;  %vm14260_vm3 = vcmp.lt.f32.partialorder %v14259_v58, 4.0  ;;  %vm4591_vm9 = vcmp.ne.s32.totalorder %v4461_v29, %v11165_v27  ;;  %v14276_v29 = vld [vmem:[#allocation201_spill] sm:$0xff] }
 0x403   :  { %5295 = vst [vmem:[#allocation5 + $0x88] sm:$0xff] %v5231_v41  ;;  %vm5077_vm4 = vmpackc.low %vm14249_vm13, %vm14247_vm10  ;;  %vm14263_vm10 = vcmp.lt.f32.partialorder %v14262_v36, 4.0  ;;  %v14268_v41 = vld [vmem:[#allocation348_spill] sm:$0xff]  ;;  %v14287_v36 = vld [vmem:[#allocation203_spill] sm:$0xff] }
 0x404   :  { %vm5078_vm12 = vmpackc.even %vm5077_vm4, %vm5076_vm15  ;;  %vm14261_vm15 = vcmp.lt.f32.partialorder %v10164_v37, 4.0  ;;  %vm4595_vm4 = vcmp.ne.s32.totalorder %v4462_v2, %v11165_v27  ;;  %v14280_v2 = vld [vmem:[#allocation345_spill] sm:$0xff] }
 0x405   :  { %v5232_v53 = vsel %vm5078_vm12, 16843009, %v5897_v47  ;;  %vm5079_vm11 = vmpackc.low %vm14253_vm6, %vm14251_vm5  ;;  %vm4599_vm5 = vcmp.ne.s32.totalorder %v4463_v0, %v11165_v27  ;;  %vm4603_vm6 = vcmp.ne.s32.totalorder %v4464_v21, %v11165_v27  ;;  %v14284_v0 = vld [vmem:[#allocation341_spill] sm:$0xff]  ;;  %v4467_v21 = vadd.s32 208, %v14111_v3 }
 0x406   :  { %5296 = vst [vmem:[#allocation5 + $0x90] sm:$0xff] %v5232_v53  ;;  %vm5080_vm14 = vmpackc.low %vm14257_vm8, %vm14255_vm0  ;;  %vm14266_vm8 = vcmp.lt.f32.partialorder %v14265_v56, 4.0  ;;  %v4465_v53 = vadd.s32 192, %v14111_v3 }
 0x407   :  { %vm5081_vm1 = vmpackc.even %vm5080_vm14, %vm5079_vm11  ;;  %vm14264_vm11 = vcmp.lt.f32.partialorder %v10118_v6, 4.0 }
 0x408   :  { %v5233_v23 = vsel %vm5081_vm1, 16843009, %v5897_v47  ;;  %vm5082_vm7 = vmpackc.low %vm14260_vm3, %vm14258_vm2  ;;  %vm14267_vm1 = vcmp.lt.f32.partialorder %v10166_v15, 4.0  ;;  %vm14269_vm3 = vcmp.lt.f32.partialorder %v14268_v41, 4.0  ;;  %v14293_v41 = vld [vmem:[#allocation343_spill] sm:$0xff] }
 0x409   :  { %5297 = vst [vmem:[#allocation5 + $0x98] sm:$0xff] %v5233_v23  ;;  %vm5083_vm13 = vmpackc.low %vm14263_vm10, %vm14261_vm15  ;;  %v4468_v23 = vadd.s32 216, %v14111_v3 }
 0x40a   :  { %vm5084_vm12 = vmpackc.even %vm5083_vm13, %vm5082_vm7 }
 0x40b   :  { %v5234_v18 = vsel %vm5084_vm12, 16843009, %v5897_v47  ;;  %vm4847_vm0 = vmand %vm14264_vm11, %vm4591_vm9  ;;  %vm14271_vm12 = vcmp.lt.f32.partialorder %v14270_v62, 4.0  ;;  %vm14273_vm9 = vcmp.lt.f32.partialorder %v14272_v17, 4.0  ;;  %v14298_v17 = vld [vmem:[#allocation210_spill] sm:$0xff] }
 0x40c   :  { %5298 = vst [vmem:[#allocation5 + $0xa0] sm:$0xff] %v5234_v18  ;;  %vm4851_vm14 = vmand %vm14266_vm8, %vm4595_vm4  ;;  %vm14275_vm4 = vcmp.lt.f32.partialorder %v14274_v1, 4.0  ;;  %vm14277_vm8 = vcmp.lt.f32.partialorder %v14276_v29, 4.0  ;;  %v14290_v18 = vld [vmem:[#allocation223_spill] sm:$0xff]  ;;  %v14300_v1 = vld [vmem:[#allocation204_spill] sm:$0xff] }
 0x40d   :  { %vm4855_vm2 = vmand %vm14267_vm1, %vm4599_vm5  ;;  %v14303_v29 = vld [vmem:[#allocation209_spill] sm:$0xff] }
 0x40e   :  { %vm4859_vm15 = vmand %vm14269_vm3, %vm4603_vm6  ;;  %vm14279_vm6 = vcmp.lt.f32.partialorder %v14278_v42, 4.0  ;;  %vm14285_vm3 = vcmp.lt.f32.partialorder %v14284_v0, 4.0  ;;  %v14305_v42 = vld [vmem:[#allocation350_spill] sm:$0xff]  ;;  %v4471_v0 = vadd.s32 240, %v14111_v3 }
 0x40f   :  { %vm5085_vm7 = vmpackc.low %vm4851_vm14, %vm4847_vm0  ;;  %vm14281_vm0 = vcmp.lt.f32.partialorder %v14280_v2, 4.0  ;;  %v14307_v2 = vld [vmem:[#allocation344_spill] sm:$0xff] }
 0x410   :  { %vm5086_vm10 = vmpackc.low %vm4859_vm15, %vm4855_vm2  ;;  %vm14283_vm2 = vcmp.lt.f32.partialorder %v14282_v28, 4.0  ;;  %v14310_v28 = vld [vmem:[#allocation349_spill] sm:$0xff] }
 0x411   :  { %vm5087_vm13 = vmpackc.even %vm5086_vm10, %vm5085_vm7  ;;  %vm14286_vm10 = vcmp.lt.f32.partialorder %v10212_v57, 4.0 }
 0x412   :  { %v5235_v5 = vsel %vm5087_vm13, 16843009, %v5897_v47  ;;  %vm5088_vm11 = vmpackc.low %vm14273_vm9, %vm14271_vm12  ;;  %vm14288_vm13 = vcmp.lt.f32.partialorder %v14287_v36, 4.0  ;;  %vm4607_vm9 = vcmp.ne.s32.totalorder %v4465_v53, %v11165_v27  ;;  %v4469_v53 = vadd.s32 224, %v14111_v3  ;;  %v14316_v36 = vld [vmem:[#allocation217_spill] sm:$0xff] }
 0x413   :  { %5299 = vst [vmem:[#allocation5 + $0xa8] sm:$0xff] %v5235_v5  ;;  %vm5089_vm1 = vmpackc.low %vm14277_vm8, %vm14275_vm4  ;;  %vm14291_vm4 = vcmp.lt.f32.partialorder %v14290_v18, 4.0  ;;  %v14296_v5 = vld [vmem:[#allocation224_spill] sm:$0xff] }
 0x414   :  { %vm5090_vm5 = vmpackc.even %vm5089_vm1, %vm5088_vm11  ;;  %vm14289_vm11 = vcmp.lt.f32.partialorder %v10258_v13, 4.0  ;;  %vm4611_vm1 = vcmp.ne.s32.totalorder %v4466_v12, %v11165_v27  ;;  %v4470_v12 = vadd.s32 232, %v14111_v3 }
 0x415   :  { %v5236_v32 = vsel %vm5090_vm5, 16843009, %v5897_v47  ;;  %vm5091_vm14 = vmpackc.low %vm14281_vm0, %vm14279_vm6  ;;  %vm4615_vm6 = vcmp.ne.s32.totalorder %v4467_v21, %v11165_v27  ;;  %vm4619_vm0 = vcmp.ne.s32.totalorder %v4468_v23, %v11165_v27  ;;  %v4472_v21 = vadd.s32 248, %v14111_v3 }
 0x416   :  { %5300 = vst [vmem:[#allocation5 + $0xb0] sm:$0xff] %v5236_v32  ;;  %vm5092_vm15 = vmpackc.low %vm14285_vm3, %vm14283_vm2  ;;  %vm14294_vm3 = vcmp.lt.f32.partialorder %v14293_v41, 4.0  ;;  %v14322_v41 = vld [vmem:[#allocation353_spill] sm:$0xff] }
 0x417   :  { %vm5093_vm7 = vmpackc.even %vm5092_vm15, %vm5091_vm14  ;;  %vm14292_vm14 = vcmp.lt.f32.partialorder %v10214_v11, 4.0 }
 0x418   :  { %v5237_v58 = vsel %vm5093_vm7, 16843009, %v5897_v47  ;;  %vm5094_vm12 = vmpackc.low %vm14288_vm13, %vm14286_vm10  ;;  %vm14295_vm7 = vcmp.lt.f32.partialorder %v10260_v33, 4.0  ;;  %vm14297_vm13 = vcmp.lt.f32.partialorder %v14296_v5, 4.0 }
 0x419   :  { %5301 = vst [vmem:[#allocation5 + $0xb8] sm:$0xff] %v5237_v58  ;;  %vm5095_vm8 = vmpackc.low %vm14291_vm4, %vm14289_vm11  ;;  %v14313_v58 = vld [vmem:[#allocation211_spill] sm:$0xff] }
 0x41a   :  { %vm5096_vm5 = vmpackc.even %vm5095_vm8, %vm5094_vm12 }
 0x41b   :  { %v5238_v56 = vsel %vm5096_vm5, 16843009, %v5897_v47  ;;  %vm4863_vm2 = vmand %vm14292_vm14, %vm4607_vm9  ;;  %vm14299_vm5 = vcmp.lt.f32.partialorder %v14298_v17, 4.0  ;;  %vm14301_vm9 = vcmp.lt.f32.partialorder %v14300_v1, 4.0  ;;  %v14331_v1 = vld [vmem:[#allocation352_spill] sm:$0xff] }
 0x41c   :  { %5302 = vst [vmem:[#allocation5 + $0xc0] sm:$0xff] %v5238_v56  ;;  %vm4867_vm15 = vmand %vm14294_vm3, %vm4611_vm1  ;;  %vm14302_vm1 = vcmp.lt.f32.partialorder %v10264_v24, 4.0  ;;  %vm14304_vm3 = vcmp.lt.f32.partialorder %v14303_v29, 4.0  ;;  %v14319_v56 = vld [vmem:[#allocation351_spill] sm:$0xff]  ;;  %v14334_v29 = vld [vmem:[#allocation354_spill] sm:$0xff] }
 0x41d   :  { %vm4871_vm10 = vmand %vm14295_vm7, %vm4615_vm6 }
 0x41e   :  { %vm4875_vm11 = vmand %vm14297_vm13, %vm4619_vm0  ;;  %vm14306_vm0 = vcmp.lt.f32.partialorder %v14305_v42, 4.0  ;;  %vm14311_vm13 = vcmp.lt.f32.partialorder %v14310_v28, 4.0  ;;  %v14340_v28 = vld [vmem:[#allocation356_spill] sm:$0xff] }
 0x41f   :  { %vm5097_vm12 = vmpackc.low %vm4867_vm15, %vm4863_vm2  ;;  %vm14308_vm2 = vcmp.lt.f32.partialorder %v14307_v2, 4.0  ;;  %v4474_v2 = vadd.s32 264, %v14111_v3 }
 0x420   :  { %vm5098_vm4 = vmpackc.low %vm4875_vm11, %vm4871_vm10  ;;  %vm14309_vm10 = vcmp.lt.f32.partialorder %v10266_v10, 4.0 }
 0x421   :  { %vm5099_vm8 = vmpackc.even %vm5098_vm4, %vm5097_vm12  ;;  %vm14312_vm4 = vcmp.lt.f32.partialorder %v10302_v22, 4.0 }
 0x422   :  { %v5239_v62 = vsel %vm5099_vm8, 16843009, %v5897_v47  ;;  %vm5100_vm14 = vmpackc.low %vm14301_vm9, %vm14299_vm5  ;;  %vm14314_vm8 = vcmp.lt.f32.partialorder %v14313_v58, 4.0  ;;  %vm4623_vm9 = vcmp.ne.s32.totalorder %v4469_v53, %v11165_v27  ;;  %v4473_v53 = vadd.s32 256, %v14111_v3  ;;  %v14342_v58 = vld [vmem:[#allocation22_spill] sm:$0xff] }
 0x423   :  { %5303 = vst [vmem:[#allocation5 + $0xc8] sm:$0xff] %v5239_v62  ;;  %vm5101_vm6 = vmpackc.low %vm14304_vm3, %vm14302_vm1  ;;  %vm14317_vm1 = vcmp.lt.f32.partialorder %v14316_v36, 4.0  ;;  %v14328_v62 = vld [vmem:[#allocation218_spill] sm:$0xff]  ;;  %v14344_v36 = vld [vmem:[#allocation219_spill] sm:$0xff] }
 0x424   :  { %vm5102_vm7 = vmpackc.even %vm5101_vm6, %vm5100_vm14  ;;  %vm14315_vm14 = vcmp.lt.f32.partialorder %v10339_v26, 4.0  ;;  %vm4627_vm6 = vcmp.ne.s32.totalorder %v4470_v12, %v11165_v27  ;;  %v14338_v12 = vld [vmem:[#allocation26_spill] sm:$0xff] }
 0x425   :  { %v5240_v32 = vsel %vm5102_vm7, 16843009, %v5897_v47  ;;  %vm5103_vm15 = vmpackc.low %vm14308_vm2, %vm14306_vm0  ;;  %vm4631_vm0 = vcmp.ne.s32.totalorder %v4471_v0, %v11165_v27  ;;  %vm4635_vm2 = vcmp.ne.s32.totalorder %v4472_v21, %v11165_v27  ;;  %v14325_v27 = vld [vmem:[#allocation212_spill] sm:$0xff]  ;;  %v4475_v0 = vadd.s32 272, %v14111_v3 }
 0x426   :  { %5304 = vst [vmem:[#allocation5 + $0xd0] sm:$0xff] %v5240_v32  ;;  %vm5104_vm11 = vmpackc.low %vm14311_vm13, %vm14309_vm10  ;;  %vm14320_vm13 = vcmp.lt.f32.partialorder %v14319_v56, 4.0  ;;  %v11353_v32 = vadd.s32 256, %v10998_v16  ;;  %v4476_v21 = vadd.s32 280, %v14111_v3  ;;  %v14348_v56 = vld [vmem:[#allocation20_spill] sm:$0xff] }
 0x427   :  { %vm5105_vm12 = vmpackc.even %vm5104_vm11, %vm5103_vm15  ;;  %vm14318_vm15 = vcmp.lt.f32.partialorder %v10304_v19, 4.0 }
 0x428   :  { %v5241_v23 = vsel %vm5105_vm12, 16843009, %v5897_v47  ;;  %vm5106_vm5 = vmpackc.low %vm14314_vm8, %vm14312_vm4  ;;  %vm14321_vm12 = vcmp.lt.f32.partialorder %v10342_v7, 4.0  ;;  %vm14323_vm8 = vcmp.lt.f32.partialorder %v14322_v41, 4.0 }
 0x429   :  { %5305 = vst [vmem:[#allocation5 + $0xd8] sm:$0xff] %v5241_v23  ;;  %vm5107_vm3 = vmpackc.low %vm14317_vm1, %vm14315_vm14 }
 0x42a   :  { %vm5108_vm7 = vmpackc.even %vm5107_vm3, %vm5106_vm5 }
 0x42b   :  { %v5242_v18 = vsel %vm5108_vm7, 16843009, %v5897_v47  ;;  %vm4879_vm10 = vmand %vm14318_vm15, %vm4623_vm9  ;;  %vm14324_vm7 = vcmp.lt.f32.partialorder %v10308_v54, 4.0  ;;  %vm14326_vm9 = vcmp.lt.f32.partialorder %v14325_v27, 4.0  ;;  %v14352_v27 = vld [vmem:[#allocation355_spill] sm:$0xff] }
 0x42c   :  { %5306 = vst [vmem:[#allocation5 + $0xe0] sm:$0xff] %v5242_v18  ;;  %vm4883_vm11 = vmand %vm14320_vm13, %vm4627_vm6  ;;  %vm14327_vm6 = vcmp.lt.f32.partialorder %v10347_v20, 4.0  ;;  %vm14329_vm13 = vcmp.lt.f32.partialorder %v14328_v62, 4.0  ;;  %v14346_v18 = vld [vmem:[#allocation373_spill] sm:$0xff]  ;;  %v14354_v62 = vld [vmem:[#allocation27_spill] sm:$0xff] }
 0x42d   :  { %vm4887_vm4 = vmand %vm14321_vm12, %vm4631_vm0 }
 0x42e   :  { %vm4891_vm14 = vmand %vm14323_vm8, %vm4635_vm2  ;;  %vm14330_vm2 = vcmp.lt.f32.partialorder %v10310_v25, 4.0  ;;  %vm14335_vm8 = vcmp.lt.f32.partialorder %v14334_v29, 4.0  ;;  %v14358_v29 = vld [vmem:[#allocation23_spill] sm:$0xff] }
 0x42f   :  { %vm5109_vm5 = vmpackc.low %vm4883_vm11, %vm4879_vm10  ;;  %vm14332_vm10 = vcmp.lt.f32.partialorder %v14331_v1, 4.0 }
 0x430   :  { %vm5110_vm1 = vmpackc.low %vm4891_vm14, %vm4887_vm4  ;;  %vm14333_vm4 = vcmp.lt.f32.partialorder %v10350_v31, 4.0 }
 0x431   :  { %vm5111_vm3 = vmpackc.even %vm5110_vm1, %vm5109_vm5  ;;  %vm14336_vm1 = vcmp.lt.f32.partialorder %v10379_v45, 4.0 }
 0x432   :  { %v5243_v5 = vsel %vm5111_vm3, 16843009, %v5897_v47  ;;  %vm5112_vm15 = vmpackc.low %vm14326_vm9, %vm14324_vm7  ;;  %vm14337_vm3 = vcmp.lt.f32.partialorder %v10317_v49, 4.0  ;;  %vm14339_vm9 = vcmp.lt.f32.partialorder %v14338_v12, 4.0  ;;  %v4477_v12 = vadd.s32 288, %v14111_v3 }
 0x433   :  { %5307 = vst [vmem:[#allocation5 + $0xe8] sm:$0xff] %v5243_v5  ;;  %vm5113_vm0 = vmpackc.low %vm14329_vm13, %vm14327_vm6  ;;  %v14350_v5 = vld [vmem:[#allocation110_spill] sm:$0xff] }
 0x434   :  { %vm5114_vm12 = vmpackc.even %vm5113_vm0, %vm5112_vm15  ;;  %vm14341_vm15 = vcmp.lt.f32.partialorder %v14340_v28, 4.0  ;;  %vm14343_vm0 = vcmp.lt.f32.partialorder %v14342_v58, 4.0  ;;  %v14370_v58 = vld [vmem:[#allocation380_spill] sm:$0xff] }
 0x435   :  { %v5244_v17 = vsel %vm5114_vm12, 16843009, %v5897_v47  ;;  %vm5115_vm11 = vmpackc.low %vm14332_vm10, %vm14330_vm2  ;;  %vm14345_vm12 = vcmp.lt.f32.partialorder %v14344_v36, 4.0  ;;  %vm4640_vm10 = vcmp.ne.s32.totalorder %v4473_v53, %v11353_v32  ;;  %v14360_v53 = vld [vmem:[#allocation220_spill] sm:$0xff] }
 0x436   :  { %5308 = vst [vmem:[#allocation5 + $0xf0] sm:$0xff] %v5244_v17  ;;  %vm5116_vm14 = vmpackc.low %vm14335_vm8, %vm14333_vm4  ;;  %vm14349_vm4 = vcmp.lt.f32.partialorder %v14348_v56, 4.0  ;;  %v14356_v17 = vld [vmem:[#allocation21_spill] sm:$0xff]  ;;  %v14372_v36 = vld [vmem:[#allocation12_spill] sm:$0xff]  ;;  %v4480_v56 = vadd.s32 312, %v14111_v3 }
 0x437   :  { %vm5117_vm5 = vmpackc.even %vm5116_vm14, %vm5115_vm11  ;;  %vm14347_vm11 = vcmp.lt.f32.partialorder %v14346_v18, 4.0  ;;  %vm4644_vm14 = vcmp.ne.s32.totalorder %v4474_v2, %v11353_v32  ;;  %v14364_v2 = vld [vmem:[#allocation109_spill] sm:$0xff]  ;;  %v4479_v18 = vadd.s32 304, %v14111_v3 }
 0x438   :  { %v5245_v42 = vsel %vm5117_vm5, 16843009, %v5897_v47  ;;  %vm5118_vm7 = vmpackc.low %vm14337_vm3, %vm14336_vm1  ;;  %vm4648_vm1 = vcmp.ne.s32.totalorder %v4475_v0, %v11353_v32  ;;  %vm4652_vm3 = vcmp.ne.s32.totalorder %v4476_v21, %v11353_v32  ;;  %v14366_v0 = vld [vmem:[#allocation230_spill] sm:$0xff]  ;;  %v14368_v21 = vld [vmem:[#allocation111_spill] sm:$0xff] }
 0x439   :  { %5309 = vst [vmem:[#allocation5 + $0xf8] sm:$0xff] %v5245_v42  ;;  %vm5119_vm6 = vmpackc.low %vm14341_vm15, %vm14339_vm9  ;;  %vm14353_vm15 = vcmp.lt.f32.partialorder %v14352_v27, 4.0  ;;  %v14362_v42 = vld [vmem:[#allocation374_spill] sm:$0xff]  ;;  %v14376_v27 = vld [vmem:[#allocation24_spill] sm:$0xff] }
 0x43a   :  { %vm5120_vm13 = vmpackc.even %vm5119_vm6, %vm5118_vm7  ;;  %vm14351_vm7 = vcmp.lt.f32.partialorder %v14350_v5, 4.0  ;;  %v14374_v5 = vld [vmem:[#allocation106_spill] sm:$0xff] }
 0x43b   :  { %v5246_v23 = vsel %vm5120_vm13, 16843009, %v5897_v47  ;;  %vm5121_vm2 = vmpackc.low %vm14345_vm12, %vm14343_vm0  ;;  %vm14355_vm13 = vcmp.lt.f32.partialorder %v14354_v62, 4.0  ;;  %vm14357_vm12 = vcmp.lt.f32.partialorder %v14356_v17, 4.0  ;;  %v14378_v62 = vld [vmem:[#allocation31_spill] sm:$0xff]  ;;  %v14380_v17 = vld [vmem:[#allocation116_spill] sm:$0xff] }
 0x43c   :  { %5310 = vst [vmem:[#allocation5 + $0x100] sm:$0xff] %v5246_v23  ;;  %vm5122_vm8 = vmpackc.low %vm14349_vm4, %vm14347_vm11  ;;  %v4478_v23 = vadd.s32 296, %v14111_v3 }
 0x43d   :  { %vm5123_vm5 = vmpackc.even %vm5122_vm8, %vm5121_vm2 }
 0x43e   :  { %v5247_v41 = vsel %vm5123_vm5, 16843009, %v5897_v47  ;;  %vm4896_vm9 = vmand %vm14351_vm7, %vm4640_vm10  ;;  %vm14359_vm5 = vcmp.lt.f32.partialorder %v14358_v29, 4.0  ;;  %vm14361_vm7 = vcmp.lt.f32.partialorder %v14360_v53, 4.0  ;;  %v14382_v29 = vld [vmem:[#allocation231_spill] sm:$0xff]  ;;  %v14384_v53 = vld [vmem:[#allocation25_spill] sm:$0xff] }
 0x43f   :  { %5311 = vst [vmem:[#allocation5 + $0x108] sm:$0xff] %v5247_v41  ;;  %vm4900_vm6 = vmand %vm14353_vm15, %vm4644_vm14  ;;  %vm14363_vm14 = vcmp.lt.f32.partialorder %v14362_v42, 4.0  ;;  %vm14365_vm15 = vcmp.lt.f32.partialorder %v14364_v2, 4.0  ;;  %v14386_v42 = vld [vmem:[#allocation381_spill] sm:$0xff]  ;;  %v14388_v2 = vld [vmem:[#allocation15_spill] sm:$0xff] }
 0x440   :  { %vm4904_vm0 = vmand %vm14355_vm13, %vm4648_vm1 }
 0x441   :  { %vm4908_vm11 = vmand %vm14357_vm12, %vm4652_vm3  ;;  %vm14367_vm3 = vcmp.lt.f32.partialorder %v14366_v0, 4.0  ;;  %vm14373_vm12 = vcmp.lt.f32.partialorder %v14372_v36, 4.0  ;;  %v14392_v0 = vld [vmem:[#allocation372_spill] sm:$0xff] }
 0x442   :  { %vm5124_vm2 = vmpackc.low %vm4900_vm6, %vm4896_vm9  ;;  %vm14369_vm9 = vcmp.lt.f32.partialorder %v14368_v21, 4.0  ;;  %v14394_v21 = vld [vmem:[#allocation16_spill] sm:$0xff] }
 0x443   :  { %vm5125_vm4 = vmpackc.low %vm4908_vm11, %vm4904_vm0  ;;  %vm14371_vm0 = vcmp.lt.f32.partialorder %v14370_v58, 4.0  ;;  %v4481_v58 = vadd.s32 320, %v14111_v3 }
 0x444   :  { %vm5126_vm8 = vmpackc.even %vm5125_vm4, %vm5124_vm2  ;;  %vm14375_vm4 = vcmp.lt.f32.partialorder %v14374_v5, 4.0  ;;  %v14402_v5 = vld [vmem:[#allocation388_spill] sm:$0xff] }
 0x445   :  { %v5248_v1 = vsel %vm5126_vm8, 16843009, %v5897_v47  ;;  %vm5127_vm10 = vmpackc.low %vm14361_vm7, %vm14359_vm5  ;;  %vm14377_vm8 = vcmp.lt.f32.partialorder %v14376_v27, 4.0  ;;  %vm4656_vm7 = vcmp.ne.s32.totalorder %v4477_v12, %v11353_v32  ;;  %v14404_v27 = vld [vmem:[#allocation108_spill] sm:$0xff] }
 0x446   :  { %5312 = vst [vmem:[#allocation5 + $0x110] sm:$0xff] %v5248_v1  ;;  %vm5128_vm1 = vmpackc.low %vm14365_vm15, %vm14363_vm14  ;;  %vm14381_vm14 = vcmp.lt.f32.partialorder %v14380_v17, 4.0  ;;  %v4484_v17 = vadd.s32 344, %v14111_v3 }
 0x447   :  { %vm5129_vm13 = vmpackc.even %vm5128_vm1, %vm5127_vm10  ;;  %vm14379_vm10 = vcmp.lt.f32.partialorder %v14378_v62, 4.0  ;;  %vm4660_vm1 = vcmp.ne.s32.totalorder %v4478_v23, %v11353_v32  ;;  %v14396_v23 = vld [vmem:[#allocation105_spill] sm:$0xff]  ;;  %v4483_v62 = vadd.s32 336, %v14111_v3 }
 0x448   :  { %v5249_v28 = vsel %vm5129_vm13, 16843009, %v5897_v47  ;;  %vm5130_vm6 = vmpackc.low %vm14369_vm9, %vm14367_vm3  ;;  %vm4664_vm3 = vcmp.ne.s32.totalorder %v4479_v18, %v11353_v32  ;;  %vm4668_vm9 = vcmp.ne.s32.totalorder %v4480_v56, %v11353_v32  ;;  %v14398_v18 = vld [vmem:[#allocation366_spill] sm:$0xff]  ;;  %v14400_v56 = vld [vmem:[#allocation28_spill] sm:$0xff] }
 0x449   :  { %5313 = vst [vmem:[#allocation5 + $0x118] sm:$0xff] %v5249_v28  ;;  %vm5131_vm11 = vmpackc.low %vm14373_vm12, %vm14371_vm0  ;;  %vm14385_vm12 = vcmp.lt.f32.partialorder %v14384_v53, 4.0  ;;  %v14390_v28 = vld [vmem:[#allocation107_spill] sm:$0xff]  ;;  %v14408_v53 = vld [vmem:[#allocation29_spill] sm:$0xff] }
 0x44a   :  { %vm5132_vm2 = vmpackc.even %vm5131_vm11, %vm5130_vm6  ;;  %vm14383_vm6 = vcmp.lt.f32.partialorder %v14382_v29, 4.0  ;;  %v14406_v29 = vld [vmem:[#allocation19_spill] sm:$0xff] }
 0x44b   :  { %v5250_v41 = vsel %vm5132_vm2, 16843009, %v5897_v47  ;;  %vm5133_vm5 = vmpackc.low %vm14377_vm8, %vm14375_vm4  ;;  %vm14387_vm2 = vcmp.lt.f32.partialorder %v14386_v42, 4.0  ;;  %vm14389_vm8 = vcmp.lt.f32.partialorder %v14388_v2, 4.0  ;;  %v14410_v42 = vld [vmem:[#allocation36_spill] sm:$0xff]  ;;  %v14412_v2 = vld [vmem:[#allocation17_spill] sm:$0xff] }
 0x44c   :  { %5314 = vst [vmem:[#allocation5 + $0x120] sm:$0xff] %v5250_v41  ;;  %vm5134_vm15 = vmpackc.low %vm14381_vm14, %vm14379_vm10  ;;  %v4482_v41 = vadd.s32 328, %v14111_v3 }
 0x44d   :  { %vm5135_vm13 = vmpackc.even %vm5134_vm15, %vm5133_vm5 }
 0x44e   :  { %v5251_v1 = vsel %vm5135_vm13, 16843009, %v5897_v47  ;;  %vm4912_vm0 = vmand %vm14383_vm6, %vm4656_vm7  ;;  %vm14391_vm13 = vcmp.lt.f32.partialorder %v14390_v28, 4.0  ;;  %vm14393_vm6 = vcmp.lt.f32.partialorder %v14392_v0, 4.0  ;;  %v14414_v28 = vld [vmem:[#allocation367_spill] sm:$0xff] }
 0x44f   :  { %5315 = vst [vmem:[#allocation5 + $0x128] sm:$0xff] %v5251_v1  ;;  %vm4916_vm11 = vmand %vm14385_vm12, %vm4660_vm1  ;;  %vm14395_vm1 = vcmp.lt.f32.partialorder %v14394_v21, 4.0  ;;  %vm14397_vm12 = vcmp.lt.f32.partialorder %v14396_v23, 4.0  ;;  %v14416_v0 = vld [vmem:[#allocation379_spill] sm:$0xff]  ;;  %v14418_v21 = vld [vmem:[#allocation389_spill] sm:$0xff] }
 0x450   :  { %vm4920_vm4 = vmand %vm14387_vm2, %vm4664_vm3  ;;  %v14420_v23 = vld [vmem:[#allocation365_spill] sm:$0xff] }
 0x451   :  { %vm4924_vm10 = vmand %vm14389_vm8, %vm4668_vm9  ;;  %vm14399_vm9 = vcmp.lt.f32.partialorder %v14398_v18, 4.0  ;;  %vm14405_vm8 = vcmp.lt.f32.partialorder %v14404_v27, 4.0  ;;  %v14424_v18 = vld [vmem:[#allocation30_spill] sm:$0xff] }
 0x452   :  { %vm5136_vm5 = vmpackc.low %vm4916_vm11, %vm4912_vm0  ;;  %vm14401_vm0 = vcmp.lt.f32.partialorder %v14400_v56, 4.0  ;;  %v14426_v56 = vld [vmem:[#allocation32_spill] sm:$0xff] }
 0x453   :  { %vm5137_vm14 = vmpackc.low %vm4924_vm10, %vm4920_vm4  ;;  %vm14403_vm4 = vcmp.lt.f32.partialorder %v14402_v5, 4.0  ;;  %v4485_v5 = vadd.s32 352, %v14111_v3 }
 0x454   :  { %vm5138_vm15 = vmpackc.even %vm5137_vm14, %vm5136_vm5  ;;  %vm14407_vm14 = vcmp.lt.f32.partialorder %v14406_v29, 4.0  ;;  %v4487_v29 = vadd.s32 368, %v14111_v3 }
 0x455   :  { %v5252_v12 = vsel %vm5138_vm15, 16843009, %v5897_v47  ;;  %vm5139_vm7 = vmpackc.low %vm14393_vm6, %vm14391_vm13  ;;  %vm14409_vm15 = vcmp.lt.f32.partialorder %v14408_v53, 4.0  ;;  %vm4672_vm6 = vcmp.ne.s32.totalorder %v4481_v58, %v11353_v32  ;;  %v4488_v53 = vadd.s32 376, %v14111_v3 }
 0x456   :  { %5316 = vst [vmem:[#allocation5 + $0x130] sm:$0xff] %v5252_v12  ;;  %vm5140_vm2 = vmpackc.low %vm14397_vm12, %vm14395_vm1  ;;  %vm14413_vm1 = vcmp.lt.f32.partialorder %v14412_v2, 4.0  ;;  %v14436_v2 = vld [vmem:[#allocation370_spill] sm:$0xff] }
 0x457   :  { %vm5141_vm3 = vmpackc.even %vm5140_vm2, %vm5139_vm7  ;;  %vm14411_vm7 = vcmp.lt.f32.partialorder %v14410_v42, 4.0  ;;  %vm4676_vm2 = vcmp.ne.s32.totalorder %v4482_v41, %v11353_v32  ;;  %v14428_v41 = vld [vmem:[#allocation18_spill] sm:$0xff] }
 0x458   :  { %v5253_v36 = vsel %vm5141_vm3, 16843009, %v5897_v47  ;;  %vm5142_vm11 = vmpackc.low %vm14401_vm0, %vm14399_vm9  ;;  %vm4680_vm9 = vcmp.ne.s32.totalorder %v4483_v62, %v11353_v32  ;;  %vm4684_vm0 = vcmp.ne.s32.totalorder %v4484_v17, %v11353_v32  ;;  %v14431_v62 = vld [vmem:[#allocation386_spill] sm:$0xff]  ;;  %v4486_v17 = vadd.s32 360, %v14111_v3 }
 0x459   :  { %5317 = vst [vmem:[#allocation5 + $0x138] sm:$0xff] %v5253_v36  ;;  %vm5143_vm10 = vmpackc.low %vm14405_vm8, %vm14403_vm4  ;;  %vm14417_vm8 = vcmp.lt.f32.partialorder %v14416_v0, 4.0  ;;  %v14422_v36 = vld [vmem:[#allocation33_spill] sm:$0xff]  ;;  %v14442_v0 = vld [vmem:[#allocation232_spill] sm:$0xff] }
 0x45a   :  { %vm5144_vm5 = vmpackc.even %vm5143_vm10, %vm5142_vm11  ;;  %vm14415_vm11 = vcmp.lt.f32.partialorder %v14414_v28, 4.0  ;;  %v14440_v28 = vld [vmem:[#allocation395_spill] sm:$0xff] }
 0x45b   :  { %v5254_v1 = vsel %vm5144_vm5, 16843009, %v5897_v47  ;;  %vm5145_vm13 = vmpackc.low %vm14409_vm15, %vm14407_vm14  ;;  %vm14419_vm5 = vcmp.lt.f32.partialorder %v14418_v21, 4.0  ;;  %vm14421_vm15 = vcmp.lt.f32.partialorder %v14420_v23, 4.0  ;;  %v14444_v23 = vld [vmem:[#allocation234_spill] sm:$0xff] }
 0x45c   :  { %5318 = vst [vmem:[#allocation5 + $0x140] sm:$0xff] %v5254_v1  ;;  %vm5146_vm12 = vmpackc.low %vm14413_vm1, %vm14411_vm7  ;;  %v14434_v1 = vld [vmem:[#allocation368_spill] sm:$0xff] }
 0x45d   :  { %vm5147_vm3 = vmpackc.even %vm5146_vm12, %vm5145_vm13 }
 0x45e   :  { %v5255_v12 = vsel %vm5147_vm3, 16843009, %v5897_v47  ;;  %vm4928_vm4 = vmand %vm14415_vm11, %vm4672_vm6  ;;  %vm14423_vm3 = vcmp.lt.f32.partialorder %v14422_v36, 4.0  ;;  %vm14425_vm6 = vcmp.lt.f32.partialorder %v14424_v18, 4.0  ;;  %v14448_v36 = vld [vmem:[#allocation43_spill] sm:$0xff]  ;;  %v14450_v18 = vld [vmem:[#allocation369_spill] sm:$0xff] }
 0x45f   :  { %5319 = vst [vmem:[#allocation5 + $0x148] sm:$0xff] %v5255_v12  ;;  %vm4932_vm10 = vmand %vm14417_vm8, %vm4676_vm2  ;;  %vm14427_vm2 = vcmp.lt.f32.partialorder %v14426_v56, 4.0  ;;  %vm14429_vm8 = vcmp.lt.f32.partialorder %v14428_v41, 4.0  ;;  %v14438_v12 = vld [vmem:[#allocation34_spill] sm:$0xff]  ;;  %v14452_v41 = vld [vmem:[#allocation371_spill] sm:$0xff] }
 0x460   :  { %vm4936_vm14 = vmand %vm14419_vm5, %vm4680_vm9 }
 0x461   :  { %vm4940_vm7 = vmand %vm14421_vm15, %vm4684_vm0  ;;  %vm14430_vm0 = vcmp.lt.f32.partialorder %v10619_v40, 4.0  ;;  %vm14435_vm15 = vcmp.lt.f32.partialorder %v14434_v1, 4.0  ;;  %v14462_v1 = vld [vmem:[#allocation40_spill] sm:$0xff] }
 0x462   :  { %vm5148_vm13 = vmpackc.low %vm4932_vm10, %vm4928_vm4  ;;  %vm14432_vm4 = vcmp.lt.f32.partialorder %v14431_v62, 4.0 }
 0x463   :  { %vm5149_vm1 = vmpackc.low %vm4940_vm7, %vm4936_vm14  ;;  %vm14433_vm14 = vcmp.lt.f32.partialorder %v10659_v4, 4.0 }
 0x464   :  { %vm5150_vm12 = vmpackc.even %vm5149_vm1, %vm5148_vm13  ;;  %vm14437_vm1 = vcmp.lt.f32.partialorder %v14436_v2, 4.0 }
 0x465   :  { %v5256_v58 = vsel %vm5150_vm12, 16843009, %v5897_v47  ;;  %vm5151_vm11 = vmpackc.low %vm14425_vm6, %vm14423_vm3  ;;  %vm14439_vm12 = vcmp.lt.f32.partialorder %v14438_v12, 4.0  ;;  %vm4688_vm6 = vcmp.ne.s32.totalorder %v4485_v5, %v11353_v32  ;;  %v14456_v5 = vld [vmem:[#allocation396_spill] sm:$0xff]  ;;  %v14467_v12 = vld [vmem:[#allocation377_spill] sm:$0xff] }
 0x466   :  { %5320 = vst [vmem:[#allocation5 + $0x150] sm:$0xff] %v5256_v58  ;;  %vm5152_vm5 = vmpackc.low %vm14429_vm8, %vm14427_vm2  ;;  %vm14443_vm2 = vcmp.lt.f32.partialorder %v14442_v0, 4.0  ;;  %v14446_v58 = vld [vmem:[#allocation387_spill] sm:$0xff]  ;;  %v4490_v0 = vadd.s32 392, %v14111_v3 }
 0x467   :  { %vm5153_vm9 = vmpackc.even %vm5152_vm5, %vm5151_vm11  ;;  %vm14441_vm11 = vcmp.lt.f32.partialorder %v14440_v28, 4.0  ;;  %vm4692_vm5 = vcmp.ne.s32.totalorder %v4486_v17, %v11353_v32  ;;  %v14460_v17 = vld [vmem:[#allocation38_spill] sm:$0xff]  ;;  %v14469_v28 = vld [vmem:[#allocation41_spill] sm:$0xff] }
 0x468   :  { %v5257_v27 = vsel %vm5153_vm9, 16843009, %v5897_v47  ;;  %vm5154_vm10 = vmpackc.low %vm14432_vm4, %vm14430_vm0  ;;  %vm4696_vm0 = vcmp.ne.s32.totalorder %v4487_v29, %v11353_v32  ;;  %vm4700_vm4 = vcmp.ne.s32.totalorder %v4488_v53, %v11353_v32  ;;  %v14454_v32 = vld [vmem:[#allocation35_spill] sm:$0xff]  ;;  %v4489_v53 = vadd.s32 384, %v14111_v3 }
 0x469   :  { %5321 = vst [vmem:[#allocation5 + $0x158] sm:$0xff] %v5257_v27  ;;  %vm5155_vm7 = vmpackc.low %vm14435_vm15, %vm14433_vm14  ;;  %vm14447_vm15 = vcmp.lt.f32.partialorder %v14446_v58, 4.0  ;;  %v14458_v27 = vld [vmem:[#allocation233_spill] sm:$0xff]  ;;  %v14465_v29 = vld [vmem:[#allocation235_spill] sm:$0xff] }
 0x46a   :  { %vm5156_vm13 = vmpackc.even %vm5155_vm7, %vm5154_vm10  ;;  %vm14445_vm10 = vcmp.lt.f32.partialorder %v14444_v23, 4.0  ;;  %v4491_v23 = vadd.s32 400, %v14111_v3 }
 0x46b   :  { %v5258_v42 = vsel %vm5156_vm13, 16843009, %v5897_v47  ;;  %vm5157_vm3 = vmpackc.low %vm14439_vm12, %vm14437_vm1  ;;  %vm14449_vm13 = vcmp.lt.f32.partialorder %v14448_v36, 4.0  ;;  %vm14451_vm12 = vcmp.lt.f32.partialorder %v14450_v18, 4.0  ;;  %v14474_v36 = vld [vmem:[#allocation39_spill] sm:$0xff]  ;;  %v14476_v18 = vld [vmem:[#allocation394_spill] sm:$0xff] }
 0x46c   :  { %5322 = vst [vmem:[#allocation5 + $0x160] sm:$0xff] %v5258_v42  ;;  %vm5158_vm8 = vmpackc.low %vm14443_vm2, %vm14441_vm11  ;;  %v11541_v42 = vadd.s32 384, %v10998_v16  ;;  %v4492_v16 = vadd.s32 408, %v14111_v3 }
 0x46d   :  { %vm5159_vm9 = vmpackc.even %vm5158_vm8, %vm5157_vm3 }
 0x46e   :  { %v5259_v21 = vsel %vm5159_vm9, 16843009, %v5897_v47  ;;  %vm4944_vm14 = vmand %vm14445_vm10, %vm4688_vm6  ;;  %vm14453_vm9 = vcmp.lt.f32.partialorder %v14452_v41, 4.0  ;;  %vm14455_vm6 = vcmp.lt.f32.partialorder %v14454_v32, 4.0  ;;  %v14480_v41 = vld [vmem:[#allocation37_spill] sm:$0xff] }
 0x46f   :  { %5323 = vst [vmem:[#allocation5 + $0x168] sm:$0xff] %v5259_v21  ;;  %vm4948_vm7 = vmand %vm14447_vm15, %vm4692_vm5  ;;  %vm14457_vm5 = vcmp.lt.f32.partialorder %v14456_v5, 4.0  ;;  %vm14459_vm15 = vcmp.lt.f32.partialorder %v14458_v27, 4.0  ;;  %v14472_v21 = vld [vmem:[#allocation375_spill] sm:$0xff]  ;;  %v14482_v5 = vld [vmem:[#allocation378_spill] sm:$0xff] }
 0x470   :  { %vm4952_vm1 = vmand %vm14449_vm13, %vm4696_vm0  ;;  %v14484_v27 = vld [vmem:[#allocation42_spill] sm:$0xff] }
 0x471   :  { %vm4956_vm11 = vmand %vm14451_vm12, %vm4700_vm4  ;;  %vm14461_vm4 = vcmp.lt.f32.partialorder %v14460_v17, 4.0  ;;  %vm14466_vm12 = vcmp.lt.f32.partialorder %v14465_v29, 4.0  ;;  %v14488_v17 = vld [vmem:[#allocation376_spill] sm:$0xff]  ;;  %v14491_v29 = vld [vmem:[#allocation45_spill] sm:$0xff] }
 0x472   :  { %vm5160_vm3 = vmpackc.low %vm4948_vm7, %vm4944_vm14  ;;  %vm14463_vm14 = vcmp.lt.f32.partialorder %v14462_v1, 4.0 }
 0x473   :  { %vm5161_vm2 = vmpackc.low %vm4956_vm11, %vm4952_vm1  ;;  %vm14464_vm1 = vcmp.lt.f32.partialorder %v10739_v55, 4.0 }
 0x474   :  { %vm5162_vm8 = vmpackc.even %vm5161_vm2, %vm5160_vm3  ;;  %vm14468_vm2 = vcmp.lt.f32.partialorder %v14467_v12, 4.0 }
 0x475   :  { %v5260_v56 = vsel %vm5162_vm8, 16843009, %v5897_v47  ;;  %vm5163_vm10 = vmpackc.low %vm14455_vm6, %vm14453_vm9  ;;  %vm14470_vm8 = vcmp.lt.f32.partialorder %v14469_v28, 4.0  ;;  %vm14471_vm6 = vcmp.lt.f32.partialorder %v10742_v50, 4.0  ;;  %v14496_v28 = vld [vmem:[#allocation236_spill] sm:$0xff] }
 0x476   :  { %5324 = vst [vmem:[#allocation5 + $0x170] sm:$0xff] %v5260_v56  ;;  %vm5164_vm0 = vmpackc.low %vm14459_vm15, %vm14457_vm5  ;;  %v14478_v56 = vld [vmem:[#allocation47_spill] sm:$0xff] }
 0x477   :  { %vm5165_vm13 = vmpackc.even %vm5164_vm0, %vm5163_vm10  ;;  %vm14473_vm10 = vcmp.lt.f32.partialorder %v14472_v21, 4.0  ;;  %vm14475_vm0 = vcmp.lt.f32.partialorder %v14474_v36, 4.0  ;;  %v4494_v21 = vadd.s32 424, %v14111_v3  ;;  %v4496_v36 = vadd.s32 440, %v14111_v3 }
 0x478   :  { %v5261_v62 = vsel %vm5165_vm13, 16843009, %v5897_v47  ;;  %vm5166_vm7 = vmpackc.low %vm14463_vm14, %vm14461_vm4  ;;  %vm14477_vm13 = vcmp.lt.f32.partialorder %v14476_v18, 4.0  ;;  %vm4705_vm14 = vcmp.ne.s32.totalorder %v4489_v53, %v11541_v42  ;;  %v14494_v53 = vld [vmem:[#allocation48_spill] sm:$0xff] }
 0x479   :  { %5325 = vst [vmem:[#allocation5 + $0x178] sm:$0xff] %v5261_v62  ;;  %vm5167_vm11 = vmpackc.low %vm14466_vm12, %vm14464_vm1  ;;  %vm14481_vm1 = vcmp.lt.f32.partialorder %v14480_v41, 4.0  ;;  %v14486_v62 = vld [vmem:[#allocation403_spill] sm:$0xff]  ;;  %v14506_v41 = vld [vmem:[#allocation46_spill] sm:$0xff] }
 0x47a   :  { %vm5168_vm3 = vmpackc.even %vm5167_vm11, %vm5166_vm7  ;;  %vm14479_vm7 = vcmp.lt.f32.partialorder %v14478_v56, 4.0  ;;  %vm4709_vm11 = vcmp.ne.s32.totalorder %v4490_v0, %v11541_v42  ;;  %v14498_v0 = vld [vmem:[#allocation401_spill] sm:$0xff]  ;;  %v14504_v56 = vld [vmem:[#allocation383_spill] sm:$0xff] }
 0x47b   :  { %v5262_v2 = vsel %vm5168_vm3, 16843009, %v5897_v47  ;;  %vm5169_vm9 = vmpackc.low %vm14470_vm8, %vm14468_vm2  ;;  %vm4713_vm2 = vcmp.ne.s32.totalorder %v4491_v23, %v11541_v42  ;;  %vm4717_vm8 = vcmp.ne.s32.totalorder %v4492_v16, %v11541_v42  ;;  %v14500_v23 = vld [vmem:[#allocation53_spill] sm:$0xff]  ;;  %v14502_v16 = vld [vmem:[#allocation404_spill] sm:$0xff] }
 0x47c   :  { %5326 = vst [vmem:[#allocation5 + $0x180] sm:$0xff] %v5262_v2  ;;  %vm5170_vm5 = vmpackc.low %vm14473_vm10, %vm14471_vm6  ;;  %vm14485_vm10 = vcmp.lt.f32.partialorder %v14484_v27, 4.0  ;;  %v4493_v2 = vadd.s32 416, %v14111_v3 }
 0x47d   :  { %vm5171_vm15 = vmpackc.even %vm5170_vm5, %vm5169_vm9  ;;  %vm14483_vm9 = vcmp.lt.f32.partialorder %v14482_v5, 4.0  ;;  %v14510_v5 = vld [vmem:[#allocation44_spill] sm:$0xff] }
 0x47e   :  { %v5263_v58 = vsel %vm5171_vm15, 16843009, %v5897_v47  ;;  %vm5172_vm4 = vmpackc.low %vm14477_vm13, %vm14475_vm0  ;;  %vm14487_vm15 = vcmp.lt.f32.partialorder %v14486_v62, 4.0  ;;  %vm14489_vm13 = vcmp.lt.f32.partialorder %v14488_v17, 4.0  ;;  %v14512_v62 = vld [vmem:[#allocation237_spill] sm:$0xff]  ;;  %v14514_v17 = vld [vmem:[#allocation402_spill] sm:$0xff] }
 0x47f   :  { %5327 = vst [vmem:[#allocation5 + $0x188] sm:$0xff] %v5263_v58  ;;  %vm5173_vm12 = vmpackc.low %vm14481_vm1, %vm14479_vm7  ;;  %v4495_v58 = vadd.s32 432, %v14111_v3 }
 0x480   :  { %vm5174_vm3 = vmpackc.even %vm5173_vm12, %vm5172_vm4 }
 0x481   :  { %v5264_v32 = vsel %vm5174_vm3, 16843009, %v5897_v47  ;;  %vm4961_vm6 = vmand %vm14483_vm9, %vm4705_vm14  ;;  %vm14490_vm3 = vcmp.lt.f32.partialorder %v10779_v52, 4.0  ;;  %vm14492_vm9 = vcmp.lt.f32.partialorder %v14491_v29, 4.0  ;;  %v14518_v29 = vld [vmem:[#allocation382_spill] sm:$0xff] }
 0x482   :  { %5328 = vst [vmem:[#allocation5 + $0x190] sm:$0xff] %v5264_v32  ;;  %vm4965_vm5 = vmand %vm14485_vm10, %vm4709_vm11  ;;  %vm14493_vm10 = vcmp.lt.f32.partialorder %v10819_v30, 4.0  ;;  %vm14495_vm11 = vcmp.lt.f32.partialorder %v14494_v53, 4.0  ;;  %v14508_v32 = vld [vmem:[#allocation409_spill] sm:$0xff] }
 0x483   :  { %vm4969_vm0 = vmand %vm14487_vm15, %vm4713_vm2 }
 0x484   :  { %vm4973_vm7 = vmand %vm14489_vm13, %vm4717_vm8  ;;  %vm14497_vm8 = vcmp.lt.f32.partialorder %v14496_v28, 4.0  ;;  %vm14503_vm13 = vcmp.lt.f32.partialorder %v14502_v16, 4.0  ;;  %v14524_v28 = vld [vmem:[#allocation58_spill] sm:$0xff]  ;;  %v14528_v16 = vld [vmem:[#allocation49_spill] sm:$0xff] }
 0x485   :  { %vm5175_vm4 = vmpackc.low %vm4965_vm5, %vm4961_vm6  ;;  %vm14499_vm6 = vcmp.lt.f32.partialorder %v14498_v0, 4.0  ;;  %v14526_v0 = vld [vmem:[#allocation410_spill] sm:$0xff] }
 0x486   :  { %vm5176_vm1 = vmpackc.low %vm4973_vm7, %vm4969_vm0  ;;  %vm14501_vm0 = vcmp.lt.f32.partialorder %v14500_v23, 4.0 }
 0x487   :  { %vm5177_vm12 = vmpackc.even %vm5176_vm1, %vm5175_vm4  ;;  %vm14505_vm1 = vcmp.lt.f32.partialorder %v14504_v56, 4.0  ;;  %v14534_v56 = vld [vmem:[#allocation55_spill] sm:$0xff] }
 0x488   :  { %v5265_v1 = vsel %vm5177_vm12, 16843009, %v5897_v47  ;;  %vm5178_vm14 = vmpackc.low %vm14492_vm9, %vm14490_vm3  ;;  %vm14507_vm12 = vcmp.lt.f32.partialorder %v14506_v41, 4.0  ;;  %vm4721_vm9 = vcmp.ne.s32.totalorder %v4493_v2, %v11541_v42  ;;  %v14520_v2 = vld [vmem:[#allocation390_spill] sm:$0xff]  ;;  %v4499_v41 = vadd.s32 464, %v14111_v3 }
 0x489   :  { %5329 = vst [vmem:[#allocation5 + $0x198] sm:$0xff] %v5265_v1  ;;  %vm5179_vm2 = vmpackc.low %vm14495_vm11, %vm14493_vm10  ;;  %vm14511_vm10 = vcmp.lt.f32.partialorder %v14510_v5, 4.0  ;;  %v14516_v1 = vld [vmem:[#allocation54_spill] sm:$0xff] }
 0x48a   :  { %vm5180_vm15 = vmpackc.even %vm5179_vm2, %vm5178_vm14  ;;  %vm14509_vm14 = vcmp.lt.f32.partialorder %v14508_v32, 4.0  ;;  %vm4725_vm2 = vcmp.ne.s32.totalorder %v4494_v21, %v11541_v42  ;;  %v4497_v21 = vadd.s32 448, %v14111_v3  ;;  %v4500_v32 = vadd.s32 472, %v14111_v3 }
 0x48b   :  { %v5266_v12 = vsel %vm5180_vm15, 16843009, %v5897_v47  ;;  %vm5181_vm5 = vmpackc.low %vm14499_vm6, %vm14497_vm8  ;;  %vm4729_vm8 = vcmp.ne.s32.totalorder %v4495_v58, %v11541_v42  ;;  %vm4733_vm6 = vcmp.ne.s32.totalorder %v4496_v36, %v11541_v42  ;;  %v14530_v58 = vld [vmem:[#allocation238_spill] sm:$0xff]  ;;  %v4498_v36 = vadd.s32 456, %v14111_v3 }
 0x48c   :  { %5330 = vst [vmem:[#allocation5 + $0x1a0] sm:$0xff] %v5266_v12  ;;  %vm5182_vm7 = vmpackc.low %vm14503_vm13, %vm14501_vm0  ;;  %vm14515_vm13 = vcmp.lt.f32.partialorder %v14514_v17, 4.0  ;;  %v14522_v12 = vld [vmem:[#allocation384_spill] sm:$0xff]  ;;  %v14540_v17 = vld [vmem:[#allocation59_spill] sm:$0xff] }
 0x48d   :  { %vm5183_vm4 = vmpackc.even %vm5182_vm7, %vm5181_vm5  ;;  %vm14513_vm5 = vcmp.lt.f32.partialorder %v14512_v62, 4.0  ;;  %v14538_v62 = vld [vmem:[#allocation385_spill] sm:$0xff] }
 0x48e   :  { %v5267_v18 = vsel %vm5183_vm4, 16843009, %v5897_v47  ;;  %vm5184_vm3 = vmpackc.low %vm14507_vm12, %vm14505_vm1  ;;  %vm14517_vm4 = vcmp.lt.f32.partialorder %v14516_v1, 4.0  ;;  %vm14519_vm12 = vcmp.lt.f32.partialorder %v14518_v29, 4.0  ;;  %v14542_v1 = vld [vmem:[#allocation411_spill] sm:$0xff] }
 0x48f   :  { %5331 = vst [vmem:[#allocation5 + $0x1a8] sm:$0xff] %v5267_v18  ;;  %vm5185_vm11 = vmpackc.low %vm14511_vm10, %vm14509_vm14  ;;  %v14532_v18 = vld [vmem:[#allocation416_spill] sm:$0xff] }
 0x490   :  { %vm5186_vm15 = vmpackc.even %vm5185_vm11, %vm5184_vm3 }
 0x491   :  { %v5268_v27 = vsel %vm5186_vm15, 16843009, %v5897_v47  ;;  %vm4977_vm0 = vmand %vm14513_vm5, %vm4721_vm9  ;;  %vm14521_vm15 = vcmp.lt.f32.partialorder %v14520_v2, 4.0  ;;  %vm14523_vm5 = vcmp.lt.f32.partialorder %v14522_v12, 4.0  ;;  %v14546_v2 = vld [vmem:[#allocation52_spill] sm:$0xff]  ;;  %v14548_v12 = vld [vmem:[#allocation417_spill] sm:$0xff] }
 0x492   :  { %5332 = vst [vmem:[#allocation5 + $0x1b0] sm:$0xff] %v5268_v27  ;;  %vm4981_vm7 = vmand %vm14515_vm13, %vm4725_vm2  ;;  %vm14525_vm2 = vcmp.lt.f32.partialorder %v14524_v28, 4.0  ;;  %vm14527_vm13 = vcmp.lt.f32.partialorder %v14526_v0, 4.0  ;;  %v14536_v27 = vld [vmem:[#allocation391_spill] sm:$0xff] }
 0x493   :  { %vm4985_vm1 = vmand %vm14517_vm4, %vm4729_vm8  ;;  %v14550_v28 = vld [vmem:[#allocation239_spill] sm:$0xff] }
 0x494   :  { %vm4989_vm14 = vmand %vm14519_vm12, %vm4733_vm6  ;;  %vm14529_vm6 = vcmp.lt.f32.partialorder %v14528_v16, 4.0  ;;  %vm14535_vm12 = vcmp.lt.f32.partialorder %v14534_v56, 4.0  ;;  %v4504_v56 = vadd.s32 504, %v14111_v3 }
 0x495   :  { %vm5187_vm3 = vmpackc.low %vm4981_vm7, %vm4977_vm0  ;;  %vm14531_vm0 = vcmp.lt.f32.partialorder %v14530_v58, 4.0  ;;  %v14558_v58 = vld [vmem:[#allocation51_spill] sm:$0xff] }
 0x496   :  { %vm5188_vm10 = vmpackc.low %vm4989_vm14, %vm4985_vm1  ;;  %vm14533_vm1 = vcmp.lt.f32.partialorder %v14532_v18, 4.0  ;;  %v4503_v18 = vadd.s32 496, %v14111_v3 }
 0x497   :  { %vm5189_vm11 = vmpackc.even %vm5188_vm10, %vm5187_vm3  ;;  %vm14537_vm10 = vcmp.lt.f32.partialorder %v14536_v27, 4.0  ;;  %v14567_v27 = vld [vmem:[#allocation60_spill] sm:$0xff] }
 0x498   :  { %v5269_v53 = vsel %vm5189_vm11, 16843009, %v5897_v47  ;;  %vm5190_vm9 = vmpackc.low %vm14523_vm5, %vm14521_vm15  ;;  %vm14539_vm11 = vcmp.lt.f32.partialorder %v14538_v62, 4.0  ;;  %vm4737_vm5 = vcmp.ne.s32.totalorder %v4497_v21, %v11541_v42  ;;  %v14553_v21 = vld [vmem:[#allocation392_spill] sm:$0xff]  ;;  %v14569_v62 = vld [vmem:[#allocation397_spill] sm:$0xff] }
 0x499   :  { %5333 = vst [vmem:[#allocation5 + $0x1b8] sm:$0xff] %v5269_v53  ;;  %vm5191_vm4 = vmpackc.low %vm14527_vm13, %vm14525_vm2  ;;  %vm14543_vm2 = vcmp.lt.f32.partialorder %v14542_v1, 4.0  ;;  %v14544_v53 = vld [vmem:[#allocation50_spill] sm:$0xff] }
 0x49a   :  { %vm5192_vm8 = vmpackc.even %vm5191_vm4, %vm5190_vm9  ;;  %vm14541_vm9 = vcmp.lt.f32.partialorder %v14540_v17, 4.0  ;;  %vm4741_vm4 = vcmp.ne.s32.totalorder %v4498_v36, %v11541_v42  ;;  %v4502_v36 = vadd.s32 488, %v14111_v3  ;;  %v14571_v17 = vld [vmem:[#allocation57_spill] sm:$0xff]  ;;  %v14574_v1 = vld [vmem:[#allocation418_spill] sm:$0xff] }
 0x49b   :  { %v5270_v23 = vsel %vm5192_vm8, 16843009, %v5897_v47  ;;  %vm5193_vm7 = vmpackc.low %vm14531_vm0, %vm14529_vm6  ;;  %vm4745_vm6 = vcmp.ne.s32.totalorder %v4499_v41, %v11541_v42  ;;  %vm4749_vm0 = vcmp.ne.s32.totalorder %v4500_v32, %v11541_v42  ;;  %v14562_v32 = vld [vmem:[#allocation56_spill] sm:$0xff] }
 0x49c   :  { %5334 = vst [vmem:[#allocation5 + $0x1c0] sm:$0xff] %v5270_v23  ;;  %vm5194_vm14 = vmpackc.low %vm14535_vm12, %vm14533_vm1  ;;  %vm14547_vm12 = vcmp.lt.f32.partialorder %v14546_v2, 4.0  ;;  %v4501_v23 = vadd.s32 480, %v14111_v3 }
 0x49d   :  { %vm5195_vm3 = vmpackc.even %vm5194_vm14, %vm5193_vm7  ;;  %vm14545_vm7 = vcmp.lt.f32.partialorder %v14544_v53, 4.0 }
 0x49e   :  { %v5271_v5 = vsel %vm5195_vm3, 16843009, %v5897_v47  ;;  %vm5196_vm15 = vmpackc.low %vm14539_vm11, %vm14537_vm10  ;;  %vm14549_vm3 = vcmp.lt.f32.partialorder %v14548_v12, 4.0  ;;  %vm14551_vm11 = vcmp.lt.f32.partialorder %v14550_v28, 4.0 }
 0x49f   :  { %5335 = vst [vmem:[#allocation5 + $0x1c8] sm:$0xff] %v5271_v5  ;;  %vm5197_vm13 = vmpackc.low %vm14543_vm2, %vm14541_vm9  ;;  %v14564_v5 = vld [vmem:[#allocation393_spill] sm:$0xff] }
 0x4a0   :  { %vm5198_vm8 = vmpackc.even %vm5197_vm13, %vm5196_vm15 }
 0x4a1   :  { %v5272_v29 = vsel %vm5198_vm8, 16843009, %v5897_v47  ;;  %vm4993_vm1 = vmand %vm14545_vm7, %vm4737_vm5  ;;  %vm14552_vm8 = vcmp.lt.f32.partialorder %v10941_v43, 4.0  ;;  %vm14554_vm5 = vcmp.lt.f32.partialorder %v14553_v21, 4.0 }
 0x4a2   :  { %5336 = vst [vmem:[#allocation5 + $0x1d0] sm:$0xff] %v5272_v29  ;;  %vm4997_vm14 = vmand %vm14547_vm12, %vm4741_vm4  ;;  %vm14555_vm4 = vcmp.lt.f32.partialorder %v10976_v61, 4.0  ;;  %vm14556_vm12 = vcmp.lt.f32.partialorder %v10932_v34, 4.0 }
 0x4a3   :  { %vm5001_vm10 = vmand %vm14549_vm3, %vm4745_vm6 }
 0x4a4   :  { %vm5005_vm9 = vmand %vm14551_vm11, %vm4749_vm0  ;;  %vm14557_vm0 = vcmp.lt.f32.partialorder %v10944_v59, 4.0  ;;  %vm14561_vm11 = vcmp.lt.f32.partialorder %v10934_v39, 4.0 }
 0x4a5   :  { %vm5199_vm15 = vmpackc.low %vm4997_vm14, %vm4993_vm1  ;;  %vm14559_vm1 = vcmp.lt.f32.partialorder %v14558_v58, 4.0 }
 0x4a6   :  { %vm5200_vm2 = vmpackc.low %vm5005_vm9, %vm5001_vm10  ;;  %vm14560_vm10 = vcmp.lt.f32.partialorder %v10978_v8, 4.0 }
 0x4a7   :  { %vm5201_vm13 = vmpackc.even %vm5200_vm2, %vm5199_vm15  ;;  %vm14563_vm2 = vcmp.lt.f32.partialorder %v14562_v32, 4.0 }
 0x4a8   :  { %v5273_v0 = vsel %vm5201_vm13, 16843009, %v5897_v47  ;;  %vm5202_vm7 = vmpackc.low %vm14554_vm5, %vm14552_vm8  ;;  %vm14565_vm13 = vcmp.lt.f32.partialorder %v14564_v5, 4.0  ;;  %vm4753_vm5 = vcmp.ne.s32.totalorder %v4501_v23, %v11541_v42 }
 0x4a9   :  { %5337 = vst [vmem:[#allocation5 + $0x1d8] sm:$0xff] %v5273_v0  ;;  %vm5203_vm3 = vmpackc.low %vm14556_vm12, %vm14555_vm4  ;;  %vm14568_vm4 = vcmp.lt.f32.partialorder %v14567_v27, 4.0 }
 0x4aa   :  { %vm5204_vm6 = vmpackc.even %vm5203_vm3, %vm5202_vm7  ;;  %vm14566_vm7 = vcmp.lt.f32.partialorder %v10980_v51, 4.0  ;;  %vm4757_vm3 = vcmp.ne.s32.totalorder %v4502_v36, %v11541_v42 }
 0x4ab   :  { %v5274_v16 = vsel %vm5204_vm6, 16843009, %v5897_v47  ;;  %vm5205_vm14 = vmpackc.low %vm14559_vm1, %vm14557_vm0  ;;  %vm4761_vm0 = vcmp.ne.s32.totalorder %v4503_v18, %v11541_v42  ;;  %vm4765_vm1 = vcmp.ne.s32.totalorder %v4504_v56, %v11541_v42 }
 0x4ac   :  { %5338 = vst [vmem:[#allocation5 + $0x1e0] sm:$0xff] %v5274_v16  ;;  %vm5206_vm9 = vmpackc.low %vm14561_vm11, %vm14560_vm10  ;;  %vm14572_vm11 = vcmp.lt.f32.partialorder %v14571_v17, 4.0 }
 0x4ad   :  { %vm5207_vm15 = vmpackc.even %vm5206_vm9, %vm5205_vm14  ;;  %vm14570_vm14 = vcmp.lt.f32.partialorder %v14569_v62, 4.0 }
 0x4ae   :  { %v5275_v41 = vsel %vm5207_vm15, 16843009, %v5897_v47  ;;  %vm5208_vm8 = vmpackc.low %vm14565_vm13, %vm14563_vm2  ;;  %vm14573_vm15 = vcmp.lt.f32.partialorder %v10982_v44, 4.0  ;;  %vm14575_vm13 = vcmp.lt.f32.partialorder %v14574_v1, 4.0 }
 0x4af   :  { %5339 = vst [vmem:[#allocation5 + $0x1e8] sm:$0xff] %v5275_v41  ;;  %vm5209_vm12 = vmpackc.low %vm14568_vm4, %vm14566_vm7 }
 0x4b0   :  { %vm5210_vm6 = vmpackc.even %vm5209_vm12, %vm5208_vm8 }
 0x4b1   :  { %v5276_v3 = vsel %vm5210_vm6, 16843009, %v5897_v47  ;;  %vm5009_vm10 = vmand %vm14570_vm14, %vm4753_vm5 }
 0x4b2   :  { %5340 = vst [vmem:[#allocation5 + $0x1f0] sm:$0xff] %v5276_v3  ;;  %vm5013_vm9 = vmand %vm14572_vm11, %vm4757_vm3 }
 0x4b3   :  { %vm5017_vm2 = vmand %vm14573_vm15, %vm4761_vm0 }
 0x4b4   :  { %vm5021_vm7 = vmand %vm14575_vm13, %vm4765_vm1 }
 0x4b5   :  { %vm5211_vm8 = vmpackc.low %vm5013_vm9, %vm5009_vm10 }
 0x4b6   :  { %vm5212_vm4 = vmpackc.low %vm5021_vm7, %vm5017_vm2 }
 0x4b7   :  { %vm5213_vm12 = vmpackc.even %vm5212_vm4, %vm5211_vm8 }
 0x4b8   :  { %v5277_v29 = vsel %vm5213_vm12, 16843009, %v5897_v47 }
 0x4b9   :  { %5341 = vst [vmem:[#allocation5 + $0x1f8] sm:$0xff] %v5277_v29 }
 0x4ba PF:  { %p5699_p3 = scmp.eq.s32.totalorder %s12304_s0, %s12305_s1 }
 0x4bb   :  { %v14576_v42 = vld [vmem:[#allocation176_spill] sm:$0xff] (!%p5699_p3)  ;;  %v14578_v53 = vld [vmem:[#allocation163_spill] sm:$0xff] (!%p5699_p3)  ;;  %v14582_v12 = vld [vmem:[#allocation305_spill] sm:$0xff] (!%p5699_p3)  ;;  %v5898_v47 = vmov (!%p5699_p3), 0   ;;  %vm14584_vm11 = vcmp.lt.f32.partialorder (!%p5699_p3), %v9596_v9, 4.0  ;;  %vm14585_vm9 = vcmp.lt.f32.partialorder (!%p5699_p3), %v9638_v35, 4.0 }
 0x4bc   :  { %5345 = sbr.rel (%p5699_p3) target bundleno = 1406 (0x57e), region = 17  ;;  %vm14577_vm5 = vcmp.lt.f32.partialorder (!%p5699_p3), %v14576_v42, 4.0  ;;  %vm14579_vm3 = vcmp.lt.f32.partialorder (!%p5699_p3), %v14578_v53, 4.0  ;;  %v14580_v2 = vld [vmem:[#allocation183_spill] sm:$0xff] (!%p5699_p3)  ;;  %vm14583_vm1 = vcmp.lt.f32.partialorder (!%p5699_p3), %v14582_v12, 4.0  ;;  %vm5349_vm15 = vmpackc.low (!%p5699_p3), %vm14585_vm9, %vm14584_vm11  ;;  %vm14586_vm2 = vcmp.lt.f32.partialorder (!%p5699_p3), %v9686_v14, 4.0 }
 0x4bd   :  { %vm5346_vm6 = vmpackc.low (!%p5699_p3), %vm14579_vm3, %vm14577_vm5  ;;  %vm14581_vm0 = vcmp.lt.f32.partialorder (!%p5699_p3), %v14580_v2, 4.0  ;;  %vm14587_vm13 = vcmp.lt.f32.partialorder (!%p5699_p3), %v9610_v46, 4.0  ;;  %v14588_v21 = vld [vmem:[#allocation311_spill] sm:$0xff] (!%p5699_p3)  ;;  %v14592_v16 = vld [vmem:[#allocation317_spill] sm:$0xff] (!%p5699_p3) }
 0x4be   :  { %vm5347_vm14 = vmpackc.low (!%p5699_p3), %vm14583_vm1, %vm14581_vm0  ;;  %vm14589_vm4 = vcmp.lt.f32.partialorder (!%p5699_p3), %v14588_v21, 4.0  ;;  %v14590_v23 = vld [vmem:[#allocation307_spill] sm:$0xff] (!%p5699_p3)  ;;  %vm14593_vm3 = vcmp.lt.f32.partialorder (!%p5699_p3), %v14592_v16, 4.0  ;;  %v14594_v9 = vld [vmem:[#allocation162_spill] sm:$0xff] (!%p5699_p3) }
 0x4bf   :  { %vm5348_vm10 = vmpackc.even (!%p5699_p3), %vm5347_vm14, %vm5346_vm6  ;;  %vm14591_vm12 = vcmp.lt.f32.partialorder (!%p5699_p3), %v14590_v23, 4.0  ;;  %vm14595_vm6 = vcmp.lt.f32.partialorder (!%p5699_p3), %v14594_v9, 4.0  ;;  %v14596_v14 = vld [vmem:[#allocation161_spill] sm:$0xff] (!%p5699_p3)  ;;  %v14598_v46 = vld [vmem:[#allocation164_spill] sm:$0xff] (!%p5699_p3) }
 0x4c0   :  { %v5538_v28 = vsel (!%p5699_p3), %vm5348_vm10, 16843009, %v5898_v47  ;;  %vm5350_vm7 = vmpackc.low (!%p5699_p3), %vm14587_vm13, %vm14586_vm2  ;;  %vm14597_vm14 = vcmp.lt.f32.partialorder (!%p5699_p3), %v14596_v14, 4.0  ;;  %vm14599_vm10 = vcmp.lt.f32.partialorder (!%p5699_p3), %v14598_v46, 4.0  ;;  %v14600_v58 = vld [vmem:[#allocation184_spill] sm:$0xff] (!%p5699_p3)  ;;  %v14602_v36 = vld [vmem:[#allocation306_spill] sm:$0xff] (!%p5699_p3) }
 0x4c1   :  { %5602 = vst [vmem:[#allocation5] sm:$0xff] (!%p5699_p3), %v5538_v28  ;;  %vm5351_vm8 = vmpackc.even (!%p5699_p3), %vm5350_vm7, %vm5349_vm15  ;;  %vm14601_vm9 = vcmp.lt.f32.partialorder (!%p5699_p3), %v14600_v58, 4.0  ;;  %vm14603_vm15 = vcmp.lt.f32.partialorder (!%p5699_p3), %v14602_v36, 4.0  ;;  %v14604_v56 = vld [vmem:[#allocation313_spill] sm:$0xff] (!%p5699_p3)  ;;  %v14606_v41 = vld [vmem:[#allocation308_spill] sm:$0xff] (!%p5699_p3) }
 0x4c2   :  { %v5539_v0 = vsel (!%p5699_p3), %vm5351_vm8, 16843009, %v5898_v47  ;;  %vm5352_vm5 = vmpackc.low (!%p5699_p3), %vm14591_vm12, %vm14589_vm4  ;;  %vm14605_vm7 = vcmp.lt.f32.partialorder (!%p5699_p3), %v14604_v56, 4.0  ;;  %vm14607_vm8 = vcmp.lt.f32.partialorder (!%p5699_p3), %v14606_v41, 4.0  ;;  %vm14608_vm12 = vcmp.lt.f32.partialorder (!%p5699_p3), %v9780_v63, 4.0  ;;  %v14609_v32 = vld [vmem:[#allocation318_spill] sm:$0xff] (!%p5699_p3) }
 0x4c3   :  { %5603 = vst [vmem:[#allocation5 + $0x8] sm:$0xff] %v5539_v0  ;;  %vm5353_vm0 = vmpackc.low %vm14595_vm6, %vm14593_vm3  ;;  %v14611_v27 = vld [vmem:[#allocation171_spill] sm:$0xff]  ;;  %v14613_v3 = vld [vmem:[#allocation181_spill] sm:$0xff] }
 0x4c4   :  { %vm5354_vm1 = vmpackc.even %vm5353_vm0, %vm5352_vm5  ;;  %vm14610_vm5 = vcmp.lt.f32.partialorder %v14609_v32, 4.0  ;;  %vm14612_vm0 = vcmp.lt.f32.partialorder %v14611_v27, 4.0  ;;  %v14615_v62 = vld [vmem:[#allocation324_spill] sm:$0xff]  ;;  %v14617_v17 = vld [vmem:[#allocation169_spill] sm:$0xff] }
 0x4c5   :  { %v5540_v35 = vsel %vm5354_vm1, 16843009, %v5898_v47  ;;  %vm5355_vm11 = vmpackc.low %vm14599_vm10, %vm14597_vm14  ;;  %vm14614_vm1 = vcmp.lt.f32.partialorder %v14613_v3, 4.0  ;;  %vm14616_vm10 = vcmp.lt.f32.partialorder %v14615_v62, 4.0  ;;  %v14619_v1 = vld [vmem:[#allocation314_spill] sm:$0xff]  ;;  %v14623_v42 = vld [vmem:[#allocation191_spill] sm:$0xff] }
 0x4c6   :  { %5604 = vst [vmem:[#allocation5 + $0x10] sm:$0xff] %v5540_v35  ;;  %vm5356_vm2 = vmpackc.low %vm14603_vm15, %vm14601_vm9  ;;  %v14621_v29 = vld [vmem:[#allocation182_spill] sm:$0xff]  ;;  %v14625_v53 = vld [vmem:[#allocation312_spill] sm:$0xff] }
 0x4c7   :  { %vm5357_vm13 = vmpackc.even %vm5356_vm2, %vm5355_vm11  ;;  %vm14618_vm11 = vcmp.lt.f32.partialorder %v14617_v17, 4.0  ;;  %vm14620_vm2 = vcmp.lt.f32.partialorder %v14619_v1, 4.0  ;;  %v14627_v12 = vld [vmem:[#allocation172_spill] sm:$0xff]  ;;  %v14631_v0 = vld [vmem:[#allocation325_spill] sm:$0xff] }
 0x4c8   :  { %v5541_v18 = vsel %vm5357_vm13, 16843009, %v5898_v47  ;;  %vm5358_vm4 = vmpackc.low %vm14607_vm8, %vm14605_vm7  ;;  %vm14622_vm13 = vcmp.lt.f32.partialorder %v14621_v29, 4.0  ;;  %vm14624_vm8 = vcmp.lt.f32.partialorder %v14623_v42, 4.0  ;;  %v14629_v28 = vld [vmem:[#allocation316_spill] sm:$0xff]  ;;  %v14633_v21 = vld [vmem:[#allocation170_spill] sm:$0xff] }
 0x4c9   :  { %5605 = vst [vmem:[#allocation5 + $0x18] sm:$0xff] %v5541_v18  ;;  %vm5359_vm3 = vmpackc.low %vm14610_vm5, %vm14608_vm12  ;;  %v14636_v16 = vld [vmem:[#allocation315_spill] sm:$0xff]  ;;  %v14638_v9 = vld [vmem:[#allocation198_spill] sm:$0xff] }
 0x4ca   :  { %vm5360_vm6 = vmpackc.even %vm5359_vm3, %vm5358_vm4  ;;  %vm14626_vm4 = vcmp.lt.f32.partialorder %v14625_v53, 4.0  ;;  %vm14628_vm3 = vcmp.lt.f32.partialorder %v14627_v12, 4.0  ;;  %v14640_v35 = vld [vmem:[#allocation192_spill] sm:$0xff]  ;;  %v14642_v46 = vld [vmem:[#allocation178_spill] sm:$0xff] }
 0x4cb   :  { %v5542_v5 = vsel %vm5360_vm6, 16843009, %v5898_v47  ;;  %vm5361_vm14 = vmpackc.low %vm14614_vm1, %vm14612_vm0  ;;  %vm14630_vm6 = vcmp.lt.f32.partialorder %v14629_v28, 4.0  ;;  %vm14632_vm1 = vcmp.lt.f32.partialorder %v14631_v0, 4.0  ;;  %v14644_v58 = vld [vmem:[#allocation189_spill] sm:$0xff]  ;;  %v14646_v36 = vld [vmem:[#allocation331_spill] sm:$0xff] }
 0x4cc   :  { %5606 = vst [vmem:[#allocation5 + $0x20] sm:$0xff] %v5542_v5  ;;  %vm5362_vm9 = vmpackc.low %vm14618_vm11, %vm14616_vm10  ;;  %v14650_v56 = vld [vmem:[#allocation320_spill] sm:$0xff]  ;;  %v14652_v41 = vld [vmem:[#allocation323_spill] sm:$0xff] }
 0x4cd   :  { %vm5363_vm15 = vmpackc.even %vm5362_vm9, %vm5361_vm14  ;;  %vm14634_vm14 = vcmp.lt.f32.partialorder %v14633_v21, 4.0  ;;  %vm14635_vm9 = vcmp.lt.f32.partialorder %v9828_v38, 4.0  ;;  %v14648_v38 = vld [vmem:[#allocation326_spill] sm:$0xff]  ;;  %v14654_v32 = vld [vmem:[#allocation199_spill] sm:$0xff] }
 0x4ce   :  { %v5543_v63 = vsel %vm5363_vm15, 16843009, %v5898_v47  ;;  %vm5364_vm7 = vmpackc.low %vm14622_vm13, %vm14620_vm2  ;;  %vm14637_vm15 = vcmp.lt.f32.partialorder %v14636_v16, 4.0  ;;  %vm14639_vm13 = vcmp.lt.f32.partialorder %v14638_v9, 4.0  ;;  %v14656_v5 = vld [vmem:[#allocation177_spill] sm:$0xff]  ;;  %v14658_v3 = vld [vmem:[#allocation179_spill] sm:$0xff] }
 0x4cf   :  { %5607 = vst [vmem:[#allocation5 + $0x28] sm:$0xff] %v5543_v63  ;;  %vm5365_vm12 = vmpackc.low %vm14626_vm4, %vm14624_vm8  ;;  %v14660_v62 = vld [vmem:[#allocation190_spill] sm:$0xff]  ;;  %v14662_v17 = vld [vmem:[#allocation332_spill] sm:$0xff] }
 0x4d0   :  { %vm5366_vm5 = vmpackc.even %vm5365_vm12, %vm5364_vm7  ;;  %vm14641_vm7 = vcmp.lt.f32.partialorder %v14640_v35, 4.0  ;;  %vm14643_vm12 = vcmp.lt.f32.partialorder %v14642_v46, 4.0  ;;  %v14664_v63 = vld [vmem:[#allocation319_spill] sm:$0xff]  ;;  %v14667_v29 = vld [vmem:[#allocation321_spill] sm:$0xff] }
 0x4d1   :  { %v5544_v2 = vsel %vm5366_vm5, 16843009, %v5898_v47  ;;  %vm5367_vm0 = vmpackc.low %vm14630_vm6, %vm14628_vm3  ;;  %vm14645_vm5 = vcmp.lt.f32.partialorder %v14644_v58, 4.0  ;;  %vm14647_vm6 = vcmp.lt.f32.partialorder %v14646_v36, 4.0  ;;  %v14669_v42 = vld [vmem:[#allocation206_spill] sm:$0xff]  ;;  %v14671_v53 = vld [vmem:[#allocation200_spill] sm:$0xff] }
 0x4d2   :  { %5608 = vst [vmem:[#allocation5 + $0x30] sm:$0xff] %v5544_v2  ;;  %vm5368_vm10 = vmpackc.low %vm14634_vm14, %vm14632_vm1  ;;  %v14673_v12 = vld [vmem:[#allocation186_spill] sm:$0xff]  ;;  %v14675_v28 = vld [vmem:[#allocation180_spill] sm:$0xff] }
 0x4d3   :  { %vm5369_vm11 = vmpackc.even %vm5368_vm10, %vm5367_vm0  ;;  %vm14649_vm0 = vcmp.lt.f32.partialorder %v14648_v38, 4.0  ;;  %vm14651_vm10 = vcmp.lt.f32.partialorder %v14650_v56, 4.0  ;;  %v14677_v0 = vld [vmem:[#allocation338_spill] sm:$0xff]  ;;  %v14685_v9 = vld [vmem:[#allocation207_spill] sm:$0xff] }
 0x4d4   :  { %v5545_v23 = vsel %vm5369_vm11, 16843009, %v5898_v47  ;;  %vm5370_vm2 = vmpackc.low %vm14637_vm15, %vm14635_vm9  ;;  %vm14653_vm11 = vcmp.lt.f32.partialorder %v14652_v41, 4.0  ;;  %vm14655_vm15 = vcmp.lt.f32.partialorder %v14654_v32, 4.0  ;;  %v14683_v16 = vld [vmem:[#allocation322_spill] sm:$0xff]  ;;  %v14687_v35 = vld [vmem:[#allocation185_spill] sm:$0xff] }
 0x4d5   :  { %5609 = vst [vmem:[#allocation5 + $0x38] sm:$0xff] %v5545_v23  ;;  %vm5371_vm8 = vmpackc.low %vm14641_vm7, %vm14639_vm13  ;;  %v14681_v23 = vld [vmem:[#allocation328_spill] sm:$0xff]  ;;  %v14689_v46 = vld [vmem:[#allocation187_spill] sm:$0xff] }
 0x4d6   :  { %vm5372_vm4 = vmpackc.even %vm5371_vm8, %vm5370_vm2  ;;  %vm14657_vm2 = vcmp.lt.f32.partialorder %v14656_v5, 4.0  ;;  %vm14659_vm8 = vcmp.lt.f32.partialorder %v14658_v3, 4.0  ;;  %v14691_v58 = vld [vmem:[#allocation197_spill] sm:$0xff]  ;;  %v14693_v36 = vld [vmem:[#allocation339_spill] sm:$0xff] }
 0x4d7   :  { %v5546_v14 = vsel %vm5372_vm4, 16843009, %v5898_v47  ;;  %vm5373_vm3 = vmpackc.low %vm14645_vm5, %vm14643_vm12  ;;  %vm14661_vm4 = vcmp.lt.f32.partialorder %v14660_v62, 4.0  ;;  %vm14663_vm5 = vcmp.lt.f32.partialorder %v14662_v17, 4.0  ;;  %v14695_v38 = vld [vmem:[#allocation327_spill] sm:$0xff]  ;;  %v14697_v56 = vld [vmem:[#allocation194_spill] sm:$0xff] }
 0x4d8   :  { %5610 = vst [vmem:[#allocation5 + $0x40] sm:$0xff] %v5546_v14  ;;  %vm5374_vm1 = vmpackc.low %vm14649_vm0, %vm14647_vm6  ;;  %v14699_v41 = vld [vmem:[#allocation329_spill] sm:$0xff]  ;;  %v14701_v32 = vld [vmem:[#allocation214_spill] sm:$0xff] }
 0x4d9   :  { %vm5375_vm14 = vmpackc.even %vm5374_vm1, %vm5373_vm3  ;;  %vm14665_vm3 = vcmp.lt.f32.partialorder %v14664_v63, 4.0  ;;  %vm14666_vm1 = vcmp.lt.f32.partialorder %v9924_v48, 4.0  ;;  %v14679_v48 = vld [vmem:[#allocation333_spill] sm:$0xff]  ;;  %v14703_v5 = vld [vmem:[#allocation208_spill] sm:$0xff] }
 0x4da   :  { %v5547_v18 = vsel %vm5375_vm14, 16843009, %v5898_v47  ;;  %vm5376_vm9 = vmpackc.low %vm14653_vm11, %vm14651_vm10  ;;  %vm14668_vm14 = vcmp.lt.f32.partialorder %v14667_v29, 4.0  ;;  %vm14670_vm11 = vcmp.lt.f32.partialorder %v14669_v42, 4.0  ;;  %v14705_v3 = vld [vmem:[#allocation335_spill] sm:$0xff]  ;;  %v14707_v62 = vld [vmem:[#allocation188_spill] sm:$0xff] }
 0x4db   :  { %5611 = vst [vmem:[#allocation5 + $0x48] sm:$0xff] %v5547_v18  ;;  %vm5377_vm13 = vmpackc.low %vm14657_vm2, %vm14655_vm15  ;;  %v14709_v17 = vld [vmem:[#allocation346_spill] sm:$0xff]  ;;  %v14711_v63 = vld [vmem:[#allocation340_spill] sm:$0xff] }
 0x4dc   :  { %vm5378_vm7 = vmpackc.even %vm5377_vm13, %vm5376_vm9  ;;  %vm14672_vm9 = vcmp.lt.f32.partialorder %v14671_v53, 4.0  ;;  %vm14674_vm13 = vcmp.lt.f32.partialorder %v14673_v12, 4.0  ;;  %v14713_v29 = vld [vmem:[#allocation195_spill] sm:$0xff]  ;;  %v14715_v42 = vld [vmem:[#allocation330_spill] sm:$0xff] }
 0x4dd   :  { %v5548_v27 = vsel %vm5378_vm7, 16843009, %v5898_v47  ;;  %vm5379_vm12 = vmpackc.low %vm14661_vm4, %vm14659_vm8  ;;  %vm14676_vm7 = vcmp.lt.f32.partialorder %v14675_v28, 4.0  ;;  %vm14678_vm4 = vcmp.lt.f32.partialorder %v14677_v0, 4.0  ;;  %v14717_v53 = vld [vmem:[#allocation215_spill] sm:$0xff]  ;;  %v14721_v28 = vld [vmem:[#allocation336_spill] sm:$0xff] }
 0x4de   :  { %5612 = vst [vmem:[#allocation5 + $0x50] sm:$0xff] %v5548_v27  ;;  %vm5380_vm6 = vmpackc.low %vm14665_vm3, %vm14663_vm5  ;;  %v14723_v0 = vld [vmem:[#allocation205_spill] sm:$0xff] }
 0x4df   :  { %vm5381_vm0 = vmpackc.even %vm5380_vm6, %vm5379_vm12  ;;  %vm14680_vm12 = vcmp.lt.f32.partialorder %v14679_v48, 4.0  ;;  %vm14682_vm6 = vcmp.lt.f32.partialorder %v14681_v23, 4.0  ;;  %v14725_v48 = vld [vmem:[#allocation347_spill] sm:$0xff] }
 0x4e0   :  { %v5549_v1 = vsel %vm5381_vm0, 16843009, %v5898_v47  ;;  %vm5382_vm10 = vmpackc.low %vm14668_vm14, %vm14666_vm1  ;;  %vm14684_vm0 = vcmp.lt.f32.partialorder %v14683_v16, 4.0  ;;  %vm14686_vm14 = vcmp.lt.f32.partialorder %v14685_v9, 4.0  ;;  %v14730_v16 = vld [vmem:[#allocation196_spill] sm:$0xff] }
 0x4e1   :  { %5613 = vst [vmem:[#allocation5 + $0x58] sm:$0xff] %v5549_v1  ;;  %vm5383_vm15 = vmpackc.low %vm14672_vm9, %vm14670_vm11  ;;  %v14733_v9 = vld [vmem:[#allocation216_spill] sm:$0xff] }
 0x4e2   :  { %vm5384_vm2 = vmpackc.even %vm5383_vm15, %vm5382_vm10  ;;  %vm14688_vm10 = vcmp.lt.f32.partialorder %v14687_v35, 4.0  ;;  %vm14690_vm15 = vcmp.lt.f32.partialorder %v14689_v46, 4.0  ;;  %v14741_v46 = vld [vmem:[#allocation202_spill] sm:$0xff] }
 0x4e3   :  { %v5550_v2 = vsel %vm5384_vm2, 16843009, %v5898_v47  ;;  %vm5385_vm8 = vmpackc.low %vm14676_vm7, %vm14674_vm13  ;;  %vm14692_vm2 = vcmp.lt.f32.partialorder %v14691_v58, 4.0  ;;  %vm14694_vm7 = vcmp.lt.f32.partialorder %v14693_v36, 4.0  ;;  %v14743_v58 = vld [vmem:[#allocation213_spill] sm:$0xff] }
 0x4e4   :  { %5614 = vst [vmem:[#allocation5 + $0x60] sm:$0xff] %v5550_v2  ;;  %vm5386_vm5 = vmpackc.low %vm14680_vm12, %vm14678_vm4  ;;  %v14719_v2 = vld [vmem:[#allocation193_spill] sm:$0xff] }
 0x4e5   :  { %vm5387_vm3 = vmpackc.even %vm5386_vm5, %vm5385_vm8  ;;  %vm14696_vm8 = vcmp.lt.f32.partialorder %v14695_v38, 4.0  ;;  %vm14698_vm5 = vcmp.lt.f32.partialorder %v14697_v56, 4.0  ;;  %v14745_v36 = vld [vmem:[#allocation221_spill] sm:$0xff]  ;;  %v14749_v38 = vld [vmem:[#allocation342_spill] sm:$0xff] }
 0x4e6   :  { %v5551_v21 = vsel %vm5387_vm3, 16843009, %v5898_v47  ;;  %vm5388_vm1 = vmpackc.low %vm14684_vm0, %vm14682_vm6  ;;  %vm14700_vm3 = vcmp.lt.f32.partialorder %v14699_v41, 4.0  ;;  %vm14702_vm0 = vcmp.lt.f32.partialorder %v14701_v32, 4.0  ;;  %v14753_v56 = vld [vmem:[#allocation222_spill] sm:$0xff]  ;;  %v14755_v41 = vld [vmem:[#allocation341_spill] sm:$0xff] }
 0x4e7   :  { %5615 = vst [vmem:[#allocation5 + $0x68] sm:$0xff] %v5551_v21  ;;  %vm5389_vm11 = vmpackc.low %vm14688_vm10, %vm14686_vm14  ;;  %v14727_v21 = vld [vmem:[#allocation334_spill] sm:$0xff] }
 0x4e8   :  { %vm5390_vm9 = vmpackc.even %vm5389_vm11, %vm5388_vm1  ;;  %vm14704_vm1 = vcmp.lt.f32.partialorder %v14703_v5, 4.0  ;;  %vm14706_vm11 = vcmp.lt.f32.partialorder %v14705_v3, 4.0  ;;  %v14758_v5 = vld [vmem:[#allocation203_spill] sm:$0xff] }
 0x4e9   :  { %v5552_v14 = vsel %vm5390_vm9, 16843009, %v5898_v47  ;;  %vm5391_vm13 = vmpackc.low %vm14692_vm2, %vm14690_vm15  ;;  %vm14708_vm9 = vcmp.lt.f32.partialorder %v14707_v62, 4.0  ;;  %vm14710_vm2 = vcmp.lt.f32.partialorder %v14709_v17, 4.0  ;;  %v14764_v62 = vld [vmem:[#allocation343_spill] sm:$0xff]  ;;  %v14769_v17 = vld [vmem:[#allocation210_spill] sm:$0xff] }
 0x4ea   :  { %5616 = vst [vmem:[#allocation5 + $0x70] sm:$0xff] %v5552_v14  ;;  %vm5392_vm4 = vmpackc.low %vm14696_vm8, %vm14694_vm7  ;;  %v14736_v14 = vld [vmem:[#allocation337_spill] sm:$0xff] }
 0x4eb   :  { %vm5393_vm12 = vmpackc.even %vm5392_vm4, %vm5391_vm13  ;;  %vm14712_vm13 = vcmp.lt.f32.partialorder %v14711_v63, 4.0  ;;  %vm14714_vm4 = vcmp.lt.f32.partialorder %v14713_v29, 4.0  ;;  %v14771_v63 = vld [vmem:[#allocation204_spill] sm:$0xff] }
 0x4ec   :  { %v5553_v18 = vsel %vm5393_vm12, 16843009, %v5898_v47  ;;  %vm5394_vm6 = vmpackc.low %vm14700_vm3, %vm14698_vm5  ;;  %vm14716_vm12 = vcmp.lt.f32.partialorder %v14715_v42, 4.0  ;;  %vm14718_vm3 = vcmp.lt.f32.partialorder %v14717_v53, 4.0  ;;  %v14778_v29 = vld [vmem:[#allocation344_spill] sm:$0xff]  ;;  %v14781_v42 = vld [vmem:[#allocation349_spill] sm:$0xff] }
 0x4ed   :  { %5617 = vst [vmem:[#allocation5 + $0x78] sm:$0xff] %v5553_v18  ;;  %vm5395_vm14 = vmpackc.low %vm14704_vm1, %vm14702_vm0  ;;  %v14751_v18 = vld [vmem:[#allocation345_spill] sm:$0xff]  ;;  %v14784_v53 = vld [vmem:[#allocation211_spill] sm:$0xff] }
 0x4ee   :  { %vm5396_vm10 = vmpackc.even %vm5395_vm14, %vm5394_vm6  ;;  %vm14720_vm6 = vcmp.lt.f32.partialorder %v14719_v2, 4.0  ;;  %vm14722_vm14 = vcmp.lt.f32.partialorder %v14721_v28, 4.0  ;;  %v14787_v2 = vld [vmem:[#allocation217_spill] sm:$0xff]  ;;  %v14796_v28 = vld [vmem:[#allocation212_spill] sm:$0xff] }
 0x4ef   :  { %v5554_v27 = vsel %vm5396_vm10, 16843009, %v5898_v47  ;;  %vm5397_vm15 = vmpackc.low %vm14708_vm9, %vm14706_vm11  ;;  %vm14724_vm10 = vcmp.lt.f32.partialorder %v14723_v0, 4.0  ;;  %vm14726_vm9 = vcmp.lt.f32.partialorder %v14725_v48, 4.0  ;;  %v14802_v0 = vld [vmem:[#allocation352_spill] sm:$0xff]  ;;  %v14809_v48 = vld [vmem:[#allocation26_spill] sm:$0xff] }
 0x4f0   :  { %5618 = vst [vmem:[#allocation5 + $0x80] sm:$0xff] %v5554_v27  ;;  %vm5398_vm7 = vmpackc.low %vm14712_vm13, %vm14710_vm2  ;;  %v14761_v27 = vld [vmem:[#allocation223_spill] sm:$0xff] }
 0x4f1   :  { %vm5399_vm8 = vmpackc.even %vm5398_vm7, %vm5397_vm15  ;;  %vm14728_vm15 = vcmp.lt.f32.partialorder %v14727_v21, 4.0  ;;  %vm14729_vm7 = vcmp.lt.f32.partialorder %v10116_v60, 4.0  ;;  %v14739_v60 = vld [vmem:[#allocation348_spill] sm:$0xff]  ;;  %v14813_v21 = vld [vmem:[#allocation22_spill] sm:$0xff] }
 0x4f2   :  { %v5555_v1 = vsel %vm5399_vm8, 16843009, %v5898_v47  ;;  %vm5400_vm5 = vmpackc.low %vm14716_vm12, %vm14714_vm4  ;;  %vm14731_vm8 = vcmp.lt.f32.partialorder %v14730_v16, 4.0  ;;  %vm14732_vm12 = vcmp.lt.f32.partialorder %v10164_v37, 4.0  ;;  %v14817_v16 = vld [vmem:[#allocation373_spill] sm:$0xff] }
 0x4f3   :  { %5619 = vst [vmem:[#allocation5 + $0x88] sm:$0xff] %v5555_v1  ;;  %vm5401_vm0 = vmpackc.low %vm14720_vm6, %vm14718_vm3  ;;  %v14776_v1 = vld [vmem:[#allocation350_spill] sm:$0xff] }
 0x4f4   :  { %vm5402_vm1 = vmpackc.even %vm5401_vm0, %vm5400_vm5  ;;  %vm14734_vm5 = vcmp.lt.f32.partialorder %v14733_v9, 4.0  ;;  %vm14735_vm0 = vcmp.lt.f32.partialorder %v10118_v6, 4.0  ;;  %v14747_v6 = vld [vmem:[#allocation201_spill] sm:$0xff]  ;;  %v14821_v9 = vld [vmem:[#allocation110_spill] sm:$0xff] }
 0x4f5   :  { %v5556_v12 = vsel %vm5402_vm1, 16843009, %v5898_v47  ;;  %vm5403_vm11 = vmpackc.low %vm14724_vm10, %vm14722_vm14  ;;  %vm14737_vm1 = vcmp.lt.f32.partialorder %v14736_v14, 4.0  ;;  %vm14738_vm10 = vcmp.lt.f32.partialorder %v10166_v15, 4.0  ;;  %v14825_v14 = vld [vmem:[#allocation27_spill] sm:$0xff] }
 0x4f6   :  { %5620 = vst [vmem:[#allocation5 + $0x90] sm:$0xff] %v5556_v12  ;;  %vm5404_vm2 = vmpackc.low %vm14728_vm15, %vm14726_vm9  ;;  %v14790_v12 = vld [vmem:[#allocation351_spill] sm:$0xff] }
 0x4f7   :  { %vm5405_vm13 = vmpackc.even %vm5404_vm2, %vm5403_vm11  ;;  %vm14740_vm11 = vcmp.lt.f32.partialorder %v14739_v60, 4.0  ;;  %vm14742_vm2 = vcmp.lt.f32.partialorder %v14741_v46, 4.0  ;;  %v14827_v60 = vld [vmem:[#allocation21_spill] sm:$0xff]  ;;  %v14829_v46 = vld [vmem:[#allocation23_spill] sm:$0xff] }
 0x4f8   :  { %v5557_v23 = vsel %vm5405_vm13, 16843009, %v5898_v47  ;;  %vm5406_vm4 = vmpackc.low %vm14731_vm8, %vm14729_vm7  ;;  %vm14744_vm13 = vcmp.lt.f32.partialorder %v14743_v58, 4.0  ;;  %vm14746_vm8 = vcmp.lt.f32.partialorder %v14745_v36, 4.0  ;;  %v14831_v58 = vld [vmem:[#allocation220_spill] sm:$0xff]  ;;  %v14833_v36 = vld [vmem:[#allocation374_spill] sm:$0xff] }
 0x4f9   :  { %5621 = vst [vmem:[#allocation5 + $0x98] sm:$0xff] %v5557_v23  ;;  %vm5407_vm3 = vmpackc.low %vm14734_vm5, %vm14732_vm12  ;;  %v14815_v23 = vld [vmem:[#allocation219_spill] sm:$0xff] }
 0x4fa   :  { %vm5408_vm6 = vmpackc.even %vm5407_vm3, %vm5406_vm4  ;;  %vm14748_vm4 = vcmp.lt.f32.partialorder %v14747_v6, 4.0  ;;  %vm14750_vm3 = vcmp.lt.f32.partialorder %v14749_v38, 4.0  ;;  %v14835_v6 = vld [vmem:[#allocation109_spill] sm:$0xff]  ;;  %v14837_v38 = vld [vmem:[#allocation230_spill] sm:$0xff] }
 0x4fb   :  { %v5558_v35 = vsel %vm5408_vm6, 16843009, %v5898_v47  ;;  %vm5409_vm14 = vmpackc.low %vm14737_vm1, %vm14735_vm0  ;;  %vm14752_vm6 = vcmp.lt.f32.partialorder %v14751_v18, 4.0  ;;  %vm14754_vm1 = vcmp.lt.f32.partialorder %v14753_v56, 4.0  ;;  %v14839_v18 = vld [vmem:[#allocation111_spill] sm:$0xff]  ;;  %v14841_v56 = vld [vmem:[#allocation380_spill] sm:$0xff] }
 0x4fc   :  { %5622 = vst [vmem:[#allocation5 + $0xa0] sm:$0xff] %v5558_v35  ;;  %vm5410_vm9 = vmpackc.low %vm14740_vm11, %vm14738_vm10  ;;  %v14823_v35 = vld [vmem:[#allocation355_spill] sm:$0xff] }
 0x4fd   :  { %vm5411_vm15 = vmpackc.even %vm5410_vm9, %vm5409_vm14  ;;  %vm14756_vm14 = vcmp.lt.f32.partialorder %v14755_v41, 4.0  ;;  %vm14757_vm9 = vcmp.lt.f32.partialorder %v10212_v57, 4.0  ;;  %v14767_v57 = vld [vmem:[#allocation224_spill] sm:$0xff] }
 0x4fe   :  { %v5559_v37 = vsel %vm5411_vm15, 16843009, %v5898_v47  ;;  %vm5412_vm7 = vmpackc.low %vm14744_vm13, %vm14742_vm2  ;;  %vm14759_vm15 = vcmp.lt.f32.partialorder %v14758_v5, 4.0  ;;  %vm14760_vm13 = vcmp.lt.f32.partialorder %v10258_v13, 4.0  ;;  %v14843_v41 = vld [vmem:[#allocation12_spill] sm:$0xff]  ;;  %v14845_v5 = vld [vmem:[#allocation106_spill] sm:$0xff] }
 0x4ff   :  { %5623 = vst [vmem:[#allocation5 + $0xa8] sm:$0xff] %v5559_v37  ;;  %vm5413_vm12 = vmpackc.low %vm14748_vm4, %vm14746_vm8 }
 0x500   :  { %vm5414_vm5 = vmpackc.even %vm5413_vm12, %vm5412_vm7  ;;  %vm14762_vm7 = vcmp.lt.f32.partialorder %v14761_v27, 4.0  ;;  %vm14763_vm12 = vcmp.lt.f32.partialorder %v10214_v11, 4.0  ;;  %v14774_v11 = vld [vmem:[#allocation209_spill] sm:$0xff]  ;;  %v14847_v27 = vld [vmem:[#allocation24_spill] sm:$0xff] }
 0x501   :  { %v5560_v15 = vsel %vm5414_vm5, 16843009, %v5898_v47  ;;  %vm5415_vm0 = vmpackc.low %vm14752_vm6, %vm14750_vm3  ;;  %vm14765_vm5 = vcmp.lt.f32.partialorder %v14764_v62, 4.0  ;;  %vm14766_vm6 = vcmp.lt.f32.partialorder %v10260_v33, 4.0  ;;  %v14851_v62 = vld [vmem:[#allocation116_spill] sm:$0xff] }
 0x502   :  { %5624 = vst [vmem:[#allocation5 + $0xb0] sm:$0xff] %v5560_v15  ;;  %vm5416_vm10 = vmpackc.low %vm14756_vm14, %vm14754_vm1 }
 0x503   :  { %vm5417_vm11 = vmpackc.even %vm5416_vm10, %vm5415_vm0  ;;  %vm14768_vm0 = vcmp.lt.f32.partialorder %v14767_v57, 4.0  ;;  %vm14770_vm10 = vcmp.lt.f32.partialorder %v14769_v17, 4.0  ;;  %v14855_v17 = vld [vmem:[#allocation25_spill] sm:$0xff] }
 0x504   :  { %v5561_v32 = vsel %vm5417_vm11, 16843009, %v5898_v47  ;;  %vm5418_vm2 = vmpackc.low %vm14759_vm15, %vm14757_vm9  ;;  %vm14772_vm11 = vcmp.lt.f32.partialorder %v14771_v63, 4.0  ;;  %vm14773_vm15 = vcmp.lt.f32.partialorder %v10264_v24, 4.0  ;;  %v14857_v63 = vld [vmem:[#allocation381_spill] sm:$0xff] }
 0x505   :  { %5625 = vst [vmem:[#allocation5 + $0xb8] sm:$0xff] %v5561_v32  ;;  %vm5419_vm8 = vmpackc.low %vm14762_vm7, %vm14760_vm13 }
 0x506   :  { %vm5420_vm4 = vmpackc.even %vm5419_vm8, %vm5418_vm2  ;;  %vm14775_vm2 = vcmp.lt.f32.partialorder %v14774_v11, 4.0  ;;  %vm14777_vm8 = vcmp.lt.f32.partialorder %v14776_v1, 4.0  ;;  %v14859_v11 = vld [vmem:[#allocation15_spill] sm:$0xff] }
 0x507   :  { %v5562_v3 = vsel %vm5420_vm4, 16843009, %v5898_v47  ;;  %vm5421_vm3 = vmpackc.low %vm14765_vm5, %vm14763_vm12  ;;  %vm14779_vm4 = vcmp.lt.f32.partialorder %v14778_v29, 4.0  ;;  %vm14780_vm5 = vcmp.lt.f32.partialorder %v10266_v10, 4.0  ;;  %v14861_v1 = vld [vmem:[#allocation107_spill] sm:$0xff]  ;;  %v14863_v29 = vld [vmem:[#allocation372_spill] sm:$0xff] }
 0x508   :  { %5626 = vst [vmem:[#allocation5 + $0xc0] sm:$0xff] %v5562_v3  ;;  %vm5422_vm1 = vmpackc.low %vm14768_vm0, %vm14766_vm6  ;;  %v14849_v3 = vld [vmem:[#allocation31_spill] sm:$0xff] }
 0x509   :  { %vm5423_vm14 = vmpackc.even %vm5422_vm1, %vm5421_vm3  ;;  %vm14782_vm3 = vcmp.lt.f32.partialorder %v14781_v42, 4.0  ;;  %vm14783_vm1 = vcmp.lt.f32.partialorder %v10302_v22, 4.0  ;;  %v14793_v22 = vld [vmem:[#allocation353_spill] sm:$0xff]  ;;  %v14865_v42 = vld [vmem:[#allocation16_spill] sm:$0xff] }
 0x50a   :  { %v5563_v13 = vsel %vm5423_vm14, 16843009, %v5898_v47  ;;  %vm5424_vm9 = vmpackc.low %vm14772_vm11, %vm14770_vm10  ;;  %vm14785_vm14 = vcmp.lt.f32.partialorder %v14784_v53, 4.0  ;;  %vm14786_vm11 = vcmp.lt.f32.partialorder %v10339_v26, 4.0 }
 0x50b   :  { %5627 = vst [vmem:[#allocation5 + $0xc8] sm:$0xff] %v5563_v13  ;;  %vm5425_vm13 = vmpackc.low %vm14775_vm2, %vm14773_vm15  ;;  %v14853_v13 = vld [vmem:[#allocation231_spill] sm:$0xff] }
 0x50c   :  { %vm5426_vm7 = vmpackc.even %vm5425_vm13, %vm5424_vm9  ;;  %vm14788_vm9 = vcmp.lt.f32.partialorder %v14787_v2, 4.0  ;;  %vm14789_vm13 = vcmp.lt.f32.partialorder %v10304_v19, 4.0  ;;  %v14799_v19 = vld [vmem:[#allocation218_spill] sm:$0xff] }
 0x50d   :  { %v5564_v33 = vsel %vm5426_vm7, 16843009, %v5898_v47  ;;  %vm5427_vm12 = vmpackc.low %vm14779_vm4, %vm14777_vm8  ;;  %vm14791_vm7 = vcmp.lt.f32.partialorder %v14790_v12, 4.0  ;;  %vm14792_vm4 = vcmp.lt.f32.partialorder %v10342_v7, 4.0  ;;  %v14869_v2 = vld [vmem:[#allocation366_spill] sm:$0xff]  ;;  %v14873_v12 = vld [vmem:[#allocation388_spill] sm:$0xff] }
 0x50e   :  { %5628 = vst [vmem:[#allocation5 + $0xd0] sm:$0xff] %v5564_v33  ;;  %vm5428_vm6 = vmpackc.low %vm14782_vm3, %vm14780_vm5 }
 0x50f   :  { %vm5429_vm0 = vmpackc.even %vm5428_vm6, %vm5427_vm12  ;;  %vm14794_vm12 = vcmp.lt.f32.partialorder %v14793_v22, 4.0  ;;  %vm14795_vm6 = vcmp.lt.f32.partialorder %v10308_v54, 4.0  ;;  %v14805_v54 = vld [vmem:[#allocation354_spill] sm:$0xff]  ;;  %v14875_v22 = vld [vmem:[#allocation108_spill] sm:$0xff] }
 0x510   :  { %v5565_v24 = vsel %vm5429_vm0, 16843009, %v5898_v47  ;;  %vm5430_vm10 = vmpackc.low %vm14785_vm14, %vm14783_vm1  ;;  %vm14797_vm0 = vcmp.lt.f32.partialorder %v14796_v28, 4.0  ;;  %vm14798_vm14 = vcmp.lt.f32.partialorder %v10347_v20, 4.0  ;;  %v14877_v28 = vld [vmem:[#allocation19_spill] sm:$0xff] }
 0x511   :  { %5629 = vst [vmem:[#allocation5 + $0xd8] sm:$0xff] %v5565_v24  ;;  %vm5431_vm15 = vmpackc.low %vm14788_vm9, %vm14786_vm11  ;;  %v14867_v24 = vld [vmem:[#allocation105_spill] sm:$0xff] }
 0x512   :  { %vm5432_vm2 = vmpackc.even %vm5431_vm15, %vm5430_vm10  ;;  %vm14800_vm10 = vcmp.lt.f32.partialorder %v14799_v19, 4.0  ;;  %vm14801_vm15 = vcmp.lt.f32.partialorder %v10310_v25, 4.0  ;;  %v14811_v25 = vld [vmem:[#allocation356_spill] sm:$0xff]  ;;  %v14879_v19 = vld [vmem:[#allocation29_spill] sm:$0xff] }
 0x513   :  { %v5566_v10 = vsel %vm5432_vm2, 16843009, %v5898_v47  ;;  %vm5433_vm8 = vmpackc.low %vm14791_vm7, %vm14789_vm13  ;;  %vm14803_vm2 = vcmp.lt.f32.partialorder %v14802_v0, 4.0  ;;  %vm14804_vm7 = vcmp.lt.f32.partialorder %v10350_v31, 4.0  ;;  %v14883_v0 = vld [vmem:[#allocation17_spill] sm:$0xff] }
 0x514   :  { %5630 = vst [vmem:[#allocation5 + $0xe0] sm:$0xff] %v5566_v10  ;;  %vm5434_vm5 = vmpackc.low %vm14794_vm12, %vm14792_vm4  ;;  %v14871_v10 = vld [vmem:[#allocation28_spill] sm:$0xff] }
 0x515   :  { %vm5435_vm3 = vmpackc.even %vm5434_vm5, %vm5433_vm8  ;;  %vm14806_vm8 = vcmp.lt.f32.partialorder %v14805_v54, 4.0  ;;  %vm14807_vm5 = vcmp.lt.f32.partialorder %v10379_v45, 4.0  ;;  %v14819_v45 = vld [vmem:[#allocation20_spill] sm:$0xff] }
 0x516   :  { %v5567_v26 = vsel %vm5435_vm3, 16843009, %v5898_v47  ;;  %vm5436_vm1 = vmpackc.low %vm14797_vm0, %vm14795_vm6  ;;  %vm14808_vm3 = vcmp.lt.f32.partialorder %v10317_v49, 4.0  ;;  %vm14810_vm0 = vcmp.lt.f32.partialorder %v14809_v48, 4.0  ;;  %v14887_v48 = vld [vmem:[#allocation379_spill] sm:$0xff] }
 0x517   :  { %5631 = vst [vmem:[#allocation5 + $0xe8] sm:$0xff] %v5567_v26  ;;  %vm5437_vm11 = vmpackc.low %vm14800_vm10, %vm14798_vm14 }
 0x518   :  { %vm5438_vm9 = vmpackc.even %vm5437_vm11, %vm5436_vm1  ;;  %vm14812_vm1 = vcmp.lt.f32.partialorder %v14811_v25, 4.0  ;;  %vm14814_vm11 = vcmp.lt.f32.partialorder %v14813_v21, 4.0  ;;  %v14889_v25 = vld [vmem:[#allocation389_spill] sm:$0xff] }
 0x519   :  { %v5568_v7 = vsel %vm5438_vm9, 16843009, %v5898_v47  ;;  %vm5439_vm13 = vmpackc.low %vm14803_vm2, %vm14801_vm15  ;;  %vm14816_vm9 = vcmp.lt.f32.partialorder %v14815_v23, 4.0  ;;  %vm14818_vm2 = vcmp.lt.f32.partialorder %v14817_v16, 4.0  ;;  %v14893_v23 = vld [vmem:[#allocation33_spill] sm:$0xff]  ;;  %v14895_v16 = vld [vmem:[#allocation30_spill] sm:$0xff] }
 0x51a   :  { %5632 = vst [vmem:[#allocation5 + $0xf0] sm:$0xff] %v5568_v7  ;;  %vm5440_vm4 = vmpackc.low %vm14806_vm8, %vm14804_vm7  ;;  %v14881_v7 = vld [vmem:[#allocation36_spill] sm:$0xff] }
 0x51b   :  { %vm5441_vm12 = vmpackc.even %vm5440_vm4, %vm5439_vm13  ;;  %vm14820_vm13 = vcmp.lt.f32.partialorder %v14819_v45, 4.0  ;;  %vm14822_vm4 = vcmp.lt.f32.partialorder %v14821_v9, 4.0  ;;  %v14897_v45 = vld [vmem:[#allocation32_spill] sm:$0xff] }
 0x51c   :  { %v5569_v20 = vsel %vm5441_vm12, 16843009, %v5898_v47  ;;  %vm5442_vm6 = vmpackc.low %vm14808_vm3, %vm14807_vm5  ;;  %vm14824_vm12 = vcmp.lt.f32.partialorder %v14823_v35, 4.0  ;;  %vm14826_vm3 = vcmp.lt.f32.partialorder %v14825_v14, 4.0  ;;  %v14902_v35 = vld [vmem:[#allocation386_spill] sm:$0xff]  ;;  %v14905_v14 = vld [vmem:[#allocation368_spill] sm:$0xff] }
 0x51d   :  { %5633 = vst [vmem:[#allocation5 + $0xf8] sm:$0xff] %v5569_v20  ;;  %vm5443_vm14 = vmpackc.low %vm14812_vm1, %vm14810_vm0  ;;  %v14885_v20 = vld [vmem:[#allocation367_spill] sm:$0xff] }
 0x51e   :  { %vm5444_vm10 = vmpackc.even %vm5443_vm14, %vm5442_vm6  ;;  %vm14828_vm6 = vcmp.lt.f32.partialorder %v14827_v60, 4.0  ;;  %vm14830_vm14 = vcmp.lt.f32.partialorder %v14829_v46, 4.0  ;;  %v14909_v46 = vld [vmem:[#allocation34_spill] sm:$0xff] }
 0x51f   :  { %v5570_v31 = vsel %vm5444_vm10, 16843009, %v5898_v47  ;;  %vm5445_vm15 = vmpackc.low %vm14816_vm9, %vm14814_vm11  ;;  %vm14832_vm10 = vcmp.lt.f32.partialorder %v14831_v58, 4.0  ;;  %vm14834_vm9 = vcmp.lt.f32.partialorder %v14833_v36, 4.0  ;;  %v14911_v58 = vld [vmem:[#allocation395_spill] sm:$0xff]  ;;  %v14915_v36 = vld [vmem:[#allocation234_spill] sm:$0xff] }
 0x520   :  { %5634 = vst [vmem:[#allocation5 + $0x100] sm:$0xff] %v5570_v31  ;;  %vm5446_vm7 = vmpackc.low %vm14820_vm13, %vm14818_vm2  ;;  %v14891_v31 = vld [vmem:[#allocation365_spill] sm:$0xff] }
 0x521   :  { %vm5447_vm8 = vmpackc.even %vm5446_vm7, %vm5445_vm15  ;;  %vm14836_vm15 = vcmp.lt.f32.partialorder %v14835_v6, 4.0  ;;  %vm14838_vm7 = vcmp.lt.f32.partialorder %v14837_v38, 4.0  ;;  %v14917_v6 = vld [vmem:[#allocation387_spill] sm:$0xff]  ;;  %v14921_v38 = vld [vmem:[#allocation369_spill] sm:$0xff] }
 0x522   :  { %v5571_v49 = vsel %vm5447_vm8, 16843009, %v5898_v47  ;;  %vm5448_vm5 = vmpackc.low %vm14824_vm12, %vm14822_vm4  ;;  %vm14840_vm8 = vcmp.lt.f32.partialorder %v14839_v18, 4.0  ;;  %vm14842_vm12 = vcmp.lt.f32.partialorder %v14841_v56, 4.0  ;;  %v14923_v56 = vld [vmem:[#allocation371_spill] sm:$0xff] }
 0x523   :  { %5635 = vst [vmem:[#allocation5 + $0x108] sm:$0xff] %v5571_v49  ;;  %vm5449_vm0 = vmpackc.low %vm14828_vm6, %vm14826_vm3  ;;  %v14899_v49 = vld [vmem:[#allocation18_spill] sm:$0xff] }
 0x524   :  { %vm5450_vm1 = vmpackc.even %vm5449_vm0, %vm5448_vm5  ;;  %vm14844_vm5 = vcmp.lt.f32.partialorder %v14843_v41, 4.0  ;;  %vm14846_vm0 = vcmp.lt.f32.partialorder %v14845_v5, 4.0  ;;  %v14925_v41 = vld [vmem:[#allocation35_spill] sm:$0xff]  ;;  %v14929_v5 = vld [vmem:[#allocation233_spill] sm:$0xff] }
 0x525   :  { %v5572_v37 = vsel %vm5450_vm1, 16843009, %v5898_v47  ;;  %vm5451_vm11 = vmpackc.low %vm14832_vm10, %vm14830_vm14  ;;  %vm14848_vm1 = vcmp.lt.f32.partialorder %v14847_v27, 4.0  ;;  %vm14850_vm10 = vcmp.lt.f32.partialorder %v14849_v3, 4.0  ;;  %v14931_v3 = vld [vmem:[#allocation38_spill] sm:$0xff] }
 0x526   :  { %5636 = vst [vmem:[#allocation5 + $0x110] sm:$0xff] %v5572_v37  ;;  %vm5452_vm2 = vmpackc.low %vm14836_vm15, %vm14834_vm9  ;;  %v14907_v37 = vld [vmem:[#allocation370_spill] sm:$0xff] }
 0x527   :  { %vm5453_vm13 = vmpackc.even %vm5452_vm2, %vm5451_vm11  ;;  %vm14852_vm11 = vcmp.lt.f32.partialorder %v14851_v62, 4.0  ;;  %vm14854_vm2 = vcmp.lt.f32.partialorder %v14853_v13, 4.0  ;;  %v14933_v62 = vld [vmem:[#allocation40_spill] sm:$0xff] }
 0x528   :  { %v5573_v15 = vsel %vm5453_vm13, 16843009, %v5898_v47  ;;  %vm5454_vm4 = vmpackc.low %vm14840_vm8, %vm14838_vm7  ;;  %vm14856_vm13 = vcmp.lt.f32.partialorder %v14855_v17, 4.0  ;;  %vm14858_vm8 = vcmp.lt.f32.partialorder %v14857_v63, 4.0  ;;  %v14938_v17 = vld [vmem:[#allocation377_spill] sm:$0xff] }
 0x529   :  { %5637 = vst [vmem:[#allocation5 + $0x118] sm:$0xff] %v5573_v15  ;;  %vm5455_vm3 = vmpackc.low %vm14844_vm5, %vm14842_vm12  ;;  %v14919_v15 = vld [vmem:[#allocation43_spill] sm:$0xff]  ;;  %v14940_v63 = vld [vmem:[#allocation41_spill] sm:$0xff] }
 0x52a   :  { %vm5456_vm6 = vmpackc.even %vm5455_vm3, %vm5454_vm4  ;;  %vm14860_vm4 = vcmp.lt.f32.partialorder %v14859_v11, 4.0  ;;  %vm14862_vm3 = vcmp.lt.f32.partialorder %v14861_v1, 4.0  ;;  %v14943_v11 = vld [vmem:[#allocation375_spill] sm:$0xff]  ;;  %v14947_v1 = vld [vmem:[#allocation394_spill] sm:$0xff] }
 0x52b   :  { %v5574_v32 = vsel %vm5456_vm6, 16843009, %v5898_v47  ;;  %vm5457_vm14 = vmpackc.low %vm14848_vm1, %vm14846_vm0  ;;  %vm14864_vm6 = vcmp.lt.f32.partialorder %v14863_v29, 4.0  ;;  %vm14866_vm1 = vcmp.lt.f32.partialorder %v14865_v42, 4.0  ;;  %v14949_v29 = vld [vmem:[#allocation47_spill] sm:$0xff]  ;;  %v14951_v42 = vld [vmem:[#allocation37_spill] sm:$0xff] }
 0x52c   :  { %5638 = vst [vmem:[#allocation5 + $0x120] sm:$0xff] %v5574_v32  ;;  %vm5458_vm9 = vmpackc.low %vm14852_vm11, %vm14850_vm10  ;;  %v14927_v32 = vld [vmem:[#allocation396_spill] sm:$0xff] }
 0x52d   :  { %vm5459_vm15 = vmpackc.even %vm5458_vm9, %vm5457_vm14  ;;  %vm14868_vm14 = vcmp.lt.f32.partialorder %v14867_v24, 4.0  ;;  %vm14870_vm9 = vcmp.lt.f32.partialorder %v14869_v2, 4.0  ;;  %v14953_v24 = vld [vmem:[#allocation378_spill] sm:$0xff]  ;;  %v14957_v2 = vld [vmem:[#allocation403_spill] sm:$0xff] }
 0x52e   :  { %v5575_v57 = vsel %vm5459_vm15, 16843009, %v5898_v47  ;;  %vm5460_vm7 = vmpackc.low %vm14856_vm13, %vm14854_vm2  ;;  %vm14872_vm15 = vcmp.lt.f32.partialorder %v14871_v10, 4.0  ;;  %vm14874_vm13 = vcmp.lt.f32.partialorder %v14873_v12, 4.0  ;;  %v14959_v10 = vld [vmem:[#allocation376_spill] sm:$0xff] }
 0x52f   :  { %5639 = vst [vmem:[#allocation5 + $0x128] sm:$0xff] %v5575_v57  ;;  %vm5461_vm12 = vmpackc.low %vm14860_vm4, %vm14858_vm8  ;;  %v14936_v57 = vld [vmem:[#allocation235_spill] sm:$0xff] }
 0x530   :  { %vm5462_vm5 = vmpackc.even %vm5461_vm12, %vm5460_vm7  ;;  %vm14876_vm7 = vcmp.lt.f32.partialorder %v14875_v22, 4.0  ;;  %vm14878_vm12 = vcmp.lt.f32.partialorder %v14877_v28, 4.0  ;;  %v14962_v22 = vld [vmem:[#allocation45_spill] sm:$0xff] }
 0x531   :  { %v5576_v33 = vsel %vm5462_vm5, 16843009, %v5898_v47  ;;  %vm5463_vm0 = vmpackc.low %vm14864_vm6, %vm14862_vm3  ;;  %vm14880_vm5 = vcmp.lt.f32.partialorder %v14879_v19, 4.0  ;;  %vm14882_vm6 = vcmp.lt.f32.partialorder %v14881_v7, 4.0  ;;  %v14967_v19 = vld [vmem:[#allocation236_spill] sm:$0xff]  ;;  %v14969_v7 = vld [vmem:[#allocation401_spill] sm:$0xff] }
 0x532   :  { %5640 = vst [vmem:[#allocation5 + $0x130] sm:$0xff] %v5576_v33  ;;  %vm5464_vm10 = vmpackc.low %vm14868_vm14, %vm14866_vm1  ;;  %v14945_v33 = vld [vmem:[#allocation39_spill] sm:$0xff] }
 0x533   :  { %vm5465_vm11 = vmpackc.even %vm5464_vm10, %vm5463_vm0  ;;  %vm14884_vm0 = vcmp.lt.f32.partialorder %v14883_v0, 4.0  ;;  %vm14886_vm10 = vcmp.lt.f32.partialorder %v14885_v20, 4.0  ;;  %v14971_v0 = vld [vmem:[#allocation53_spill] sm:$0xff]  ;;  %v14977_v20 = vld [vmem:[#allocation46_spill] sm:$0xff] }
 0x534   :  { %v5577_v53 = vsel %vm5465_vm11, 16843009, %v5898_v47  ;;  %vm5466_vm2 = vmpackc.low %vm14872_vm15, %vm14870_vm9  ;;  %vm14888_vm11 = vcmp.lt.f32.partialorder %v14887_v48, 4.0  ;;  %vm14890_vm15 = vcmp.lt.f32.partialorder %v14889_v25, 4.0  ;;  %v14979_v48 = vld [vmem:[#allocation409_spill] sm:$0xff]  ;;  %v14981_v25 = vld [vmem:[#allocation44_spill] sm:$0xff] }
 0x535   :  { %5641 = vst [vmem:[#allocation5 + $0x138] sm:$0xff] %v5577_v53  ;;  %vm5467_vm8 = vmpackc.low %vm14876_vm7, %vm14874_vm13  ;;  %v14955_v53 = vld [vmem:[#allocation42_spill] sm:$0xff] }
 0x536   :  { %vm5468_vm4 = vmpackc.even %vm5467_vm8, %vm5466_vm2  ;;  %vm14892_vm2 = vcmp.lt.f32.partialorder %v14891_v31, 4.0  ;;  %vm14894_vm8 = vcmp.lt.f32.partialorder %v14893_v23, 4.0  ;;  %v14985_v23 = vld [vmem:[#allocation402_spill] sm:$0xff] }
 0x537   :  { %v5578_v26 = vsel %vm5468_vm4, 16843009, %v5898_v47  ;;  %vm5469_vm3 = vmpackc.low %vm14880_vm5, %vm14878_vm12  ;;  %vm14896_vm4 = vcmp.lt.f32.partialorder %v14895_v16, 4.0  ;;  %vm14898_vm5 = vcmp.lt.f32.partialorder %v14897_v45, 4.0  ;;  %v14987_v16 = vld [vmem:[#allocation54_spill] sm:$0xff] }
 0x538   :  { %5642 = vst [vmem:[#allocation5 + $0x140] sm:$0xff] %v5578_v26  ;;  %vm5470_vm1 = vmpackc.low %vm14884_vm0, %vm14882_vm6  ;;  %v14965_v26 = vld [vmem:[#allocation48_spill] sm:$0xff]  ;;  %v14989_v45 = vld [vmem:[#allocation382_spill] sm:$0xff] }
 0x539   :  { %vm5471_vm14 = vmpackc.even %vm5470_vm1, %vm5469_vm3  ;;  %vm14900_vm3 = vcmp.lt.f32.partialorder %v14899_v49, 4.0  ;;  %vm14901_vm1 = vcmp.lt.f32.partialorder %v10619_v40, 4.0  ;;  %v14913_v40 = vld [vmem:[#allocation232_spill] sm:$0xff] }
 0x53a   :  { %v5579_v54 = vsel %vm5471_vm14, 16843009, %v5898_v47  ;;  %vm5472_vm9 = vmpackc.low %vm14888_vm11, %vm14886_vm10  ;;  %vm14903_vm14 = vcmp.lt.f32.partialorder %v14902_v35, 4.0  ;;  %vm14904_vm11 = vcmp.lt.f32.partialorder %v10659_v4, 4.0  ;;  %v14993_v35 = vld [vmem:[#allocation384_spill] sm:$0xff] }
 0x53b   :  { %5643 = vst [vmem:[#allocation5 + $0x148] sm:$0xff] %v5579_v54  ;;  %vm5473_vm13 = vmpackc.low %vm14892_vm2, %vm14890_vm15  ;;  %v14975_v54 = vld [vmem:[#allocation383_spill] sm:$0xff] }
 0x53c   :  { %vm5474_vm7 = vmpackc.even %vm5473_vm13, %vm5472_vm9  ;;  %vm14906_vm9 = vcmp.lt.f32.partialorder %v14905_v14, 4.0  ;;  %vm14908_vm13 = vcmp.lt.f32.partialorder %v14907_v37, 4.0  ;;  %v14995_v14 = vld [vmem:[#allocation58_spill] sm:$0xff] }
 0x53d   :  { %v5580_v21 = vsel %vm5474_vm7, 16843009, %v5898_v47  ;;  %vm5475_vm12 = vmpackc.low %vm14896_vm4, %vm14894_vm8  ;;  %vm14910_vm7 = vcmp.lt.f32.partialorder %v14909_v46, 4.0  ;;  %vm14912_vm4 = vcmp.lt.f32.partialorder %v14911_v58, 4.0  ;;  %v14999_v46 = vld [vmem:[#allocation49_spill] sm:$0xff]  ;;  %v15001_v58 = vld [vmem:[#allocation238_spill] sm:$0xff] }
 0x53e   :  { %5644 = vst [vmem:[#allocation5 + $0x150] sm:$0xff] %v5580_v21  ;;  %vm5476_vm6 = vmpackc.low %vm14900_vm3, %vm14898_vm5  ;;  %v14983_v21 = vld [vmem:[#allocation237_spill] sm:$0xff] }
 0x53f   :  { %vm5477_vm0 = vmpackc.even %vm5476_vm6, %vm5475_vm12  ;;  %vm14914_vm12 = vcmp.lt.f32.partialorder %v14913_v40, 4.0  ;;  %vm14916_vm6 = vcmp.lt.f32.partialorder %v14915_v36, 4.0  ;;  %v15003_v40 = vld [vmem:[#allocation416_spill] sm:$0xff] }
 0x540   :  { %v5581_v9 = vsel %vm5477_vm0, 16843009, %v5898_v47  ;;  %vm5478_vm10 = vmpackc.low %vm14903_vm14, %vm14901_vm1  ;;  %vm14918_vm0 = vcmp.lt.f32.partialorder %v14917_v6, 4.0  ;;  %vm14920_vm14 = vcmp.lt.f32.partialorder %v14919_v15, 4.0  ;;  %v15007_v6 = vld [vmem:[#allocation391_spill] sm:$0xff]  ;;  %v15009_v15 = vld [vmem:[#allocation385_spill] sm:$0xff] }
 0x541   :  { %5645 = vst [vmem:[#allocation5 + $0x158] sm:$0xff] %v5581_v9  ;;  %vm5479_vm15 = vmpackc.low %vm14906_vm9, %vm14904_vm11  ;;  %v14991_v9 = vld [vmem:[#allocation390_spill] sm:$0xff] }
 0x542   :  { %vm5480_vm2 = vmpackc.even %vm5479_vm15, %vm5478_vm10  ;;  %vm14922_vm10 = vcmp.lt.f32.partialorder %v14921_v38, 4.0  ;;  %vm14924_vm15 = vcmp.lt.f32.partialorder %v14923_v56, 4.0  ;;  %v15011_v38 = vld [vmem:[#allocation59_spill] sm:$0xff] }
 0x543   :  { %v5582_v60 = vsel %vm5480_vm2, 16843009, %v5898_v47  ;;  %vm5481_vm8 = vmpackc.low %vm14910_vm7, %vm14908_vm13  ;;  %vm14926_vm2 = vcmp.lt.f32.partialorder %v14925_v41, 4.0  ;;  %vm14928_vm7 = vcmp.lt.f32.partialorder %v14927_v32, 4.0  ;;  %v15015_v41 = vld [vmem:[#allocation50_spill] sm:$0xff]  ;;  %v15017_v32 = vld [vmem:[#allocation52_spill] sm:$0xff] }
 0x544   :  { %5646 = vst [vmem:[#allocation5 + $0x160] sm:$0xff] %v5582_v60  ;;  %vm5482_vm5 = vmpackc.low %vm14914_vm12, %vm14912_vm4  ;;  %v14997_v60 = vld [vmem:[#allocation410_spill] sm:$0xff] }
 0x545   :  { %vm5483_vm3 = vmpackc.even %vm5482_vm5, %vm5481_vm8  ;;  %vm14930_vm8 = vcmp.lt.f32.partialorder %v14929_v5, 4.0  ;;  %vm14932_vm5 = vcmp.lt.f32.partialorder %v14931_v3, 4.0  ;;  %v15019_v5 = vld [vmem:[#allocation417_spill] sm:$0xff] }
 0x546   :  { %v5583_v4 = vsel %vm5483_vm3, 16843009, %v5898_v47  ;;  %vm5484_vm1 = vmpackc.low %vm14918_vm0, %vm14916_vm6  ;;  %vm14934_vm3 = vcmp.lt.f32.partialorder %v14933_v62, 4.0  ;;  %vm14935_vm0 = vcmp.lt.f32.partialorder %v10739_v55, 4.0  ;;  %v15024_v62 = vld [vmem:[#allocation392_spill] sm:$0xff] }
 0x547   :  { %5647 = vst [vmem:[#allocation5 + $0x168] sm:$0xff] %v5583_v4  ;;  %vm5485_vm11 = vmpackc.low %vm14922_vm10, %vm14920_vm14  ;;  %v15005_v4 = vld [vmem:[#allocation55_spill] sm:$0xff] }
 0x548   :  { %vm5486_vm9 = vmpackc.even %vm5485_vm11, %vm5484_vm1  ;;  %vm14937_vm1 = vcmp.lt.f32.partialorder %v14936_v57, 4.0  ;;  %vm14939_vm11 = vcmp.lt.f32.partialorder %v14938_v17, 4.0  ;;  %v15040_v17 = vld [vmem:[#allocation397_spill] sm:$0xff] }
 0x549   :  { %v5584_v18 = vsel %vm5486_vm9, 16843009, %v5898_v47  ;;  %vm5487_vm13 = vmpackc.low %vm14926_vm2, %vm14924_vm15  ;;  %vm14941_vm9 = vcmp.lt.f32.partialorder %v14940_v63, 4.0  ;;  %vm14942_vm2 = vcmp.lt.f32.partialorder %v10742_v50, 4.0  ;;  %v15045_v63 = vld [vmem:[#allocation418_spill] sm:$0xff] }
 0x54a   :  { %5648 = vst [vmem:[#allocation5 + $0x170] sm:$0xff] %v5584_v18  ;;  %vm5488_vm4 = vmpackc.low %vm14930_vm8, %vm14928_vm7  ;;  %v15013_v18 = vld [vmem:[#allocation411_spill] sm:$0xff] }
 0x54b   :  { %vm5489_vm12 = vmpackc.even %vm5488_vm4, %vm5487_vm13  ;;  %vm14944_vm13 = vcmp.lt.f32.partialorder %v14943_v11, 4.0  ;;  %vm14946_vm4 = vcmp.lt.f32.partialorder %v14945_v33, 4.0 }
 0x54c   :  { %v5585_v27 = vsel %vm5489_vm12, 16843009, %v5898_v47  ;;  %vm5490_vm6 = vmpackc.low %vm14934_vm3, %vm14932_vm5  ;;  %vm14948_vm12 = vcmp.lt.f32.partialorder %v14947_v1, 4.0  ;;  %vm14950_vm3 = vcmp.lt.f32.partialorder %v14949_v29, 4.0 }
 0x54d   :  { %5649 = vst [vmem:[#allocation5 + $0x178] sm:$0xff] %v5585_v27  ;;  %vm5491_vm14 = vmpackc.low %vm14937_vm1, %vm14935_vm0  ;;  %v15021_v27 = vld [vmem:[#allocation239_spill] sm:$0xff] }
 0x54e   :  { %vm5492_vm10 = vmpackc.even %vm5491_vm14, %vm5490_vm6  ;;  %vm14952_vm6 = vcmp.lt.f32.partialorder %v14951_v42, 4.0  ;;  %vm14954_vm14 = vcmp.lt.f32.partialorder %v14953_v24, 4.0 }
 0x54f   :  { %v5586_v13 = vsel %vm5492_vm10, 16843009, %v5898_v47  ;;  %vm5493_vm15 = vmpackc.low %vm14941_vm9, %vm14939_vm11  ;;  %vm14956_vm10 = vcmp.lt.f32.partialorder %v14955_v53, 4.0  ;;  %vm14958_vm9 = vcmp.lt.f32.partialorder %v14957_v2, 4.0 }
 0x550   :  { %5650 = vst [vmem:[#allocation5 + $0x180] sm:$0xff] %v5586_v13  ;;  %vm5494_vm7 = vmpackc.low %vm14944_vm13, %vm14942_vm2  ;;  %v15029_v13 = vld [vmem:[#allocation51_spill] sm:$0xff] }
 0x551   :  { %vm5495_vm8 = vmpackc.even %vm5494_vm7, %vm5493_vm15  ;;  %vm14960_vm15 = vcmp.lt.f32.partialorder %v14959_v10, 4.0  ;;  %vm14961_vm7 = vcmp.lt.f32.partialorder %v10779_v52, 4.0  ;;  %v14973_v52 = vld [vmem:[#allocation404_spill] sm:$0xff] }
 0x552   :  { %v5587_v55 = vsel %vm5495_vm8, 16843009, %v5898_v47  ;;  %vm5496_vm5 = vmpackc.low %vm14948_vm12, %vm14946_vm4  ;;  %vm14963_vm8 = vcmp.lt.f32.partialorder %v14962_v22, 4.0  ;;  %vm14964_vm12 = vcmp.lt.f32.partialorder %v10819_v30, 4.0 }
 0x553   :  { %5651 = vst [vmem:[#allocation5 + $0x188] sm:$0xff] %v5587_v55  ;;  %vm5497_vm0 = vmpackc.low %vm14952_vm6, %vm14950_vm3 }
 0x554   :  { %vm5498_vm1 = vmpackc.even %vm5497_vm0, %vm5496_vm5  ;;  %vm14966_vm5 = vcmp.lt.f32.partialorder %v14965_v26, 4.0  ;;  %vm14968_vm0 = vcmp.lt.f32.partialorder %v14967_v19, 4.0 }
 0x555   :  { %v5588_v50 = vsel %vm5498_vm1, 16843009, %v5898_v47  ;;  %vm5499_vm11 = vmpackc.low %vm14956_vm10, %vm14954_vm14  ;;  %vm14970_vm1 = vcmp.lt.f32.partialorder %v14969_v7, 4.0  ;;  %vm14972_vm10 = vcmp.lt.f32.partialorder %v14971_v0, 4.0 }
 0x556   :  { %5652 = vst [vmem:[#allocation5 + $0x190] sm:$0xff] %v5588_v50  ;;  %vm5500_vm2 = vmpackc.low %vm14960_vm15, %vm14958_vm9 }
 0x557   :  { %vm5501_vm13 = vmpackc.even %vm5500_vm2, %vm5499_vm11  ;;  %vm14974_vm11 = vcmp.lt.f32.partialorder %v14973_v52, 4.0  ;;  %vm14976_vm2 = vcmp.lt.f32.partialorder %v14975_v54, 4.0 }
 0x558   :  { %v5589_v12 = vsel %vm5501_vm13, 16843009, %v5898_v47  ;;  %vm5502_vm4 = vmpackc.low %vm14963_vm8, %vm14961_vm7  ;;  %vm14978_vm13 = vcmp.lt.f32.partialorder %v14977_v20, 4.0  ;;  %vm14980_vm8 = vcmp.lt.f32.partialorder %v14979_v48, 4.0 }
 0x559   :  { %5653 = vst [vmem:[#allocation5 + $0x198] sm:$0xff] %v5589_v12  ;;  %vm5503_vm3 = vmpackc.low %vm14966_vm5, %vm14964_vm12 }
 0x55a   :  { %vm5504_vm6 = vmpackc.even %vm5503_vm3, %vm5502_vm4  ;;  %vm14982_vm4 = vcmp.lt.f32.partialorder %v14981_v25, 4.0  ;;  %vm14984_vm3 = vcmp.lt.f32.partialorder %v14983_v21, 4.0 }
 0x55b   :  { %v5590_v28 = vsel %vm5504_vm6, 16843009, %v5898_v47  ;;  %vm5505_vm14 = vmpackc.low %vm14970_vm1, %vm14968_vm0  ;;  %vm14986_vm6 = vcmp.lt.f32.partialorder %v14985_v23, 4.0  ;;  %vm14988_vm1 = vcmp.lt.f32.partialorder %v14987_v16, 4.0 }
 0x55c   :  { %5654 = vst [vmem:[#allocation5 + $0x1a0] sm:$0xff] %v5590_v28  ;;  %vm5506_vm9 = vmpackc.low %vm14974_vm11, %vm14972_vm10 }
 0x55d   :  { %vm5507_vm15 = vmpackc.even %vm5506_vm9, %vm5505_vm14  ;;  %vm14990_vm14 = vcmp.lt.f32.partialorder %v14989_v45, 4.0  ;;  %vm14992_vm9 = vcmp.lt.f32.partialorder %v14991_v9, 4.0 }
 0x55e   :  { %v5591_v30 = vsel %vm5507_vm15, 16843009, %v5898_v47  ;;  %vm5508_vm7 = vmpackc.low %vm14978_vm13, %vm14976_vm2  ;;  %vm14994_vm15 = vcmp.lt.f32.partialorder %v14993_v35, 4.0  ;;  %vm14996_vm13 = vcmp.lt.f32.partialorder %v14995_v14, 4.0 }
 0x55f   :  { %5655 = vst [vmem:[#allocation5 + $0x1a8] sm:$0xff] %v5591_v30  ;;  %vm5509_vm12 = vmpackc.low %vm14982_vm4, %vm14980_vm8 }
 0x560   :  { %vm5510_vm5 = vmpackc.even %vm5509_vm12, %vm5508_vm7  ;;  %vm14998_vm7 = vcmp.lt.f32.partialorder %v14997_v60, 4.0  ;;  %vm15000_vm12 = vcmp.lt.f32.partialorder %v14999_v46, 4.0 }
 0x561   :  { %v5592_v31 = vsel %vm5510_vm5, 16843009, %v5898_v47  ;;  %vm5511_vm0 = vmpackc.low %vm14986_vm6, %vm14984_vm3  ;;  %vm15002_vm5 = vcmp.lt.f32.partialorder %v15001_v58, 4.0  ;;  %vm15004_vm6 = vcmp.lt.f32.partialorder %v15003_v40, 4.0 }
 0x562   :  { %5656 = vst [vmem:[#allocation5 + $0x1b0] sm:$0xff] %v5592_v31  ;;  %vm5512_vm10 = vmpackc.low %vm14990_vm14, %vm14988_vm1 }
 0x563   :  { %vm5513_vm11 = vmpackc.even %vm5512_vm10, %vm5511_vm0  ;;  %vm15006_vm0 = vcmp.lt.f32.partialorder %v15005_v4, 4.0  ;;  %vm15008_vm10 = vcmp.lt.f32.partialorder %v15007_v6, 4.0 }
 0x564   :  { %v5593_v49 = vsel %vm5513_vm11, 16843009, %v5898_v47  ;;  %vm5514_vm2 = vmpackc.low %vm14994_vm15, %vm14992_vm9  ;;  %vm15010_vm11 = vcmp.lt.f32.partialorder %v15009_v15, 4.0  ;;  %vm15012_vm15 = vcmp.lt.f32.partialorder %v15011_v38, 4.0 }
 0x565   :  { %5657 = vst [vmem:[#allocation5 + $0x1b8] sm:$0xff] %v5593_v49  ;;  %vm5515_vm8 = vmpackc.low %vm14998_vm7, %vm14996_vm13 }
 0x566   :  { %vm5516_vm4 = vmpackc.even %vm5515_vm8, %vm5514_vm2  ;;  %vm15014_vm2 = vcmp.lt.f32.partialorder %v15013_v18, 4.0  ;;  %vm15016_vm8 = vcmp.lt.f32.partialorder %v15015_v41, 4.0 }
 0x567   :  { %v5594_v37 = vsel %vm5516_vm4, 16843009, %v5898_v47  ;;  %vm5517_vm3 = vmpackc.low %vm15002_vm5, %vm15000_vm12  ;;  %vm15018_vm4 = vcmp.lt.f32.partialorder %v15017_v32, 4.0  ;;  %vm15020_vm5 = vcmp.lt.f32.partialorder %v15019_v5, 4.0 }
 0x568   :  { %5658 = vst [vmem:[#allocation5 + $0x1c0] sm:$0xff] %v5594_v37  ;;  %vm5518_vm1 = vmpackc.low %vm15006_vm0, %vm15004_vm6 }
 0x569   :  { %vm5519_vm14 = vmpackc.even %vm5518_vm1, %vm5517_vm3  ;;  %vm15022_vm3 = vcmp.lt.f32.partialorder %v15021_v27, 4.0  ;;  %vm15023_vm1 = vcmp.lt.f32.partialorder %v10941_v43, 4.0 }
 0x56a   :  { %v5595_v36 = vsel %vm5519_vm14, 16843009, %v5898_v47  ;;  %vm5520_vm9 = vmpackc.low %vm15010_vm11, %vm15008_vm10  ;;  %vm15025_vm14 = vcmp.lt.f32.partialorder %v15024_v62, 4.0  ;;  %vm15026_vm11 = vcmp.lt.f32.partialorder %v10976_v61, 4.0  ;;  %v15033_v61 = vld [vmem:[#allocation56_spill] sm:$0xff] }
 0x56b   :  { %5659 = vst [vmem:[#allocation5 + $0x1c8] sm:$0xff] %v5595_v36  ;;  %vm5521_vm13 = vmpackc.low %vm15014_vm2, %vm15012_vm15 }
 0x56c   :  { %vm5522_vm7 = vmpackc.even %vm5521_vm13, %vm5520_vm9  ;;  %vm15027_vm9 = vcmp.lt.f32.partialorder %v10932_v34, 4.0  ;;  %vm15028_vm13 = vcmp.lt.f32.partialorder %v10944_v59, 4.0  ;;  %v15035_v34 = vld [vmem:[#allocation393_spill] sm:$0xff]  ;;  %v15038_v59 = vld [vmem:[#allocation60_spill] sm:$0xff] }
 0x56d   :  { %v5596_v56 = vsel %vm5522_vm7, 16843009, %v5898_v47  ;;  %vm5523_vm12 = vmpackc.low %vm15018_vm4, %vm15016_vm8  ;;  %vm15030_vm7 = vcmp.lt.f32.partialorder %v15029_v13, 4.0  ;;  %vm15031_vm4 = vcmp.lt.f32.partialorder %v10978_v8, 4.0 }
 0x56e   :  { %5660 = vst [vmem:[#allocation5 + $0x1d0] sm:$0xff] %v5596_v56  ;;  %vm5524_vm6 = vmpackc.low %vm15022_vm3, %vm15020_vm5 }
 0x56f   :  { %vm5525_vm0 = vmpackc.even %vm5524_vm6, %vm5523_vm12  ;;  %vm15032_vm12 = vcmp.lt.f32.partialorder %v10934_v39, 4.0  ;;  %vm15034_vm6 = vcmp.lt.f32.partialorder %v15033_v61, 4.0  ;;  %v15042_v39 = vld [vmem:[#allocation57_spill] sm:$0xff] }
 0x570   :  { %v5597_v3 = vsel %vm5525_vm0, 16843009, %v5898_v47  ;;  %vm5526_vm10 = vmpackc.low %vm15025_vm14, %vm15023_vm1  ;;  %vm15036_vm0 = vcmp.lt.f32.partialorder %v15035_v34, 4.0  ;;  %vm15037_vm14 = vcmp.lt.f32.partialorder %v10980_v51, 4.0 }
 0x571   :  { %5661 = vst [vmem:[#allocation5 + $0x1d8] sm:$0xff] %v5597_v3  ;;  %vm5527_vm15 = vmpackc.low %vm15027_vm9, %vm15026_vm11 }
 0x572   :  { %vm5528_vm2 = vmpackc.even %vm5527_vm15, %vm5526_vm10  ;;  %vm15039_vm10 = vcmp.lt.f32.partialorder %v15038_v59, 4.0  ;;  %vm15041_vm15 = vcmp.lt.f32.partialorder %v15040_v17, 4.0 }
 0x573   :  { %v5598_v57 = vsel %vm5528_vm2, 16843009, %v5898_v47  ;;  %vm5529_vm8 = vmpackc.low %vm15030_vm7, %vm15028_vm13  ;;  %vm15043_vm2 = vcmp.lt.f32.partialorder %v15042_v39, 4.0  ;;  %vm15044_vm7 = vcmp.lt.f32.partialorder %v10982_v44, 4.0 }
 0x574   :  { %5662 = vst [vmem:[#allocation5 + $0x1e0] sm:$0xff] %v5598_v57  ;;  %vm5530_vm5 = vmpackc.low %vm15032_vm12, %vm15031_vm4 }
 0x575   :  { %vm5531_vm3 = vmpackc.even %vm5530_vm5, %vm5529_vm8  ;;  %vm15046_vm8 = vcmp.lt.f32.partialorder %v15045_v63, 4.0 }
 0x576   :  { %v5599_v43 = vsel %vm5531_vm3, 16843009, %v5898_v47  ;;  %vm5532_vm1 = vmpackc.low %vm15036_vm0, %vm15034_vm6 }
 0x577   :  { %5663 = vst [vmem:[#allocation5 + $0x1e8] sm:$0xff] %v5599_v43  ;;  %vm5533_vm11 = vmpackc.low %vm15039_vm10, %vm15037_vm14 }
 0x578   :  { %vm5534_vm9 = vmpackc.even %vm5533_vm11, %vm5532_vm1 }
 0x579   :  { %v5600_v8 = vsel %vm5534_vm9, 16843009, %v5898_v47  ;;  %vm5535_vm13 = vmpackc.low %vm15043_vm2, %vm15041_vm15 }
 0x57a   :  { %5664 = vst [vmem:[#allocation5 + $0x1f0] sm:$0xff] %v5600_v8  ;;  %vm5536_vm4 = vmpackc.low %vm15046_vm8, %vm15044_vm7 }
 0x57b   :  { %vm5537_vm12 = vmpackc.even %vm5536_vm4, %vm5535_vm13 }
 0x57c   :  { %v5601_v51 = vsel %vm5537_vm12, 16843009, %v5898_v47 }
 0x57d   :  { %5665 = vst [vmem:[#allocation5 + $0x1f8] sm:$0xff] %v5601_v51 }
 0x57e PF:  { %s5899_s0 = smov [#allocation5]  }
 0x57f   :  { %s5671_s1 = sshll.u32 %s5899_s0, 4  ;;  %s5672_s1 = int_to_ptr.vmem [resolvable:$true] %s5671_s1 }
 0x580   :  { %s5869_s9 = scalar_lea.vmem %s5672_s1, 8192  ;;  %p5874_p5 = scmp.lt.s32.totalorder %s5672_s1, %s5672_s1 }
 0x581   :  { %p5870_p4 = scmp.ne.s32.totalorder %s5672_s1, %s5869_s9  ;;  %p5875_p6 = scmp.lt.s32.totalorder %s5869_s9, %s5869_s9 }
 0x583   :  { %p5876_p7 = por %p5875_p6, %p5874_p5 }
 0x585   :  { %p5877_p8 = pnand %p5876_p7, %p5870_p4 }
 0x587   :  { %5880 = shalt.err (!%p5877_p8)
}
 0x588   :  { %s5881_s12 = scalar_lea.hbm %s12308_s4, 8192 }
 0x589   :  { %p5882_p9 = scmp.ne.s32.totalorder %s12308_s4, %s5881_s12  ;;  %p5885_p10 = scmp.lt.u32.totalorder %s5881_s12, %s12308_s4 }
 0x58b   :  { %p5887_p11 = pnand %p5885_p10, %p5882_p9 }
 0x58d   :  { %5890 = shalt.err (!%p5887_p11)
}
 0x58e   :  { %s5900_s17 = smov 512   ;;  %s5901_s18 = smov 32  }
 0x58f   :  { %5677 = dma.vmem_to_hbm [thread:$0]  %s5672_s1, 8192, %s12308_s4, [#allocation6], %s5900_s17, %s5900_s17, %s5901_s18  }
 0x590   :  { %5891 = dma.done.wait [#allocation6], 8192  }
 0x591   :  { %5892 = vsyncadd [#allocation6], 4294959104 }
 0x592   :  { %5681 = vsyncpa [#allocation6], 1 }

</bundles_post_ra>
